<compile_context>
chip_gen: v7x
topology: tpu7x:2x2x1
jax: 0.10.0
libtpu: 0.0.40
codegen_flags: <defaults>
</compile_context>

<pallas_src>
from functools import partial

import jax
import jax.numpy as jnp
from jax.experimental import pallas as pl
from jax.experimental.pallas import tpu as pltpu

NEG_SLOPE = 0.2
BN_EPS = 1e-5


def _leaky(y):
    return jnp.where(y >= 0, y, NEG_SLOPE * y)


# ---------------------------------------------------------------------------
# Pallas kernels
# ---------------------------------------------------------------------------
def _conv_leaky_kernel(p_ref, w_ref, o_ref):
    y = jnp.dot(p_ref[...], w_ref[...], preferred_element_type=jnp.float32)
    o_ref[...] = _leaky(y).astype(o_ref.dtype)


def conv_leaky(patches, w, tm=512):
    """Layer 1: (M,K)@(K,N) GEMM + LeakyReLU, small M-grid, bf16 in/out."""
    M, K = patches.shape
    _, N = w.shape
    if M % tm != 0:
        tm = M
    return pl.pallas_call(
        _conv_leaky_kernel,
        out_shape=jax.ShapeDtypeStruct((M, N), jnp.bfloat16),
        grid=(M // tm,),
        in_specs=[
            pl.BlockSpec((tm, K), lambda i: (i, 0)),
            pl.BlockSpec((K, N), lambda i: (0, 0)),
        ],
        out_specs=pl.BlockSpec((tm, N), lambda i: (i, 0)),
        compiler_params=pltpu.CompilerParams(
            dimension_semantics=("parallel",)),
    )(patches, w)


def _conv_bn_leaky_kernel(p_ref, w_ref, g_ref, b_ref, o_ref):
    # Whole-M GEMM (f32 accumulation) + BatchNorm batch statistics + LeakyReLU
    y = jnp.dot(p_ref[...], w_ref[...], preferred_element_type=jnp.float32)
    m = y.shape[0]
    mean = jnp.sum(y, axis=0, keepdims=True) * (1.0 / m)
    var = jnp.sum(y * y, axis=0, keepdims=True) * (1.0 / m) - mean * mean
    scale = g_ref[...] * jax.lax.rsqrt(var + BN_EPS)
    shift = b_ref[...] - mean * scale
    o_ref[...] = _leaky(y * scale + shift).astype(o_ref.dtype)


def conv_bn_leaky(patches, w, gamma, beta):
    """Layers 2-3: fused conv-GEMM + BN(training stats) + LeakyReLU, no grid
    (whole operands live in VMEM)."""
    M, K = patches.shape
    _, N = w.shape
    return pl.pallas_call(
        _conv_bn_leaky_kernel,
        out_shape=jax.ShapeDtypeStruct((M, N), jnp.bfloat16),
    )(patches, w, gamma.reshape(1, N), beta.reshape(1, N))


def _conv_bn_leaky_head_kernel(p_ref, w_ref, g_ref, b_ref, w5_ref, o_ref,
                               *, batch, spatial):
    y = jnp.dot(p_ref[...], w_ref[...], preferred_element_type=jnp.float32)
    m = y.shape[0]
    mean = jnp.sum(y, axis=0, keepdims=True) * (1.0 / m)
    var = jnp.sum(y * y, axis=0, keepdims=True) * (1.0 / m) - mean * mean
    scale = g_ref[...] * jax.lax.rsqrt(var + BN_EPS)
    shift = b_ref[...] - mean * scale
    a = _leaky(y * scale + shift)                       # (batch*spatial, C) f32
    # Fused layer 5: 4x4 "valid" conv over the whole 4x4 map == dot with w5.
    a3 = a.reshape(batch, spatial, a.shape[-1])         # (B, 16, 512)
    prod = a3 * w5_ref[...]                             # broadcast (16, 512)
    logits = jnp.sum(jnp.sum(prod, axis=2), axis=1, keepdims=True)  # (B, 1)
    o_ref[...] = jax.nn.sigmoid(logits)


def conv_bn_leaky_sigmoid_head(patches, w, gamma, beta, w5_2d, batch):
    """Layer 4 (conv+BN+LeakyReLU) fused with layer 5 (conv 512->1) + Sigmoid."""
    M, K = patches.shape
    _, N = w.shape
    spatial = M // batch
    return pl.pallas_call(
        partial(_conv_bn_leaky_head_kernel, batch=batch, spatial=spatial),
        out_shape=jax.ShapeDtypeStruct((batch, 1), jnp.float32),
    )(patches, w, gamma.reshape(1, N), beta.reshape(1, N), w5_2d)


# ---------------------------------------------------------------------------
# Plain-JAX glue: im2col, weight layout, parameter setup, network wiring
# ---------------------------------------------------------------------------
def im2col(x_nhwc, k, stride, pad):
    B, H, W, C = x_nhwc.shape
    xp = jnp.pad(x_nhwc, ((0, 0), (pad, pad), (pad, pad), (0, 0)))
    Ho = (H + 2 * pad - k) // stride + 1
    Wo = (W + 2 * pad - k) // stride + 1
    cols = []
    for di in range(k):
        for dj in range(k):
            cols.append(xp[:, di:di + stride * Ho:stride,
                           dj:dj + stride * Wo:stride, :])
    patches = jnp.stack(cols, axis=3)            # (B, Ho, Wo, k*k, C)
    return patches.reshape(B * Ho * Wo, k * k * C), B, Ho, Wo


def w_to_gemm(w_oihw):
    """OIHW -> (kh*kw*Cin, Cout) in bf16, row order matching im2col columns."""
    Cout, Cin, kh, kw = w_oihw.shape
    return (jnp.transpose(w_oihw, (2, 3, 1, 0))
            .reshape(kh * kw * Cin, Cout).astype(jnp.bfloat16))


def init_params(key):
    ks = jax.random.split(key, 5)
    p = {
        "w1": 0.02 * jax.random.normal(ks[0], (64, 3, 4, 4), jnp.float32),
        "w2": 0.02 * jax.random.normal(ks[1], (128, 64, 4, 4), jnp.float32),
        "w3": 0.02 * jax.random.normal(ks[2], (256, 128, 4, 4), jnp.float32),
        "w4": 0.02 * jax.random.normal(ks[3], (512, 256, 4, 4), jnp.float32),
        "w5": 0.02 * jax.random.normal(ks[4], (1, 512, 4, 4), jnp.float32),
    }
    for idx, c in ((2, 128), (3, 256), (4, 512)):
        p[f"g{idx}"] = jnp.ones((c,), jnp.float32)   # BatchNorm2d default gamma
        p[f"b{idx}"] = jnp.zeros((c,), jnp.float32)  # BatchNorm2d default beta
    return p


@jax.jit
def d_forward(x_nchw, params):
    x = jnp.transpose(x_nchw, (0, 2, 3, 1)).astype(jnp.bfloat16)   # NCHW->NHWC

    # layer 1: Conv(3->64, 4, 2, 1) + LeakyReLU (no BN)
    p, B, H, W = im2col(x, 4, 2, 1)
    y = conv_leaky(p, w_to_gemm(params["w1"]))
    x = y.reshape(B, H, W, 64)

    # layers 2-3: Conv + BatchNorm(batch stats) + LeakyReLU, fully fused
    for idx, cout in ((2, 128), (3, 256)):
        p, B, H, W = im2col(x, 4, 2, 1)
        y = conv_bn_leaky(p, w_to_gemm(params[f"w{idx}"]),
                          params[f"g{idx}"], params[f"b{idx}"])
        x = y.reshape(B, H, W, cout)

    # layer 4 (Conv+BN+LeakyReLU) fused with layer 5 (Conv 512->1, 4,1,0)+Sigmoid
    p, B, Ho, Wo = im2col(x, 4, 2, 1)
    assert Ho == 4 and Wo == 4, "DCGAN D expects 64x64 inputs"
    w5_2d = jnp.transpose(params["w5"][0], (1, 2, 0)).reshape(Ho * Wo, 512)
    out = conv_bn_leaky_sigmoid_head(p, w_to_gemm(params["w4"]),
                                     params["g4"], params["b4"],
                                     w5_2d, batch=B)
    return out.reshape(-1)


if __name__ == "__main__":
    key = jax.random.PRNGKey(0)
    kx, kp = jax.random.split(key)
    # DCGAN D requires 64x64 inputs (final 4x4 valid conv on a 4x4 map).
    x = jax.random.normal(kx, (2, 3, 64, 64), jnp.float32)
    params = init_params(kp)
    out = d_forward(x, params)
    jax.block_until_ready(out)
    assert out.shape == (2,) and out.dtype == jnp.float32
    assert bool(jnp.all((out >= 0) & (out <= 1)))
    print("KERNEL_OK")
</pallas_src>

<mosaic_0001>
module attributes {stable_mosaic.version = 11 : i64} {
  func.func @_conv_leaky_kernel(%arg0: i32, %arg1: memref<512x48xbf16, #tpu.memory_space<vmem>>, %arg2: memref<48x64xbf16, #tpu.memory_space<vmem>>, %arg3: memref<512x64xbf16, #tpu.memory_space<vmem>>) attributes {dimension_semantics = [#tpu.dimension_semantics<parallel>], iteration_bounds = array<i64: 4>, scalar_prefetch = 0 : i64, scratch_operands = 0 : i64, tpu.core_type = #tpu.core_type<tc>, window_params = [{transform_indices = @transform_0, window_bounds = array<i64: 512, 48>}, {pipeline_mode = #tpu.pipeline_mode<synchronous>, transform_indices = @transform_1, window_bounds = array<i64: 48, 64>}, {transform_indices = @transform_2, window_bounds = array<i64: 512, 64>}]} {
    %c0 = arith.constant 0 : index
    %c0_0 = arith.constant 0 : index
    %0 = vector.load %arg1[%c0, %c0_0] : memref<512x48xbf16, #tpu.memory_space<vmem>>, vector<512x48xbf16>
    %c0_1 = arith.constant 0 : index
    %c0_2 = arith.constant 0 : index
    %1 = vector.load %arg2[%c0_1, %c0_2] : memref<48x64xbf16, #tpu.memory_space<vmem>>, vector<48x64xbf16>
    %cst = arith.constant dense<0.000000e+00> : vector<512x64xf32>
    %2 = tpu.matmul %0, %1, %cst {dimension_numbers = #tpu.dot_dimension_numbers<[1], [0], [0], [1], [0, 0, 1, 1], [], []>} : vector<512x48xbf16>, vector<48x64xbf16>, vector<512x64xf32> -> vector<512x64xf32>
    %cst_3 = arith.constant 0.000000e+00 : f32
    %3 = vector.broadcast %cst_3 : f32 to vector<512x64xf32>
    %4 = arith.cmpf oge, %2, %3 : vector<512x64xf32>
    %cst_4 = arith.constant 2.000000e-01 : f32
    %5 = vector.broadcast %cst_4 : f32 to vector<512x64xf32>
    %6 = arith.mulf %5, %2 : vector<512x64xf32>
    %7 = arith.select %4, %2, %6 : vector<512x64xi1>, vector<512x64xf32>
    %8 = arith.truncf %7 : vector<512x64xf32> to vector<512x64xbf16>
    %c0_5 = arith.constant 0 : index
    %c0_6 = arith.constant 0 : index
    %9 = vector.load %arg3[%c0_5, %c0_6] : memref<512x64xbf16, #tpu.memory_space<vmem>>, vector<512x64xbf16>
    tpu.vector_store %arg3[%c0_5, %c0_6], %8 {strides = array<i32>} : memref<512x64xbf16, #tpu.memory_space<vmem>>, vector<512x64xbf16>,
    return
  }
  func.func @transform_0(%arg0: i32) -> (i32, i32) {
    %c0_i32 = arith.constant 0 : i32
    %c0_i32_0 = arith.constant 0 : i32
    return %arg0, %c0_i32 : i32, i32
  }
  func.func @transform_1(%arg0: i32) -> (i32, i32) {
    %c0_i32 = arith.constant 0 : i32
    %c0_i32_0 = arith.constant 0 : i32
    %c0_i32_1 = arith.constant 0 : i32
    return %c0_i32, %c0_i32_0 : i32, i32
  }
  func.func @transform_2(%arg0: i32) -> (i32, i32) {
    %c0_i32 = arith.constant 0 : i32
    %c0_i32_0 = arith.constant 0 : i32
    return %arg0, %c0_i32 : i32, i32
  }
}

module attributes {stable_mosaic.version = 11 : i64} {
  func.func @_conv_bn_leaky_kernel(%arg0: memref<512x1024xbf16, #tpu.memory_space<vmem>>, %arg1: memref<1024x128xbf16, #tpu.memory_space<vmem>>, %arg2: memref<1x128xf32, #tpu.memory_space<vmem>>, %arg3: memref<1x128xf32, #tpu.memory_space<vmem>>, %arg4: memref<512x128xbf16, #tpu.memory_space<vmem>>) attributes {dimension_semantics = [], scalar_prefetch = 0 : i64, scratch_operands = 0 : i64, tpu.core_type = #tpu.core_type<tc>} {
    %c0 = arith.constant 0 : index
    %c0_0 = arith.constant 0 : index
    %0 = vector.load %arg0[%c0, %c0_0] : memref<512x1024xbf16, #tpu.memory_space<vmem>>, vector<512x1024xbf16>
    %c0_1 = arith.constant 0 : index
    %c0_2 = arith.constant 0 : index
    %1 = vector.load %arg1[%c0_1, %c0_2] : memref<1024x128xbf16, #tpu.memory_space<vmem>>, vector<1024x128xbf16>
    %cst = arith.constant dense<0.000000e+00> : vector<512x128xf32>
    %2 = tpu.matmul %0, %1, %cst {dimension_numbers = #tpu.dot_dimension_numbers<[1], [0], [0], [1], [0, 0, 1, 1], [], []>} : vector<512x1024xbf16>, vector<1024x128xbf16>, vector<512x128xf32> -> vector<512x128xf32>
    %cst_3 = arith.constant dense<0.000000e+00> : vector<128xf32>
    %3 = vector.multi_reduction <add>, %2, %cst_3 [0] : vector<512x128xf32> to vector<128xf32>
    %4 = vector.shape_cast %3 : vector<128xf32> to vector<1x128xf32>
    %cst_4 = arith.constant 0.001953125 : f32
    %5 = vector.broadcast %cst_4 : f32 to vector<1x128xf32>
    %6 = arith.mulf %4, %5 : vector<1x128xf32>
    %7 = arith.mulf %2, %2 : vector<512x128xf32>
    %cst_5 = arith.constant dense<0.000000e+00> : vector<128xf32>
    %8 = vector.multi_reduction <add>, %7, %cst_5 [0] : vector<512x128xf32> to vector<128xf32>
    %9 = vector.shape_cast %8 : vector<128xf32> to vector<1x128xf32>
    %cst_6 = arith.constant 0.001953125 : f32
    %10 = vector.broadcast %cst_6 : f32 to vector<1x128xf32>
    %11 = arith.mulf %9, %10 : vector<1x128xf32>
    %12 = arith.mulf %6, %6 : vector<1x128xf32>
    %13 = arith.subf %11, %12 : vector<1x128xf32>
    %c0_7 = arith.constant 0 : index
    %c0_8 = arith.constant 0 : index
    %14 = vector.load %arg2[%c0_7, %c0_8] : memref<1x128xf32, #tpu.memory_space<vmem>>, vector<1x128xf32>
    %cst_9 = arith.constant 9.99999974E-6 : f32
    %15 = vector.broadcast %cst_9 : f32 to vector<1x128xf32>
    %16 = arith.addf %13, %15 : vector<1x128xf32>
    %17 = math.rsqrt %16 : vector<1x128xf32>
    %18 = arith.mulf %14, %17 : vector<1x128xf32>
    %c0_10 = arith.constant 0 : index
    %c0_11 = arith.constant 0 : index
    %19 = vector.load %arg3[%c0_10, %c0_11] : memref<1x128xf32, #tpu.memory_space<vmem>>, vector<1x128xf32>
    %20 = arith.mulf %6, %18 : vector<1x128xf32>
    %21 = arith.subf %19, %20 : vector<1x128xf32>
    %22 = vector.broadcast %18 : vector<1x128xf32> to vector<512x128xf32>
    %23 = arith.mulf %2, %22 : vector<512x128xf32>
    %24 = vector.broadcast %21 : vector<1x128xf32> to vector<512x128xf32>
    %25 = arith.addf %23, %24 : vector<512x128xf32>
    %cst_12 = arith.constant 0.000000e+00 : f32
    %26 = vector.broadcast %cst_12 : f32 to vector<512x128xf32>
    %27 = arith.cmpf oge, %25, %26 : vector<512x128xf32>
    %cst_13 = arith.constant 2.000000e-01 : f32
    %28 = vector.broadcast %cst_13 : f32 to vector<512x128xf32>
    %29 = arith.mulf %28, %25 : vector<512x128xf32>
    %30 = arith.select %27, %25, %29 : vector<512x128xi1>, vector<512x128xf32>
    %31 = arith.truncf %30 : vector<512x128xf32> to vector<512x128xbf16>
    %c0_14 = arith.constant 0 : index
    %c0_15 = arith.constant 0 : index
    %32 = vector.load %arg4[%c0_14, %c0_15] : memref<512x128xbf16, #tpu.memory_space<vmem>>, vector<512x128xbf16>
    tpu.vector_store %arg4[%c0_14, %c0_15], %31 {strides = array<i32>} : memref<512x128xbf16, #tpu.memory_space<vmem>>, vector<512x128xbf16>,
    return
  }
}

module attributes {stable_mosaic.version = 11 : i64} {
  func.func @_conv_bn_leaky_kernel(%arg0: memref<128x2048xbf16, #tpu.memory_space<vmem>>, %arg1: memref<2048x256xbf16, #tpu.memory_space<vmem>>, %arg2: memref<1x256xf32, #tpu.memory_space<vmem>>, %arg3: memref<1x256xf32, #tpu.memory_space<vmem>>, %arg4: memref<128x256xbf16, #tpu.memory_space<vmem>>) attributes {dimension_semantics = [], scalar_prefetch = 0 : i64, scratch_operands = 0 : i64, tpu.core_type = #tpu.core_type<tc>} {
    %c0 = arith.constant 0 : index
    %c0_0 = arith.constant 0 : index
    %0 = vector.load %arg0[%c0, %c0_0] : memref<128x2048xbf16, #tpu.memory_space<vmem>>, vector<128x2048xbf16>
    %c0_1 = arith.constant 0 : index
    %c0_2 = arith.constant 0 : index
    %1 = vector.load %arg1[%c0_1, %c0_2] : memref<2048x256xbf16, #tpu.memory_space<vmem>>, vector<2048x256xbf16>
    %cst = arith.constant dense<0.000000e+00> : vector<128x256xf32>
    %2 = tpu.matmul %0, %1, %cst {dimension_numbers = #tpu.dot_dimension_numbers<[1], [0], [0], [1], [0, 0, 1, 1], [], []>} : vector<128x2048xbf16>, vector<2048x256xbf16>, vector<128x256xf32> -> vector<128x256xf32>
    %cst_3 = arith.constant dense<0.000000e+00> : vector<256xf32>
    %3 = vector.multi_reduction <add>, %2, %cst_3 [0] : vector<128x256xf32> to vector<256xf32>
    %4 = vector.shape_cast %3 : vector<256xf32> to vector<1x256xf32>
    %cst_4 = arith.constant 7.812500e-03 : f32
    %5 = vector.broadcast %cst_4 : f32 to vector<1x256xf32>
    %6 = arith.mulf %4, %5 : vector<1x256xf32>
    %7 = arith.mulf %2, %2 : vector<128x256xf32>
    %cst_5 = arith.constant dense<0.000000e+00> : vector<256xf32>
    %8 = vector.multi_reduction <add>, %7, %cst_5 [0] : vector<128x256xf32> to vector<256xf32>
    %9 = vector.shape_cast %8 : vector<256xf32> to vector<1x256xf32>
    %cst_6 = arith.constant 7.812500e-03 : f32
    %10 = vector.broadcast %cst_6 : f32 to vector<1x256xf32>
    %11 = arith.mulf %9, %10 : vector<1x256xf32>
    %12 = arith.mulf %6, %6 : vector<1x256xf32>
    %13 = arith.subf %11, %12 : vector<1x256xf32>
    %c0_7 = arith.constant 0 : index
    %c0_8 = arith.constant 0 : index
    %14 = vector.load %arg2[%c0_7, %c0_8] : memref<1x256xf32, #tpu.memory_space<vmem>>, vector<1x256xf32>
    %cst_9 = arith.constant 9.99999974E-6 : f32
    %15 = vector.broadcast %cst_9 : f32 to vector<1x256xf32>
    %16 = arith.addf %13, %15 : vector<1x256xf32>
    %17 = math.rsqrt %16 : vector<1x256xf32>
    %18 = arith.mulf %14, %17 : vector<1x256xf32>
    %c0_10 = arith.constant 0 : index
    %c0_11 = arith.constant 0 : index
    %19 = vector.load %arg3[%c0_10, %c0_11] : memref<1x256xf32, #tpu.memory_space<vmem>>, vector<1x256xf32>
    %20 = arith.mulf %6, %18 : vector<1x256xf32>
    %21 = arith.subf %19, %20 : vector<1x256xf32>
    %22 = vector.broadcast %18 : vector<1x256xf32> to vector<128x256xf32>
    %23 = arith.mulf %2, %22 : vector<128x256xf32>
    %24 = vector.broadcast %21 : vector<1x256xf32> to vector<128x256xf32>
    %25 = arith.addf %23, %24 : vector<128x256xf32>
    %cst_12 = arith.constant 0.000000e+00 : f32
    %26 = vector.broadcast %cst_12 : f32 to vector<128x256xf32>
    %27 = arith.cmpf oge, %25, %26 : vector<128x256xf32>
    %cst_13 = arith.constant 2.000000e-01 : f32
    %28 = vector.broadcast %cst_13 : f32 to vector<128x256xf32>
    %29 = arith.mulf %28, %25 : vector<128x256xf32>
    %30 = arith.select %27, %25, %29 : vector<128x256xi1>, vector<128x256xf32>
    %31 = arith.truncf %30 : vector<128x256xf32> to vector<128x256xbf16>
    %c0_14 = arith.constant 0 : index
    %c0_15 = arith.constant 0 : index
    %32 = vector.load %arg4[%c0_14, %c0_15] : memref<128x256xbf16, #tpu.memory_space<vmem>>, vector<128x256xbf16>
    tpu.vector_store %arg4[%c0_14, %c0_15], %31 {strides = array<i32>} : memref<128x256xbf16, #tpu.memory_space<vmem>>, vector<128x256xbf16>,
    return
  }
}

module attributes {stable_mosaic.version = 11 : i64} {
  func.func @_conv_bn_leaky_head_kernel(%arg0: memref<32x4096xbf16, #tpu.memory_space<vmem>>, %arg1: memref<4096x512xbf16, #tpu.memory_space<vmem>>, %arg2: memref<1x512xf32, #tpu.memory_space<vmem>>, %arg3: memref<1x512xf32, #tpu.memory_space<vmem>>, %arg4: memref<16x512xf32, #tpu.memory_space<vmem>>, %arg5: memref<2x1xf32, #tpu.memory_space<vmem>>) attributes {dimension_semantics = [], scalar_prefetch = 0 : i64, scratch_operands = 0 : i64, tpu.core_type = #tpu.core_type<tc>} {
    %c0 = arith.constant 0 : index
    %c0_0 = arith.constant 0 : index
    %0 = vector.load %arg0[%c0, %c0_0] : memref<32x4096xbf16, #tpu.memory_space<vmem>>, vector<32x4096xbf16>
    %c0_1 = arith.constant 0 : index
    %c0_2 = arith.constant 0 : index
    %1 = vector.load %arg1[%c0_1, %c0_2] : memref<4096x512xbf16, #tpu.memory_space<vmem>>, vector<4096x512xbf16>
    %cst = arith.constant dense<0.000000e+00> : vector<32x512xf32>
    %2 = tpu.matmul %0, %1, %cst {dimension_numbers = #tpu.dot_dimension_numbers<[1], [0], [0], [1], [0, 0, 1, 1], [], []>} : vector<32x4096xbf16>, vector<4096x512xbf16>, vector<32x512xf32> -> vector<32x512xf32>
    %cst_3 = arith.constant dense<0.000000e+00> : vector<512xf32>
    %3 = vector.multi_reduction <add>, %2, %cst_3 [0] : vector<32x512xf32> to vector<512xf32>
    %4 = vector.shape_cast %3 : vector<512xf32> to vector<1x512xf32>
    %cst_4 = arith.constant 3.125000e-02 : f32
    %5 = vector.broadcast %cst_4 : f32 to vector<1x512xf32>
    %6 = arith.mulf %4, %5 : vector<1x512xf32>
    %7 = arith.mulf %2, %2 : vector<32x512xf32>
    %cst_5 = arith.constant dense<0.000000e+00> : vector<512xf32>
    %8 = vector.multi_reduction <add>, %7, %cst_5 [0] : vector<32x512xf32> to vector<512xf32>
    %9 = vector.shape_cast %8 : vector<512xf32> to vector<1x512xf32>
    %cst_6 = arith.constant 3.125000e-02 : f32
    %10 = vector.broadcast %cst_6 : f32 to vector<1x512xf32>
    %11 = arith.mulf %9, %10 : vector<1x512xf32>
    %12 = arith.mulf %6, %6 : vector<1x512xf32>
    %13 = arith.subf %11, %12 : vector<1x512xf32>
    %c0_7 = arith.constant 0 : index
    %c0_8 = arith.constant 0 : index
    %14 = vector.load %arg2[%c0_7, %c0_8] : memref<1x512xf32, #tpu.memory_space<vmem>>, vector<1x512xf32>
    %cst_9 = arith.constant 9.99999974E-6 : f32
    %15 = vector.broadcast %cst_9 : f32 to vector<1x512xf32>
    %16 = arith.addf %13, %15 : vector<1x512xf32>
    %17 = math.rsqrt %16 : vector<1x512xf32>
    %18 = arith.mulf %14, %17 : vector<1x512xf32>
    %c0_10 = arith.constant 0 : index
    %c0_11 = arith.constant 0 : index
    %19 = vector.load %arg3[%c0_10, %c0_11] : memref<1x512xf32, #tpu.memory_space<vmem>>, vector<1x512xf32>
    %20 = arith.mulf %6, %18 : vector<1x512xf32>
    %21 = arith.subf %19, %20 : vector<1x512xf32>
    %22 = vector.broadcast %18 : vector<1x512xf32> to vector<32x512xf32>
    %23 = arith.mulf %2, %22 : vector<32x512xf32>
    %24 = vector.broadcast %21 : vector<1x512xf32> to vector<32x512xf32>
    %25 = arith.addf %23, %24 : vector<32x512xf32>
    %cst_12 = arith.constant 0.000000e+00 : f32
    %26 = vector.broadcast %cst_12 : f32 to vector<32x512xf32>
    %27 = arith.cmpf oge, %25, %26 : vector<32x512xf32>
    %cst_13 = arith.constant 2.000000e-01 : f32
    %28 = vector.broadcast %cst_13 : f32 to vector<32x512xf32>
    %29 = arith.mulf %28, %25 : vector<32x512xf32>
    %30 = arith.select %27, %25, %29 : vector<32x512xi1>, vector<32x512xf32>
    %31 = vector.shape_cast %30 : vector<32x512xf32> to vector<2x16x512xf32>
    %c0_14 = arith.constant 0 : index
    %c0_15 = arith.constant 0 : index
    %32 = vector.load %arg4[%c0_14, %c0_15] : memref<16x512xf32, #tpu.memory_space<vmem>>, vector<16x512xf32>
    %33 = vector.shape_cast %32 : vector<16x512xf32> to vector<1x16x512xf32>
    %34 = vector.broadcast %33 : vector<1x16x512xf32> to vector<2x16x512xf32>
    %35 = arith.mulf %31, %34 : vector<2x16x512xf32>
    %cst_16 = arith.constant dense<0.000000e+00> : vector<2x16xf32>
    %36 = vector.multi_reduction <add>, %35, %cst_16 [2] : vector<2x16x512xf32> to vector<2x16xf32>
    %cst_17 = arith.constant dense<0.000000e+00> : vector<2xf32>
    %37 = vector.multi_reduction <add>, %36, %cst_17 [1] : vector<2x16xf32> to vector<2xf32>
    %38 = vector.shape_cast %37 : vector<2xf32> to vector<2x1xf32>
    %39 = arith.negf %38 : vector<2x1xf32>
    %40 = math.exp %39 : vector<2x1xf32>
    %cst_18 = arith.constant 1.000000e+00 : f32
    %41 = vector.broadcast %cst_18 : f32 to vector<2x1xf32>
    %42 = arith.addf %41, %40 : vector<2x1xf32>
    %43 = arith.divf %41, %42 : vector<2x1xf32>
    %c0_19 = arith.constant 0 : index
    %c0_20 = arith.constant 0 : index
    %44 = vector.load %arg5[%c0_19, %c0_20] : memref<2x1xf32, #tpu.memory_space<vmem>>, vector<2x1xf32>
    tpu.vector_store %arg5[%c0_19, %c0_20], %43 {strides = array<i32>} : memref<2x1xf32, #tpu.memory_space<vmem>>, vector<2x1xf32>,
    return
  }
}

</mosaic_0001>

<bundles_post_ra>
// kernel: d_forward.4
= control target key start
LH: loop header
LB: loop body
LE: loop exit
PB: predicated region body
PF: predicated region fallthrough
CT: control target
= control target key end

     0   :  { %s1734_s9 = smov 0   ;;  %s1964_s0 = inlined_call_operand.vmem [shape: bf16[2048,48], index: 0, kind: input, shape index: {}]   ;;  %s1965_s1 = inlined_call_operand.vmem [shape: bf16[48,64], index: 1, kind: input, shape index: {}]   ;;  %s1966_s2 = inlined_call_operand.vmem [shape: bf16[2048,64], index: 2, kind: output, shape index: {}]  }
   0x1 LB: > { %s1351_s10 = sadd.s32 4294967295, %s1717_s9   ;;  %p1355_p0 = scmp.ge.s32.totalorder %s1717_s9, 1  ;;  %s1717_s9 = sphi %s1734_s9, %s12_s9  }
   0x2   : > { %p113_p1 = scmp.lt.s32.totalorder %s1717_s9, 5 }
   0x4   : > { %p114_p2 = pnand %p1355_p0, %p113_p1 }
   0x5   : > { %v1676_v0 = vld [vmem:[%s1965_s1] sm:$0xff] (!%p114_p2)   ;;  %s1356_s13 = sshll.u32 (!%p114_p2), %s1351_s10, 6  ;;  %v1677_v1 = vld [vmem:[%s1965_s1 + $0x8] sm:$0xff] (!%p114_p2)   ;;  %v1678_v2 = vld [vmem:[%s1965_s1 + $0x10] sm:$0xff] (!%p114_p2)   ;;  %vm396_vm0 = vcmask (!%p114_p2), 392192   ;;  %vm1230_vm3 = vcmask (!%p114_p2), 519168  }
   0x6   : > { %117 = sbr.rel (%p114_p2) target bundleno = 302 (0x12e), region = 28  ;;  %p136_p3 = scmp.lt.s32.totalorder (!%p114_p2), %s1356_s13, 255  ;;  %1592 = vmatprep.subr.bf16.mxu0 (!%p114_p2), %v1676_v0  ;;  %1662 = vmatprep.subr.bf16.mxu1 (!%p114_p2), %v1676_v0 }
   0x7   : > { %1593 = vmatpush3.bf16.msra.mxu0 (!%p114_p2), %v1676_v0  ;;  %1665 = vmatpush3.bf16.msra.mxu1 (!%p114_p2), %v1676_v0 }
   0x8   : > { %1594 = vmatprep.subr.bf16.mxu0 (!%p114_p2), %v1677_v1  ;;  %1663 = vmatprep.subr.bf16.mxu1 (!%p114_p2), %v1677_v1 }
   0xb   : > { %1595 = vmatpush3.bf16.msra.mxu0 (!%p114_p2), %v1677_v1  ;;  %1666 = vmatpush3.bf16.msra.mxu1 (!%p114_p2), %v1677_v1 }
   0xc   : > { %1596 = vmatprep.subr.bf16.mxu0 (!%p114_p2), %v1678_v2  ;;  %1664 = vmatprep.subr.bf16.mxu1 (!%p114_p2), %v1678_v2 }
   0xd   : > { %s1968_s13 = smov (!%p136_p3, %s1356_s13), 255 }
   0xe   : > { %s1357_s18 = sshll.u32 %s1968_s13, 2 }
   0xf   : > { %s1759_s21 = scalar_lea.vmem %s1964_s0, %s1357_s18  ;;  %1597 = vmatpush3.bf16.msra.mxu0 %v1678_v2  ;;  %1667 = vmatpush3.bf16.msra.mxu1 %v1678_v2  ;;  %s1830_s24 = scalar_lea.vmem %s1966_s2, %s1357_s18 }
  0x10   : > { %v1679_v3 = vld [vmem:[%s1759_s21] sm:$0xff]   ;;  %v1681_v5 = vld [vmem:[%s1759_s21 + $0x8] sm:$0xff]   ;;  %v1683_v7 = vld [vmem:[%s1759_s21 + $0x10] sm:$0xff]  }
  0x11   : > { %v1680_v4 = vld [vmem:[%s1759_s21 + $0x80] sm:$0xff]   ;;  %1598 = vmatprep.mubr.msk.bf16.mxu0 %vm396_vm0, %v1679_v3  ;;  %v1682_v6 = vld [vmem:[%s1759_s21 + $0x88] sm:$0xff]   ;;  %v1684_v8 = vld [vmem:[%s1759_s21 + $0x90] sm:$0xff]  }
  0x12   : > { %1630 = vmatprep.mubr.msk.bf16.mxu1 %vm396_vm0, %v1680_v4  ;;  %1599 = vmatmul.mubr.msk.bf16.vlgmr.msra.gmra.mrb[0].mxu0 %vm396_vm0, %v1681_v5  ;;  %v1685_v9 = vld [vmem:[%s1759_s21 + $0x18] sm:$0xff]   ;;  %v1687_v11 = vld [vmem:[%s1759_s21 + $0x20] sm:$0xff]   ;;  %v1689_v13 = vld [vmem:[%s1759_s21 + $0x28] sm:$0xff]  }
  0x13   : > { %1631 = vmatmul.mubr.msk.bf16.vlgmr.msra.gmra.mrb[0].mxu1 %vm396_vm0, %v1682_v6  ;;  %1602 = vmatprep.mubr.msk.bf16.mxu0 %vm396_vm0, %v1683_v7  ;;  %v1686_v10 = vld [vmem:[%s1759_s21 + $0x98] sm:$0xff]   ;;  %v1688_v12 = vld [vmem:[%s1759_s21 + $0xa0] sm:$0xff]   ;;  %v1690_v14 = vld [vmem:[%s1759_s21 + $0xa8] sm:$0xff]  }
  0x14   : > { %1634 = vmatprep.mubr.msk.bf16.mxu1 %vm396_vm0, %v1684_v8  ;;  %v1691_v15 = vld [vmem:[%s1759_s21 + $0x30] sm:$0xff]   ;;  %v1693_v17 = vld [vmem:[%s1759_s21 + $0x38] sm:$0xff]   ;;  %v1695_v19 = vld [vmem:[%s1759_s21 + $0x40] sm:$0xff]  }
  0x15   : > { %v1692_v16 = vld [vmem:[%s1759_s21 + $0xb0] sm:$0xff]   ;;  %v1694_v18 = vld [vmem:[%s1759_s21 + $0xb8] sm:$0xff]   ;;  %v1696_v20 = vld [vmem:[%s1759_s21 + $0xc0] sm:$0xff]  }
  0x16   : > { %v1697_v21 = vld [vmem:[%s1759_s21 + $0x48] sm:$0xff]   ;;  %v1699_v23 = vld [vmem:[%s1759_s21 + $0x50] sm:$0xff]   ;;  %v1701_v25 = vld [vmem:[%s1759_s21 + $0x58] sm:$0xff]  }
  0x17   : > { %v1698_v22 = vld [vmem:[%s1759_s21 + $0xc8] sm:$0xff]   ;;  %v1700_v24 = vld [vmem:[%s1759_s21 + $0xd0] sm:$0xff]   ;;  %v1702_v26 = vld [vmem:[%s1759_s21 + $0xd8] sm:$0xff]  }
  0x18   : > { %v1703_v27 = vld [vmem:[%s1759_s21 + $0x60] sm:$0xff]   ;;  %v1705_v29 = vld [vmem:[%s1759_s21 + $0x68] sm:$0xff]   ;;  %v1707_v31 = vld [vmem:[%s1759_s21 + $0x70] sm:$0xff]  }
  0x19   : > { %v1704_v28 = vld [vmem:[%s1759_s21 + $0xe0] sm:$0xff]   ;;  %v1706_v30 = vld [vmem:[%s1759_s21 + $0xe8] sm:$0xff]   ;;  %v1708_v32 = vld [vmem:[%s1759_s21 + $0xf0] sm:$0xff]  }
  0x1a   : > { %1603 = vmatmul.mubr.msk.bf16.gmra.mrb[4].mxu0 %vm396_vm0, %v1685_v9  ;;  %v1709_v33 = vld [vmem:[%s1759_s21 + $0x78] sm:$0xff]  }
  0x1b   : > { %1635 = vmatmul.mubr.msk.bf16.gmra.mrb[4].mxu1 %vm396_vm0, %v1686_v10  ;;  %1606 = vmatprep.mubr.msk.bf16.mxu0 %vm396_vm0, %v1687_v11  ;;  %v1710_v34 = vld [vmem:[%s1759_s21 + $0xf8] sm:$0xff]  }
  0x1c   : > { %1638 = vmatprep.mubr.msk.bf16.mxu1 %vm396_vm0, %v1688_v12 }
  0x22   : > { %1607 = vmatmul.mubr.msk.bf16.gmra.mrb[8].mxu0 %vm396_vm0, %v1689_v13 }
  0x23   : > { %1639 = vmatmul.mubr.msk.bf16.gmra.mrb[8].mxu1 %vm396_vm0, %v1690_v14  ;;  %1610 = vmatprep.mubr.msk.bf16.mxu0 %vm396_vm0, %v1691_v15 }
  0x24   : > { %1642 = vmatprep.mubr.msk.bf16.mxu1 %vm396_vm0, %v1692_v16 }
  0x2a   : > { %1611 = vmatmul.mubr.msk.bf16.gmra.mrb[12].mxu0 %vm396_vm0, %v1693_v17 }
  0x2b   : > { %1643 = vmatmul.mubr.msk.bf16.gmra.mrb[12].mxu1 %vm396_vm0, %v1694_v18  ;;  %1614 = vmatprep.mubr.msk.bf16.mxu0 %vm396_vm0, %v1695_v19 }
  0x2c   : > { %1646 = vmatprep.mubr.msk.bf16.mxu1 %vm396_vm0, %v1696_v20 }
  0x32   : > { %1615 = vmatmul.mubr.msk.bf16.gmra.mrb[16].mxu0 %vm396_vm0, %v1697_v21 }
  0x33   : > { %1647 = vmatmul.mubr.msk.bf16.gmra.mrb[16].mxu1 %vm396_vm0, %v1698_v22  ;;  %1618 = vmatprep.mubr.msk.bf16.mxu0 %vm396_vm0, %v1699_v23 }
  0x34   : > { %1650 = vmatprep.mubr.msk.bf16.mxu1 %vm396_vm0, %v1700_v24 }
  0x3a   : > { %1619 = vmatmul.mubr.msk.bf16.gmra.mrb[20].mxu0 %vm396_vm0, %v1701_v25 }
  0x3b   : > { %1651 = vmatmul.mubr.msk.bf16.gmra.mrb[20].mxu1 %vm396_vm0, %v1702_v26  ;;  %1622 = vmatprep.mubr.msk.bf16.mxu0 %vm396_vm0, %v1703_v27 }
  0x3c   : > { %1654 = vmatprep.mubr.msk.bf16.mxu1 %vm396_vm0, %v1704_v28 }
  0x42   : > { %1623 = vmatmul.mubr.msk.bf16.gmra.mrb[24].mxu0 %vm396_vm0, %v1705_v29 }
  0x43   : > { %1655 = vmatmul.mubr.msk.bf16.gmra.mrb[24].mxu1 %vm396_vm0, %v1706_v30  ;;  %1626 = vmatprep.mubr.msk.bf16.mxu0 %vm396_vm0, %v1707_v31 }
  0x44   : > { %1658 = vmatprep.mubr.msk.bf16.mxu1 %vm396_vm0, %v1708_v32 }
  0x4a   : > { %1627 = vmatmul.mubr.msk.bf16.gmra.mrb[28].mxu0 %vm396_vm0, %v1709_v33 }
  0x4b   : > { %1659 = vmatmul.mubr.msk.bf16.gmra.mrb[28].mxu1 %vm396_vm0, %v1710_v34 }
  0xe5   : > { %v1600_v35 = vpop.f32.mrb[0].mxu0 }
  0xe6   : > { %v1632_v36 = vpop.f32.mrb[0].mxu1  ;;  %vm784_vm1 = vcmp.ge.f32.partialorder %v1600_v35, 0.0  ;;  %v848_v37 = vmul.f32 0.2, %v1600_v35  ;;  %v527_v39 = vpop.f32.mrb[1].mxu0 }
  0xe7   : > { %vm816_vm2 = vcmp.ge.f32.partialorder %v1632_v36, 0.0  ;;  %v880_v38 = vmul.f32 0.2, %v1632_v36  ;;  %v655_v40 = vpop.f32.mrb[1].mxu1  ;;  %vm782_vm4 = vcmp.ge.f32.partialorder %v527_v39, 0.0  ;;  %v1601_v44 = vpop.f32.mrb[2].mxu0 }
  0xe8   : > { %v912_v41 = vsel %vm784_vm1, %v1600_v35, %v848_v37  ;;  %v846_v43 = vmul.f32 0.2, %v527_v39  ;;  %v1633_v45 = vpop.f32.mrb[2].mxu1  ;;  %vm814_vm5 = vcmp.ge.f32.partialorder %v655_v40, 0.0  ;;  %v878_v48 = vmul.f32 0.2, %v655_v40 }
  0xe9   : > { %v944_v42 = vsel %vm816_vm2, %v1632_v36, %v880_v38  ;;  %v1495_v46 = vpack.c.bf16 %v912_v41, %v912_v41  ;;  %v530_v49 = vpop.f32.mrb[3].mxu0  ;;  %v658_v50 = vpop.f32.mrb[3].mxu1  ;;  %vm785_vm6 = vcmp.ge.f32.partialorder %v1601_v44, 0.0  ;;  %v849_v52 = vmul.f32 0.2, %v1601_v44 }
  0xea   : > { %v1527_v47 = vpack.c.bf16 %v944_v42, %v944_v42  ;;  %v910_v51 = vsel %vm782_vm4, %v527_v39, %v846_v43  ;;  %vm817_vm7 = vcmp.ge.f32.partialorder %v1633_v45, 0.0  ;;  %v942_v54 = vsel %vm814_vm5, %v655_v40, %v878_v48 }
  0xeb   : > { %1233 = vst.msk [vmem:[%s1830_s24 + $0x8] sm:$0xf] %vm1230_vm3, %v1495_v46  ;;  %v1493_v53 = vpack.c.bf16 %v910_v51, %v910_v51  ;;  %v881_v55 = vmul.f32 0.2, %v1633_v45  ;;  %vm783_vm8 = vcmp.ge.f32.partialorder %v530_v49, 0.0  ;;  %v1525_v56 = vpack.c.bf16 %v942_v54, %v942_v54 }
  0xec   : > { %1265 = vst.msk [vmem:[%s1830_s24 + $0x88] sm:$0xf] %vm1230_vm3, %v1527_v47  ;;  %v913_v57 = vsel %vm785_vm6, %v1601_v44, %v849_v52  ;;  %v847_v58 = vmul.f32 0.2, %v530_v49  ;;  %vm815_vm9 = vcmp.ge.f32.partialorder %v658_v50, 0.0 }
  0xed   : > { %1231 = vst.msk [vmem:[%s1830_s24] sm:$0xf] %vm1230_vm3, %v1493_v53  ;;  %v1496_v59 = vpack.c.bf16 %v913_v57, %v913_v57  ;;  %v945_v60 = vsel %vm817_vm7, %v1633_v45, %v881_v55  ;;  %v879_v61 = vmul.f32 0.2, %v658_v50  ;;  %v1604_v62 = vpop.f32.mrb[4].mxu0 }
  0xee   : > { %v1636_v63 = vpop.f32.mrb[4].mxu1  ;;  %1263 = vst.msk [vmem:[%s1830_s24 + $0x80] sm:$0xf] %vm1230_vm3, %v1525_v56  ;;  %v1528_v0 = vpack.c.bf16 %v945_v60, %v945_v60  ;;  %v911_v1 = vsel %vm783_vm8, %v530_v49, %v847_v58  ;;  %vm788_vm10 = vcmp.ge.f32.partialorder %v1604_v62, 0.0  ;;  %v852_v2 = vmul.f32 0.2, %v1604_v62 }
  0xef   : > { %v543_v3 = vpop.f32.mrb[5].mxu0  ;;  %v671_v4 = vpop.f32.mrb[5].mxu1  ;;  %1234 = vst.msk [vmem:[%s1830_s24 + $0xc] sm:$0xf] %vm1230_vm3, %v1496_v59  ;;  %v1494_v5 = vpack.c.bf16 %v911_v1, %v911_v1  ;;  %v943_v6 = vsel %vm815_vm9, %v658_v50, %v879_v61  ;;  %vm820_vm11 = vcmp.ge.f32.partialorder %v1636_v63, 0.0 }
  0xf0   : > { %v884_v7 = vmul.f32 0.2, %v1636_v63  ;;  %v1605_v8 = vpop.f32.mrb[6].mxu0  ;;  %v1637_v9 = vpop.f32.mrb[6].mxu1  ;;  %1266 = vst.msk [vmem:[%s1830_s24 + $0x8c] sm:$0xf] %vm1230_vm3, %v1528_v0  ;;  %v1526_v10 = vpack.c.bf16 %v943_v6, %v943_v6  ;;  %v916_v11 = vsel %vm788_vm10, %v1604_v62, %v852_v2 }
  0xf1   : > { %vm786_vm12 = vcmp.ge.f32.partialorder %v543_v3, 0.0  ;;  %v850_v12 = vmul.f32 0.2, %v543_v3  ;;  %v546_v13 = vpop.f32.mrb[7].mxu0  ;;  %v674_v14 = vpop.f32.mrb[7].mxu1  ;;  %v1499_v15 = vpack.c.bf16 %v916_v11, %v916_v11  ;;  %vm818_vm13 = vcmp.ge.f32.partialorder %v671_v4, 0.0 }
  0xf2   : > { %1232 = vst.msk [vmem:[%s1830_s24 + $0x4] sm:$0xf] %vm1230_vm3, %v1494_v5  ;;  %v948_v16 = vsel %vm820_vm11, %v1636_v63, %v884_v7  ;;  %v882_v17 = vmul.f32 0.2, %v671_v4  ;;  %1264 = vst.msk [vmem:[%s1830_s24 + $0x84] sm:$0xf] %vm1230_vm3, %v1526_v10 }
  0xf3   : > { %v1531_v18 = vpack.c.bf16 %v948_v16, %v948_v16  ;;  %v914_v19 = vsel %vm786_vm12, %v543_v3, %v850_v12  ;;  %vm789_vm14 = vcmp.ge.f32.partialorder %v1605_v8, 0.0  ;;  %v853_v20 = vmul.f32 0.2, %v1605_v8  ;;  %1237 = vst.msk [vmem:[%s1830_s24 + $0x18] sm:$0xf] %vm1230_vm3, %v1499_v15 }
  0xf4   : > { %v1497_v21 = vpack.c.bf16 %v914_v19, %v914_v19  ;;  %v946_v22 = vsel %vm818_vm13, %v671_v4, %v882_v17  ;;  %vm821_vm15 = vcmp.ge.f32.partialorder %v1637_v9, 0.0  ;;  %v885_v23 = vmul.f32 0.2, %v1637_v9 }
  0xf5   : > { %1269 = vst.msk [vmem:[%s1830_s24 + $0x98] sm:$0xf] %vm1230_vm3, %v1531_v18  ;;  %v1529_v24 = vpack.c.bf16 %v946_v22, %v946_v22  ;;  %v917_v25 = vsel %vm789_vm14, %v1605_v8, %v853_v20  ;;  %vm787_vm0 = vcmp.ge.f32.partialorder %v546_v13, 0.0  ;;  %v851_v26 = vmul.f32 0.2, %v546_v13  ;;  %v1608_v30 = vpop.f32.mrb[8].mxu0 }
  0xf6   : > { %1235 = vst.msk [vmem:[%s1830_s24 + $0x10] sm:$0xf] %vm1230_vm3, %v1497_v21  ;;  %v1500_v27 = vpack.c.bf16 %v917_v25, %v917_v25  ;;  %v949_v28 = vsel %vm821_vm15, %v1637_v9, %v885_v23  ;;  %vm819_vm1 = vcmp.ge.f32.partialorder %v674_v14, 0.0  ;;  %v883_v29 = vmul.f32 0.2, %v674_v14  ;;  %v1640_v31 = vpop.f32.mrb[8].mxu1 }
  0xf7   : > { %1267 = vst.msk [vmem:[%s1830_s24 + $0x90] sm:$0xf] %vm1230_vm3, %v1529_v24  ;;  %v1532_v32 = vpack.c.bf16 %v949_v28, %v949_v28  ;;  %v915_v33 = vsel %vm787_vm0, %v546_v13, %v851_v26  ;;  %vm792_vm2 = vcmp.ge.f32.partialorder %v1608_v30, 0.0  ;;  %v856_v34 = vmul.f32 0.2, %v1608_v30  ;;  %v559_v35 = vpop.f32.mrb[9].mxu0 }
  0xf8   : > { %v687_v36 = vpop.f32.mrb[9].mxu1  ;;  %1238 = vst.msk [vmem:[%s1830_s24 + $0x1c] sm:$0xf] %vm1230_vm3, %v1500_v27  ;;  %v1498_v37 = vpack.c.bf16 %v915_v33, %v915_v33  ;;  %v947_v38 = vsel %vm819_vm1, %v674_v14, %v883_v29  ;;  %vm824_vm4 = vcmp.ge.f32.partialorder %v1640_v31, 0.0  ;;  %v888_v39 = vmul.f32 0.2, %v1640_v31 }
  0xf9   : > { %v1609_v40 = vpop.f32.mrb[10].mxu0  ;;  %v1641_v41 = vpop.f32.mrb[10].mxu1  ;;  %1270 = vst.msk [vmem:[%s1830_s24 + $0x9c] sm:$0xf] %vm1230_vm3, %v1532_v32  ;;  %v1530_v42 = vpack.c.bf16 %v947_v38, %v947_v38  ;;  %v920_v43 = vsel %vm792_vm2, %v1608_v30, %v856_v34  ;;  %vm790_vm5 = vcmp.ge.f32.partialorder %v559_v35, 0.0  ;;  %vm822_vm6 = vcmp.ge.f32.partialorder %v687_v36, 0.0 }
  0xfa   : > { %v854_v44 = vmul.f32 0.2, %v559_v35  ;;  %v562_v45 = vpop.f32.mrb[11].mxu0  ;;  %v690_v46 = vpop.f32.mrb[11].mxu1  ;;  %1236 = vst.msk [vmem:[%s1830_s24 + $0x14] sm:$0xf] %vm1230_vm3, %v1498_v37  ;;  %v1503_v47 = vpack.c.bf16 %v920_v43, %v920_v43  ;;  %v952_v48 = vsel %vm824_vm4, %v1640_v31, %v888_v39 }
  0xfb   : > { %v886_v49 = vmul.f32 0.2, %v687_v36  ;;  %1268 = vst.msk [vmem:[%s1830_s24 + $0x94] sm:$0xf] %vm1230_vm3, %v1530_v42  ;;  %v1535_v50 = vpack.c.bf16 %v952_v48, %v952_v48  ;;  %vm793_vm7 = vcmp.ge.f32.partialorder %v1609_v40, 0.0  ;;  %vm825_vm8 = vcmp.ge.f32.partialorder %v1641_v41, 0.0 }
  0xfc   : > { %v918_v51 = vsel %vm790_vm5, %v559_v35, %v854_v44  ;;  %v857_v52 = vmul.f32 0.2, %v1609_v40  ;;  %1241 = vst.msk [vmem:[%s1830_s24 + $0x28] sm:$0xf] %vm1230_vm3, %v1503_v47  ;;  %v889_v55 = vmul.f32 0.2, %v1641_v41 }
  0xfd   : > { %v1501_v53 = vpack.c.bf16 %v918_v51, %v918_v51  ;;  %v950_v54 = vsel %vm822_vm6, %v687_v36, %v886_v49  ;;  %1273 = vst.msk [vmem:[%s1830_s24 + $0xa8] sm:$0xf] %vm1230_vm3, %v1535_v50  ;;  %vm791_vm9 = vcmp.ge.f32.partialorder %v562_v45, 0.0  ;;  %v855_v58 = vmul.f32 0.2, %v562_v45  ;;  %v1612_v62 = vpop.f32.mrb[12].mxu0 }
  0xfe   : > { %v1533_v56 = vpack.c.bf16 %v950_v54, %v950_v54  ;;  %v921_v57 = vsel %vm793_vm7, %v1609_v40, %v857_v52  ;;  %v953_v60 = vsel %vm825_vm8, %v1641_v41, %v889_v55  ;;  %vm823_vm10 = vcmp.ge.f32.partialorder %v690_v46, 0.0  ;;  %v1644_v63 = vpop.f32.mrb[12].mxu1  ;;  %v575_v3 = vpop.f32.mrb[13].mxu0 }
  0xff   : > { %1239 = vst.msk [vmem:[%s1830_s24 + $0x20] sm:$0xf] %vm1230_vm3, %v1501_v53  ;;  %v1504_v59 = vpack.c.bf16 %v921_v57, %v921_v57  ;;  %v887_v61 = vmul.f32 0.2, %v690_v46  ;;  %v1536_v0 = vpack.c.bf16 %v953_v60, %v953_v60  ;;  %v919_v1 = vsel %vm791_vm9, %v562_v45, %v855_v58  ;;  %v703_v4 = vpop.f32.mrb[13].mxu1  ;;  %v1613_v8 = vpop.f32.mrb[14].mxu0 }
 0x100   : > { %1271 = vst.msk [vmem:[%s1830_s24 + $0xa0] sm:$0xf] %vm1230_vm3, %v1533_v56  ;;  %vm796_vm11 = vcmp.ge.f32.partialorder %v1612_v62, 0.0  ;;  %v860_v2 = vmul.f32 0.2, %v1612_v62  ;;  %v1502_v5 = vpack.c.bf16 %v919_v1, %v919_v1  ;;  %vm828_vm12 = vcmp.ge.f32.partialorder %v1644_v63, 0.0 }
 0x101   : > { %1242 = vst.msk [vmem:[%s1830_s24 + $0x2c] sm:$0xf] %vm1230_vm3, %v1504_v59  ;;  %v951_v6 = vsel %vm823_vm10, %v690_v46, %v887_v61  ;;  %v892_v7 = vmul.f32 0.2, %v1644_v63  ;;  %v1645_v9 = vpop.f32.mrb[14].mxu1  ;;  %vm794_vm13 = vcmp.ge.f32.partialorder %v575_v3, 0.0 }
 0x102   : > { %1274 = vst.msk [vmem:[%s1830_s24 + $0xac] sm:$0xf] %vm1230_vm3, %v1536_v0  ;;  %v1534_v10 = vpack.c.bf16 %v951_v6, %v951_v6  ;;  %v924_v11 = vsel %vm796_vm11, %v1612_v62, %v860_v2  ;;  %v858_v12 = vmul.f32 0.2, %v575_v3  ;;  %v578_v13 = vpop.f32.mrb[15].mxu0  ;;  %v706_v14 = vpop.f32.mrb[15].mxu1 }
 0x103   : > { %1240 = vst.msk [vmem:[%s1830_s24 + $0x24] sm:$0xf] %vm1230_vm3, %v1502_v5  ;;  %v1507_v15 = vpack.c.bf16 %v924_v11, %v924_v11  ;;  %v956_v16 = vsel %vm828_vm12, %v1644_v63, %v892_v7  ;;  %vm826_vm14 = vcmp.ge.f32.partialorder %v703_v4, 0.0  ;;  %v890_v17 = vmul.f32 0.2, %v703_v4 }
 0x104   : > { %1272 = vst.msk [vmem:[%s1830_s24 + $0xa4] sm:$0xf] %vm1230_vm3, %v1534_v10  ;;  %v1539_v18 = vpack.c.bf16 %v956_v16, %v956_v16  ;;  %v922_v19 = vsel %vm794_vm13, %v575_v3, %v858_v12  ;;  %vm797_vm15 = vcmp.ge.f32.partialorder %v1613_v8, 0.0  ;;  %v861_v20 = vmul.f32 0.2, %v1613_v8 }
 0x105   : > { %1245 = vst.msk [vmem:[%s1830_s24 + $0x38] sm:$0xf] %vm1230_vm3, %v1507_v15  ;;  %v1505_v21 = vpack.c.bf16 %v922_v19, %v922_v19  ;;  %v954_v22 = vsel %vm826_vm14, %v703_v4, %v890_v17  ;;  %vm829_vm0 = vcmp.ge.f32.partialorder %v1645_v9, 0.0  ;;  %v893_v23 = vmul.f32 0.2, %v1645_v9  ;;  %v1616_v30 = vpop.f32.mrb[16].mxu0 }
 0x106   : > { %1277 = vst.msk [vmem:[%s1830_s24 + $0xb8] sm:$0xf] %vm1230_vm3, %v1539_v18  ;;  %v1537_v24 = vpack.c.bf16 %v954_v22, %v954_v22  ;;  %v925_v25 = vsel %vm797_vm15, %v1613_v8, %v861_v20  ;;  %vm795_vm1 = vcmp.ge.f32.partialorder %v578_v13, 0.0  ;;  %v859_v26 = vmul.f32 0.2, %v578_v13  ;;  %v1648_v31 = vpop.f32.mrb[16].mxu1 }
 0x107   : > { %1243 = vst.msk [vmem:[%s1830_s24 + $0x30] sm:$0xf] %vm1230_vm3, %v1505_v21  ;;  %v1508_v27 = vpack.c.bf16 %v925_v25, %v925_v25  ;;  %v957_v28 = vsel %vm829_vm0, %v1645_v9, %v893_v23  ;;  %vm827_vm2 = vcmp.ge.f32.partialorder %v706_v14, 0.0  ;;  %v891_v29 = vmul.f32 0.2, %v706_v14  ;;  %v591_v35 = vpop.f32.mrb[17].mxu0 }
 0x108   : > { %1275 = vst.msk [vmem:[%s1830_s24 + $0xb0] sm:$0xf] %vm1230_vm3, %v1537_v24  ;;  %v1540_v32 = vpack.c.bf16 %v957_v28, %v957_v28  ;;  %v923_v33 = vsel %vm795_vm1, %v578_v13, %v859_v26  ;;  %vm800_vm4 = vcmp.ge.f32.partialorder %v1616_v30, 0.0  ;;  %v864_v34 = vmul.f32 0.2, %v1616_v30  ;;  %v719_v36 = vpop.f32.mrb[17].mxu1 }
 0x109   : > { %1246 = vst.msk [vmem:[%s1830_s24 + $0x3c] sm:$0xf] %vm1230_vm3, %v1508_v27  ;;  %v1506_v37 = vpack.c.bf16 %v923_v33, %v923_v33  ;;  %v955_v38 = vsel %vm827_vm2, %v706_v14, %v891_v29  ;;  %vm832_vm5 = vcmp.ge.f32.partialorder %v1648_v31, 0.0  ;;  %v896_v39 = vmul.f32 0.2, %v1648_v31  ;;  %v1617_v40 = vpop.f32.mrb[18].mxu0 }
 0x10a   : > { %v1649_v41 = vpop.f32.mrb[18].mxu1  ;;  %1278 = vst.msk [vmem:[%s1830_s24 + $0xbc] sm:$0xf] %vm1230_vm3, %v1540_v32  ;;  %v1538_v42 = vpack.c.bf16 %v955_v38, %v955_v38  ;;  %v928_v43 = vsel %vm800_vm4, %v1616_v30, %v864_v34  ;;  %vm798_vm6 = vcmp.ge.f32.partialorder %v591_v35, 0.0  ;;  %v862_v44 = vmul.f32 0.2, %v591_v35 }
 0x10b   : > { %v594_v45 = vpop.f32.mrb[19].mxu0  ;;  %v722_v46 = vpop.f32.mrb[19].mxu1  ;;  %1244 = vst.msk [vmem:[%s1830_s24 + $0x34] sm:$0xf] %vm1230_vm3, %v1506_v37  ;;  %v1511_v47 = vpack.c.bf16 %v928_v43, %v928_v43  ;;  %v960_v48 = vsel %vm832_vm5, %v1648_v31, %v896_v39  ;;  %vm830_vm7 = vcmp.ge.f32.partialorder %v719_v36, 0.0  ;;  %vm801_vm8 = vcmp.ge.f32.partialorder %v1617_v40, 0.0 }
 0x10c   : > { %v894_v49 = vmul.f32 0.2, %v719_v36  ;;  %1276 = vst.msk [vmem:[%s1830_s24 + $0xb4] sm:$0xf] %vm1230_vm3, %v1538_v42  ;;  %v1543_v50 = vpack.c.bf16 %v960_v48, %v960_v48  ;;  %v926_v51 = vsel %vm798_vm6, %v591_v35, %v862_v44  ;;  %v865_v52 = vmul.f32 0.2, %v1617_v40 }
 0x10d   : > { %1249 = vst.msk [vmem:[%s1830_s24 + $0x48] sm:$0xf] %vm1230_vm3, %v1511_v47  ;;  %v1509_v53 = vpack.c.bf16 %v926_v51, %v926_v51  ;;  %vm833_vm9 = vcmp.ge.f32.partialorder %v1649_v41, 0.0  ;;  %v897_v55 = vmul.f32 0.2, %v1649_v41  ;;  %vm799_vm10 = vcmp.ge.f32.partialorder %v594_v45, 0.0 }
 0x10e   : > { %v958_v54 = vsel %vm830_vm7, %v719_v36, %v894_v49  ;;  %1281 = vst.msk [vmem:[%s1830_s24 + $0xc8] sm:$0xf] %vm1230_vm3, %v1543_v50  ;;  %v929_v57 = vsel %vm801_vm8, %v1617_v40, %v865_v52  ;;  %v863_v58 = vmul.f32 0.2, %v594_v45  ;;  %vm831_vm11 = vcmp.ge.f32.partialorder %v722_v46, 0.0  ;;  %v1620_v62 = vpop.f32.mrb[20].mxu0 }
 0x10f   : > { %v1541_v56 = vpack.c.bf16 %v958_v54, %v958_v54  ;;  %1247 = vst.msk [vmem:[%s1830_s24 + $0x40] sm:$0xf] %vm1230_vm3, %v1509_v53  ;;  %v1512_v59 = vpack.c.bf16 %v929_v57, %v929_v57  ;;  %v961_v60 = vsel %vm833_vm9, %v1649_v41, %v897_v55  ;;  %v895_v61 = vmul.f32 0.2, %v722_v46  ;;  %v1652_v63 = vpop.f32.mrb[20].mxu1  ;;  %v607_v3 = vpop.f32.mrb[21].mxu0 }
 0x110   : > { %v1544_v0 = vpack.c.bf16 %v961_v60, %v961_v60  ;;  %v927_v1 = vsel %vm799_vm10, %v594_v45, %v863_v58  ;;  %vm804_vm12 = vcmp.ge.f32.partialorder %v1620_v62, 0.0  ;;  %v868_v2 = vmul.f32 0.2, %v1620_v62  ;;  %v735_v4 = vpop.f32.mrb[21].mxu1  ;;  %v1621_v8 = vpop.f32.mrb[22].mxu0 }
 0x111   : > { %1279 = vst.msk [vmem:[%s1830_s24 + $0xc0] sm:$0xf] %vm1230_vm3, %v1541_v56  ;;  %1250 = vst.msk [vmem:[%s1830_s24 + $0x4c] sm:$0xf] %vm1230_vm3, %v1512_v59  ;;  %v1510_v5 = vpack.c.bf16 %v927_v1, %v927_v1  ;;  %v959_v6 = vsel %vm831_vm11, %v722_v46, %v895_v61  ;;  %vm836_vm13 = vcmp.ge.f32.partialorder %v1652_v63, 0.0  ;;  %v1653_v9 = vpop.f32.mrb[22].mxu1 }
 0x112   : > { %v900_v7 = vmul.f32 0.2, %v1652_v63  ;;  %1282 = vst.msk [vmem:[%s1830_s24 + $0xcc] sm:$0xf] %vm1230_vm3, %v1544_v0  ;;  %v1542_v10 = vpack.c.bf16 %v959_v6, %v959_v6  ;;  %v932_v11 = vsel %vm804_vm12, %v1620_v62, %v868_v2  ;;  %vm802_vm14 = vcmp.ge.f32.partialorder %v607_v3, 0.0  ;;  %v610_v13 = vpop.f32.mrb[23].mxu0 }
 0x113   : > { %v866_v12 = vmul.f32 0.2, %v607_v3  ;;  %v738_v14 = vpop.f32.mrb[23].mxu1  ;;  %1248 = vst.msk [vmem:[%s1830_s24 + $0x44] sm:$0xf] %vm1230_vm3, %v1510_v5  ;;  %v1515_v15 = vpack.c.bf16 %v932_v11, %v932_v11  ;;  %vm834_vm15 = vcmp.ge.f32.partialorder %v735_v4, 0.0 }
 0x114   : > { %v964_v16 = vsel %vm836_vm13, %v1652_v63, %v900_v7  ;;  %v898_v17 = vmul.f32 0.2, %v735_v4  ;;  %1280 = vst.msk [vmem:[%s1830_s24 + $0xc4] sm:$0xf] %vm1230_vm3, %v1542_v10  ;;  %vm805_vm0 = vcmp.ge.f32.partialorder %v1621_v8, 0.0  ;;  %vm837_vm1 = vcmp.ge.f32.partialorder %v1653_v9, 0.0 }
 0x115   : > { %v1547_v18 = vpack.c.bf16 %v964_v16, %v964_v16  ;;  %v930_v19 = vsel %vm802_vm14, %v607_v3, %v866_v12  ;;  %v869_v20 = vmul.f32 0.2, %v1621_v8  ;;  %1253 = vst.msk [vmem:[%s1830_s24 + $0x58] sm:$0xf] %vm1230_vm3, %v1515_v15  ;;  %v901_v23 = vmul.f32 0.2, %v1653_v9 }
 0x116   : > { %v1513_v21 = vpack.c.bf16 %v930_v19, %v930_v19  ;;  %v962_v22 = vsel %vm834_vm15, %v735_v4, %v898_v17  ;;  %vm803_vm2 = vcmp.ge.f32.partialorder %v610_v13, 0.0  ;;  %v867_v26 = vmul.f32 0.2, %v610_v13  ;;  %v1624_v30 = vpop.f32.mrb[24].mxu0  ;;  %v1656_v31 = vpop.f32.mrb[24].mxu1 }
 0x117   : > { %1285 = vst.msk [vmem:[%s1830_s24 + $0xd8] sm:$0xf] %vm1230_vm3, %v1547_v18  ;;  %v1545_v24 = vpack.c.bf16 %v962_v22, %v962_v22  ;;  %v933_v25 = vsel %vm805_vm0, %v1621_v8, %v869_v20  ;;  %v965_v28 = vsel %vm837_vm1, %v1653_v9, %v901_v23  ;;  %vm835_vm4 = vcmp.ge.f32.partialorder %v738_v14, 0.0  ;;  %v623_v35 = vpop.f32.mrb[25].mxu0  ;;  %v751_v36 = vpop.f32.mrb[25].mxu1 }
 0x118   : > { %1251 = vst.msk [vmem:[%s1830_s24 + $0x50] sm:$0xf] %vm1230_vm3, %v1513_v21  ;;  %v1516_v27 = vpack.c.bf16 %v933_v25, %v933_v25  ;;  %v899_v29 = vmul.f32 0.2, %v738_v14  ;;  %v1548_v32 = vpack.c.bf16 %v965_v28, %v965_v28  ;;  %v931_v33 = vsel %vm803_vm2, %v610_v13, %v867_v26  ;;  %v1625_v40 = vpop.f32.mrb[26].mxu0  ;;  %v1657_v41 = vpop.f32.mrb[26].mxu1 }
 0x119   : > { %1283 = vst.msk [vmem:[%s1830_s24 + $0xd0] sm:$0xf] %vm1230_vm3, %v1545_v24  ;;  %vm808_vm5 = vcmp.ge.f32.partialorder %v1624_v30, 0.0  ;;  %v872_v34 = vmul.f32 0.2, %v1624_v30  ;;  %v1514_v37 = vpack.c.bf16 %v931_v33, %v931_v33  ;;  %vm840_vm6 = vcmp.ge.f32.partialorder %v1656_v31, 0.0 }
 0x11a   : > { %1254 = vst.msk [vmem:[%s1830_s24 + $0x5c] sm:$0xf] %vm1230_vm3, %v1516_v27  ;;  %v963_v38 = vsel %vm835_vm4, %v738_v14, %v899_v29  ;;  %v904_v39 = vmul.f32 0.2, %v1656_v31  ;;  %1286 = vst.msk [vmem:[%s1830_s24 + $0xdc] sm:$0xf] %vm1230_vm3, %v1548_v32 }
 0x11b   : > { %v1546_v42 = vpack.c.bf16 %v963_v38, %v963_v38  ;;  %v936_v43 = vsel %vm808_vm5, %v1624_v30, %v872_v34  ;;  %vm806_vm7 = vcmp.ge.f32.partialorder %v623_v35, 0.0  ;;  %v870_v44 = vmul.f32 0.2, %v623_v35  ;;  %v626_v45 = vpop.f32.mrb[27].mxu0  ;;  %v754_v46 = vpop.f32.mrb[27].mxu1 }
 0x11c   : > { %1252 = vst.msk [vmem:[%s1830_s24 + $0x54] sm:$0xf] %vm1230_vm3, %v1514_v37  ;;  %v1519_v47 = vpack.c.bf16 %v936_v43, %v936_v43  ;;  %v968_v48 = vsel %vm840_vm6, %v1656_v31, %v904_v39  ;;  %vm838_vm8 = vcmp.ge.f32.partialorder %v751_v36, 0.0  ;;  %v902_v49 = vmul.f32 0.2, %v751_v36 }
 0x11d   : > { %1284 = vst.msk [vmem:[%s1830_s24 + $0xd4] sm:$0xf] %vm1230_vm3, %v1546_v42  ;;  %v1551_v50 = vpack.c.bf16 %v968_v48, %v968_v48  ;;  %v934_v51 = vsel %vm806_vm7, %v623_v35, %v870_v44  ;;  %vm809_vm9 = vcmp.ge.f32.partialorder %v1625_v40, 0.0  ;;  %v873_v52 = vmul.f32 0.2, %v1625_v40  ;;  %v1628_v62 = vpop.f32.mrb[28].mxu0 }
 0x11e   : > { %1257 = vst.msk [vmem:[%s1830_s24 + $0x68] sm:$0xf] %vm1230_vm3, %v1519_v47  ;;  %v1517_v53 = vpack.c.bf16 %v934_v51, %v934_v51  ;;  %v966_v54 = vsel %vm838_vm8, %v751_v36, %v902_v49  ;;  %vm841_vm10 = vcmp.ge.f32.partialorder %v1657_v41, 0.0  ;;  %v905_v55 = vmul.f32 0.2, %v1657_v41  ;;  %v1660_v63 = vpop.f32.mrb[28].mxu1 }
 0x11f   : > { %1289 = vst.msk [vmem:[%s1830_s24 + $0xe8] sm:$0xf] %vm1230_vm3, %v1551_v50  ;;  %v1549_v56 = vpack.c.bf16 %v966_v54, %v966_v54  ;;  %v937_v57 = vsel %vm809_vm9, %v1625_v40, %v873_v52  ;;  %vm807_vm11 = vcmp.ge.f32.partialorder %v626_v45, 0.0  ;;  %v871_v58 = vmul.f32 0.2, %v626_v45  ;;  %v639_v3 = vpop.f32.mrb[29].mxu0 }
 0x120   : > { %1255 = vst.msk [vmem:[%s1830_s24 + $0x60] sm:$0xf] %vm1230_vm3, %v1517_v53  ;;  %v1520_v59 = vpack.c.bf16 %v937_v57, %v937_v57  ;;  %v969_v60 = vsel %vm841_vm10, %v1657_v41, %v905_v55  ;;  %vm839_vm12 = vcmp.ge.f32.partialorder %v754_v46, 0.0  ;;  %v903_v61 = vmul.f32 0.2, %v754_v46  ;;  %v767_v4 = vpop.f32.mrb[29].mxu1 }
 0x121   : > { %1287 = vst.msk [vmem:[%s1830_s24 + $0xe0] sm:$0xf] %vm1230_vm3, %v1549_v56  ;;  %v1552_v0 = vpack.c.bf16 %v969_v60, %v969_v60  ;;  %v935_v1 = vsel %vm807_vm11, %v626_v45, %v871_v58  ;;  %vm812_vm13 = vcmp.ge.f32.partialorder %v1628_v62, 0.0  ;;  %v876_v2 = vmul.f32 0.2, %v1628_v62  ;;  %v1629_v8 = vpop.f32.mrb[30].mxu0 }
 0x122   : > { %1258 = vst.msk [vmem:[%s1830_s24 + $0x6c] sm:$0xf] %vm1230_vm3, %v1520_v59  ;;  %v1518_v5 = vpack.c.bf16 %v935_v1, %v935_v1  ;;  %v967_v6 = vsel %vm839_vm12, %v754_v46, %v903_v61  ;;  %vm844_vm14 = vcmp.ge.f32.partialorder %v1660_v63, 0.0  ;;  %v908_v7 = vmul.f32 0.2, %v1660_v63  ;;  %v1661_v9 = vpop.f32.mrb[30].mxu1 }
 0x123   : > { %1290 = vst.msk [vmem:[%s1830_s24 + $0xec] sm:$0xf] %vm1230_vm3, %v1552_v0  ;;  %v1550_v10 = vpack.c.bf16 %v967_v6, %v967_v6  ;;  %v940_v11 = vsel %vm812_vm13, %v1628_v62, %v876_v2  ;;  %vm810_vm15 = vcmp.ge.f32.partialorder %v639_v3, 0.0  ;;  %v874_v12 = vmul.f32 0.2, %v639_v3  ;;  %v642_v13 = vpop.f32.mrb[31].mxu0 }
 0x124   : > { %v770_v14 = vpop.f32.mrb[31].mxu1  ;;  %1256 = vst.msk [vmem:[%s1830_s24 + $0x64] sm:$0xf] %vm1230_vm3, %v1518_v5  ;;  %v1523_v15 = vpack.c.bf16 %v940_v11, %v940_v11  ;;  %v972_v16 = vsel %vm844_vm14, %v1660_v63, %v908_v7  ;;  %vm842_vm0 = vcmp.ge.f32.partialorder %v767_v4, 0.0  ;;  %v906_v17 = vmul.f32 0.2, %v767_v4 }
 0x125   : > { %1288 = vst.msk [vmem:[%s1830_s24 + $0xe4] sm:$0xf] %vm1230_vm3, %v1550_v10  ;;  %v1555_v18 = vpack.c.bf16 %v972_v16, %v972_v16  ;;  %v938_v19 = vsel %vm810_vm15, %v639_v3, %v874_v12  ;;  %vm813_vm1 = vcmp.ge.f32.partialorder %v1629_v8, 0.0  ;;  %v877_v20 = vmul.f32 0.2, %v1629_v8 }
 0x126   : > { %1261 = vst.msk [vmem:[%s1830_s24 + $0x78] sm:$0xf] %vm1230_vm3, %v1523_v15  ;;  %v1521_v21 = vpack.c.bf16 %v938_v19, %v938_v19  ;;  %v970_v22 = vsel %vm842_vm0, %v767_v4, %v906_v17  ;;  %vm845_vm2 = vcmp.ge.f32.partialorder %v1661_v9, 0.0  ;;  %v909_v23 = vmul.f32 0.2, %v1661_v9 }
 0x127   : > { %1293 = vst.msk [vmem:[%s1830_s24 + $0xf8] sm:$0xf] %vm1230_vm3, %v1555_v18  ;;  %v1553_v24 = vpack.c.bf16 %v970_v22, %v970_v22  ;;  %v941_v25 = vsel %vm813_vm1, %v1629_v8, %v877_v20  ;;  %vm811_vm4 = vcmp.ge.f32.partialorder %v642_v13, 0.0  ;;  %v875_v26 = vmul.f32 0.2, %v642_v13 }
 0x128   : > { %1259 = vst.msk [vmem:[%s1830_s24 + $0x70] sm:$0xf] %vm1230_vm3, %v1521_v21  ;;  %v1524_v27 = vpack.c.bf16 %v941_v25, %v941_v25  ;;  %v973_v28 = vsel %vm845_vm2, %v1661_v9, %v909_v23  ;;  %vm843_vm5 = vcmp.ge.f32.partialorder %v770_v14, 0.0  ;;  %v907_v29 = vmul.f32 0.2, %v770_v14 }
 0x129   : > { %1291 = vst.msk [vmem:[%s1830_s24 + $0xf0] sm:$0xf] %vm1230_vm3, %v1553_v24  ;;  %v1556_v30 = vpack.c.bf16 %v973_v28, %v973_v28  ;;  %v939_v31 = vsel %vm811_vm4, %v642_v13, %v875_v26 }
 0x12a   : > { %1262 = vst.msk [vmem:[%s1830_s24 + $0x7c] sm:$0xf] %vm1230_vm3, %v1524_v27  ;;  %v1522_v32 = vpack.c.bf16 %v939_v31, %v939_v31  ;;  %v971_v33 = vsel %vm843_vm5, %v770_v14, %v907_v29 }
 0x12b   : > { %1294 = vst.msk [vmem:[%s1830_s24 + $0xfc] sm:$0xf] %vm1230_vm3, %v1556_v30  ;;  %v1554_v34 = vpack.c.bf16 %v971_v33, %v971_v33 }
 0x12c   : > { %1260 = vst.msk [vmem:[%s1830_s24 + $0x74] sm:$0xf] %vm1230_vm3, %v1522_v32 }
 0x12d   : > { %1292 = vst.msk [vmem:[%s1830_s24 + $0xf4] sm:$0xf] %vm1230_vm3, %v1554_v34 }
 0x12e PF: > { %s12_s9 = sadd.s32 1, %s1717_s9  }
 0x12f   : > { %p9_p4 = scmp.ge.s32.totalorder %s12_s9, 6  }
 0x131   :  { %11 = sbr.rel (!%p9_p4) target bundleno = 1 (0x1), region = 58 }

// kernel: d_forward.5
= control target key start
LH: loop header
LB: loop body
LE: loop exit
PB: predicated region body
PF: predicated region fallthrough
CT: control target
= control target key end

     0   :  { %v5117_v0 = vmov 0   ;;  %s7757_s1 = inlined_call_operand.vmem [shape: bf16[1024,128], index: 1, kind: input, shape index: {}]   ;;  %s7758_s0 = inlined_call_operand.vmem [shape: bf16[512,1024], index: 0, kind: input, shape index: {}]   ;;  %s7759_s2 = inlined_call_operand.vmem [shape: f32[1,128], index: 2, kind: input, shape index: {}]   ;;  %s7760_s3 = inlined_call_operand.vmem [shape: f32[1,128], index: 3, kind: input, shape index: {}]   ;;  %s7761_s4 = inlined_call_operand.vmem [shape: bf16[512,128], index: 4, kind: output, shape index: {}]  }
   0x1   :  { %2066 = vmatprep.subr.bf16.mxu1 %v5117_v0  ;;  %2644 = vmatprep.subr.bf16.mxu0 %v5117_v0  ;;  %v5051_v1 = vld [vmem:[%s7757_s1] sm:$0xff]   ;;  %v5053_v3 = vld [vmem:[%s7757_s1 + $0x8] sm:$0xff]   ;;  %v5055_v5 = vld [vmem:[%s7757_s1 + $0x10] sm:$0xff]  }
   0x2   :  { %v5052_v2 = vld [vmem:[%s7757_s1 + $0x100] sm:$0xff]   ;;  %2067 = vmatpush1.bf16.msra.mxu1 %v5051_v1  ;;  %v5054_v4 = vld [vmem:[%s7757_s1 + $0x108] sm:$0xff]   ;;  %v5056_v6 = vld [vmem:[%s7757_s1 + $0x110] sm:$0xff]  }
   0x3   :  { %2645 = vmatpush1.bf16.msra.mxu0 %v5052_v2  ;;  %2068 = vmatprep.subr.bf16.mxu1 %v5117_v0  ;;  %v5057_v7 = vld [vmem:[%s7757_s1 + $0x18] sm:$0xff]   ;;  %v5059_v9 = vld [vmem:[%s7757_s1 + $0x20] sm:$0xff]   ;;  %v5061_v11 = vld [vmem:[%s7757_s1 + $0x28] sm:$0xff]  }
   0x4   :  { %2646 = vmatprep.subr.bf16.mxu0 %v5117_v0  ;;  %v5058_v8 = vld [vmem:[%s7757_s1 + $0x118] sm:$0xff]   ;;  %v5060_v10 = vld [vmem:[%s7757_s1 + $0x120] sm:$0xff]   ;;  %v5062_v12 = vld [vmem:[%s7757_s1 + $0x128] sm:$0xff]  }
   0x5   :  { %v5063_v13 = vld [vmem:[%s7757_s1 + $0x30] sm:$0xff]   ;;  %v5065_v15 = vld [vmem:[%s7757_s1 + $0x38] sm:$0xff]   ;;  %v5067_v17 = vld [vmem:[%s7757_s1 + $0x40] sm:$0xff]  }
   0x6   :  { %2069 = vmatpush1.bf16.msra.mxu1 %v5053_v3  ;;  %v5064_v14 = vld [vmem:[%s7757_s1 + $0x130] sm:$0xff]   ;;  %v5066_v16 = vld [vmem:[%s7757_s1 + $0x138] sm:$0xff]   ;;  %v5068_v18 = vld [vmem:[%s7757_s1 + $0x140] sm:$0xff]  }
   0x7   :  { %2647 = vmatpush1.bf16.msra.mxu0 %v5054_v4  ;;  %2070 = vmatprep.subr.bf16.mxu1 %v5117_v0  ;;  %v5218_v19 = vld [vmem:[%s7758_s0] sm:$0xff]  ;;  %v5228_v21 = vld [vmem:[%s7758_s0 + $0x10] sm:$0xff]  ;;  %v5069_v24 = vld [vmem:[%s7757_s1 + $0x48] sm:$0xff]  }
   0x8   :  { %2648 = vmatprep.subr.bf16.mxu0 %v5117_v0  ;;  %v5223_v20 = vld [vmem:[%s7758_s0 + $0x20] sm:$0xff]  ;;  %v5235_v23 = vld [vmem:[%s7758_s0 + $0x30] sm:$0xff]  ;;  %v5070_v26 = vld [vmem:[%s7757_s1 + $0x148] sm:$0xff]  }
   0x9   :  { %v4092_v22 = vcombine.high %v5218_v19, %v5223_v20  ;;  %v4096_v25 = vcombine.high %v5228_v21, %v5235_v23  ;;  %v5071_v27 = vld [vmem:[%s7757_s1 + $0x50] sm:$0xff]   ;;  %v5073_v29 = vld [vmem:[%s7757_s1 + $0x58] sm:$0xff]   ;;  %v5075_v31 = vld [vmem:[%s7757_s1 + $0x60] sm:$0xff]   ;;  %v4091_v42 = vcombine.low %v5218_v19, %v5223_v20  ;;  %v4095_v44 = vcombine.low %v5228_v21, %v5235_v23 }
   0xa   :  { %2071 = vmatpush1.bf16.msra.mxu1 %v5055_v5  ;;  %v5072_v28 = vld [vmem:[%s7757_s1 + $0x150] sm:$0xff]   ;;  %v5074_v30 = vld [vmem:[%s7757_s1 + $0x158] sm:$0xff]   ;;  %v5076_v32 = vld [vmem:[%s7757_s1 + $0x160] sm:$0xff]  }
   0xb   :  { %2649 = vmatpush1.bf16.msra.mxu0 %v5056_v6  ;;  %2072 = vmatprep.subr.bf16.mxu1 %v5117_v0  ;;  %v5077_v33 = vld [vmem:[%s7757_s1 + $0x68] sm:$0xff]   ;;  %v5079_v35 = vld [vmem:[%s7757_s1 + $0x70] sm:$0xff]   ;;  %v5081_v37 = vld [vmem:[%s7757_s1 + $0x78] sm:$0xff]  }
   0xc   :  { %2650 = vmatprep.subr.bf16.mxu0 %v5117_v0  ;;  %2098 = vmatprep.mubr.bf16.mxu1 %v4092_v22  ;;  %v5078_v34 = vld [vmem:[%s7757_s1 + $0x168] sm:$0xff]   ;;  %v5080_v36 = vld [vmem:[%s7757_s1 + $0x170] sm:$0xff]   ;;  %v5082_v38 = vld [vmem:[%s7757_s1 + $0x178] sm:$0xff]  }
   0xd   :  { %2676 = vmatprep.mubr.bf16.mxu0 %v4096_v25  ;;  %v26_v39 = vld [vmem:[%s7758_s0 + $0x40] sm:$0xff]  ;;  %v28_v41 = vld [vmem:[%s7758_s0 + $0x50] sm:$0xff]  ;;  %v5085_v51 = vld [vmem:[%s7757_s1 + $0x88] sm:$0xff]  }
   0xe   :  { %2073 = vmatpush1.bf16.msra.mxu1 %v5057_v7  ;;  %v30_v40 = vld [vmem:[%s7758_s0 + $0x60] sm:$0xff]  ;;  %v32_v43 = vld [vmem:[%s7758_s0 + $0x70] sm:$0xff]  ;;  %v5086_v52 = vld [vmem:[%s7757_s1 + $0x188] sm:$0xff]  }
   0xf   :  { %2651 = vmatpush1.bf16.msra.mxu0 %v5058_v8  ;;  %2074 = vmatprep.subr.bf16.mxu1 %v5117_v0  ;;  %v5083_v45 = vld [vmem:[%s7757_s1 + $0x80] sm:$0xff]   ;;  %v4100_v47 = vcombine.high %v26_v39, %v30_v40  ;;  %v4104_v48 = vcombine.high %v28_v41, %v32_v43  ;;  %v36_v53 = vld [vmem:[%s7758_s0 + $0x90] sm:$0xff]  ;;  %v4099_v55 = vcombine.low %v26_v39, %v30_v40  ;;  %v5089_v2 = vld [vmem:[%s7757_s1 + $0x98] sm:$0xff]  }
  0x10   :  { %2652 = vmatprep.subr.bf16.mxu0 %v5117_v0  ;;  %v5084_v46 = vld [vmem:[%s7757_s1 + $0x180] sm:$0xff]   ;;  %v40_v54 = vld [vmem:[%s7758_s0 + $0xb0] sm:$0xff]  ;;  %v4103_v56 = vcombine.low %v28_v41, %v32_v43  ;;  %v5090_v3 = vld [vmem:[%s7757_s1 + $0x198] sm:$0xff]  }
  0x11   :  { %v34_v49 = vld [vmem:[%s7758_s0 + $0x80] sm:$0xff]  ;;  %v4112_v58 = vcombine.high %v36_v53, %v40_v54  ;;  %v5087_v59 = vld [vmem:[%s7757_s1 + $0x90] sm:$0xff]   ;;  %v4111_v6 = vcombine.low %v36_v53, %v40_v54  ;;  %v5102_v39 = vld [vmem:[%s7757_s1 + $0x1c8] sm:$0xff]  }
  0x12   :  { %2075 = vmatpush1.bf16.msra.mxu1 %v5059_v9  ;;  %v38_v50 = vld [vmem:[%s7758_s0 + $0xa0] sm:$0xff]  ;;  %v5088_v60 = vld [vmem:[%s7757_s1 + $0x190] sm:$0xff]   ;;  %v5105_v54 = vld [vmem:[%s7757_s1 + $0xd8] sm:$0xff]  }
  0x13   :  { %2653 = vmatpush1.bf16.msra.mxu0 %v5060_v10  ;;  %2076 = vmatprep.subr.bf16.mxu1 %v5117_v0  ;;  %v4108_v57 = vcombine.high %v34_v49, %v38_v50  ;;  %v42_v61 = vld [vmem:[%s7758_s0 + $0xc0] sm:$0xff]  ;;  %v44_v63 = vld [vmem:[%s7758_s0 + $0xd0] sm:$0xff]  ;;  %v4107_v4 = vcombine.low %v34_v49, %v38_v50 }
  0x14   :  { %2654 = vmatprep.subr.bf16.mxu0 %v5117_v0  ;;  %v46_v62 = vld [vmem:[%s7758_s0 + $0xe0] sm:$0xff]  ;;  %v48_v1 = vld [vmem:[%s7758_s0 + $0xf0] sm:$0xff] }
  0x15   :  { %v5091_v5 = vld [vmem:[%s7757_s1 + $0xa0] sm:$0xff]   ;;  %v4116_v7 = vcombine.high %v42_v61, %v46_v62  ;;  %v4120_v9 = vcombine.high %v44_v63, %v48_v1  ;;  %v5095_v20 = vld [vmem:[%s7757_s1 + $0xb0] sm:$0xff]  }
  0x16   :  { %2077 = vmatpush1.bf16.msra.mxu1 %v5061_v11  ;;  %v5092_v8 = vld [vmem:[%s7757_s1 + $0x1a0] sm:$0xff]   ;;  %v5096_v21 = vld [vmem:[%s7757_s1 + $0x1b0] sm:$0xff]  }
  0x17   :  { %2655 = vmatpush1.bf16.msra.mxu0 %v5062_v12  ;;  %2078 = vmatprep.subr.bf16.mxu1 %v5117_v0  ;;  %v50_v10 = vld [vmem:[%s7758_s0 + $0x100] sm:$0xff]  ;;  %v52_v12 = vld [vmem:[%s7758_s0 + $0x110] sm:$0xff] }
  0x18   :  { %2656 = vmatprep.subr.bf16.mxu0 %v5117_v0  ;;  %v54_v11 = vld [vmem:[%s7758_s0 + $0x120] sm:$0xff]  ;;  %v60_v25 = vld [vmem:[%s7758_s0 + $0x150] sm:$0xff] }
  0x19   :  { %v58_v22 = vld [vmem:[%s7758_s0 + $0x140] sm:$0xff]  ;;  %v80_v49 = vld [vmem:[%s7758_s0 + $0x1f0] sm:$0xff] }
  0x1a   :  { %2079 = vmatpush1.bf16.msra.mxu1 %v5063_v13  ;;  %v56_v13 = vld [vmem:[%s7758_s0 + $0x130] sm:$0xff]  ;;  %v62_v23 = vld [vmem:[%s7758_s0 + $0x160] sm:$0xff] }
  0x1b   :  { %2657 = vmatpush1.bf16.msra.mxu0 %v5064_v14  ;;  %2080 = vmatprep.subr.bf16.mxu1 %v5117_v0  ;;  %v5093_v14 = vld [vmem:[%s7757_s1 + $0xa8] sm:$0xff]   ;;  %v4128_v19 = vcombine.high %v52_v12, %v56_v13  ;;  %v4131_v40 = vcombine.low %v58_v22, %v62_v23 }
  0x1c   :  { %2658 = vmatprep.subr.bf16.mxu0 %v5117_v0 }
  0x1e   :  { %2081 = vmatpush1.bf16.msra.mxu1 %v5065_v15  ;;  %v5094_v15 = vld [vmem:[%s7757_s1 + $0x1a8] sm:$0xff]  }
  0x1f   :  { %2659 = vmatpush1.bf16.msra.mxu0 %v5066_v16  ;;  %2082 = vmatprep.subr.bf16.mxu1 %v5117_v0  ;;  %v4115_v16 = vcombine.low %v42_v61, %v46_v62 }
  0x20   :  { %2660 = vmatprep.subr.bf16.mxu0 %v5117_v0 }
  0x22   :  { %2083 = vmatpush1.bf16.msra.mxu1 %v5067_v17  ;;  %v4119_v17 = vcombine.low %v44_v63, %v48_v1  ;;  %v90_v1 = vld [vmem:[%s7758_s0 + $0x240] sm:$0xff] }
  0x23   :  { %2661 = vmatpush1.bf16.msra.mxu0 %v5068_v18  ;;  %2084 = vmatprep.subr.bf16.mxu1 %v5117_v0  ;;  %v4124_v18 = vcombine.high %v50_v10, %v54_v11 }
  0x24   :  { %2662 = vmatprep.subr.bf16.mxu0 %v5117_v0 }
  0x26   :  { %2085 = vmatpush1.bf16.msra.mxu1 %v5069_v24  ;;  %v5097_v24 = vld [vmem:[%s7757_s1 + $0xb8] sm:$0xff]  }
  0x27   :  { %2663 = vmatpush1.bf16.msra.mxu0 %v5070_v26  ;;  %2086 = vmatprep.subr.bf16.mxu1 %v5117_v0  ;;  %v64_v26 = vld [vmem:[%s7758_s0 + $0x170] sm:$0xff] }
  0x28   :  { %2664 = vmatprep.subr.bf16.mxu0 %v5117_v0  ;;  %v4135_v41 = vcombine.low %v60_v25, %v64_v26 }
  0x2a   :  { %2087 = vmatpush1.bf16.msra.mxu1 %v5071_v27  ;;  %v5098_v27 = vld [vmem:[%s7757_s1 + $0x1b8] sm:$0xff]  }
  0x2b   :  { %2665 = vmatpush1.bf16.msra.mxu0 %v5072_v28  ;;  %2088 = vmatprep.subr.bf16.mxu1 %v5117_v0  ;;  %v4123_v28 = vcombine.low %v50_v10, %v54_v11  ;;  %v5108_v10 = vld [vmem:[%s7757_s1 + $0x1e0] sm:$0xff]  }
  0x2c   :  { %2666 = vmatprep.subr.bf16.mxu0 %v5117_v0  ;;  %v98_v11 = vld [vmem:[%s7758_s0 + $0x280] sm:$0xff] }
  0x2e   :  { %2089 = vmatpush1.bf16.msra.mxu1 %v5073_v29  ;;  %v4127_v29 = vcombine.low %v52_v12, %v56_v13  ;;  %v102_v12 = vld [vmem:[%s7758_s0 + $0x2a0] sm:$0xff]  ;;  %v100_v13 = vld [vmem:[%s7758_s0 + $0x290] sm:$0xff] }
  0x2f   :  { %2667 = vmatpush1.bf16.msra.mxu0 %v5074_v30  ;;  %2090 = vmatprep.subr.bf16.mxu1 %v5117_v0  ;;  %v4132_v30 = vcombine.high %v58_v22, %v62_v23  ;;  %v112_v22 = vld [vmem:[%s7758_s0 + $0x2f0] sm:$0xff]  ;;  %v4171_v23 = vcombine.low %v98_v11, %v102_v12 }
  0x30   :  { %2668 = vmatprep.subr.bf16.mxu0 %v5117_v0 }
  0x32   :  { %2091 = vmatpush1.bf16.msra.mxu1 %v5075_v31  ;;  %v4136_v31 = vcombine.high %v60_v25, %v64_v26 }
  0x33   :  { %2669 = vmatpush1.bf16.msra.mxu0 %v5076_v32  ;;  %2092 = vmatprep.subr.bf16.mxu1 %v5117_v0  ;;  %v5099_v32 = vld [vmem:[%s7757_s1 + $0xc0] sm:$0xff]  }
  0x34   :  { %2670 = vmatprep.subr.bf16.mxu0 %v5117_v0 }
  0x36   :  { %2093 = vmatpush1.bf16.msra.mxu1 %v5077_v33  ;;  %v5100_v33 = vld [vmem:[%s7757_s1 + $0x1c0] sm:$0xff]  }
  0x37   :  { %2671 = vmatpush1.bf16.msra.mxu0 %v5078_v34  ;;  %2094 = vmatprep.subr.bf16.mxu1 %v5117_v0  ;;  %v66_v34 = vld [vmem:[%s7758_s0 + $0x180] sm:$0xff] }
  0x38   :  { %2672 = vmatprep.subr.bf16.mxu0 %v5117_v0 }
  0x3a   :  { %2095 = vmatpush1.bf16.msra.mxu1 %v5079_v35  ;;  %v70_v35 = vld [vmem:[%s7758_s0 + $0x1a0] sm:$0xff] }
  0x3b   :  { %2673 = vmatpush1.bf16.msra.mxu0 %v5080_v36  ;;  %2096 = vmatprep.subr.bf16.mxu1 %v5117_v0  ;;  %v5101_v36 = vld [vmem:[%s7757_s1 + $0xc8] sm:$0xff]   ;;  %v4139_v50 = vcombine.low %v66_v34, %v70_v35 }
  0x3c   :  { %2674 = vmatprep.subr.bf16.mxu0 %v5117_v0 }
  0x3e   :  { %2097 = vmatpush1.bf16.msra.mxu1 %v5081_v37  ;;  %v68_v37 = vld [vmem:[%s7758_s0 + $0x190] sm:$0xff] }
  0x3f   :  { %2675 = vmatpush1.bf16.msra.mxu0 %v5082_v38  ;;  %2355 = vmatprep.subr.bf16.mxu1 %v5117_v0  ;;  %v72_v38 = vld [vmem:[%s7758_s0 + $0x1b0] sm:$0xff] }
  0x40   :  { %2933 = vmatprep.subr.bf16.mxu0 %v5117_v0  ;;  %v4144_v43 = vcombine.high %v68_v37, %v72_v38 }
  0x41   :  { %2099 = vmatmul.mubr.bf16.vlgmr.msra.gmra.mrb[0].mxu1 %v4091_v42  ;;  %v4140_v42 = vcombine.high %v66_v34, %v70_v35 }
  0x42   :  { %2677 = vmatmul.mubr.bf16.vlgmr.msra.gmra.mrb[0].mxu0 %v4095_v44  ;;  %2356 = vmatpush1.bf16.msra.mxu1 %v5083_v45  ;;  %v5103_v44 = vld [vmem:[%s7757_s1 + $0xd0] sm:$0xff]  }
  0x43   :  { %2934 = vmatpush1.bf16.msra.mxu0 %v5084_v46  ;;  %2106 = vmatprep.mubr.bf16.mxu1 %v4100_v47  ;;  %v5104_v45 = vld [vmem:[%s7757_s1 + $0x1d0] sm:$0xff]   ;;  %v74_v46 = vld [vmem:[%s7758_s0 + $0x1c0] sm:$0xff] }
  0x44   :  { %2684 = vmatprep.mubr.bf16.mxu0 %v4104_v48  ;;  %2357 = vmatprep.subr.bf16.mxu1 %v5117_v0  ;;  %v78_v47 = vld [vmem:[%s7758_s0 + $0x1e0] sm:$0xff]  ;;  %v76_v48 = vld [vmem:[%s7758_s0 + $0x1d0] sm:$0xff] }
  0x45   :  { %2935 = vmatprep.subr.bf16.mxu0 %v5117_v0  ;;  %v4152_v53 = vcombine.high %v76_v48, %v80_v49  ;;  %v4151_v61 = vcombine.low %v76_v48, %v80_v49  ;;  %v134_v48 = vld [vmem:[%s7758_s0 + $0x3a0] sm:$0xff]  ;;  %v132_v49 = vld [vmem:[%s7758_s0 + $0x390] sm:$0xff] }
  0x46   :  { %2358 = vmatpush1.bf16.msra.mxu1 %v5085_v51  ;;  %v4143_v51 = vcombine.low %v68_v37, %v72_v38  ;;  %v122_v37 = vld [vmem:[%s7758_s0 + $0x340] sm:$0xff] }
  0x47   :  { %2936 = vmatpush1.bf16.msra.mxu0 %v5086_v52  ;;  %2359 = vmatprep.subr.bf16.mxu1 %v5117_v0  ;;  %v4148_v52 = vcombine.high %v74_v46, %v78_v47  ;;  %v126_v38 = vld [vmem:[%s7758_s0 + $0x360] sm:$0xff] }
  0x48   :  { %2937 = vmatprep.subr.bf16.mxu0 %v5117_v0 }
  0x49   :  { %2107 = vmatmul.mubr.bf16.gmra.mrb[4].mxu1 %v4099_v55  ;;  %v5106_v55 = vld [vmem:[%s7757_s1 + $0x1d8] sm:$0xff]  }
  0x4a   :  { %2685 = vmatmul.mubr.bf16.gmra.mrb[4].mxu0 %v4103_v56  ;;  %2114 = vmatprep.mubr.bf16.mxu1 %v4108_v57  ;;  %v82_v56 = vld [vmem:[%s7758_s0 + $0x200] sm:$0xff] }
  0x4b   :  { %2692 = vmatprep.mubr.bf16.mxu0 %v4112_v58  ;;  %2360 = vmatpush1.bf16.msra.mxu1 %v5087_v59  ;;  %v86_v57 = vld [vmem:[%s7758_s0 + $0x220] sm:$0xff]  ;;  %v84_v58 = vld [vmem:[%s7758_s0 + $0x210] sm:$0xff] }
  0x4c   :  { %2938 = vmatpush1.bf16.msra.mxu0 %v5088_v60  ;;  %2361 = vmatprep.subr.bf16.mxu1 %v5117_v0  ;;  %v88_v59 = vld [vmem:[%s7758_s0 + $0x230] sm:$0xff]  ;;  %v4147_v60 = vcombine.low %v74_v46, %v78_v47  ;;  %v4156_v62 = vcombine.high %v82_v56, %v86_v57  ;;  %v130_v47 = vld [vmem:[%s7758_s0 + $0x380] sm:$0xff] }
  0x4d   :  { %2939 = vmatprep.subr.bf16.mxu0 %v5117_v0  ;;  %v4160_v63 = vcombine.high %v84_v58, %v88_v59  ;;  %v5112_v46 = vld [vmem:[%s7757_s1 + $0x1f0] sm:$0xff]  }
  0x4f   :  { %2362 = vmatpush1.bf16.msra.mxu1 %v5089_v2  ;;  %v94_v2 = vld [vmem:[%s7758_s0 + $0x260] sm:$0xff] }
  0x50   :  { %2940 = vmatpush1.bf16.msra.mxu0 %v5090_v3  ;;  %2363 = vmatprep.subr.bf16.mxu1 %v5117_v0  ;;  %v92_v3 = vld [vmem:[%s7758_s0 + $0x250] sm:$0xff] }
  0x51   :  { %2115 = vmatmul.mubr.bf16.gmra.mrb[8].mxu1 %v4107_v4  ;;  %2941 = vmatprep.subr.bf16.mxu0 %v5117_v0  ;;  %v96_v4 = vld [vmem:[%s7758_s0 + $0x270] sm:$0xff] }
  0x52   :  { %2693 = vmatmul.mubr.bf16.gmra.mrb[8].mxu0 %v4111_v6  ;;  %2122 = vmatprep.mubr.bf16.mxu1 %v4116_v7  ;;  %v4159_v6 = vcombine.low %v84_v58, %v88_v59  ;;  %v4164_v7 = vcombine.high %v90_v1, %v94_v2  ;;  %v4203_v58 = vcombine.low %v130_v47, %v134_v48 }
  0x53   :  { %2700 = vmatprep.mubr.bf16.mxu0 %v4120_v9  ;;  %2364 = vmatpush1.bf16.msra.mxu1 %v5091_v5  ;;  %v4155_v5 = vcombine.low %v82_v56, %v86_v57  ;;  %v5107_v9 = vld [vmem:[%s7757_s1 + $0xe0] sm:$0xff]   ;;  %v140_v57 = vld [vmem:[%s7758_s0 + $0x3d0] sm:$0xff] }
  0x54   :  { %2942 = vmatpush1.bf16.msra.mxu0 %v5092_v8  ;;  %2365 = vmatprep.subr.bf16.mxu1 %v5117_v0  ;;  %v4168_v8 = vcombine.high %v92_v3, %v96_v4  ;;  %v142_v56 = vld [vmem:[%s7758_s0 + $0x3e0] sm:$0xff] }
  0x55   :  { %2943 = vmatprep.subr.bf16.mxu0 %v5117_v0 }
  0x57   :  { %2366 = vmatpush1.bf16.msra.mxu1 %v5093_v14  ;;  %v104_v14 = vld [vmem:[%s7758_s0 + $0x2b0] sm:$0xff] }
  0x58   :  { %2944 = vmatpush1.bf16.msra.mxu0 %v5094_v15  ;;  %2367 = vmatprep.subr.bf16.mxu1 %v5117_v0  ;;  %v4163_v15 = vcombine.low %v90_v1, %v94_v2  ;;  %v146_v1 = vld [vmem:[%s7758_s0 + $0x400] sm:$0xff] }
  0x59   :  { %2123 = vmatmul.mubr.bf16.gmra.mrb[12].mxu1 %v4115_v16  ;;  %2945 = vmatprep.subr.bf16.mxu0 %v5117_v0  ;;  %v4167_v16 = vcombine.low %v92_v3, %v96_v4  ;;  %v150_v2 = vld [vmem:[%s7758_s0 + $0x420] sm:$0xff]  ;;  %v148_v3 = vld [vmem:[%s7758_s0 + $0x410] sm:$0xff] }
  0x5a   :  { %2701 = vmatmul.mubr.bf16.gmra.mrb[12].mxu0 %v4119_v17  ;;  %2130 = vmatprep.mubr.bf16.mxu1 %v4124_v18  ;;  %v4172_v17 = vcombine.high %v98_v11, %v102_v12  ;;  %v4176_v18 = vcombine.high %v100_v13, %v104_v14  ;;  %v152_v4 = vld [vmem:[%s7758_s0 + $0x430] sm:$0xff] }
  0x5b   :  { %2708 = vmatprep.mubr.bf16.mxu0 %v4128_v19  ;;  %2368 = vmatpush1.bf16.msra.mxu1 %v5095_v20  ;;  %v106_v19 = vld [vmem:[%s7758_s0 + $0x2c0] sm:$0xff]  ;;  %v156_v11 = vld [vmem:[%s7758_s0 + $0x450] sm:$0xff] }
  0x5c   :  { %2946 = vmatpush1.bf16.msra.mxu0 %v5096_v21  ;;  %2369 = vmatprep.subr.bf16.mxu1 %v5117_v0  ;;  %v110_v20 = vld [vmem:[%s7758_s0 + $0x2e0] sm:$0xff]  ;;  %v108_v21 = vld [vmem:[%s7758_s0 + $0x2d0] sm:$0xff] }
  0x5d   :  { %2947 = vmatprep.subr.bf16.mxu0 %v5117_v0  ;;  %v4180_v25 = vcombine.high %v106_v19, %v110_v20  ;;  %v4184_v26 = vcombine.high %v108_v21, %v112_v22  ;;  %v4183_v34 = vcombine.low %v108_v21, %v112_v22  ;;  %v160_v12 = vld [vmem:[%s7758_s0 + $0x470] sm:$0xff] }
  0x5e   :  { %v4231_v22 = vcombine.low %v156_v11, %v160_v12 }
  0x5f   :  { %2370 = vmatpush1.bf16.msra.mxu1 %v5097_v24  ;;  %v4175_v24 = vcombine.low %v100_v13, %v104_v14  ;;  %v4219_v13 = vcombine.low %v146_v1, %v150_v2  ;;  %v4223_v14 = vcombine.low %v148_v3, %v152_v4 }
  0x60   :  { %2948 = vmatpush1.bf16.msra.mxu0 %v5098_v27  ;;  %2371 = vmatprep.subr.bf16.mxu1 %v5117_v0  ;;  %v5109_v27 = vld [vmem:[%s7757_s1 + $0xe8] sm:$0xff]  }
  0x61   :  { %2131 = vmatmul.mubr.bf16.gmra.mrb[16].mxu1 %v4123_v28  ;;  %2949 = vmatprep.subr.bf16.mxu0 %v5117_v0  ;;  %v5110_v28 = vld [vmem:[%s7757_s1 + $0x1e8] sm:$0xff]  }
  0x62   :  { %2709 = vmatmul.mubr.bf16.gmra.mrb[16].mxu0 %v4127_v29  ;;  %2138 = vmatprep.mubr.bf16.mxu1 %v4132_v30  ;;  %v114_v29 = vld [vmem:[%s7758_s0 + $0x300] sm:$0xff] }
  0x63   :  { %2716 = vmatprep.mubr.bf16.mxu0 %v4136_v31  ;;  %2372 = vmatpush1.bf16.msra.mxu1 %v5099_v32  ;;  %v118_v30 = vld [vmem:[%s7758_s0 + $0x320] sm:$0xff]  ;;  %v116_v31 = vld [vmem:[%s7758_s0 + $0x310] sm:$0xff] }
  0x64   :  { %2950 = vmatpush1.bf16.msra.mxu0 %v5100_v33  ;;  %2373 = vmatprep.subr.bf16.mxu1 %v5117_v0  ;;  %v120_v32 = vld [vmem:[%s7758_s0 + $0x330] sm:$0xff]  ;;  %v4179_v33 = vcombine.low %v106_v19, %v110_v20  ;;  %v4188_v35 = vcombine.high %v114_v29, %v118_v30 }
  0x65   :  { %2951 = vmatprep.subr.bf16.mxu0 %v5117_v0  ;;  %v164_v19 = vld [vmem:[%s7758_s0 + $0x490] sm:$0xff] }
  0x66   :  { %v168_v20 = vld [vmem:[%s7758_s0 + $0x4b0] sm:$0xff] }
  0x67   :  { %2374 = vmatpush1.bf16.msra.mxu1 %v5101_v36  ;;  %v4192_v36 = vcombine.high %v116_v31, %v120_v32 }
  0x68   :  { %2952 = vmatpush1.bf16.msra.mxu0 %v5102_v39  ;;  %2375 = vmatprep.subr.bf16.mxu1 %v5117_v0  ;;  %v124_v39 = vld [vmem:[%s7758_s0 + $0x350] sm:$0xff] }
  0x69   :  { %2139 = vmatmul.mubr.bf16.gmra.mrb[20].mxu1 %v4131_v40  ;;  %2953 = vmatprep.subr.bf16.mxu0 %v5117_v0  ;;  %v128_v40 = vld [vmem:[%s7758_s0 + $0x370] sm:$0xff] }
  0x6a   :  { %2717 = vmatmul.mubr.bf16.gmra.mrb[20].mxu0 %v4135_v41  ;;  %2146 = vmatprep.mubr.bf16.mxu1 %v4140_v42  ;;  %v4187_v41 = vcombine.low %v114_v29, %v118_v30  ;;  %v4191_v42 = vcombine.low %v116_v31, %v120_v32  ;;  %v4239_v30 = vcombine.low %v164_v19, %v168_v20 }
  0x6b   :  { %2724 = vmatprep.mubr.bf16.mxu0 %v4144_v43  ;;  %2376 = vmatpush1.bf16.msra.mxu1 %v5103_v44  ;;  %v4196_v43 = vcombine.high %v122_v37, %v126_v38  ;;  %v4200_v44 = vcombine.high %v124_v39, %v128_v40 }
  0x6c   :  { %2954 = vmatpush1.bf16.msra.mxu0 %v5104_v45  ;;  %2377 = vmatprep.subr.bf16.mxu1 %v5117_v0  ;;  %v5111_v45 = vld [vmem:[%s7757_s1 + $0xf0] sm:$0xff]  }
  0x6d   :  { %2955 = vmatprep.subr.bf16.mxu0 %v5117_v0 }
  0x6f   :  { %2378 = vmatpush1.bf16.msra.mxu1 %v5105_v54 }
  0x70   :  { %2956 = vmatpush1.bf16.msra.mxu0 %v5106_v55  ;;  %2379 = vmatprep.subr.bf16.mxu1 %v5117_v0  ;;  %v138_v55 = vld [vmem:[%s7758_s0 + $0x3c0] sm:$0xff] }
  0x71   :  { %2147 = vmatmul.mubr.bf16.gmra.mrb[24].mxu1 %v4139_v50  ;;  %2957 = vmatprep.subr.bf16.mxu0 %v5117_v0  ;;  %v136_v50 = vld [vmem:[%s7758_s0 + $0x3b0] sm:$0xff] }
  0x72   :  { %2725 = vmatmul.mubr.bf16.gmra.mrb[24].mxu0 %v4143_v51  ;;  %2154 = vmatprep.mubr.bf16.mxu1 %v4148_v52  ;;  %v4195_v51 = vcombine.low %v122_v37, %v126_v38  ;;  %v4199_v52 = vcombine.low %v124_v39, %v128_v40  ;;  %v4208_v54 = vcombine.high %v132_v49, %v136_v50 }
  0x73   :  { %2732 = vmatprep.mubr.bf16.mxu0 %v4152_v53  ;;  %2380 = vmatpush1.bf16.msra.mxu1 %v5107_v9  ;;  %v4204_v53 = vcombine.high %v130_v47, %v134_v48  ;;  %v4207_v59 = vcombine.low %v132_v49, %v136_v50  ;;  %v154_v9 = vld [vmem:[%s7758_s0 + $0x440] sm:$0xff] }
  0x74   :  { %2958 = vmatpush1.bf16.msra.mxu0 %v5108_v10  ;;  %2381 = vmatprep.subr.bf16.mxu1 %v5117_v0  ;;  %v158_v10 = vld [vmem:[%s7758_s0 + $0x460] sm:$0xff] }
  0x75   :  { %2959 = vmatprep.subr.bf16.mxu0 %v5117_v0  ;;  %v4227_v21 = vcombine.low %v154_v9, %v158_v10  ;;  %v194_v49 = vld [vmem:[%s7758_s0 + $0x580] sm:$0xff] }
  0x76   :  { %v198_v50 = vld [vmem:[%s7758_s0 + $0x5a0] sm:$0xff] }
  0x77   :  { %2382 = vmatpush1.bf16.msra.mxu1 %v5109_v27  ;;  %v172_v27 = vld [vmem:[%s7758_s0 + $0x4d0] sm:$0xff] }
  0x78   :  { %2960 = vmatpush1.bf16.msra.mxu0 %v5110_v28  ;;  %2383 = vmatprep.subr.bf16.mxu1 %v5117_v0  ;;  %v176_v28 = vld [vmem:[%s7758_s0 + $0x4f0] sm:$0xff] }
  0x79   :  { %2155 = vmatmul.mubr.bf16.gmra.mrb[28].mxu1 %v4147_v60  ;;  %2961 = vmatprep.subr.bf16.mxu0 %v5117_v0  ;;  %v4212_v60 = vcombine.high %v138_v55, %v142_v56  ;;  %v4248_v32 = vcombine.high %v172_v27, %v176_v28  ;;  %v4247_v38 = vcombine.low %v172_v27, %v176_v28  ;;  %v236_v27 = vld [vmem:[%s7758_s0 + $0x6d0] sm:$0xff] }
  0x7a   :  { %2733 = vmatmul.mubr.bf16.gmra.mrb[28].mxu0 %v4151_v61  ;;  %2162 = vmatprep.mubr.bf16.mxu1 %v4156_v62  ;;  %v5113_v62 = vld [vmem:[%s7757_s1 + $0xf8] sm:$0xff]   ;;  %v240_v28 = vld [vmem:[%s7758_s0 + $0x6f0] sm:$0xff] }
  0x7b   :  { %2740 = vmatprep.mubr.bf16.mxu0 %v4160_v63  ;;  %2384 = vmatpush1.bf16.msra.mxu1 %v5111_v45  ;;  %v5114_v63 = vld [vmem:[%s7757_s1 + $0x1f8] sm:$0xff]  }
  0x7c   :  { %2962 = vmatpush1.bf16.msra.mxu0 %v5112_v46  ;;  %2385 = vmatprep.subr.bf16.mxu1 %v5117_v0 }
  0x7d   :  { %2963 = vmatprep.subr.bf16.mxu0 %v5117_v0  ;;  %v144_v0 = vld [vmem:[%s7758_s0 + $0x3f0] sm:$0xff] }
  0x7e   :  { %v4216_v61 = vcombine.high %v140_v57, %v144_v0 }
  0x7f   :  { %2386 = vmatpush1.bf16.msra.mxu1 %v5113_v62 }
  0x80   :  { %2964 = vmatpush1.bf16.msra.mxu0 %v5114_v63 }
  0x81   :  { %2163 = vmatmul.mubr.bf16.gmra.mrb[32].mxu1 %v4155_v5  ;;  %v4211_v5 = vcombine.low %v138_v55, %v142_v56  ;;  %v4268_v55 = vcombine.high %v194_v49, %v198_v50 }
  0x82   :  { %2741 = vmatmul.mubr.bf16.gmra.mrb[32].mxu0 %v4159_v6  ;;  %2170 = vmatprep.mubr.bf16.mxu1 %v4164_v7  ;;  %v4215_v6 = vcombine.low %v140_v57, %v144_v0  ;;  %v4220_v7 = vcombine.high %v146_v1, %v150_v2  ;;  %v202_v57 = vld [vmem:[%s7758_s0 + $0x5c0] sm:$0xff] }
  0x83   :  { %2748 = vmatprep.mubr.bf16.mxu0 %v4168_v8  ;;  %v4224_v8 = vcombine.high %v148_v3, %v152_v4  ;;  %v206_v0 = vld [vmem:[%s7758_s0 + $0x5e0] sm:$0xff]  ;;  %v212_v3 = vld [vmem:[%s7758_s0 + $0x610] sm:$0xff] }
  0x84   :  { %v4276_v62 = vcombine.high %v202_v57, %v206_v0  ;;  %v210_v1 = vld [vmem:[%s7758_s0 + $0x600] sm:$0xff]  ;;  %v216_v4 = vld [vmem:[%s7758_s0 + $0x630] sm:$0xff] }
  0x85   :  { %v214_v2 = vld [vmem:[%s7758_s0 + $0x620] sm:$0xff] }
  0x89   :  { %2171 = vmatmul.mubr.bf16.gmra.mrb[36].mxu1 %v4163_v15  ;;  %v4228_v15 = vcombine.high %v154_v9, %v158_v10  ;;  %v218_v9 = vld [vmem:[%s7758_s0 + $0x640] sm:$0xff] }
  0x8a   :  { %2749 = vmatmul.mubr.bf16.gmra.mrb[36].mxu0 %v4167_v16  ;;  %2178 = vmatprep.mubr.bf16.mxu1 %v4172_v17  ;;  %v4232_v16 = vcombine.high %v156_v11, %v160_v12  ;;  %v162_v17 = vld [vmem:[%s7758_s0 + $0x480] sm:$0xff]  ;;  %v220_v11 = vld [vmem:[%s7758_s0 + $0x650] sm:$0xff] }
  0x8b   :  { %2756 = vmatprep.mubr.bf16.mxu0 %v4176_v18  ;;  %v166_v18 = vld [vmem:[%s7758_s0 + $0x4a0] sm:$0xff]  ;;  %v224_v12 = vld [vmem:[%s7758_s0 + $0x670] sm:$0xff] }
  0x8c   :  { %v4235_v29 = vcombine.low %v162_v17, %v166_v18  ;;  %v222_v10 = vld [vmem:[%s7758_s0 + $0x660] sm:$0xff] }
  0x91   :  { %2179 = vmatmul.mubr.bf16.gmra.mrb[40].mxu1 %v4171_v23  ;;  %v4236_v23 = vcombine.high %v162_v17, %v166_v18  ;;  %v226_v17 = vld [vmem:[%s7758_s0 + $0x680] sm:$0xff] }
  0x92   :  { %2757 = vmatmul.mubr.bf16.gmra.mrb[40].mxu0 %v4175_v24  ;;  %2186 = vmatprep.mubr.bf16.mxu1 %v4180_v25  ;;  %v4240_v24 = vcombine.high %v164_v19, %v168_v20  ;;  %v170_v25 = vld [vmem:[%s7758_s0 + $0x4c0] sm:$0xff]  ;;  %v228_v19 = vld [vmem:[%s7758_s0 + $0x690] sm:$0xff] }
  0x93   :  { %2764 = vmatprep.mubr.bf16.mxu0 %v4184_v26  ;;  %v174_v26 = vld [vmem:[%s7758_s0 + $0x4e0] sm:$0xff]  ;;  %v232_v20 = vld [vmem:[%s7758_s0 + $0x6b0] sm:$0xff] }
  0x94   :  { %v4244_v31 = vcombine.high %v170_v25, %v174_v26  ;;  %v4243_v37 = vcombine.low %v170_v25, %v174_v26  ;;  %v230_v18 = vld [vmem:[%s7758_s0 + $0x6a0] sm:$0xff] }
  0x95   :  { %v234_v25 = vld [vmem:[%s7758_s0 + $0x6c0] sm:$0xff] }
  0x96   :  { %v238_v26 = vld [vmem:[%s7758_s0 + $0x6e0] sm:$0xff] }
  0x99   :  { %2187 = vmatmul.mubr.bf16.gmra.mrb[44].mxu1 %v4179_v33  ;;  %v178_v33 = vld [vmem:[%s7758_s0 + $0x500] sm:$0xff] }
  0x9a   :  { %2765 = vmatmul.mubr.bf16.gmra.mrb[44].mxu0 %v4183_v34  ;;  %2194 = vmatprep.mubr.bf16.mxu1 %v4188_v35  ;;  %v182_v34 = vld [vmem:[%s7758_s0 + $0x520] sm:$0xff]  ;;  %v180_v35 = vld [vmem:[%s7758_s0 + $0x510] sm:$0xff] }
  0x9b   :  { %2772 = vmatprep.mubr.bf16.mxu0 %v4192_v36  ;;  %v184_v36 = vld [vmem:[%s7758_s0 + $0x530] sm:$0xff]  ;;  %v4252_v39 = vcombine.high %v178_v33, %v182_v34  ;;  %v4251_v45 = vcombine.low %v178_v33, %v182_v34  ;;  %v242_v33 = vld [vmem:[%s7758_s0 + $0x700] sm:$0xff] }
  0x9c   :  { %v4256_v40 = vcombine.high %v180_v35, %v184_v36  ;;  %v4255_v46 = vcombine.low %v180_v35, %v184_v36  ;;  %v246_v34 = vld [vmem:[%s7758_s0 + $0x720] sm:$0xff]  ;;  %v244_v35 = vld [vmem:[%s7758_s0 + $0x710] sm:$0xff] }
  0x9d   :  { %v248_v36 = vld [vmem:[%s7758_s0 + $0x730] sm:$0xff] }
  0xa1   :  { %2195 = vmatmul.mubr.bf16.gmra.mrb[48].mxu1 %v4187_v41  ;;  %v186_v41 = vld [vmem:[%s7758_s0 + $0x540] sm:$0xff] }
  0xa2   :  { %2773 = vmatmul.mubr.bf16.gmra.mrb[48].mxu0 %v4191_v42  ;;  %2202 = vmatprep.mubr.bf16.mxu1 %v4196_v43  ;;  %v190_v42 = vld [vmem:[%s7758_s0 + $0x560] sm:$0xff]  ;;  %v188_v43 = vld [vmem:[%s7758_s0 + $0x550] sm:$0xff] }
  0xa3   :  { %2780 = vmatprep.mubr.bf16.mxu0 %v4200_v44  ;;  %v192_v44 = vld [vmem:[%s7758_s0 + $0x570] sm:$0xff]  ;;  %v4260_v47 = vcombine.high %v186_v41, %v190_v42 }
  0xa4   :  { %v4264_v48 = vcombine.high %v188_v43, %v192_v44 }
  0xa9   :  { %2203 = vmatmul.mubr.bf16.gmra.mrb[52].mxu1 %v4195_v51  ;;  %v196_v51 = vld [vmem:[%s7758_s0 + $0x590] sm:$0xff] }
  0xaa   :  { %2781 = vmatmul.mubr.bf16.gmra.mrb[52].mxu0 %v4199_v52  ;;  %2210 = vmatprep.mubr.bf16.mxu1 %v4204_v53  ;;  %v200_v52 = vld [vmem:[%s7758_s0 + $0x5b0] sm:$0xff]  ;;  %v4259_v53 = vcombine.low %v186_v41, %v190_v42  ;;  %v250_v41 = vld [vmem:[%s7758_s0 + $0x740] sm:$0xff] }
  0xab   :  { %2788 = vmatprep.mubr.bf16.mxu0 %v4208_v54  ;;  %v4263_v54 = vcombine.low %v188_v43, %v192_v44  ;;  %v4272_v56 = vcombine.high %v196_v51, %v200_v52  ;;  %v254_v42 = vld [vmem:[%s7758_s0 + $0x760] sm:$0xff]  ;;  %v252_v43 = vld [vmem:[%s7758_s0 + $0x750] sm:$0xff] }
  0xac   :  { %v256_v44 = vld [vmem:[%s7758_s0 + $0x770] sm:$0xff] }
  0xb1   :  { %2211 = vmatmul.mubr.bf16.gmra.mrb[56].mxu1 %v4203_v58  ;;  %v204_v58 = vld [vmem:[%s7758_s0 + $0x5d0] sm:$0xff] }
  0xb2   :  { %2789 = vmatmul.mubr.bf16.gmra.mrb[56].mxu0 %v4207_v59  ;;  %2218 = vmatprep.mubr.bf16.mxu1 %v4212_v60  ;;  %v208_v59 = vld [vmem:[%s7758_s0 + $0x5f0] sm:$0xff]  ;;  %v4267_v60 = vcombine.low %v194_v49, %v198_v50  ;;  %v258_v49 = vld [vmem:[%s7758_s0 + $0x780] sm:$0xff] }
  0xb3   :  { %2796 = vmatprep.mubr.bf16.mxu0 %v4216_v61  ;;  %v4271_v61 = vcombine.low %v196_v51, %v200_v52  ;;  %v4280_v63 = vcombine.high %v204_v58, %v208_v59  ;;  %v262_v50 = vld [vmem:[%s7758_s0 + $0x7a0] sm:$0xff]  ;;  %v260_v51 = vld [vmem:[%s7758_s0 + $0x790] sm:$0xff] }
  0xb4   :  { %v264_v52 = vld [vmem:[%s7758_s0 + $0x7b0] sm:$0xff] }
  0xb9   :  { %2219 = vmatmul.mubr.bf16.gmra.mrb[60].mxu1 %v4211_v5  ;;  %v4275_v5 = vcombine.low %v202_v57, %v206_v0  ;;  %v266_v57 = vld [vmem:[%s7758_s0 + $0x7c0] sm:$0xff] }
  0xba   :  { %2797 = vmatmul.mubr.bf16.gmra.mrb[60].mxu0 %v4215_v6  ;;  %2226 = vmatprep.mubr.bf16.mxu1 %v4220_v7  ;;  %v4279_v6 = vcombine.low %v204_v58, %v208_v59  ;;  %v4284_v7 = vcombine.high %v210_v1, %v214_v2  ;;  %v270_v0 = vld [vmem:[%s7758_s0 + $0x7e0] sm:$0xff]  ;;  %v268_v58 = vld [vmem:[%s7758_s0 + $0x7d0] sm:$0xff] }
  0xbb   :  { %2804 = vmatprep.mubr.bf16.mxu0 %v4224_v8  ;;  %v4288_v8 = vcombine.high %v212_v3, %v216_v4  ;;  %v272_v59 = vld [vmem:[%s7758_s0 + $0x7f0] sm:$0xff] }
  0xc1   :  { %2227 = vmatmul.mubr.bf16.gmra.mrb[64].mxu1 %v4219_v13  ;;  %v4283_v13 = vcombine.low %v210_v1, %v214_v2  ;;  %v19_v1 = vld [vmem:[%s7758_s0 + $0x8] sm:$0xff] }
  0xc2   :  { %2805 = vmatmul.mubr.bf16.gmra.mrb[64].mxu0 %v4223_v14  ;;  %2234 = vmatprep.mubr.bf16.mxu1 %v4228_v15  ;;  %v4287_v14 = vcombine.low %v212_v3, %v216_v4  ;;  %v4292_v15 = vcombine.high %v218_v9, %v222_v10  ;;  %v23_v2 = vld [vmem:[%s7758_s0 + $0x28] sm:$0xff]  ;;  %v21_v3 = vld [vmem:[%s7758_s0 + $0x18] sm:$0xff] }
  0xc3   :  { %2812 = vmatprep.mubr.bf16.mxu0 %v4232_v16  ;;  %v4296_v16 = vcombine.high %v220_v11, %v224_v12  ;;  %v25_v4 = vld [vmem:[%s7758_s0 + $0x38] sm:$0xff] }
  0xc9   :  { %2235 = vmatmul.mubr.bf16.gmra.mrb[68].mxu1 %v4227_v21  ;;  %v4291_v21 = vcombine.low %v218_v9, %v222_v10  ;;  %v27_v9 = vld [vmem:[%s7758_s0 + $0x48] sm:$0xff] }
  0xca   :  { %2813 = vmatmul.mubr.bf16.gmra.mrb[68].mxu0 %v4231_v22  ;;  %2242 = vmatprep.mubr.bf16.mxu1 %v4236_v23  ;;  %v4295_v22 = vcombine.low %v220_v11, %v224_v12  ;;  %v4300_v23 = vcombine.high %v226_v17, %v230_v18  ;;  %v31_v10 = vld [vmem:[%s7758_s0 + $0x68] sm:$0xff]  ;;  %v29_v11 = vld [vmem:[%s7758_s0 + $0x58] sm:$0xff] }
  0xcb   :  { %2820 = vmatprep.mubr.bf16.mxu0 %v4240_v24  ;;  %v4304_v24 = vcombine.high %v228_v19, %v232_v20  ;;  %v33_v12 = vld [vmem:[%s7758_s0 + $0x78] sm:$0xff] }
  0xd1   :  { %2243 = vmatmul.mubr.bf16.gmra.mrb[72].mxu1 %v4235_v29  ;;  %v4299_v29 = vcombine.low %v226_v17, %v230_v18  ;;  %v35_v17 = vld [vmem:[%s7758_s0 + $0x88] sm:$0xff] }
  0xd2   :  { %2821 = vmatmul.mubr.bf16.gmra.mrb[72].mxu0 %v4239_v30  ;;  %2250 = vmatprep.mubr.bf16.mxu1 %v4244_v31  ;;  %v4303_v30 = vcombine.low %v228_v19, %v232_v20  ;;  %v4308_v31 = vcombine.high %v234_v25, %v238_v26  ;;  %v39_v18 = vld [vmem:[%s7758_s0 + $0xa8] sm:$0xff]  ;;  %v37_v19 = vld [vmem:[%s7758_s0 + $0x98] sm:$0xff] }
  0xd3   :  { %2828 = vmatprep.mubr.bf16.mxu0 %v4248_v32  ;;  %v4312_v32 = vcombine.high %v236_v27, %v240_v28  ;;  %v41_v20 = vld [vmem:[%s7758_s0 + $0xb8] sm:$0xff] }
  0xd9   :  { %2251 = vmatmul.mubr.bf16.gmra.mrb[76].mxu1 %v4243_v37  ;;  %v4307_v37 = vcombine.low %v234_v25, %v238_v26  ;;  %v43_v25 = vld [vmem:[%s7758_s0 + $0xc8] sm:$0xff] }
  0xda   :  { %2829 = vmatmul.mubr.bf16.gmra.mrb[76].mxu0 %v4247_v38  ;;  %2258 = vmatprep.mubr.bf16.mxu1 %v4252_v39  ;;  %v4311_v38 = vcombine.low %v236_v27, %v240_v28  ;;  %v4316_v39 = vcombine.high %v242_v33, %v246_v34  ;;  %v47_v26 = vld [vmem:[%s7758_s0 + $0xe8] sm:$0xff]  ;;  %v45_v27 = vld [vmem:[%s7758_s0 + $0xd8] sm:$0xff] }
  0xdb   :  { %2836 = vmatprep.mubr.bf16.mxu0 %v4256_v40  ;;  %v4320_v40 = vcombine.high %v244_v35, %v248_v36  ;;  %v49_v28 = vld [vmem:[%s7758_s0 + $0xf8] sm:$0xff] }
  0xe1   :  { %2259 = vmatmul.mubr.bf16.gmra.mrb[80].mxu1 %v4251_v45  ;;  %v4315_v45 = vcombine.low %v242_v33, %v246_v34  ;;  %v51_v33 = vld [vmem:[%s7758_s0 + $0x108] sm:$0xff] }
  0xe2   :  { %2837 = vmatmul.mubr.bf16.gmra.mrb[80].mxu0 %v4255_v46  ;;  %2266 = vmatprep.mubr.bf16.mxu1 %v4260_v47  ;;  %v4319_v46 = vcombine.low %v244_v35, %v248_v36  ;;  %v4324_v47 = vcombine.high %v250_v41, %v254_v42  ;;  %v55_v34 = vld [vmem:[%s7758_s0 + $0x128] sm:$0xff]  ;;  %v53_v35 = vld [vmem:[%s7758_s0 + $0x118] sm:$0xff] }
  0xe3   :  { %2844 = vmatprep.mubr.bf16.mxu0 %v4264_v48  ;;  %v4328_v48 = vcombine.high %v252_v43, %v256_v44  ;;  %v57_v36 = vld [vmem:[%s7758_s0 + $0x138] sm:$0xff] }
  0xe9   :  { %2267 = vmatmul.mubr.bf16.gmra.mrb[84].mxu1 %v4259_v53  ;;  %v4323_v53 = vcombine.low %v250_v41, %v254_v42  ;;  %v59_v41 = vld [vmem:[%s7758_s0 + $0x148] sm:$0xff] }
  0xea   :  { %2845 = vmatmul.mubr.bf16.gmra.mrb[84].mxu0 %v4263_v54  ;;  %2274 = vmatprep.mubr.bf16.mxu1 %v4268_v55  ;;  %v4327_v54 = vcombine.low %v252_v43, %v256_v44  ;;  %v4332_v55 = vcombine.high %v258_v49, %v262_v50  ;;  %v63_v42 = vld [vmem:[%s7758_s0 + $0x168] sm:$0xff]  ;;  %v61_v43 = vld [vmem:[%s7758_s0 + $0x158] sm:$0xff] }
  0xeb   :  { %2852 = vmatprep.mubr.bf16.mxu0 %v4272_v56  ;;  %v4336_v56 = vcombine.high %v260_v51, %v264_v52  ;;  %v65_v44 = vld [vmem:[%s7758_s0 + $0x178] sm:$0xff] }
  0xf1   :  { %2275 = vmatmul.mubr.bf16.gmra.mrb[88].mxu1 %v4267_v60  ;;  %v4331_v60 = vcombine.low %v258_v49, %v262_v50  ;;  %v67_v49 = vld [vmem:[%s7758_s0 + $0x188] sm:$0xff] }
  0xf2   :  { %2853 = vmatmul.mubr.bf16.gmra.mrb[88].mxu0 %v4271_v61  ;;  %2282 = vmatprep.mubr.bf16.mxu1 %v4276_v62  ;;  %v4335_v61 = vcombine.low %v260_v51, %v264_v52  ;;  %v4340_v62 = vcombine.high %v266_v57, %v270_v0  ;;  %v71_v50 = vld [vmem:[%s7758_s0 + $0x1a8] sm:$0xff]  ;;  %v69_v51 = vld [vmem:[%s7758_s0 + $0x198] sm:$0xff] }
  0xf3   :  { %2860 = vmatprep.mubr.bf16.mxu0 %v4280_v63  ;;  %v4344_v63 = vcombine.high %v268_v58, %v272_v59  ;;  %v73_v52 = vld [vmem:[%s7758_s0 + $0x1b8] sm:$0xff] }
  0xf9   :  { %2283 = vmatmul.mubr.bf16.gmra.mrb[92].mxu1 %v4275_v5  ;;  %v4339_v5 = vcombine.low %v266_v57, %v270_v0  ;;  %v75_v57 = vld [vmem:[%s7758_s0 + $0x1c8] sm:$0xff] }
  0xfa   :  { %2861 = vmatmul.mubr.bf16.gmra.mrb[92].mxu0 %v4279_v6  ;;  %2290 = vmatprep.mubr.bf16.mxu1 %v4284_v7  ;;  %v4343_v6 = vcombine.low %v268_v58, %v272_v59  ;;  %v4094_v7 = vcombine.high %v19_v1, %v23_v2  ;;  %v79_v0 = vld [vmem:[%s7758_s0 + $0x1e8] sm:$0xff]  ;;  %v77_v58 = vld [vmem:[%s7758_s0 + $0x1d8] sm:$0xff] }
  0xfb   :  { %2868 = vmatprep.mubr.bf16.mxu0 %v4288_v8  ;;  %v4098_v8 = vcombine.high %v21_v3, %v25_v4  ;;  %v81_v59 = vld [vmem:[%s7758_s0 + $0x1f8] sm:$0xff] }
 0x101   :  { %2291 = vmatmul.mubr.bf16.gmra.mrb[96].mxu1 %v4283_v13  ;;  %v4093_v13 = vcombine.low %v19_v1, %v23_v2  ;;  %v83_v1 = vld [vmem:[%s7758_s0 + $0x208] sm:$0xff] }
 0x102   :  { %2869 = vmatmul.mubr.bf16.gmra.mrb[96].mxu0 %v4287_v14  ;;  %2298 = vmatprep.mubr.bf16.mxu1 %v4292_v15  ;;  %v4097_v14 = vcombine.low %v21_v3, %v25_v4  ;;  %v4102_v15 = vcombine.high %v27_v9, %v31_v10  ;;  %v87_v2 = vld [vmem:[%s7758_s0 + $0x228] sm:$0xff]  ;;  %v85_v3 = vld [vmem:[%s7758_s0 + $0x218] sm:$0xff] }
 0x103   :  { %2876 = vmatprep.mubr.bf16.mxu0 %v4296_v16  ;;  %v4106_v16 = vcombine.high %v29_v11, %v33_v12  ;;  %v89_v4 = vld [vmem:[%s7758_s0 + $0x238] sm:$0xff] }
 0x109   :  { %2299 = vmatmul.mubr.bf16.gmra.mrb[100].mxu1 %v4291_v21  ;;  %v4101_v21 = vcombine.low %v27_v9, %v31_v10  ;;  %v91_v9 = vld [vmem:[%s7758_s0 + $0x248] sm:$0xff] }
 0x10a   :  { %2877 = vmatmul.mubr.bf16.gmra.mrb[100].mxu0 %v4295_v22  ;;  %2306 = vmatprep.mubr.bf16.mxu1 %v4300_v23  ;;  %v4105_v22 = vcombine.low %v29_v11, %v33_v12  ;;  %v4110_v23 = vcombine.high %v35_v17, %v39_v18  ;;  %v95_v10 = vld [vmem:[%s7758_s0 + $0x268] sm:$0xff]  ;;  %v93_v11 = vld [vmem:[%s7758_s0 + $0x258] sm:$0xff] }
 0x10b   :  { %2884 = vmatprep.mubr.bf16.mxu0 %v4304_v24  ;;  %v4114_v24 = vcombine.high %v37_v19, %v41_v20  ;;  %v97_v12 = vld [vmem:[%s7758_s0 + $0x278] sm:$0xff] }
 0x111   :  { %2307 = vmatmul.mubr.bf16.gmra.mrb[104].mxu1 %v4299_v29  ;;  %v4109_v29 = vcombine.low %v35_v17, %v39_v18  ;;  %v99_v17 = vld [vmem:[%s7758_s0 + $0x288] sm:$0xff] }
 0x112   :  { %2885 = vmatmul.mubr.bf16.gmra.mrb[104].mxu0 %v4303_v30  ;;  %2314 = vmatprep.mubr.bf16.mxu1 %v4308_v31  ;;  %v4113_v30 = vcombine.low %v37_v19, %v41_v20  ;;  %v4118_v31 = vcombine.high %v43_v25, %v47_v26  ;;  %v103_v18 = vld [vmem:[%s7758_s0 + $0x2a8] sm:$0xff]  ;;  %v101_v19 = vld [vmem:[%s7758_s0 + $0x298] sm:$0xff] }
 0x113   :  { %2892 = vmatprep.mubr.bf16.mxu0 %v4312_v32  ;;  %v4122_v32 = vcombine.high %v45_v27, %v49_v28  ;;  %v105_v20 = vld [vmem:[%s7758_s0 + $0x2b8] sm:$0xff] }
 0x119   :  { %2315 = vmatmul.mubr.bf16.gmra.mrb[108].mxu1 %v4307_v37  ;;  %v4117_v37 = vcombine.low %v43_v25, %v47_v26  ;;  %v107_v25 = vld [vmem:[%s7758_s0 + $0x2c8] sm:$0xff] }
 0x11a   :  { %2893 = vmatmul.mubr.bf16.gmra.mrb[108].mxu0 %v4311_v38  ;;  %2322 = vmatprep.mubr.bf16.mxu1 %v4316_v39  ;;  %v4121_v38 = vcombine.low %v45_v27, %v49_v28  ;;  %v4126_v39 = vcombine.high %v51_v33, %v55_v34  ;;  %v111_v26 = vld [vmem:[%s7758_s0 + $0x2e8] sm:$0xff]  ;;  %v109_v27 = vld [vmem:[%s7758_s0 + $0x2d8] sm:$0xff] }
 0x11b   :  { %2900 = vmatprep.mubr.bf16.mxu0 %v4320_v40  ;;  %v4130_v40 = vcombine.high %v53_v35, %v57_v36  ;;  %v113_v28 = vld [vmem:[%s7758_s0 + $0x2f8] sm:$0xff] }
 0x121   :  { %2323 = vmatmul.mubr.bf16.gmra.mrb[112].mxu1 %v4315_v45  ;;  %v4125_v45 = vcombine.low %v51_v33, %v55_v34  ;;  %v115_v33 = vld [vmem:[%s7758_s0 + $0x308] sm:$0xff] }
 0x122   :  { %2901 = vmatmul.mubr.bf16.gmra.mrb[112].mxu0 %v4319_v46  ;;  %2330 = vmatprep.mubr.bf16.mxu1 %v4324_v47  ;;  %v4129_v46 = vcombine.low %v53_v35, %v57_v36  ;;  %v4134_v47 = vcombine.high %v59_v41, %v63_v42  ;;  %v119_v34 = vld [vmem:[%s7758_s0 + $0x328] sm:$0xff]  ;;  %v117_v35 = vld [vmem:[%s7758_s0 + $0x318] sm:$0xff] }
 0x123   :  { %2908 = vmatprep.mubr.bf16.mxu0 %v4328_v48  ;;  %v4138_v48 = vcombine.high %v61_v43, %v65_v44  ;;  %v121_v36 = vld [vmem:[%s7758_s0 + $0x338] sm:$0xff] }
 0x129   :  { %2331 = vmatmul.mubr.bf16.gmra.mrb[116].mxu1 %v4323_v53  ;;  %v4133_v53 = vcombine.low %v59_v41, %v63_v42  ;;  %v123_v41 = vld [vmem:[%s7758_s0 + $0x348] sm:$0xff] }
 0x12a   :  { %2909 = vmatmul.mubr.bf16.gmra.mrb[116].mxu0 %v4327_v54  ;;  %2338 = vmatprep.mubr.bf16.mxu1 %v4332_v55  ;;  %v4137_v54 = vcombine.low %v61_v43, %v65_v44  ;;  %v4142_v55 = vcombine.high %v67_v49, %v71_v50  ;;  %v127_v42 = vld [vmem:[%s7758_s0 + $0x368] sm:$0xff]  ;;  %v125_v43 = vld [vmem:[%s7758_s0 + $0x358] sm:$0xff] }
 0x12b   :  { %2916 = vmatprep.mubr.bf16.mxu0 %v4336_v56  ;;  %v4146_v56 = vcombine.high %v69_v51, %v73_v52  ;;  %v129_v44 = vld [vmem:[%s7758_s0 + $0x378] sm:$0xff] }
 0x131   :  { %2339 = vmatmul.mubr.bf16.gmra.mrb[120].mxu1 %v4331_v60  ;;  %v4141_v60 = vcombine.low %v67_v49, %v71_v50  ;;  %v131_v49 = vld [vmem:[%s7758_s0 + $0x388] sm:$0xff] }
 0x132   :  { %2917 = vmatmul.mubr.bf16.gmra.mrb[120].mxu0 %v4335_v61  ;;  %2346 = vmatprep.mubr.bf16.mxu1 %v4340_v62  ;;  %v4145_v61 = vcombine.low %v69_v51, %v73_v52  ;;  %v4150_v62 = vcombine.high %v75_v57, %v79_v0  ;;  %v135_v50 = vld [vmem:[%s7758_s0 + $0x3a8] sm:$0xff]  ;;  %v133_v51 = vld [vmem:[%s7758_s0 + $0x398] sm:$0xff] }
 0x133   :  { %2924 = vmatprep.mubr.bf16.mxu0 %v4344_v63  ;;  %v4154_v63 = vcombine.high %v77_v58, %v81_v59  ;;  %v137_v52 = vld [vmem:[%s7758_s0 + $0x3b8] sm:$0xff] }
 0x139   :  { %2347 = vmatmul.mubr.bf16.gmra.mrb[124].mxu1 %v4339_v5  ;;  %v4149_v5 = vcombine.low %v75_v57, %v79_v0  ;;  %v139_v57 = vld [vmem:[%s7758_s0 + $0x3c8] sm:$0xff] }
 0x13a   :  { %2925 = vmatmul.mubr.bf16.gmra.mrb[124].mxu0 %v4343_v6  ;;  %2387 = vmatprep.mubr.bf16.mxu1 %v4094_v7  ;;  %v4153_v6 = vcombine.low %v77_v58, %v81_v59  ;;  %v4158_v7 = vcombine.high %v83_v1, %v87_v2  ;;  %v143_v0 = vld [vmem:[%s7758_s0 + $0x3e8] sm:$0xff]  ;;  %v141_v58 = vld [vmem:[%s7758_s0 + $0x3d8] sm:$0xff] }
 0x13b   :  { %2965 = vmatprep.mubr.bf16.mxu0 %v4098_v8  ;;  %v4162_v8 = vcombine.high %v85_v3, %v89_v4  ;;  %v145_v59 = vld [vmem:[%s7758_s0 + $0x3f8] sm:$0xff] }
 0x141   :  { %2388 = vmatmul.mubr.bf16.vlgmr.msra.gmra.mrb[0].mxu1 %v4093_v13  ;;  %v4157_v13 = vcombine.low %v83_v1, %v87_v2  ;;  %v147_v1 = vld [vmem:[%s7758_s0 + $0x408] sm:$0xff] }
 0x142   :  { %2966 = vmatmul.mubr.bf16.vlgmr.msra.gmra.mrb[0].mxu0 %v4097_v14  ;;  %2395 = vmatprep.mubr.bf16.mxu1 %v4102_v15  ;;  %v4161_v14 = vcombine.low %v85_v3, %v89_v4  ;;  %v4166_v15 = vcombine.high %v91_v9, %v95_v10  ;;  %v151_v2 = vld [vmem:[%s7758_s0 + $0x428] sm:$0xff]  ;;  %v149_v3 = vld [vmem:[%s7758_s0 + $0x418] sm:$0xff] }
 0x143   :  { %2973 = vmatprep.mubr.bf16.mxu0 %v4106_v16  ;;  %v4170_v16 = vcombine.high %v93_v11, %v97_v12  ;;  %v153_v4 = vld [vmem:[%s7758_s0 + $0x438] sm:$0xff] }
 0x149   :  { %2396 = vmatmul.mubr.bf16.gmra.mrb[4].mxu1 %v4101_v21  ;;  %v4165_v21 = vcombine.low %v91_v9, %v95_v10  ;;  %v155_v9 = vld [vmem:[%s7758_s0 + $0x448] sm:$0xff] }
 0x14a   :  { %2974 = vmatmul.mubr.bf16.gmra.mrb[4].mxu0 %v4105_v22  ;;  %2403 = vmatprep.mubr.bf16.mxu1 %v4110_v23  ;;  %v4169_v22 = vcombine.low %v93_v11, %v97_v12  ;;  %v4174_v23 = vcombine.high %v99_v17, %v103_v18  ;;  %v159_v10 = vld [vmem:[%s7758_s0 + $0x468] sm:$0xff]  ;;  %v157_v11 = vld [vmem:[%s7758_s0 + $0x458] sm:$0xff] }
 0x14b   :  { %2981 = vmatprep.mubr.bf16.mxu0 %v4114_v24  ;;  %v4178_v24 = vcombine.high %v101_v19, %v105_v20  ;;  %v161_v12 = vld [vmem:[%s7758_s0 + $0x478] sm:$0xff] }
 0x151   :  { %2404 = vmatmul.mubr.bf16.gmra.mrb[8].mxu1 %v4109_v29  ;;  %v4173_v29 = vcombine.low %v99_v17, %v103_v18  ;;  %v163_v17 = vld [vmem:[%s7758_s0 + $0x488] sm:$0xff] }
 0x152   :  { %2982 = vmatmul.mubr.bf16.gmra.mrb[8].mxu0 %v4113_v30  ;;  %2411 = vmatprep.mubr.bf16.mxu1 %v4118_v31  ;;  %v4177_v30 = vcombine.low %v101_v19, %v105_v20  ;;  %v4182_v31 = vcombine.high %v107_v25, %v111_v26  ;;  %v167_v18 = vld [vmem:[%s7758_s0 + $0x4a8] sm:$0xff]  ;;  %v165_v19 = vld [vmem:[%s7758_s0 + $0x498] sm:$0xff] }
 0x153   :  { %2989 = vmatprep.mubr.bf16.mxu0 %v4122_v32  ;;  %v4186_v32 = vcombine.high %v109_v27, %v113_v28  ;;  %v169_v20 = vld [vmem:[%s7758_s0 + $0x4b8] sm:$0xff] }
 0x159   :  { %2412 = vmatmul.mubr.bf16.gmra.mrb[12].mxu1 %v4117_v37  ;;  %v4181_v37 = vcombine.low %v107_v25, %v111_v26  ;;  %v171_v25 = vld [vmem:[%s7758_s0 + $0x4c8] sm:$0xff] }
 0x15a   :  { %2990 = vmatmul.mubr.bf16.gmra.mrb[12].mxu0 %v4121_v38  ;;  %2419 = vmatprep.mubr.bf16.mxu1 %v4126_v39  ;;  %v4185_v38 = vcombine.low %v109_v27, %v113_v28  ;;  %v4190_v39 = vcombine.high %v115_v33, %v119_v34  ;;  %v175_v26 = vld [vmem:[%s7758_s0 + $0x4e8] sm:$0xff]  ;;  %v173_v27 = vld [vmem:[%s7758_s0 + $0x4d8] sm:$0xff] }
 0x15b   :  { %2997 = vmatprep.mubr.bf16.mxu0 %v4130_v40  ;;  %v4194_v40 = vcombine.high %v117_v35, %v121_v36  ;;  %v177_v28 = vld [vmem:[%s7758_s0 + $0x4f8] sm:$0xff] }
 0x161   :  { %2420 = vmatmul.mubr.bf16.gmra.mrb[16].mxu1 %v4125_v45  ;;  %v4189_v45 = vcombine.low %v115_v33, %v119_v34  ;;  %v179_v33 = vld [vmem:[%s7758_s0 + $0x508] sm:$0xff] }
 0x162   :  { %2998 = vmatmul.mubr.bf16.gmra.mrb[16].mxu0 %v4129_v46  ;;  %2427 = vmatprep.mubr.bf16.mxu1 %v4134_v47  ;;  %v4193_v46 = vcombine.low %v117_v35, %v121_v36  ;;  %v4198_v47 = vcombine.high %v123_v41, %v127_v42  ;;  %v183_v34 = vld [vmem:[%s7758_s0 + $0x528] sm:$0xff]  ;;  %v181_v35 = vld [vmem:[%s7758_s0 + $0x518] sm:$0xff] }
 0x163   :  { %3005 = vmatprep.mubr.bf16.mxu0 %v4138_v48  ;;  %v4202_v48 = vcombine.high %v125_v43, %v129_v44  ;;  %v185_v36 = vld [vmem:[%s7758_s0 + $0x538] sm:$0xff] }
 0x169   :  { %2428 = vmatmul.mubr.bf16.gmra.mrb[20].mxu1 %v4133_v53  ;;  %v4197_v53 = vcombine.low %v123_v41, %v127_v42  ;;  %v187_v41 = vld [vmem:[%s7758_s0 + $0x548] sm:$0xff] }
 0x16a   :  { %3006 = vmatmul.mubr.bf16.gmra.mrb[20].mxu0 %v4137_v54  ;;  %2435 = vmatprep.mubr.bf16.mxu1 %v4142_v55  ;;  %v4201_v54 = vcombine.low %v125_v43, %v129_v44  ;;  %v4206_v55 = vcombine.high %v131_v49, %v135_v50  ;;  %v191_v42 = vld [vmem:[%s7758_s0 + $0x568] sm:$0xff]  ;;  %v189_v43 = vld [vmem:[%s7758_s0 + $0x558] sm:$0xff] }
 0x16b   :  { %3013 = vmatprep.mubr.bf16.mxu0 %v4146_v56  ;;  %v4210_v56 = vcombine.high %v133_v51, %v137_v52  ;;  %v193_v44 = vld [vmem:[%s7758_s0 + $0x578] sm:$0xff] }
 0x171   :  { %2436 = vmatmul.mubr.bf16.gmra.mrb[24].mxu1 %v4141_v60  ;;  %v4205_v60 = vcombine.low %v131_v49, %v135_v50  ;;  %v195_v49 = vld [vmem:[%s7758_s0 + $0x588] sm:$0xff] }
 0x172   :  { %3014 = vmatmul.mubr.bf16.gmra.mrb[24].mxu0 %v4145_v61  ;;  %2443 = vmatprep.mubr.bf16.mxu1 %v4150_v62  ;;  %v4209_v61 = vcombine.low %v133_v51, %v137_v52  ;;  %v4214_v62 = vcombine.high %v139_v57, %v143_v0  ;;  %v199_v50 = vld [vmem:[%s7758_s0 + $0x5a8] sm:$0xff]  ;;  %v197_v51 = vld [vmem:[%s7758_s0 + $0x598] sm:$0xff] }
 0x173   :  { %3021 = vmatprep.mubr.bf16.mxu0 %v4154_v63  ;;  %v4218_v63 = vcombine.high %v141_v58, %v145_v59  ;;  %v201_v52 = vld [vmem:[%s7758_s0 + $0x5b8] sm:$0xff] }
 0x179   :  { %2444 = vmatmul.mubr.bf16.gmra.mrb[28].mxu1 %v4149_v5  ;;  %v4213_v5 = vcombine.low %v139_v57, %v143_v0  ;;  %v203_v57 = vld [vmem:[%s7758_s0 + $0x5c8] sm:$0xff] }
 0x17a   :  { %3022 = vmatmul.mubr.bf16.gmra.mrb[28].mxu0 %v4153_v6  ;;  %2451 = vmatprep.mubr.bf16.mxu1 %v4158_v7  ;;  %v4217_v6 = vcombine.low %v141_v58, %v145_v59  ;;  %v4222_v7 = vcombine.high %v147_v1, %v151_v2  ;;  %v207_v0 = vld [vmem:[%s7758_s0 + $0x5e8] sm:$0xff]  ;;  %v205_v58 = vld [vmem:[%s7758_s0 + $0x5d8] sm:$0xff] }
 0x17b   :  { %3029 = vmatprep.mubr.bf16.mxu0 %v4162_v8  ;;  %v4226_v8 = vcombine.high %v149_v3, %v153_v4  ;;  %v209_v59 = vld [vmem:[%s7758_s0 + $0x5f8] sm:$0xff] }
 0x181   :  { %2452 = vmatmul.mubr.bf16.gmra.mrb[32].mxu1 %v4157_v13  ;;  %v4221_v13 = vcombine.low %v147_v1, %v151_v2  ;;  %v211_v1 = vld [vmem:[%s7758_s0 + $0x608] sm:$0xff] }
 0x182   :  { %3030 = vmatmul.mubr.bf16.gmra.mrb[32].mxu0 %v4161_v14  ;;  %2459 = vmatprep.mubr.bf16.mxu1 %v4166_v15  ;;  %v4225_v14 = vcombine.low %v149_v3, %v153_v4  ;;  %v4230_v15 = vcombine.high %v155_v9, %v159_v10  ;;  %v215_v2 = vld [vmem:[%s7758_s0 + $0x628] sm:$0xff]  ;;  %v213_v3 = vld [vmem:[%s7758_s0 + $0x618] sm:$0xff] }
 0x183   :  { %3037 = vmatprep.mubr.bf16.mxu0 %v4170_v16  ;;  %v4234_v16 = vcombine.high %v157_v11, %v161_v12  ;;  %v217_v4 = vld [vmem:[%s7758_s0 + $0x638] sm:$0xff] }
 0x189   :  { %2460 = vmatmul.mubr.bf16.gmra.mrb[36].mxu1 %v4165_v21  ;;  %v4229_v21 = vcombine.low %v155_v9, %v159_v10  ;;  %v219_v9 = vld [vmem:[%s7758_s0 + $0x648] sm:$0xff] }
 0x18a   :  { %3038 = vmatmul.mubr.bf16.gmra.mrb[36].mxu0 %v4169_v22  ;;  %2467 = vmatprep.mubr.bf16.mxu1 %v4174_v23  ;;  %v4233_v22 = vcombine.low %v157_v11, %v161_v12  ;;  %v4238_v23 = vcombine.high %v163_v17, %v167_v18  ;;  %v223_v10 = vld [vmem:[%s7758_s0 + $0x668] sm:$0xff]  ;;  %v221_v11 = vld [vmem:[%s7758_s0 + $0x658] sm:$0xff] }
 0x18b   :  { %3045 = vmatprep.mubr.bf16.mxu0 %v4178_v24  ;;  %v4242_v24 = vcombine.high %v165_v19, %v169_v20  ;;  %v225_v12 = vld [vmem:[%s7758_s0 + $0x678] sm:$0xff] }
 0x191   :  { %2468 = vmatmul.mubr.bf16.gmra.mrb[40].mxu1 %v4173_v29  ;;  %v4237_v29 = vcombine.low %v163_v17, %v167_v18  ;;  %v227_v17 = vld [vmem:[%s7758_s0 + $0x688] sm:$0xff] }
 0x192   :  { %3046 = vmatmul.mubr.bf16.gmra.mrb[40].mxu0 %v4177_v30  ;;  %2475 = vmatprep.mubr.bf16.mxu1 %v4182_v31  ;;  %v4241_v30 = vcombine.low %v165_v19, %v169_v20  ;;  %v4246_v31 = vcombine.high %v171_v25, %v175_v26  ;;  %v231_v18 = vld [vmem:[%s7758_s0 + $0x6a8] sm:$0xff]  ;;  %v229_v19 = vld [vmem:[%s7758_s0 + $0x698] sm:$0xff] }
 0x193   :  { %3053 = vmatprep.mubr.bf16.mxu0 %v4186_v32  ;;  %v4250_v32 = vcombine.high %v173_v27, %v177_v28  ;;  %v233_v20 = vld [vmem:[%s7758_s0 + $0x6b8] sm:$0xff] }
 0x199   :  { %2476 = vmatmul.mubr.bf16.gmra.mrb[44].mxu1 %v4181_v37  ;;  %v4245_v37 = vcombine.low %v171_v25, %v175_v26  ;;  %v235_v25 = vld [vmem:[%s7758_s0 + $0x6c8] sm:$0xff] }
 0x19a   :  { %3054 = vmatmul.mubr.bf16.gmra.mrb[44].mxu0 %v4185_v38  ;;  %2483 = vmatprep.mubr.bf16.mxu1 %v4190_v39  ;;  %v4249_v38 = vcombine.low %v173_v27, %v177_v28  ;;  %v4254_v39 = vcombine.high %v179_v33, %v183_v34  ;;  %v239_v26 = vld [vmem:[%s7758_s0 + $0x6e8] sm:$0xff]  ;;  %v237_v27 = vld [vmem:[%s7758_s0 + $0x6d8] sm:$0xff] }
 0x19b   :  { %3061 = vmatprep.mubr.bf16.mxu0 %v4194_v40  ;;  %v4258_v40 = vcombine.high %v181_v35, %v185_v36  ;;  %v241_v28 = vld [vmem:[%s7758_s0 + $0x6f8] sm:$0xff] }
 0x1a1   :  { %2484 = vmatmul.mubr.bf16.gmra.mrb[48].mxu1 %v4189_v45  ;;  %v4253_v45 = vcombine.low %v179_v33, %v183_v34  ;;  %v243_v33 = vld [vmem:[%s7758_s0 + $0x708] sm:$0xff] }
 0x1a2   :  { %3062 = vmatmul.mubr.bf16.gmra.mrb[48].mxu0 %v4193_v46  ;;  %2491 = vmatprep.mubr.bf16.mxu1 %v4198_v47  ;;  %v4257_v46 = vcombine.low %v181_v35, %v185_v36  ;;  %v4262_v47 = vcombine.high %v187_v41, %v191_v42  ;;  %v247_v34 = vld [vmem:[%s7758_s0 + $0x728] sm:$0xff]  ;;  %v245_v36 = vld [vmem:[%s7758_s0 + $0x718] sm:$0xff] }
 0x1a3   :  { %3069 = vmatprep.mubr.bf16.mxu0 %v4202_v48  ;;  %v4266_v48 = vcombine.high %v189_v43, %v193_v44 }
 0x1a9   :  { %2492 = vmatmul.mubr.bf16.gmra.mrb[52].mxu1 %v4197_v53  ;;  %v4261_v53 = vcombine.low %v187_v41, %v191_v42 }
 0x1aa   :  { %3070 = vmatmul.mubr.bf16.gmra.mrb[52].mxu0 %v4201_v54  ;;  %2499 = vmatprep.mubr.bf16.mxu1 %v4206_v55  ;;  %v4265_v54 = vcombine.low %v189_v43, %v193_v44  ;;  %v4270_v55 = vcombine.high %v195_v49, %v199_v50  ;;  %v4313_v44 = vcombine.low %v237_v27, %v241_v28 }
 0x1ab   :  { %3077 = vmatprep.mubr.bf16.mxu0 %v4210_v56  ;;  %v4274_v56 = vcombine.high %v197_v51, %v201_v52 }
 0x1b1   :  { %2500 = vmatmul.mubr.bf16.gmra.mrb[56].mxu1 %v4205_v60  ;;  %v4269_v60 = vcombine.low %v195_v49, %v199_v50 }
 0x1b2   :  { %3078 = vmatmul.mubr.bf16.gmra.mrb[56].mxu0 %v4209_v61  ;;  %2507 = vmatprep.mubr.bf16.mxu1 %v4214_v62  ;;  %v4273_v61 = vcombine.low %v197_v51, %v201_v52  ;;  %v4278_v62 = vcombine.high %v203_v57, %v207_v0  ;;  %v251_v51 = vld [vmem:[%s7758_s0 + $0x748] sm:$0xff] }
 0x1b3   :  { %3085 = vmatprep.mubr.bf16.mxu0 %v4218_v63  ;;  %v4282_v63 = vcombine.high %v205_v58, %v209_v59  ;;  %v255_v52 = vld [vmem:[%s7758_s0 + $0x768] sm:$0xff] }
 0x1b9   :  { %2508 = vmatmul.mubr.bf16.gmra.mrb[60].mxu1 %v4213_v5  ;;  %v4277_v5 = vcombine.low %v203_v57, %v207_v0  ;;  %v4317_v0 = vcombine.low %v243_v33, %v247_v34 }
 0x1ba   :  { %3086 = vmatmul.mubr.bf16.gmra.mrb[60].mxu0 %v4217_v6  ;;  %2515 = vmatprep.mubr.bf16.mxu1 %v4222_v7  ;;  %v4281_v6 = vcombine.low %v205_v58, %v209_v59  ;;  %v4286_v7 = vcombine.high %v211_v1, %v215_v2 }
 0x1bb   :  { %3093 = vmatprep.mubr.bf16.mxu0 %v4226_v8  ;;  %v4290_v8 = vcombine.high %v213_v3, %v217_v4 }
 0x1c1   :  { %2516 = vmatmul.mubr.bf16.gmra.mrb[64].mxu1 %v4221_v13  ;;  %v4285_v13 = vcombine.low %v211_v1, %v215_v2 }
 0x1c2   :  { %3094 = vmatmul.mubr.bf16.gmra.mrb[64].mxu0 %v4225_v14  ;;  %2523 = vmatprep.mubr.bf16.mxu1 %v4230_v15  ;;  %v4289_v14 = vcombine.low %v213_v3, %v217_v4  ;;  %v4294_v15 = vcombine.high %v219_v9, %v223_v10 }
 0x1c3   :  { %3101 = vmatprep.mubr.bf16.mxu0 %v4234_v16  ;;  %v4298_v16 = vcombine.high %v221_v11, %v225_v12 }
 0x1c9   :  { %2524 = vmatmul.mubr.bf16.gmra.mrb[68].mxu1 %v4229_v21  ;;  %v4293_v21 = vcombine.low %v219_v9, %v223_v10  ;;  %v265_v9 = vld [vmem:[%s7758_s0 + $0x7b8] sm:$0xff] }
 0x1ca   :  { %3102 = vmatmul.mubr.bf16.gmra.mrb[68].mxu0 %v4233_v22  ;;  %2531 = vmatprep.mubr.bf16.mxu1 %v4238_v23  ;;  %v4297_v22 = vcombine.low %v221_v11, %v225_v12  ;;  %v4302_v23 = vcombine.high %v227_v17, %v231_v18  ;;  %v4325_v12 = vcombine.low %v251_v51, %v255_v52 }
 0x1cb   :  { %3109 = vmatprep.mubr.bf16.mxu0 %v4242_v24  ;;  %v4306_v24 = vcombine.high %v229_v19, %v233_v20 }
 0x1d1   :  { %2532 = vmatmul.mubr.bf16.gmra.mrb[72].mxu1 %v4237_v29  ;;  %v4301_v29 = vcombine.low %v227_v17, %v231_v18 }
 0x1d2   :  { %3110 = vmatmul.mubr.bf16.gmra.mrb[72].mxu0 %v4241_v30  ;;  %2539 = vmatprep.mubr.bf16.mxu1 %v4246_v31  ;;  %v4305_v30 = vcombine.low %v229_v19, %v233_v20  ;;  %v4310_v31 = vcombine.high %v235_v25, %v239_v26 }
 0x1d3   :  { %3117 = vmatprep.mubr.bf16.mxu0 %v4250_v32  ;;  %v4314_v32 = vcombine.high %v237_v27, %v241_v28  ;;  %v273_v27 = vld [vmem:[%s7758_s0 + $0x7f8] sm:$0xff] }
 0x1d9   :  { %2540 = vmatmul.mubr.bf16.gmra.mrb[76].mxu1 %v4245_v37  ;;  %v249_v37 = vld [vmem:[%s7758_s0 + $0x738] sm:$0xff] }
 0x1da   :  { %3118 = vmatmul.mubr.bf16.gmra.mrb[76].mxu0 %v4249_v38  ;;  %2547 = vmatprep.mubr.bf16.mxu1 %v4254_v39 }
 0x1db   :  { %3125 = vmatprep.mubr.bf16.mxu0 %v4258_v40  ;;  %v4309_v40 = vcombine.low %v235_v25, %v239_v26  ;;  %v269_v26 = vld [vmem:[%s7758_s0 + $0x7d8] sm:$0xff] }
 0x1e1   :  { %2548 = vmatmul.mubr.bf16.gmra.mrb[80].mxu1 %v4253_v45  ;;  %v4318_v45 = vcombine.high %v243_v33, %v247_v34 }
 0x1e2   :  { %3126 = vmatmul.mubr.bf16.gmra.mrb[80].mxu0 %v4257_v46  ;;  %2555 = vmatprep.mubr.bf16.mxu1 %v4262_v47 }
 0x1e3   :  { %3133 = vmatprep.mubr.bf16.mxu0 %v4266_v48  ;;  %v4322_v48 = vcombine.high %v245_v36, %v249_v37 }
 0x1e9   :  { %2556 = vmatmul.mubr.bf16.gmra.mrb[84].mxu1 %v4261_v53 }
 0x1ea   :  { %3134 = vmatmul.mubr.bf16.gmra.mrb[84].mxu0 %v4265_v54  ;;  %2563 = vmatprep.mubr.bf16.mxu1 %v4270_v55  ;;  %v253_v54 = vld [vmem:[%s7758_s0 + $0x758] sm:$0xff] }
 0x1eb   :  { %3141 = vmatprep.mubr.bf16.mxu0 %v4274_v56  ;;  %v257_v55 = vld [vmem:[%s7758_s0 + $0x778] sm:$0xff] }
 0x1ec   :  { %v4330_v2 = vcombine.high %v253_v54, %v257_v55 }
 0x1f1   :  { %2564 = vmatmul.mubr.bf16.gmra.mrb[88].mxu1 %v4269_v60 }
 0x1f2   :  { %3142 = vmatmul.mubr.bf16.gmra.mrb[88].mxu0 %v4273_v61  ;;  %2571 = vmatprep.mubr.bf16.mxu1 %v4278_v62  ;;  %v4321_v61 = vcombine.low %v245_v36, %v249_v37  ;;  %v4326_v62 = vcombine.high %v251_v51, %v255_v52 }
 0x1f3   :  { %3149 = vmatprep.mubr.bf16.mxu0 %v4282_v63 }
 0x1f9   :  { %2572 = vmatmul.mubr.bf16.gmra.mrb[92].mxu1 %v4277_v5  ;;  %v259_v5 = vld [vmem:[%s7758_s0 + $0x788] sm:$0xff] }
 0x1fa   :  { %3150 = vmatmul.mubr.bf16.gmra.mrb[92].mxu0 %v4281_v6  ;;  %2579 = vmatprep.mubr.bf16.mxu1 %v4286_v7  ;;  %v263_v6 = vld [vmem:[%s7758_s0 + $0x7a8] sm:$0xff] }
 0x1fb   :  { %3157 = vmatprep.mubr.bf16.mxu0 %v4290_v8  ;;  %v261_v8 = vld [vmem:[%s7758_s0 + $0x798] sm:$0xff]  ;;  %v4334_v17 = vcombine.high %v259_v5, %v263_v6 }
 0x1fc   :  { %v4338_v20 = vcombine.high %v261_v8, %v265_v9  ;;  %v4337_v34 = vcombine.low %v261_v8, %v265_v9 }
 0x201   :  { %2580 = vmatmul.mubr.bf16.gmra.mrb[96].mxu1 %v4285_v13 }
 0x202   :  { %3158 = vmatmul.mubr.bf16.gmra.mrb[96].mxu0 %v4289_v14  ;;  %2587 = vmatprep.mubr.bf16.mxu1 %v4294_v15 }
 0x203   :  { %3165 = vmatprep.mubr.bf16.mxu0 %v4298_v16  ;;  %v4329_v16 = vcombine.low %v253_v54, %v257_v55 }
 0x209   :  { %2588 = vmatmul.mubr.bf16.gmra.mrb[100].mxu1 %v4293_v21 }
 0x20a   :  { %3166 = vmatmul.mubr.bf16.gmra.mrb[100].mxu0 %v4297_v22  ;;  %2595 = vmatprep.mubr.bf16.mxu1 %v4302_v23  ;;  %v267_v23 = vld [vmem:[%s7758_s0 + $0x7c8] sm:$0xff] }
 0x20b   :  { %3173 = vmatprep.mubr.bf16.mxu0 %v4306_v24  ;;  %v271_v24 = vld [vmem:[%s7758_s0 + $0x7e8] sm:$0xff] }
 0x211   :  { %2596 = vmatmul.mubr.bf16.gmra.mrb[104].mxu1 %v4301_v29 }
 0x212   :  { %3174 = vmatmul.mubr.bf16.gmra.mrb[104].mxu0 %v4305_v30  ;;  %2603 = vmatprep.mubr.bf16.mxu1 %v4310_v31  ;;  %v4333_v30 = vcombine.low %v259_v5, %v263_v6 }
 0x213   :  { %3181 = vmatprep.mubr.bf16.mxu0 %v4314_v32 }
 0x214   :  { %v2389_v35 = vpop.f32.mrb[0].mxu1 }
 0x215   :  { %v2967_v38 = vpop.f32.mrb[0].mxu0  ;;  %v2391_v39 = vpop.f32.mrb[1].mxu1 }
 0x216   :  { %v6147_v41 = vadd.f32 %v2967_v38, %v2389_v35  ;;  %v2969_v42 = vpop.f32.mrb[1].mxu0  ;;  %v2392_v43 = vpop.f32.mrb[2].mxu1  ;;  %v4342_v35 = vcombine.high %v267_v23, %v271_v24  ;;  %v4346_v38 = vcombine.high %v269_v26, %v273_v27 }
 0x217   :  { %v2970_v46 = vpop.f32.mrb[2].mxu0  ;;  %v2394_v47 = vpop.f32.mrb[3].mxu1 }
 0x218   :  { %v6149_v49 = vadd.f32 %v2970_v46, %v2392_v43  ;;  %v2972_v50 = vpop.f32.mrb[3].mxu0 }
 0x219   :  { %2604 = vmatmul.mubr.bf16.gmra.mrb[108].mxu1 %v4309_v40  ;;  %v4345_v50 = vcombine.low %v269_v26, %v273_v27  ;;  %v3292_v26 = vmul.f32 %v6147_v41, %v6147_v41 }
 0x21a   :  { %3182 = vmatmul.mubr.bf16.gmra.mrb[108].mxu0 %v4313_v44  ;;  %2611 = vmatprep.mubr.bf16.mxu1 %v4318_v45  ;;  %v4341_v45 = vcombine.low %v267_v23, %v271_v24  ;;  %v3293_v23 = vmul.f32 %v6149_v49, %v6149_v49  ;;  %v3222_v27 = vadd.f32 %v6149_v49, %v6147_v41 }
 0x21b   :  { %3189 = vmatprep.mubr.bf16.mxu0 %v4322_v48 }
 0x21c   :  { %v2397_v53 = vpop.f32.mrb[4].mxu1 }
 0x21d   :  { %v2975_v56 = vpop.f32.mrb[4].mxu0  ;;  %v2399_v57 = vpop.f32.mrb[5].mxu1 }
 0x21e   :  { %v6163_v58 = vadd.f32 %v2975_v56, %v2397_v53  ;;  %v2977_v59 = vpop.f32.mrb[5].mxu0  ;;  %v2400_v60 = vpop.f32.mrb[6].mxu1 }
 0x21f   :  { %v2978_v63 = vpop.f32.mrb[6].mxu0  ;;  %v2402_v1 = vpop.f32.mrb[7].mxu1 }
 0x220   :  { %v6165_v3 = vadd.f32 %v2978_v63, %v2400_v60  ;;  %v2980_v4 = vpop.f32.mrb[7].mxu0 }
 0x221   :  { %2612 = vmatmul.mubr.bf16.gmra.mrb[112].mxu1 %v4317_v0 }
 0x222   :  { %3190 = vmatmul.mubr.bf16.gmra.mrb[112].mxu0 %v4321_v61  ;;  %2619 = vmatprep.mubr.bf16.mxu1 %v4326_v62 }
 0x223   :  { %3197 = vmatprep.mubr.bf16.mxu0 %v4330_v2 }
 0x224   :  { %v2405_v7 = vpop.f32.mrb[8].mxu1 }
 0x225   :  { %v2983_v10 = vpop.f32.mrb[8].mxu0  ;;  %v2407_v11 = vpop.f32.mrb[9].mxu1 }
 0x226   :  { %v6179_v13 = vadd.f32 %v2983_v10, %v2405_v7  ;;  %v2985_v14 = vpop.f32.mrb[9].mxu0  ;;  %v2408_v15 = vpop.f32.mrb[10].mxu1 }
 0x227   :  { %v2986_v18 = vpop.f32.mrb[10].mxu0  ;;  %v2410_v19 = vpop.f32.mrb[11].mxu1 }
 0x228   :  { %v6181_v21 = vadd.f32 %v2986_v18, %v2408_v15  ;;  %v2988_v22 = vpop.f32.mrb[11].mxu0 }
 0x229   :  { %2620 = vmatmul.mubr.bf16.gmra.mrb[116].mxu1 %v4325_v12 }
 0x22a   :  { %3198 = vmatmul.mubr.bf16.gmra.mrb[116].mxu0 %v4329_v16  ;;  %2627 = vmatprep.mubr.bf16.mxu1 %v4334_v17 }
 0x22b   :  { %3205 = vmatprep.mubr.bf16.mxu0 %v4338_v20 }
 0x22c   :  { %v2413_v25 = vpop.f32.mrb[12].mxu1 }
 0x22d   :  { %v2991_v28 = vpop.f32.mrb[12].mxu0  ;;  %v2415_v29 = vpop.f32.mrb[13].mxu1 }
 0x22e   :  { %v6195_v31 = vadd.f32 %v2991_v28, %v2413_v25  ;;  %v2993_v32 = vpop.f32.mrb[13].mxu0  ;;  %v2416_v33 = vpop.f32.mrb[14].mxu1  ;;  %v3294_v28 = vmul.f32 %v6163_v58, %v6163_v58  ;;  %v3356_v29 = vadd.f32 %v3293_v23, %v3292_v26 }
 0x22f   :  { %v2994_v36 = vpop.f32.mrb[14].mxu0  ;;  %v2418_v37 = vpop.f32.mrb[15].mxu1 }
 0x230   :  { %v6197_v39 = vadd.f32 %v2994_v36, %v2416_v33  ;;  %v2996_v40 = vpop.f32.mrb[15].mxu0  ;;  %v3295_v36 = vmul.f32 %v6165_v3, %v6165_v3 }
 0x231   :  { %2628 = vmatmul.mubr.bf16.gmra.mrb[120].mxu1 %v4333_v30  ;;  %v3223_v30 = vadd.f32 %v6163_v58, %v3222_v27 }
 0x232   :  { %3206 = vmatmul.mubr.bf16.gmra.mrb[120].mxu0 %v4337_v34  ;;  %2635 = vmatprep.mubr.bf16.mxu1 %v4342_v35  ;;  %v3357_v35 = vadd.f32 %v3356_v29, %v3294_v28 }
 0x233   :  { %3213 = vmatprep.mubr.bf16.mxu0 %v4346_v38 }
 0x234   :  { %v2421_v42 = vpop.f32.mrb[16].mxu1 }
 0x235   :  { %v2999_v43 = vpop.f32.mrb[16].mxu0  ;;  %v2423_v44 = vpop.f32.mrb[17].mxu1 }
 0x236   :  { %v6199_v46 = vadd.f32 %v2999_v43, %v2421_v42  ;;  %v3001_v47 = vpop.f32.mrb[17].mxu0  ;;  %v2424_v48 = vpop.f32.mrb[18].mxu1  ;;  %v3224_v44 = vadd.f32 %v6165_v3, %v3223_v30 }
 0x237   :  { %v3002_v51 = vpop.f32.mrb[18].mxu0  ;;  %v2426_v52 = vpop.f32.mrb[19].mxu1 }
 0x238   :  { %v6201_v53 = vadd.f32 %v3002_v51, %v2424_v48  ;;  %v3004_v54 = vpop.f32.mrb[19].mxu0  ;;  %v3225_v51 = vadd.f32 %v6179_v13, %v3224_v44 }
 0x239   :  { %2636 = vmatmul.mubr.bf16.gmra.mrb[124].mxu1 %v4341_v45  ;;  %v3296_v45 = vmul.f32 %v6179_v13, %v6179_v13  ;;  %v3297_v54 = vmul.f32 %v6181_v21, %v6181_v21 }
 0x23a   :  { %3214 = vmatmul.mubr.bf16.gmra.mrb[124].mxu0 %v4345_v50  ;;  %v3358_v50 = vadd.f32 %v3357_v35, %v3295_v36  ;;  %v3301_v30 = vmul.f32 %v6201_v53, %v6201_v53 }
 0x23c   :  { %v2429_v55 = vpop.f32.mrb[20].mxu1  ;;  %v3359_v52 = vadd.f32 %v3358_v50, %v3296_v45 }
 0x23d   :  { %v3007_v56 = vpop.f32.mrb[20].mxu0  ;;  %v2431_v57 = vpop.f32.mrb[21].mxu1 }
 0x23e   :  { %v6203_v0 = vadd.f32 %v3007_v56, %v2429_v55  ;;  %v3009_v59 = vpop.f32.mrb[21].mxu0  ;;  %v2432_v60 = vpop.f32.mrb[22].mxu1 }
 0x23f   :  { %v3010_v61 = vpop.f32.mrb[22].mxu0  ;;  %v2434_v62 = vpop.f32.mrb[23].mxu1  ;;  %v3226_v59 = vadd.f32 %v6181_v21, %v3225_v51 }
 0x240   :  { %v6205_v63 = vadd.f32 %v3010_v61, %v2432_v60  ;;  %v3012_v1 = vpop.f32.mrb[23].mxu0  ;;  %v3298_v60 = vmul.f32 %v6195_v31, %v6195_v31  ;;  %v3302_v35 = vmul.f32 %v6203_v0, %v6203_v0 }
 0x242   :  { %v3303_v45 = vmul.f32 %v6205_v63, %v6205_v63 }
 0x244   :  { %v2437_v2 = vpop.f32.mrb[24].mxu1 }
 0x245   :  { %v3015_v4 = vpop.f32.mrb[24].mxu0  ;;  %v2439_v5 = vpop.f32.mrb[25].mxu1 }
 0x246   :  { %v6207_v6 = vadd.f32 %v3015_v4, %v2437_v2  ;;  %v3017_v7 = vpop.f32.mrb[25].mxu0  ;;  %v2440_v8 = vpop.f32.mrb[26].mxu1  ;;  %v3360_v5 = vadd.f32 %v3359_v52, %v3297_v54 }
 0x247   :  { %v3018_v9 = vpop.f32.mrb[26].mxu0  ;;  %v2442_v10 = vpop.f32.mrb[27].mxu1  ;;  %v3227_v7 = vadd.f32 %v6195_v31, %v3226_v59 }
 0x248   :  { %v6209_v11 = vadd.f32 %v3018_v9, %v2440_v8  ;;  %v3020_v12 = vpop.f32.mrb[27].mxu0  ;;  %v3361_v10 = vadd.f32 %v3360_v5, %v3298_v60 }
 0x249   :  { %v3299_v12 = vmul.f32 %v6197_v39, %v6197_v39 }
 0x24c   :  { %v2445_v14 = vpop.f32.mrb[28].mxu1 }
 0x24d   :  { %v3023_v15 = vpop.f32.mrb[28].mxu0  ;;  %v2447_v16 = vpop.f32.mrb[29].mxu1 }
 0x24e   :  { %v6211_v17 = vadd.f32 %v3023_v15, %v2445_v14  ;;  %v3025_v18 = vpop.f32.mrb[29].mxu0  ;;  %v2448_v19 = vpop.f32.mrb[30].mxu1  ;;  %v3228_v14 = vadd.f32 %v6197_v39, %v3227_v7  ;;  %v3300_v15 = vmul.f32 %v6199_v46, %v6199_v46 }
 0x24f   :  { %v3026_v20 = vpop.f32.mrb[30].mxu0  ;;  %v2450_v22 = vpop.f32.mrb[31].mxu1 }
 0x250   :  { %v6215_v24 = vadd.f32 %v3026_v20, %v2448_v19  ;;  %v3028_v25 = vpop.f32.mrb[31].mxu0  ;;  %v3362_v20 = vadd.f32 %v3361_v10, %v3299_v12  ;;  %v3229_v22 = vadd.f32 %v6199_v46, %v3228_v14  ;;  %v3306_v10 = vmul.f32 %v6211_v17, %v6211_v17 }
 0x252   :  { %v3363_v29 = vadd.f32 %v3362_v20, %v3300_v15 }
 0x254   :  { %v2453_v32 = vpop.f32.mrb[32].mxu1  ;;  %v3364_v36 = vadd.f32 %v3363_v29, %v3301_v30 }
 0x255   :  { %v3031_v33 = vpop.f32.mrb[32].mxu0  ;;  %v2455_v34 = vpop.f32.mrb[33].mxu1 }
 0x256   :  { %v6226_v37 = vadd.f32 %v3031_v33, %v2453_v32  ;;  %v3033_v38 = vpop.f32.mrb[33].mxu0  ;;  %v2456_v40 = vpop.f32.mrb[34].mxu1  ;;  %v3230_v34 = vadd.f32 %v6201_v53, %v3229_v22  ;;  %v3365_v44 = vadd.f32 %v3364_v36, %v3302_v35 }
 0x257   :  { %v3034_v42 = vpop.f32.mrb[34].mxu0  ;;  %v2458_v43 = vpop.f32.mrb[35].mxu1 }
 0x258   :  { %v6231_v47 = vadd.f32 %v3034_v42, %v2456_v40  ;;  %v3036_v48 = vpop.f32.mrb[35].mxu0  ;;  %v3231_v38 = vadd.f32 %v6203_v0, %v3230_v34  ;;  %v3366_v60 = vadd.f32 %v3365_v44, %v3303_v45  ;;  %v3308_v29 = vmul.f32 %v6226_v37, %v6226_v37 }
 0x25c   :  { %v2461_v55 = vpop.f32.mrb[36].mxu1 }
 0x25d   :  { %v3039_v56 = vpop.f32.mrb[36].mxu0  ;;  %v2463_v57 = vpop.f32.mrb[37].mxu1 }
 0x25e   :  { %v6239_v61 = vadd.f32 %v3039_v56, %v2461_v55  ;;  %v3041_v62 = vpop.f32.mrb[37].mxu0  ;;  %v2464_v1 = vpop.f32.mrb[38].mxu1  ;;  %v3232_v55 = vadd.f32 %v6205_v63, %v3231_v38  ;;  %v3304_v56 = vmul.f32 %v6207_v6, %v6207_v6 }
 0x25f   :  { %v3042_v2 = vpop.f32.mrb[38].mxu0  ;;  %v2466_v4 = vpop.f32.mrb[39].mxu1 }
 0x260   :  { %v6242_v8 = vadd.f32 %v3042_v2, %v2464_v1  ;;  %v3044_v9 = vpop.f32.mrb[39].mxu0  ;;  %v3233_v62 = vadd.f32 %v6207_v6, %v3232_v55  ;;  %v3367_v1 = vadd.f32 %v3366_v60, %v3304_v56  ;;  %v3305_v2 = vmul.f32 %v6209_v11, %v6209_v11 }
 0x261   :  { %v3310_v55 = vmul.f32 %v6239_v61, %v6239_v61 }
 0x262   :  { %v3234_v9 = vadd.f32 %v6209_v11, %v3233_v62 }
 0x264   :  { %v2469_v16 = vpop.f32.mrb[40].mxu1  ;;  %v3235_v20 = vadd.f32 %v6211_v17, %v3234_v9 }
 0x265   :  { %v3047_v18 = vpop.f32.mrb[40].mxu0  ;;  %v2471_v19 = vpop.f32.mrb[41].mxu1 }
 0x266   :  { %v6250_v23 = vadd.f32 %v3047_v18, %v2469_v16  ;;  %v3049_v25 = vpop.f32.mrb[41].mxu0  ;;  %v2472_v26 = vpop.f32.mrb[42].mxu1  ;;  %v3368_v19 = vadd.f32 %v3367_v1, %v3305_v2 }
 0x267   :  { %v3050_v27 = vpop.f32.mrb[42].mxu0  ;;  %v2474_v28 = vpop.f32.mrb[43].mxu1 }
 0x268   :  { %v6254_v32 = vadd.f32 %v3050_v27, %v2472_v26  ;;  %v3052_v33 = vpop.f32.mrb[43].mxu0  ;;  %v3369_v26 = vadd.f32 %v3368_v19, %v3306_v10  ;;  %v3307_v27 = vmul.f32 %v6215_v24, %v6215_v24  ;;  %v3236_v28 = vadd.f32 %v6215_v24, %v3235_v20 }
 0x26a   :  { %v3370_v35 = vadd.f32 %v3369_v26, %v3307_v27  ;;  %v3237_v36 = vadd.f32 %v6226_v37, %v3236_v28  ;;  %v3313_v27 = vmul.f32 %v6254_v32, %v6254_v32 }
 0x26c   :  { %v2477_v40 = vpop.f32.mrb[44].mxu1  ;;  %v3371_v45 = vadd.f32 %v3370_v35, %v3308_v29 }
 0x26d   :  { %v3055_v42 = vpop.f32.mrb[44].mxu0  ;;  %v2479_v43 = vpop.f32.mrb[45].mxu1 }
 0x26e   :  { %v6262_v48 = vadd.f32 %v3055_v42, %v2477_v40  ;;  %v3057_v50 = vpop.f32.mrb[45].mxu0  ;;  %v2480_v51 = vpop.f32.mrb[46].mxu1 }
 0x26f   :  { %v3058_v52 = vpop.f32.mrb[46].mxu0  ;;  %v2482_v54 = vpop.f32.mrb[47].mxu1  ;;  %v3309_v50 = vmul.f32 %v6231_v47, %v6231_v47 }
 0x270   :  { %v6267_v57 = vadd.f32 %v3058_v52, %v2480_v51  ;;  %v3060_v59 = vpop.f32.mrb[47].mxu0  ;;  %v3238_v54 = vadd.f32 %v6231_v47, %v3237_v36 }
 0x271   :  { %v3372_v56 = vadd.f32 %v3371_v45, %v3309_v50 }
 0x272   :  { %v3239_v59 = vadd.f32 %v6239_v61, %v3238_v54 }
 0x273   :  { %v3373_v2 = vadd.f32 %v3372_v56, %v3310_v55  ;;  %v3315_v55 = vmul.f32 %v6267_v57, %v6267_v57 }
 0x274   :  { %v2485_v4 = vpop.f32.mrb[48].mxu1 }
 0x275   :  { %v3063_v5 = vpop.f32.mrb[48].mxu0  ;;  %v2487_v7 = vpop.f32.mrb[49].mxu1 }
 0x276   :  { %v6275_v12 = vadd.f32 %v3063_v5, %v2485_v4  ;;  %v3065_v14 = vpop.f32.mrb[49].mxu0  ;;  %v2488_v15 = vpop.f32.mrb[50].mxu1  ;;  %v3311_v4 = vmul.f32 %v6242_v8, %v6242_v8 }
 0x277   :  { %v3066_v16 = vpop.f32.mrb[50].mxu0  ;;  %v2490_v18 = vpop.f32.mrb[51].mxu1 }
 0x278   :  { %v6278_v22 = vadd.f32 %v3066_v16, %v2488_v15  ;;  %v3068_v25 = vpop.f32.mrb[51].mxu0  ;;  %v3240_v15 = vadd.f32 %v6242_v8, %v3239_v59  ;;  %v3312_v16 = vmul.f32 %v6250_v23, %v6250_v23  ;;  %v3374_v20 = vadd.f32 %v3373_v2, %v3311_v4 }
 0x279   :  { %v3316_v59 = vmul.f32 %v6275_v12, %v6275_v12 }
 0x27a   :  { %v3241_v25 = vadd.f32 %v6250_v23, %v3240_v15  ;;  %v3375_v26 = vadd.f32 %v3374_v20, %v3312_v16 }
 0x27c   :  { %v2493_v30 = vpop.f32.mrb[52].mxu1 }
 0x27d   :  { %v3071_v33 = vpop.f32.mrb[52].mxu0  ;;  %v2495_v34 = vpop.f32.mrb[53].mxu1 }
 0x27e   :  { %v6286_v38 = vadd.f32 %v3071_v33, %v2493_v30  ;;  %v3073_v40 = vpop.f32.mrb[53].mxu0  ;;  %v2496_v42 = vpop.f32.mrb[54].mxu1  ;;  %v3242_v33 = vadd.f32 %v6254_v32, %v3241_v25  ;;  %v3314_v34 = vmul.f32 %v6262_v48, %v6262_v48 }
 0x27f   :  { %v3074_v43 = vpop.f32.mrb[54].mxu0  ;;  %v2498_v44 = vpop.f32.mrb[55].mxu1 }
 0x280   :  { %v6290_v51 = vadd.f32 %v3074_v43, %v2496_v42  ;;  %v3076_v52 = vpop.f32.mrb[55].mxu0  ;;  %v3376_v44 = vadd.f32 %v3375_v26, %v3313_v27  ;;  %v3243_v45 = vadd.f32 %v6262_v48, %v3242_v33  ;;  %v3318_v27 = vmul.f32 %v6286_v38, %v6286_v38 }
 0x282   :  { %v3377_v54 = vadd.f32 %v3376_v44, %v3314_v34  ;;  %v3244_v56 = vadd.f32 %v6267_v57, %v3243_v45 }
 0x284   :  { %v2501_v60 = vpop.f32.mrb[56].mxu1  ;;  %v3378_v2 = vadd.f32 %v3377_v54, %v3315_v55  ;;  %v3245_v4 = vadd.f32 %v6275_v12, %v3244_v56 }
 0x285   :  { %v3079_v62 = vpop.f32.mrb[56].mxu0  ;;  %v2503_v1 = vpop.f32.mrb[57].mxu1 }
 0x286   :  { %v6298_v5 = vadd.f32 %v3079_v62, %v2501_v60  ;;  %v3081_v7 = vpop.f32.mrb[57].mxu0  ;;  %v2504_v9 = vpop.f32.mrb[58].mxu1  ;;  %v3379_v16 = vadd.f32 %v3378_v2, %v3316_v59  ;;  %v3246_v26 = vadd.f32 %v6278_v22, %v3245_v4 }
 0x287   :  { %v3082_v10 = vpop.f32.mrb[58].mxu0  ;;  %v2506_v14 = vpop.f32.mrb[59].mxu1 }
 0x288   :  { %v6303_v18 = vadd.f32 %v3082_v10, %v2504_v9  ;;  %v3084_v19 = vpop.f32.mrb[59].mxu0  ;;  %v3320_v55 = vmul.f32 %v6298_v5, %v6298_v5 }
 0x289   :  { %v3317_v19 = vmul.f32 %v6278_v22, %v6278_v22 }
 0x28a   :  { %v3321_v2 = vmul.f32 %v6303_v18, %v6303_v18 }
 0x28c   :  { %v2509_v28 = vpop.f32.mrb[60].mxu1 }
 0x28d   :  { %v3087_v29 = vpop.f32.mrb[60].mxu0  ;;  %v2511_v30 = vpop.f32.mrb[61].mxu1 }
 0x28e   :  { %v6311_v35 = vadd.f32 %v3087_v29, %v2509_v28  ;;  %v3089_v36 = vpop.f32.mrb[61].mxu0  ;;  %v2512_v40 = vpop.f32.mrb[62].mxu1  ;;  %v3380_v28 = vadd.f32 %v3379_v16, %v3317_v19  ;;  %v3247_v29 = vadd.f32 %v6286_v38, %v3246_v26 }
 0x28f   :  { %v3090_v42 = vpop.f32.mrb[62].mxu0  ;;  %v2514_v43 = vpop.f32.mrb[63].mxu1 }
 0x290   :  { %v6314_v50 = vadd.f32 %v3090_v42, %v2512_v40  ;;  %v3092_v52 = vpop.f32.mrb[63].mxu0  ;;  %v3381_v36 = vadd.f32 %v3380_v28, %v3318_v27  ;;  %v3319_v40 = vmul.f32 %v6290_v51, %v6290_v51  ;;  %v3248_v54 = vadd.f32 %v6290_v51, %v3247_v29 }
 0x294   :  { %v2517_v60 = vpop.f32.mrb[64].mxu1 }
 0x295   :  { %v3095_v62 = vpop.f32.mrb[64].mxu0  ;;  %v2519_v1 = vpop.f32.mrb[65].mxu1 }
 0x296   :  { %v6322_v7 = vadd.f32 %v3095_v62, %v2517_v60  ;;  %v3097_v9 = vpop.f32.mrb[65].mxu0  ;;  %v2520_v10 = vpop.f32.mrb[66].mxu1  ;;  %v3382_v60 = vadd.f32 %v3381_v36, %v3319_v40  ;;  %v3249_v62 = vadd.f32 %v6298_v5, %v3248_v54  ;;  %v3323_v36 = vmul.f32 %v6314_v50, %v6314_v50 }
 0x297   :  { %v3098_v14 = vpop.f32.mrb[66].mxu0  ;;  %v2522_v15 = vpop.f32.mrb[67].mxu1 }
 0x298   :  { %v6326_v20 = vadd.f32 %v3098_v14, %v2520_v10  ;;  %v3100_v25 = vpop.f32.mrb[67].mxu0  ;;  %v3383_v1 = vadd.f32 %v3382_v60, %v3320_v55  ;;  %v3250_v14 = vadd.f32 %v6303_v18, %v3249_v62  ;;  %v3322_v15 = vmul.f32 %v6311_v35, %v6311_v35 }
 0x29a   :  { %v3384_v28 = vadd.f32 %v3383_v1, %v3321_v2  ;;  %v3251_v29 = vadd.f32 %v6311_v35, %v3250_v14 }
 0x29c   :  { %v2525_v30 = vpop.f32.mrb[68].mxu1  ;;  %v3252_v40 = vadd.f32 %v6314_v50, %v3251_v29 }
 0x29d   :  { %v3103_v33 = vpop.f32.mrb[68].mxu0  ;;  %v2527_v34 = vpop.f32.mrb[69].mxu1 }
 0x29e   :  { %v6334_v42 = vadd.f32 %v3103_v33, %v2525_v30  ;;  %v3105_v43 = vpop.f32.mrb[69].mxu0  ;;  %v2528_v44 = vpop.f32.mrb[70].mxu1  ;;  %v3385_v34 = vadd.f32 %v3384_v28, %v3322_v15  ;;  %v3253_v55 = vadd.f32 %v6322_v7, %v3252_v40 }
 0x29f   :  { %v3106_v45 = vpop.f32.mrb[70].mxu0  ;;  %v2530_v52 = vpop.f32.mrb[71].mxu1  ;;  %v3324_v43 = vmul.f32 %v6322_v7, %v6322_v7 }
 0x2a0   :  { %v6339_v56 = vadd.f32 %v3106_v45, %v2528_v44  ;;  %v3108_v59 = vpop.f32.mrb[71].mxu0  ;;  %v3386_v54 = vadd.f32 %v3385_v34, %v3323_v36  ;;  %v3254_v15 = vadd.f32 %v6326_v20, %v3253_v55 }
 0x2a2   :  { %v3327_v34 = vmul.f32 %v6339_v56, %v6339_v56 }
 0x2a4   :  { %v2533_v4 = vpop.f32.mrb[72].mxu1 }
 0x2a5   :  { %v3111_v9 = vpop.f32.mrb[72].mxu0  ;;  %v2535_v10 = vpop.f32.mrb[73].mxu1 }
 0x2a6   :  { %v6347_v16 = vadd.f32 %v3111_v9, %v2533_v4  ;;  %v3113_v19 = vpop.f32.mrb[73].mxu0  ;;  %v2536_v25 = vpop.f32.mrb[74].mxu1  ;;  %v3387_v4 = vadd.f32 %v3386_v54, %v3324_v43  ;;  %v3325_v9 = vmul.f32 %v6326_v20, %v6326_v20 }
 0x2a7   :  { %v3114_v26 = vpop.f32.mrb[74].mxu0  ;;  %v2538_v27 = vpop.f32.mrb[75].mxu1  ;;  %v3326_v19 = vmul.f32 %v6334_v42, %v6334_v42 }
 0x2a8   :  { %v6350_v30 = vadd.f32 %v3114_v26, %v2536_v25  ;;  %v3116_v33 = vpop.f32.mrb[75].mxu0  ;;  %v3388_v25 = vadd.f32 %v3387_v4, %v3325_v9  ;;  %v3255_v26 = vadd.f32 %v6334_v42, %v3254_v15  ;;  %v3328_v54 = vmul.f32 %v6347_v16, %v6347_v16 }
 0x2aa   :  { %v3389_v33 = vadd.f32 %v3388_v25, %v3326_v19  ;;  %v3329_v4 = vmul.f32 %v6350_v30, %v6350_v30 }
 0x2ac   :  { %v2541_v44 = vpop.f32.mrb[76].mxu1 }
 0x2ad   :  { %v3119_v45 = vpop.f32.mrb[76].mxu0  ;;  %v2543_v52 = vpop.f32.mrb[77].mxu1 }
 0x2ae   :  { %v6358_v59 = vadd.f32 %v3119_v45, %v2541_v44  ;;  %v3121_v60 = vpop.f32.mrb[77].mxu0  ;;  %v2544_v62 = vpop.f32.mrb[78].mxu1  ;;  %v3256_v52 = vadd.f32 %v6339_v56, %v3255_v26 }
 0x2af   :  { %v3122_v1 = vpop.f32.mrb[78].mxu0  ;;  %v2546_v2 = vpop.f32.mrb[79].mxu1 }
 0x2b0   :  { %v6362_v10 = vadd.f32 %v3122_v1, %v2544_v62  ;;  %v3124_v14 = vpop.f32.mrb[79].mxu0  ;;  %v3390_v62 = vadd.f32 %v3389_v33, %v3327_v34  ;;  %v3257_v1 = vadd.f32 %v6347_v16, %v3256_v52  ;;  %v3330_v25 = vmul.f32 %v6358_v59, %v6358_v59 }
 0x2b2   :  { %v3391_v2 = vadd.f32 %v3390_v62, %v3328_v54  ;;  %v3258_v19 = vadd.f32 %v6350_v30, %v3257_v1  ;;  %v3331_v52 = vmul.f32 %v6362_v10, %v6362_v10 }
 0x2b4   :  { %v2549_v27 = vpop.f32.mrb[80].mxu1  ;;  %v3392_v34 = vadd.f32 %v3391_v2, %v3329_v4 }
 0x2b5   :  { %v3127_v28 = vpop.f32.mrb[80].mxu0  ;;  %v2551_v29 = vpop.f32.mrb[81].mxu1 }
 0x2b6   :  { %v6370_v36 = vadd.f32 %v3127_v28, %v2549_v27  ;;  %v3129_v40 = vpop.f32.mrb[81].mxu0  ;;  %v2552_v43 = vpop.f32.mrb[82].mxu1 }
 0x2b7   :  { %v3130_v44 = vpop.f32.mrb[82].mxu0  ;;  %v2554_v45 = vpop.f32.mrb[83].mxu1  ;;  %v3259_v40 = vadd.f32 %v6358_v59, %v3258_v19 }
 0x2b8   :  { %v6375_v55 = vadd.f32 %v3130_v44, %v2552_v43  ;;  %v3132_v60 = vpop.f32.mrb[83].mxu0  ;;  %v3393_v45 = vadd.f32 %v3392_v34, %v3330_v25 }
 0x2b9   :  { %v3260_v54 = vadd.f32 %v6362_v10, %v3259_v40  ;;  %v3332_v60 = vmul.f32 %v6370_v36, %v6370_v36 }
 0x2ba   :  { %7817 = vst [vmem:[#allocation2_spill] sm:$0xff] %v6375_v55 }
 0x2bb   :  { %v3261_v2 = vadd.f32 %v6370_v36, %v3260_v54 }
 0x2bc   :  { %v2557_v9 = vpop.f32.mrb[84].mxu1 }
 0x2bd   :  { %v3135_v14 = vpop.f32.mrb[84].mxu0  ;;  %v2559_v15 = vpop.f32.mrb[85].mxu1  ;;  %v3262_v40 = vadd.f32 %v6375_v55, %v3261_v2 }
 0x2be   :  { %v6383_v26 = vadd.f32 %v3135_v14, %v2557_v9  ;;  %v3137_v27 = vpop.f32.mrb[85].mxu0  ;;  %v2560_v28 = vpop.f32.mrb[86].mxu1  ;;  %v3394_v14 = vadd.f32 %v3393_v45, %v3331_v52 }
 0x2bf   :  { %v3138_v29 = vpop.f32.mrb[86].mxu0  ;;  %v2562_v33 = vpop.f32.mrb[87].mxu1 }
 0x2c0   :  { %7818 = vst [vmem:[#allocation3_spill] sm:$0xff] %v6383_v26  ;;  %v6386_v43 = vadd.f32 %v3138_v29, %v2560_v28  ;;  %v3140_v44 = vpop.f32.mrb[87].mxu0  ;;  %v3395_v28 = vadd.f32 %v3394_v14, %v3332_v60  ;;  %v3333_v29 = vmul.f32 %v6375_v55, %v6375_v55  ;;  %v3263_v52 = vadd.f32 %v6383_v26, %v3262_v40 }
 0x2c1   :  { %v3334_v44 = vmul.f32 %v6383_v26, %v6383_v26 }
 0x2c2   :  { %7819 = vst [vmem:[#allocation4_spill] sm:$0xff] %v6386_v43  ;;  %v3396_v45 = vadd.f32 %v3395_v28, %v3333_v29  ;;  %v3335_v60 = vmul.f32 %v6386_v43, %v6386_v43  ;;  %v3264_v2 = vadd.f32 %v6386_v43, %v3263_v52 }
 0x2c4   :  { %v2565_v62 = vpop.f32.mrb[88].mxu1 }
 0x2c5   :  { %v3143_v1 = vpop.f32.mrb[88].mxu0  ;;  %v2567_v9 = vpop.f32.mrb[89].mxu1 }
 0x2c6   :  { %v6394_v4 = vadd.f32 %v3143_v1, %v2565_v62  ;;  %v3145_v15 = vpop.f32.mrb[89].mxu0  ;;  %v2568_v19 = vpop.f32.mrb[90].mxu1  ;;  %v3397_v9 = vadd.f32 %v3396_v45, %v3334_v44 }
 0x2c7   :  { %v3146_v27 = vpop.f32.mrb[90].mxu0  ;;  %v2570_v25 = vpop.f32.mrb[91].mxu1 }
 0x2c8   :  { %7820 = vst [vmem:[#allocation5_spill] sm:$0xff] %v6394_v4  ;;  %v6398_v33 = vadd.f32 %v3146_v27, %v2568_v19  ;;  %v3148_v34 = vpop.f32.mrb[91].mxu0  ;;  %v3336_v28 = vmul.f32 %v6394_v4, %v6394_v4  ;;  %v3398_v40 = vadd.f32 %v3397_v9, %v3335_v60  ;;  %v3265_v44 = vadd.f32 %v6394_v4, %v3264_v2 }
 0x2ca   :  { %7821 = vst [vmem:[#allocation6_spill] sm:$0xff] %v6398_v33  ;;  %v3399_v45 = vadd.f32 %v3398_v40, %v3336_v28 }
 0x2cc   :  { %v2573_v54 = vpop.f32.mrb[92].mxu1 }
 0x2cd   :  { %v3151_v62 = vpop.f32.mrb[92].mxu0  ;;  %v2575_v1 = vpop.f32.mrb[93].mxu1 }
 0x2ce   :  { %v6406_v14 = vadd.f32 %v3151_v62, %v2573_v54  ;;  %v3153_v15 = vpop.f32.mrb[93].mxu0  ;;  %v2576_v19 = vpop.f32.mrb[94].mxu1  ;;  %v3337_v54 = vmul.f32 %v6398_v33, %v6398_v33 }
 0x2cf   :  { %v3154_v27 = vpop.f32.mrb[94].mxu0  ;;  %v2578_v25 = vpop.f32.mrb[95].mxu1 }
 0x2d0   :  { %7822 = vst [vmem:[#allocation7_spill] sm:$0xff] %v6406_v14  ;;  %v6411_v29 = vadd.f32 %v3154_v27, %v2576_v19  ;;  %v3156_v34 = vpop.f32.mrb[95].mxu0  ;;  %v3266_v25 = vadd.f32 %v6398_v33, %v3265_v44  ;;  %v3338_v52 = vmul.f32 %v6406_v14, %v6406_v14  ;;  %v3400_v60 = vadd.f32 %v3399_v45, %v3337_v54 }
 0x2d2   :  { %7823 = vst [vmem:[#allocation8_spill] sm:$0xff] %v6411_v29  ;;  %v3267_v2 = vadd.f32 %v6406_v14, %v3266_v25  ;;  %v3401_v4 = vadd.f32 %v3400_v60, %v3338_v52 }
 0x2d4   :  { %v2581_v62 = vpop.f32.mrb[96].mxu1  ;;  %v3268_v44 = vadd.f32 %v6411_v29, %v3267_v2 }
 0x2d5   :  { %v3159_v1 = vpop.f32.mrb[96].mxu0  ;;  %v2583_v15 = vpop.f32.mrb[97].mxu1 }
 0x2d6   :  { %v6419_v43 = vadd.f32 %v3159_v1, %v2581_v62  ;;  %v3161_v19 = vpop.f32.mrb[97].mxu0  ;;  %v2584_v27 = vpop.f32.mrb[98].mxu1  ;;  %v3339_v15 = vmul.f32 %v6411_v29, %v6411_v29 }
 0x2d7   :  { %v3162_v34 = vpop.f32.mrb[98].mxu0  ;;  %v2586_v9 = vpop.f32.mrb[99].mxu1 }
 0x2d8   :  { %7824 = vst [vmem:[#allocation9_spill] sm:$0xff] %v6419_v43  ;;  %v6422_v28 = vadd.f32 %v3162_v34, %v2584_v27  ;;  %v3164_v40 = vpop.f32.mrb[99].mxu0  ;;  %v3340_v62 = vmul.f32 %v6419_v43, %v6419_v43  ;;  %v3402_v26 = vadd.f32 %v3401_v4, %v3339_v15  ;;  %v3269_v45 = vadd.f32 %v6419_v43, %v3268_v44 }
 0x2da   :  { %7825 = vst [vmem:[#allocation10_spill] sm:$0xff] %v6422_v28  ;;  %v3403_v9 = vadd.f32 %v3402_v26, %v3340_v62  ;;  %v3341_v60 = vmul.f32 %v6422_v28, %v6422_v28  ;;  %v3270_v29 = vadd.f32 %v6422_v28, %v3269_v45 }
 0x2dc   :  { %v2589_v1 = vpop.f32.mrb[100].mxu1 }
 0x2dd   :  { %v3167_v19 = vpop.f32.mrb[100].mxu0  ;;  %v2591_v33 = vpop.f32.mrb[101].mxu1 }
 0x2de   :  { %v6430_v54 = vadd.f32 %v3167_v19, %v2589_v1  ;;  %v3169_v25 = vpop.f32.mrb[101].mxu0  ;;  %v2592_v27 = vpop.f32.mrb[102].mxu1  ;;  %v3404_v33 = vadd.f32 %v3403_v9, %v3341_v60 }
 0x2df   :  { %v3170_v34 = vpop.f32.mrb[102].mxu0  ;;  %v2594_v52 = vpop.f32.mrb[103].mxu1 }
 0x2e0   :  { %7826 = vst [vmem:[#allocation11_spill] sm:$0xff] %v6430_v54  ;;  %v6434_v2 = vadd.f32 %v3170_v34, %v2592_v27  ;;  %v3172_v40 = vpop.f32.mrb[103].mxu0  ;;  %v3342_v4 = vmul.f32 %v6430_v54, %v6430_v54  ;;  %v3271_v15 = vadd.f32 %v6430_v54, %v3270_v29 }
 0x2e2   :  { %7827 = vst [vmem:[#allocation12_spill] sm:$0xff] %v6434_v2  ;;  %v3405_v25 = vadd.f32 %v3404_v33, %v3342_v4  ;;  %v3343_v26 = vmul.f32 %v6434_v2, %v6434_v2  ;;  %v3272_v45 = vadd.f32 %v6434_v2, %v3271_v15 }
 0x2e4   :  { %v2597_v44 = vpop.f32.mrb[104].mxu1  ;;  %v3406_v54 = vadd.f32 %v3405_v25, %v3343_v26 }
 0x2e5   :  { %v3175_v1 = vpop.f32.mrb[104].mxu0  ;;  %v2599_v19 = vpop.f32.mrb[105].mxu1 }
 0x2e6   :  { %v6442_v62 = vadd.f32 %v3175_v1, %v2597_v44  ;;  %v3177_v27 = vpop.f32.mrb[105].mxu0  ;;  %v2600_v34 = vpop.f32.mrb[106].mxu1 }
 0x2e7   :  { %v3178_v52 = vpop.f32.mrb[106].mxu0  ;;  %v2602_v40 = vpop.f32.mrb[107].mxu1 }
 0x2e8   :  { %7828 = vst [vmem:[#allocation13_spill] sm:$0xff] %v6442_v62  ;;  %v3344_v9 = vmul.f32 %v6442_v62, %v6442_v62  ;;  %v6447_v60 = vadd.f32 %v3178_v52, %v2600_v34  ;;  %v3180_v29 = vpop.f32.mrb[107].mxu0  ;;  %v3273_v4 = vadd.f32 %v6442_v62, %v3272_v45 }
 0x2ea   :  { %7829 = vst [vmem:[#allocation14_spill] sm:$0xff] %v6447_v60  ;;  %v3407_v33 = vadd.f32 %v3406_v54, %v3344_v9  ;;  %v3345_v44 = vmul.f32 %v6447_v60, %v6447_v60  ;;  %v3274_v40 = vadd.f32 %v6447_v60, %v3273_v4 }
 0x2ec   :  { %v2605_v1 = vpop.f32.mrb[108].mxu1  ;;  %v3408_v52 = vadd.f32 %v3407_v33, %v3345_v44 }
 0x2ed   :  { %v3183_v19 = vpop.f32.mrb[108].mxu0  ;;  %v2607_v27 = vpop.f32.mrb[109].mxu1 }
 0x2ee   :  { %v6453_v28 = vadd.f32 %v3183_v19, %v2605_v1  ;;  %v3185_v15 = vpop.f32.mrb[109].mxu0  ;;  %v2608_v2 = vpop.f32.mrb[110].mxu1 }
 0x2ef   :  { %v3186_v43 = vpop.f32.mrb[110].mxu0  ;;  %v2610_v34 = vpop.f32.mrb[111].mxu1 }
 0x2f0   :  { %7830 = vst [vmem:[#allocation15_spill] sm:$0xff] %v6453_v28  ;;  %v3275_v25 = vadd.f32 %v6453_v28, %v3274_v40  ;;  %v3346_v54 = vmul.f32 %v6453_v28, %v6453_v28  ;;  %v6458_v26 = vadd.f32 %v3186_v43, %v2608_v2  ;;  %v3188_v45 = vpop.f32.mrb[111].mxu0 }
 0x2f2   :  { %7831 = vst [vmem:[#allocation16_spill] sm:$0xff] %v6458_v26  ;;  %v3409_v9 = vadd.f32 %v3408_v52, %v3346_v54  ;;  %v3276_v29 = vadd.f32 %v6458_v26, %v3275_v25  ;;  %v3347_v4 = vmul.f32 %v6458_v26, %v6458_v26 }
 0x2f4   :  { %v3410_v1 = vadd.f32 %v3409_v9, %v3347_v4  ;;  %v2613_v19 = vpop.f32.mrb[112].mxu1 }
 0x2f5   :  { %v3191_v27 = vpop.f32.mrb[112].mxu0  ;;  %v2615_v15 = vpop.f32.mrb[113].mxu1 }
 0x2f6   :  { %v6463_v34 = vadd.f32 %v3191_v27, %v2613_v19  ;;  %v3193_v33 = vpop.f32.mrb[113].mxu0  ;;  %v2616_v44 = vpop.f32.mrb[114].mxu1 }
 0x2f7   :  { %v3194_v40 = vpop.f32.mrb[114].mxu0  ;;  %v2618_v60 = vpop.f32.mrb[115].mxu1 }
 0x2f8   :  { %7832 = vst [vmem:[#allocation17_spill] sm:$0xff] %v6463_v34  ;;  %v3277_v43 = vadd.f32 %v6463_v34, %v3276_v29  ;;  %v3348_v2 = vmul.f32 %v6463_v34, %v6463_v34  ;;  %v6468_v52 = vadd.f32 %v3194_v40, %v2616_v44  ;;  %v3196_v25 = vpop.f32.mrb[115].mxu0 }
 0x2fa   :  { %7833 = vst [vmem:[#allocation18_spill] sm:$0xff] %v6468_v52  ;;  %v3411_v54 = vadd.f32 %v3410_v1, %v3348_v2  ;;  %v3278_v45 = vadd.f32 %v6468_v52, %v3277_v43  ;;  %v3349_v9 = vmul.f32 %v6468_v52, %v6468_v52 }
 0x2fc   :  { %v3412_v4 = vadd.f32 %v3411_v54, %v3349_v9  ;;  %v2621_v19 = vpop.f32.mrb[116].mxu1 }
 0x2fd   :  { %v3199_v27 = vpop.f32.mrb[116].mxu0  ;;  %v2623_v15 = vpop.f32.mrb[117].mxu1 }
 0x2fe   :  { %v6473_v33 = vadd.f32 %v3199_v27, %v2621_v19  ;;  %v3201_v60 = vpop.f32.mrb[117].mxu0  ;;  %v2624_v29 = vpop.f32.mrb[118].mxu1 }
 0x2ff   :  { %v3202_v62 = vpop.f32.mrb[118].mxu0  ;;  %v2626_v26 = vpop.f32.mrb[119].mxu1 }
 0x300   :  { %7834 = vst [vmem:[#allocation19_spill] sm:$0xff] %v6473_v33  ;;  %v3279_v44 = vadd.f32 %v6473_v33, %v3278_v45  ;;  %v3350_v1 = vmul.f32 %v6473_v33, %v6473_v33  ;;  %v6478_v40 = vadd.f32 %v3202_v62, %v2624_v29  ;;  %v3204_v43 = vpop.f32.mrb[119].mxu0 }
 0x302   :  { %7835 = vst [vmem:[#allocation20_spill] sm:$0xff] %v6478_v40  ;;  %v3413_v2 = vadd.f32 %v3412_v4, %v3350_v1  ;;  %v3280_v25 = vadd.f32 %v6478_v40, %v3279_v44  ;;  %v3351_v54 = vmul.f32 %v6478_v40, %v6478_v40 }
 0x304   :  { %v3414_v9 = vadd.f32 %v3413_v2, %v3351_v54  ;;  %v2629_v19 = vpop.f32.mrb[120].mxu1 }
 0x305   :  { %v3207_v27 = vpop.f32.mrb[120].mxu0  ;;  %v2631_v15 = vpop.f32.mrb[121].mxu1 }
 0x306   :  { %v6483_v60 = vadd.f32 %v3207_v27, %v2629_v19  ;;  %v3209_v26 = vpop.f32.mrb[121].mxu0  ;;  %v2632_v45 = vpop.f32.mrb[122].mxu1 }
 0x307   :  { %v3210_v52 = vpop.f32.mrb[122].mxu0  ;;  %v2634_v34 = vpop.f32.mrb[123].mxu1 }
 0x308   :  { %7836 = vst [vmem:[#allocation21_spill] sm:$0xff] %v6483_v60  ;;  %v3281_v62 = vadd.f32 %v6483_v60, %v3280_v25  ;;  %v3352_v4 = vmul.f32 %v6483_v60, %v6483_v60  ;;  %v6488_v29 = vadd.f32 %v3210_v52, %v2632_v45  ;;  %v3212_v44 = vpop.f32.mrb[123].mxu0 }
 0x30a   :  { %7837 = vst [vmem:[#allocation22_spill] sm:$0xff] %v6488_v29  ;;  %v3415_v1 = vadd.f32 %v3414_v9, %v3352_v4  ;;  %v3282_v43 = vadd.f32 %v6488_v29, %v3281_v62  ;;  %v3353_v2 = vmul.f32 %v6488_v29, %v6488_v29 }
 0x30c   :  { %v3416_v54 = vadd.f32 %v3415_v1, %v3353_v2  ;;  %v2637_v19 = vpop.f32.mrb[124].mxu1 }
 0x30d   :  { %v3215_v27 = vpop.f32.mrb[124].mxu0  ;;  %v2639_v15 = vpop.f32.mrb[125].mxu1 }
 0x30e   :  { %v6493_v26 = vadd.f32 %v3215_v27, %v2637_v19  ;;  %v3217_v34 = vpop.f32.mrb[125].mxu0  ;;  %v2640_v25 = vpop.f32.mrb[126].mxu1 }
 0x30f   :  { %v3218_v40 = vpop.f32.mrb[126].mxu0  ;;  %v2642_v33 = vpop.f32.mrb[127].mxu1 }
 0x310   :  { %7838 = vst [vmem:[#allocation23_spill] sm:$0xff] %v6493_v26  ;;  %v3283_v52 = vadd.f32 %v6493_v26, %v3282_v43  ;;  %v3354_v9 = vmul.f32 %v6493_v26, %v6493_v26  ;;  %v6498_v45 = vadd.f32 %v3218_v40, %v2640_v25  ;;  %v3220_v62 = vpop.f32.mrb[127].mxu0 }
 0x312   :  { %7839 = vst [vmem:[#allocation24_spill] sm:$0xff] %v6498_v45  ;;  %v3417_v4 = vadd.f32 %v3416_v54, %v3354_v9  ;;  %v3284_v44 = vadd.f32 %v6498_v45, %v3283_v52  ;;  %v3355_v1 = vmul.f32 %v6498_v45, %v6498_v45  ;;  %v3436_v45 = vlaneseq }
 0x314   :  { %v3285_v2 = vrot.slane %v3284_v44, 4  ;;  %v3418_v19 = vadd.f32 %v3417_v4, %v3355_v1  ;;  %v6503_v55 = vshrl.u32 %v3436_v45, 7  ;;  %v3428_v4 = vld [vmem:[%s7759_s2] sm:$0x1] }
 0x316   :  { %v3286_v27 = vadd.f32 %v3285_v2, %v3284_v44  ;;  %v3419_v15 = vrot.slane %v3418_v19, 4  ;;  %v7785_v44 = vsub.s32 0, %v6503_v55 }
 0x318   :  { %v3287_v34 = vrot.slane %v3286_v27, 2  ;;  %v3420_v33 = vadd.f32 %v3419_v15, %v3418_v19 }
 0x31a   :  { %v3288_v29 = vadd.f32 %v3287_v34, %v3286_v27  ;;  %v3421_v43 = vrot.slane %v3420_v33, 2  ;;  %v7840_v34 = vld [vmem:[#allocation2_spill] sm:$0xff] }
 0x31c   :  { %v3289_v60 = vrot.slane %v3288_v29, 1  ;;  %v3422_v28 = vadd.f32 %v3421_v43, %v3420_v33  ;;  %v7841_v33 = vld [vmem:[#allocation3_spill] sm:$0xff]  ;;  %v7842_v43 = vld [vmem:[#allocation4_spill] sm:$0xff] }
 0x31e   :  { %v3290_v26 = vadd.f32 %v3289_v60, %v3288_v29  ;;  %v3423_v40 = vrot.slane %v3422_v28, 1 }
 0x320   :  { %v3291_v25 = vmul.f32 0.001953125, %v3290_v26  ;;  %v3424_v62 = vadd.f32 %v3423_v40, %v3422_v28  ;;  %v6512_v28 = vld [vmem:[%s7760_s3] sm:$0x1]  ;;  %v7843_v40 = vld [vmem:[#allocation5_spill] sm:$0xff] }
 0x322   :  { %v3425_v54 = vmul.f32 0.001953125, %v3424_v62  ;;  %v3426_v9 = vmul.f32 %v3291_v25, %v3291_v25  ;;  %v7845_v62 = vld [vmem:[#allocation7_spill] sm:$0xff] }
 0x324   :  { %v3427_v52 = vsub.f32 %v3425_v54, %v3426_v9  ;;  %v7846_v9 = vld [vmem:[#allocation8_spill] sm:$0xff] }
 0x326   :  { %v3429_v14 = vadd.f32 1e-05, %v3427_v52 }
 0x328   :  { %5115 = vrsqrt.f32 %v3429_v14 }
 0x332   :  { %v5116_v1 = vpop.eup %5115 }
 0x333   :  { %v3431_v2 = vmul.f32 %v5116_v1, %v3428_v4  ;;  %v7848_v4 = vld [vmem:[#allocation15_spill] sm:$0xff] }
 0x335   :  { %v6514_v60 = vmul.f32 %v3431_v2, %v3291_v25  ;;  %v6518_v14 = vrot.slane %v3431_v2, %v7785_v44  ;;  %v7844_v25 = vld [vmem:[#allocation6_spill] sm:$0xff]  ;;  %v7850_v2 = vld [vmem:[#allocation16_spill] sm:$0xff] }
 0x336   :  { %v7862_v44 = vld [vmem:[#allocation22_spill] sm:$0xff] }
 0x337   :  { %v3434_v29 = vsub.f32 %v6512_v28, %v6514_v60  ;;  %v6524_v26 = vmul.f32 %v6147_v41, %v6518_v14  ;;  %v6528_v45 = vmul.f32 %v6149_v49, %v6518_v14  ;;  %v6532_v19 = vmul.f32 %v6163_v58, %v6518_v14  ;;  %v7852_v60 = vld [vmem:[#allocation17_spill] sm:$0xff] }
 0x338   :  { %v6536_v27 = vmul.f32 %v6165_v3, %v6518_v14  ;;  %v6540_v15 = vmul.f32 %v6179_v13, %v6518_v14  ;;  %v6544_v41 = vmul.f32 %v6181_v21, %v6518_v14  ;;  %v6548_v49 = vmul.f32 %v6195_v31, %v6518_v14 }
 0x339   :  { %v6552_v58 = vmul.f32 %v6197_v39, %v6518_v14  ;;  %v6556_v3 = vmul.f32 %v6199_v46, %v6518_v14  ;;  %v6560_v13 = vmul.f32 %v6201_v53, %v6518_v14  ;;  %v6564_v21 = vmul.f32 %v6203_v0, %v6518_v14 }
 0x33a   :  { %v6568_v31 = vmul.f32 %v6205_v63, %v6518_v14  ;;  %v6572_v39 = vmul.f32 %v6207_v6, %v6518_v14  ;;  %v6576_v46 = vmul.f32 %v6209_v11, %v6518_v14  ;;  %v6580_v53 = vmul.f32 %v6211_v17, %v6518_v14 }
 0x33b   :  { %v6584_v0 = vmul.f32 %v6215_v24, %v6518_v14  ;;  %v6588_v63 = vmul.f32 %v6226_v37, %v6518_v14  ;;  %v6592_v6 = vmul.f32 %v6231_v47, %v6518_v14  ;;  %v6596_v11 = vmul.f32 %v6239_v61, %v6518_v14 }
 0x33c   :  { %v6600_v17 = vmul.f32 %v6242_v8, %v6518_v14  ;;  %v6604_v24 = vmul.f32 %v6250_v23, %v6518_v14  ;;  %v6608_v37 = vmul.f32 %v6254_v32, %v6518_v14  ;;  %v6612_v47 = vmul.f32 %v6262_v48, %v6518_v14 }
 0x33d   :  { %v6616_v61 = vmul.f32 %v6267_v57, %v6518_v14  ;;  %v6620_v8 = vmul.f32 %v6275_v12, %v6518_v14  ;;  %v6624_v23 = vmul.f32 %v6278_v22, %v6518_v14  ;;  %v6628_v32 = vmul.f32 %v6286_v38, %v6518_v14 }
 0x33e   :  { %v6632_v48 = vmul.f32 %v6290_v51, %v6518_v14  ;;  %v6636_v57 = vmul.f32 %v6298_v5, %v6518_v14  ;;  %v6640_v12 = vmul.f32 %v6303_v18, %v6518_v14  ;;  %v6644_v22 = vmul.f32 %v6311_v35, %v6518_v14 }
 0x33f   :  { %v6648_v38 = vmul.f32 %v6314_v50, %v6518_v14  ;;  %v6652_v51 = vmul.f32 %v6322_v7, %v6518_v14  ;;  %v6656_v5 = vmul.f32 %v6326_v20, %v6518_v14  ;;  %v6660_v18 = vmul.f32 %v6334_v42, %v6518_v14 }
 0x340   :  { %v6664_v35 = vmul.f32 %v6339_v56, %v6518_v14  ;;  %v6668_v50 = vmul.f32 %v6347_v16, %v6518_v14  ;;  %v6672_v7 = vmul.f32 %v6350_v30, %v6518_v14  ;;  %v6676_v20 = vmul.f32 %v6358_v59, %v6518_v14 }
 0x341   :  { %v6680_v42 = vmul.f32 %v6362_v10, %v6518_v14  ;;  %v6684_v56 = vmul.f32 %v6370_v36, %v6518_v14  ;;  %v6688_v16 = vmul.f32 %v7840_v34, %v6518_v14  ;;  %v6692_v30 = vmul.f32 %v7841_v33, %v6518_v14  ;;  %v7854_v33 = vld [vmem:[#allocation18_spill] sm:$0xff] }
 0x342   :  { %v6696_v59 = vmul.f32 %v7842_v43, %v6518_v14  ;;  %v6700_v10 = vmul.f32 %v7843_v40, %v6518_v14  ;;  %v6704_v36 = vmul.f32 %v7844_v25, %v6518_v14  ;;  %v6708_v54 = vmul.f32 %v7845_v62, %v6518_v14  ;;  %v7856_v40 = vld [vmem:[#allocation19_spill] sm:$0xff]  ;;  %v7858_v62 = vld [vmem:[#allocation20_spill] sm:$0xff] }
 0x343   :  { %v6712_v52 = vmul.f32 %v7846_v9, %v6518_v14  ;;  %v6716_v1 = vmul.f32 %v7848_v4, %v6518_v14  ;;  %v6720_v28 = vmul.f32 %v7850_v2, %v6518_v14  ;;  %v6724_v34 = vmul.f32 %v7852_v60, %v6518_v14  ;;  %v7860_v4 = vld [vmem:[#allocation21_spill] sm:$0xff] }
 0x344   :  { %v6728_v43 = vmul.f32 %v7854_v33, %v6518_v14  ;;  %v6732_v25 = vmul.f32 %v7856_v40, %v6518_v14  ;;  %v6736_v9 = vmul.f32 %v7858_v62, %v6518_v14  ;;  %v6740_v2 = vmul.f32 %v7860_v4, %v6518_v14  ;;  %v7868_v62 = vld [vmem:[#allocation24_spill] sm:$0xff] }
 0x345   :  { %7847 = vst [vmem:[#allocation2_spill] sm:$0xff] %v6712_v52  ;;  %7849 = vst [vmem:[#allocation3_spill] sm:$0xff] %v6716_v1  ;;  %v6744_v60 = vmul.f32 %v7862_v44, %v6518_v14  ;;  %v7869_v4 = vsub.s32 0, %v6503_v55  ;;  %v7870_v44 = vld [vmem:[#allocation11_spill] sm:$0xff]  ;;  %v7872_v1 = vld [vmem:[#allocation13_spill] sm:$0xff] }
 0x346   :  { %7851 = vst [vmem:[#allocation4_spill] sm:$0xff] %v6720_v28  ;;  %7853 = vst [vmem:[#allocation5_spill] sm:$0xff] %v6724_v34  ;;  %v7864_v34 = vld [vmem:[#allocation23_spill] sm:$0xff]  ;;  %v7873_v52 = vld [vmem:[#allocation14_spill] sm:$0xff] }
 0x347   :  { %7855 = vst [vmem:[#allocation6_spill] sm:$0xff] %v6728_v43  ;;  %7857 = vst [vmem:[#allocation7_spill] sm:$0xff] %v6732_v25  ;;  %v6748_v33 = vmul.f32 %v7864_v34, %v6518_v14  ;;  %v7866_v43 = vld [vmem:[#allocation9_spill] sm:$0xff]  ;;  %v7867_v25 = vld [vmem:[#allocation10_spill] sm:$0xff] }
 0x348   :  { %7859 = vst [vmem:[#allocation8_spill] sm:$0xff] %v6736_v9  ;;  %7861 = vst [vmem:[#allocation15_spill] sm:$0xff] %v6740_v2  ;;  %v3489_v40 = vmul.f32 %v7866_v43, %v6518_v14  ;;  %v3490_v28 = vmul.f32 %v7867_v25, %v6518_v14  ;;  %v6756_v9 = vmul.f32 %v7868_v62, %v6518_v14  ;;  %v7871_v34 = vld [vmem:[#allocation12_spill] sm:$0xff] }
 0x349   :  { %7863 = vst [vmem:[#allocation16_spill] sm:$0xff] %v6744_v60  ;;  %7865 = vst [vmem:[#allocation17_spill] sm:$0xff] %v6748_v33  ;;  %v6760_v2 = vrot.slane %v3434_v29, %v7869_v4  ;;  %v3491_v60 = vmul.f32 %v7870_v44, %v6518_v14  ;;  %v3492_v33 = vmul.f32 %v7871_v34, %v6518_v14 }
 0x34a   :  { %v3493_v43 = vmul.f32 %v7872_v1, %v6518_v14  ;;  %v3494_v25 = vmul.f32 %v7873_v52, %v6518_v14 }
 0x34b   :  { %v6772_v62 = vadd.f32 %v6760_v2, %v6524_v26  ;;  %v6776_v55 = vadd.f32 %v6760_v2, %v6528_v45  ;;  %v6780_v29 = vadd.f32 %v6760_v2, %v6532_v19  ;;  %v6784_v4 = vadd.f32 %v6760_v2, %v6536_v27 }
 0x34c   :  { %v6788_v1 = vadd.f32 %v6760_v2, %v6540_v15  ;;  %v6792_v14 = vadd.f32 %v6760_v2, %v6544_v41  ;;  %v6796_v26 = vadd.f32 %v6760_v2, %v6548_v49  ;;  %v6800_v45 = vadd.f32 %v6760_v2, %v6552_v58  ;;  %v7882_v34 = vld [vmem:[#allocation3_spill] sm:$0xff] }
 0x34d   :  { %v6804_v19 = vadd.f32 %v6760_v2, %v6556_v3  ;;  %v6808_v27 = vadd.f32 %v6760_v2, %v6560_v13  ;;  %v6812_v15 = vadd.f32 %v6760_v2, %v6564_v21  ;;  %v6816_v41 = vadd.f32 %v6760_v2, %v6568_v31 }
 0x34e   :  { %v6820_v49 = vadd.f32 %v6760_v2, %v6572_v39  ;;  %v6824_v58 = vadd.f32 %v6760_v2, %v6576_v46  ;;  %v6828_v3 = vadd.f32 %v6760_v2, %v6580_v53  ;;  %v6832_v13 = vadd.f32 %v6760_v2, %v6584_v0 }
 0x34f   :  { %v6836_v21 = vadd.f32 %v6760_v2, %v6588_v63  ;;  %v6840_v31 = vadd.f32 %v6760_v2, %v6592_v6  ;;  %v6844_v39 = vadd.f32 %v6760_v2, %v6596_v11  ;;  %v6848_v46 = vadd.f32 %v6760_v2, %v6600_v17 }
 0x350   :  { %v6852_v53 = vadd.f32 %v6760_v2, %v6604_v24  ;;  %v6856_v0 = vadd.f32 %v6760_v2, %v6608_v37  ;;  %v6860_v63 = vadd.f32 %v6760_v2, %v6612_v47  ;;  %v6864_v6 = vadd.f32 %v6760_v2, %v6616_v61 }
 0x351   :  { %v6868_v11 = vadd.f32 %v6760_v2, %v6620_v8  ;;  %v6872_v17 = vadd.f32 %v6760_v2, %v6624_v23  ;;  %v6876_v24 = vadd.f32 %v6760_v2, %v6628_v32  ;;  %v6880_v37 = vadd.f32 %v6760_v2, %v6632_v48 }
 0x352   :  { %v6884_v47 = vadd.f32 %v6760_v2, %v6636_v57  ;;  %v6888_v61 = vadd.f32 %v6760_v2, %v6640_v12  ;;  %v6892_v8 = vadd.f32 %v6760_v2, %v6644_v22  ;;  %v6896_v23 = vadd.f32 %v6760_v2, %v6648_v38 }
 0x353   :  { %v6900_v32 = vadd.f32 %v6760_v2, %v6652_v51  ;;  %v6904_v48 = vadd.f32 %v6760_v2, %v6656_v5  ;;  %v6908_v57 = vadd.f32 %v6760_v2, %v6660_v18  ;;  %v6912_v12 = vadd.f32 %v6760_v2, %v6664_v35 }
 0x354   :  { %v6916_v22 = vadd.f32 %v6760_v2, %v6668_v50  ;;  %v6920_v38 = vadd.f32 %v6760_v2, %v6672_v7  ;;  %v6924_v51 = vadd.f32 %v6760_v2, %v6676_v20  ;;  %v6928_v5 = vadd.f32 %v6760_v2, %v6680_v42 }
 0x355   :  { %v6932_v18 = vadd.f32 %v6760_v2, %v6684_v56  ;;  %v6936_v35 = vadd.f32 %v6760_v2, %v6688_v16  ;;  %v6940_v50 = vadd.f32 %v6760_v2, %v6692_v30  ;;  %v6944_v7 = vadd.f32 %v6760_v2, %v6696_v59  ;;  %v7875_v16 = vld [vmem:[#allocation2_spill] sm:$0xff] }
 0x356   :  { %v6948_v20 = vadd.f32 %v6760_v2, %v6700_v10  ;;  %v6952_v42 = vadd.f32 %v6760_v2, %v6704_v36  ;;  %v6956_v56 = vadd.f32 %v6760_v2, %v6708_v54  ;;  %v6960_v30 = vadd.f32 %v6760_v2, %v7875_v16 }
 0x357   :  { %v6963_v52 = vadd.f32 %v6760_v2, %v3489_v40  ;;  %v6966_v59 = vadd.f32 %v6760_v2, %v3490_v28  ;;  %v6969_v10 = vadd.f32 %v6760_v2, %v3491_v60  ;;  %v6972_v36 = vadd.f32 %v6760_v2, %v3492_v33  ;;  %v7884_v40 = vld [vmem:[#allocation4_spill] sm:$0xff]  ;;  %v7888_v33 = vld [vmem:[#allocation6_spill] sm:$0xff] }
 0x358   :  { %7874 = vst [vmem:[#allocation18_spill] sm:$0xff] %v6952_v42  ;;  %v6975_v44 = vadd.f32 %v6760_v2, %v3493_v43  ;;  %v6978_v54 = vadd.f32 %v6760_v2, %v3494_v25  ;;  %v6982_v16 = vadd.f32 %v6760_v2, %v7882_v34  ;;  %v6986_v28 = vadd.f32 %v6760_v2, %v7884_v40  ;;  %v7890_v43 = vld [vmem:[#allocation7_spill] sm:$0xff] }
 0x359   :  { %7876 = vst [vmem:[#allocation19_spill] sm:$0xff] %v6963_v52  ;;  %7877 = vst [vmem:[#allocation20_spill] sm:$0xff] %v6966_v59  ;;  %v7886_v59 = vld [vmem:[#allocation5_spill] sm:$0xff]  ;;  %v6998_v25 = vadd.f32 %v6760_v2, %v7890_v43  ;;  %v7018_v43 = vadd.f32 %v6760_v2, %v6756_v9  ;;  %vm3575_vm0 = vcmp.ge.f32.partialorder %v6772_v62, 0.0  ;;  %vm3576_vm1 = vcmp.ge.f32.partialorder %v6776_v55, 0.0 }
 0x35a   :  { %7878 = vst [vmem:[#allocation21_spill] sm:$0xff] %v6969_v10  ;;  %7879 = vst [vmem:[#allocation22_spill] sm:$0xff] %v6972_v36  ;;  %v6990_v60 = vadd.f32 %v6760_v2, %v7886_v59  ;;  %v6994_v36 = vadd.f32 %v6760_v2, %v7888_v33  ;;  %vm3577_vm2 = vcmp.ge.f32.partialorder %v6780_v29, 0.0  ;;  %vm3578_vm3 = vcmp.ge.f32.partialorder %v6784_v4, 0.0 }
 0x35b   :  { %7880 = vst [vmem:[#allocation23_spill] sm:$0xff] %v6975_v44  ;;  %7881 = vst [vmem:[#allocation9_spill] sm:$0xff] %v6978_v54  ;;  %v7892_v54 = vld [vmem:[#allocation8_spill] sm:$0xff]  ;;  %vm3579_vm4 = vcmp.ge.f32.partialorder %v6788_v1, 0.0  ;;  %vm3580_vm5 = vcmp.ge.f32.partialorder %v6792_v14, 0.0  ;;  %vm3581_vm6 = vcmp.ge.f32.partialorder %v6796_v26, 0.0 }
 0x35c   :  { %7883 = vst [vmem:[#allocation10_spill] sm:$0xff] %v6982_v16  ;;  %7885 = vst [vmem:[#allocation24_spill] sm:$0xff] %v6986_v28  ;;  %v7002_v34 = vadd.f32 %v6760_v2, %v7892_v54  ;;  %v7894_v16 = vld [vmem:[#allocation15_spill] sm:$0xff]  ;;  %v7896_v28 = vld [vmem:[#allocation16_spill] sm:$0xff]  ;;  %vm3582_vm7 = vcmp.ge.f32.partialorder %v6800_v45, 0.0  ;;  %vm3583_vm8 = vcmp.ge.f32.partialorder %v6804_v19, 0.0 }
 0x35d   :  { %7887 = vst [vmem:[#allocation11_spill] sm:$0xff] %v6990_v60  ;;  %7889 = vst [vmem:[#allocation12_spill] sm:$0xff] %v6994_v36  ;;  %v7006_v40 = vadd.f32 %v6760_v2, %v7894_v16  ;;  %v7010_v59 = vadd.f32 %v6760_v2, %v7896_v28  ;;  %v7898_v60 = vld [vmem:[#allocation17_spill] sm:$0xff]  ;;  %vm3584_vm9 = vcmp.ge.f32.partialorder %v6808_v27, 0.0  ;;  %v3639_v9 = vmul.f32 0.2, %v6772_v62 }
 0x35e   :  { %7891 = vst [vmem:[#allocation13_spill] sm:$0xff] %v6998_v25  ;;  %7893 = vst [vmem:[#allocation14_spill] sm:$0xff] %v7002_v34  ;;  %v7014_v33 = vadd.f32 %v6760_v2, %v7898_v60  ;;  %v3640_v2 = vmul.f32 0.2, %v6776_v55  ;;  %v3641_v54 = vmul.f32 0.2, %v6780_v29 }
 0x35f   :  { %7895 = vst [vmem:[#allocation2_spill] sm:$0xff] %v7006_v40  ;;  %7897 = vst [vmem:[#allocation3_spill] sm:$0xff] %v7010_v59  ;;  %vm3585_vm10 = vcmp.ge.f32.partialorder %v6812_v15, 0.0  ;;  %v3642_v16 = vmul.f32 0.2, %v6784_v4  ;;  %vm3586_vm11 = vcmp.ge.f32.partialorder %v6816_v41, 0.0  ;;  %v7044_v40 = vsel %vm3575_vm0, %v6772_v62, %v3639_v9 }
 0x360   :  { %7899 = vst [vmem:[#allocation4_spill] sm:$0xff] %v7014_v33  ;;  %7900 = vst [vmem:[#allocation5_spill] sm:$0xff] %v7018_v43  ;;  %v3643_v28 = vmul.f32 0.2, %v6788_v1  ;;  %v3644_v60 = vmul.f32 0.2, %v6792_v14  ;;  %v7055_v44 = vsel %vm3576_vm1, %v6776_v55, %v3640_v2 }
 0x361   :  { %v3645_v43 = vmul.f32 0.2, %v6796_v26  ;;  %v3646_v33 = vmul.f32 0.2, %v6800_v45  ;;  %v3647_v59 = vmul.f32 0.2, %v6804_v19 }
 0x362   :  { %7901 = vst [vmem:[#allocation6_spill] sm:$0xff] %v7044_v40  ;;  %vm3587_vm12 = vcmp.ge.f32.partialorder %v6820_v49, 0.0  ;;  %v3648_v34 = vmul.f32 0.2, %v6808_v27  ;;  %v3649_v25 = vmul.f32 0.2, %v6812_v15  ;;  %v7070_v40 = vsel %vm3577_vm2, %v6780_v29, %v3641_v54 }
 0x363   :  { %v7050_v36 = vmul.f32 0.2, %v6816_v41  ;;  %7902 = vst [vmem:[#allocation7_spill] sm:$0xff] %v7055_v44  ;;  %vm3588_vm13 = vcmp.ge.f32.partialorder %v6824_v58, 0.0  ;;  %v7059_v10 = vmul.f32 0.2, %v6820_v49 }
 0x364   :  { %v7062_v62 = vmul.f32 0.2, %v6824_v58  ;;  %v7065_v9 = vmul.f32 0.2, %v6828_v3  ;;  %7904 = vst [vmem:[#allocation15_spill] sm:$0xff] %v7070_v40  ;;  %vm3589_vm14 = vcmp.ge.f32.partialorder %v6828_v3, 0.0 }
 0x365   :  { %v7074_v55 = vmul.f32 0.2, %v6832_v13  ;;  %v7077_v2 = vmul.f32 0.2, %v6836_v21  ;;  %v7080_v44 = vmul.f32 0.2, %v6840_v31 }
 0x366   :  { %7903 = vst [vmem:[#allocation8_spill] sm:$0xff] %v7065_v9  ;;  %v7085_v9 = vsel %vm3578_vm3, %v6784_v4, %v3642_v16  ;;  %vm3590_vm15 = vcmp.ge.f32.partialorder %v6832_v13, 0.0  ;;  %v7089_v29 = vmul.f32 0.2, %v6844_v39  ;;  %v7092_v54 = vmul.f32 0.2, %v6848_v46 }
 0x367   :  { %7905 = vst [vmem:[#allocation16_spill] sm:$0xff] %v7080_v44  ;;  %7906 = vst [vmem:[#allocation17_spill] sm:$0xff] %v7085_v9  ;;  %v7095_v40 = vmul.f32 0.2, %v6852_v53  ;;  %v7100_v44 = vsel %vm3579_vm4, %v6788_v1, %v3643_v28  ;;  %vm3591_vm0 = vcmp.ge.f32.partialorder %v6836_v21, 0.0  ;;  %vm3592_vm1 = vcmp.ge.f32.partialorder %v6840_v31, 0.0 }
 0x368   :  { %7908 = vst [vmem:[#allocation26_spill] sm:$0xff] %v7100_v44  ;;  %v7104_v4 = vmul.f32 0.2, %v6856_v0  ;;  %v7107_v16 = vmul.f32 0.2, %v6860_v63  ;;  %vm3593_vm2 = vcmp.ge.f32.partialorder %v6844_v39, 0.0 }
 0x369   :  { %7907 = vst [vmem:[#allocation25_spill] sm:$0xff] %v7095_v40  ;;  %v7110_v9 = vmul.f32 0.2, %v6864_v6  ;;  %v7115_v40 = vsel %vm3580_vm5, %v6792_v14, %v3644_v60  ;;  %v7119_v1 = vmul.f32 0.2, %v6868_v11  ;;  %vm3594_vm3 = vcmp.ge.f32.partialorder %v6848_v46, 0.0 }
 0x36a   :  { %7910 = vst [vmem:[#allocation28_spill] sm:$0xff] %v7115_v40  ;;  %v7122_v28 = vmul.f32 0.2, %v6872_v17  ;;  %v7125_v44 = vmul.f32 0.2, %v6876_v24 }
 0x36b   :  { %7909 = vst [vmem:[#allocation27_spill] sm:$0xff] %v7110_v9  ;;  %v7130_v9 = vsel %vm3581_vm6, %v6796_v26, %v3645_v43  ;;  %v7134_v14 = vmul.f32 0.2, %v6880_v37  ;;  %v7137_v60 = vmul.f32 0.2, %v6884_v47  ;;  %vm3597_vm6 = vcmp.ge.f32.partialorder %v6860_v63, 0.0 }
 0x36c   :  { %7911 = vst [vmem:[#allocation29_spill] sm:$0xff] %v7125_v44  ;;  %7912 = vst [vmem:[#allocation30_spill] sm:$0xff] %v7130_v9  ;;  %v7140_v40 = vmul.f32 0.2, %v6888_v61  ;;  %v7145_v44 = vsel %vm3582_vm7, %v6800_v45, %v3646_v33  ;;  %v7151_v26 = vmul.f32 0.2, %v6892_v8  ;;  %v7162_v45 = vsel %vm3583_vm8, %v6804_v19, %v3647_v59 }
 0x36d   :  { %7913 = vst [vmem:[#allocation31_spill] sm:$0xff] %v7145_v44  ;;  %v7154_v43 = vmul.f32 0.2, %v6896_v23  ;;  %v7157_v9 = vmul.f32 0.2, %v6900_v32  ;;  %7915 = vst [vmem:[#allocation33_spill] sm:$0xff] %v7162_v45  ;;  %v7180_v19 = vsel %vm3584_vm9, %v6808_v27, %v3648_v34  ;;  %v7198_v27 = vsel %vm3585_vm10, %v6812_v15, %v3649_v25 }
 0x36e   :  { %v7169_v33 = vmul.f32 0.2, %v6904_v48  ;;  %v7172_v44 = vmul.f32 0.2, %v6908_v57  ;;  %7917 = vst [vmem:[#allocation35_spill] sm:$0xff] %v7180_v19  ;;  %vm3601_vm8 = vcmp.ge.f32.partialorder %v6876_v24, 0.0  ;;  %v7217_v15 = vsel %vm3586_vm11, %v6816_v41, %v7050_v36 }
 0x36f   :  { %7914 = vst [vmem:[#allocation32_spill] sm:$0xff] %v7157_v9  ;;  %v7175_v9 = vmul.f32 0.2, %v6912_v12  ;;  %v7187_v59 = vmul.f32 0.2, %v6916_v22  ;;  %7919 = vst [vmem:[#allocation37_spill] sm:$0xff] %v7198_v27  ;;  %v7236_v41 = vsel %vm3587_vm12, %v6820_v49, %v7059_v10  ;;  %v7255_v49 = vsel %vm3588_vm13, %v6824_v58, %v7062_v62 }
 0x370   :  { %v7190_v45 = vmul.f32 0.2, %v6920_v38  ;;  %vm3605_vm9 = vcmp.ge.f32.partialorder %v6892_v8, 0.0  ;;  %v7205_v34 = vmul.f32 0.2, %v6928_v5  ;;  %7921 = vst [vmem:[#allocation39_spill] sm:$0xff] %v7217_v15 }
 0x371   :  { %7916 = vst [vmem:[#allocation34_spill] sm:$0xff] %v7175_v9  ;;  %v7193_v9 = vmul.f32 0.2, %v6924_v51  ;;  %v7208_v19 = vmul.f32 0.2, %v6932_v18  ;;  %vm3609_vm10 = vcmp.ge.f32.partialorder %v6908_v57, 0.0 }
 0x372   :  { %v7224_v25 = vmul.f32 0.2, %v6940_v50  ;;  %v7227_v27 = vmul.f32 0.2, %v6944_v7  ;;  %7924 = vst [vmem:[#allocation42_spill] sm:$0xff] %v7236_v41  ;;  %vm3613_vm11 = vcmp.ge.f32.partialorder %v6924_v51, 0.0 }
 0x373   :  { %7918 = vst [vmem:[#allocation36_spill] sm:$0xff] %v7193_v9  ;;  %v7211_v9 = vmul.f32 0.2, %v6936_v35  ;;  %v7243_v36 = vmul.f32 0.2, %v6952_v42  ;;  %7928 = vst [vmem:[#allocation46_spill] sm:$0xff] %v7255_v49 }
 0x374   :  { %7922 = vst [vmem:[#allocation40_spill] sm:$0xff] %v7227_v27  ;;  %v7246_v15 = vmul.f32 0.2, %v6956_v56  ;;  %vm3617_vm12 = vcmp.ge.f32.partialorder %v6940_v50, 0.0  ;;  %v7262_v10 = vmul.f32 0.2, %v6963_v52 }
 0x375   :  { %7920 = vst [vmem:[#allocation38_spill] sm:$0xff] %v7211_v9  ;;  %v7230_v9 = vmul.f32 0.2, %v6948_v20  ;;  %7925 = vst [vmem:[#allocation43_spill] sm:$0xff] %v7243_v36  ;;  %v7930_v41 = vld [vmem:[#allocation20_spill] sm:$0xff]  ;;  %vm3621_vm13 = vcmp.ge.f32.partialorder %v6956_v56, 0.0 }
 0x376   :  { %7926 = vst [vmem:[#allocation44_spill] sm:$0xff] %v7246_v15  ;;  %7929 = vst [vmem:[#allocation47_spill] sm:$0xff] %v7262_v10  ;;  %v7265_v15 = vmul.f32 0.2, %v7930_v41  ;;  %v7934_v27 = vld [vmem:[#allocation8_spill] sm:$0xff]  ;;  %v7936_v62 = vld [vmem:[#allocation22_spill] sm:$0xff] }
 0x377   :  { %7923 = vst [vmem:[#allocation41_spill] sm:$0xff] %v7230_v9  ;;  %v7249_v9 = vmul.f32 0.2, %v6960_v30  ;;  %v7274_v58 = vsel %vm3589_vm14, %v6828_v3, %v7934_v27  ;;  %v7281_v49 = vmul.f32 0.2, %v7936_v62  ;;  %v7293_v3 = vsel %vm3590_vm15, %v6832_v13, %v7074_v55  ;;  %v7943_v27 = vld [vmem:[#allocation10_spill] sm:$0xff] }
 0x378   :  { %7931 = vst [vmem:[#allocation48_spill] sm:$0xff] %v7265_v15  ;;  %7935 = vst [vmem:[#allocation8_spill] sm:$0xff] %v7274_v58  ;;  %v7938_v15 = vld [vmem:[#allocation23_spill] sm:$0xff]  ;;  %v3693_v58 = vmul.f32 0.2, %v7943_v27  ;;  %v7306_v13 = vsel %vm3591_vm0, %v6836_v21, %v7077_v2  ;;  %vm3629_vm15 = vcmp.ge.f32.partialorder %v7943_v27, 0.0 }
 0x379   :  { %7927 = vst [vmem:[#allocation45_spill] sm:$0xff] %v7249_v9  ;;  %v7932_v9 = vld [vmem:[#allocation21_spill] sm:$0xff]  ;;  %7937 = vst [vmem:[#allocation50_spill] sm:$0xff] %v7281_v49  ;;  %v7284_v10 = vmul.f32 0.2, %v7938_v15  ;;  %v7945_v41 = vld [vmem:[#allocation11_spill] sm:$0xff] }
 0x37a   :  { %v7268_v36 = vmul.f32 0.2, %v7932_v9  ;;  %7942 = vst [vmem:[#allocation53_spill] sm:$0xff] %v7293_v3  ;;  %vm3625_vm14 = vcmp.ge.f32.partialorder %v7932_v9, 0.0  ;;  %7946 = vst [vmem:[#allocation54_spill] sm:$0xff] %v7306_v13  ;;  %v7947_v55 = vld [vmem:[#allocation12_spill] sm:$0xff] }
 0x37b   :  { %7939 = vst [vmem:[#allocation51_spill] sm:$0xff] %v7284_v10  ;;  %v7944_v10 = vld [vmem:[#allocation24_spill] sm:$0xff]  ;;  %v3696_v3 = vmul.f32 0.2, %v7947_v55  ;;  %v7949_v62 = vld [vmem:[#allocation14_spill] sm:$0xff]  ;;  %v7953_v13 = vld [vmem:[#allocation3_spill] sm:$0xff] }
 0x37c   :  { %7933 = vst [vmem:[#allocation49_spill] sm:$0xff] %v7268_v36  ;;  %v7940_v36 = vld [vmem:[#allocation9_spill] sm:$0xff]  ;;  %v3694_v49 = vmul.f32 0.2, %v7944_v10  ;;  %v3698_v9 = vmul.f32 0.2, %v7949_v62 }
 0x37d   :  { %v7287_v42 = vmul.f32 0.2, %v7940_v36  ;;  %v7948_v36 = vld [vmem:[#allocation13_spill] sm:$0xff]  ;;  %v7950_v52 = vld [vmem:[#allocation16_spill] sm:$0xff]  ;;  %v7952_v2 = vld [vmem:[#allocation2_spill] sm:$0xff]  ;;  %vm7957_vm7 = vcmp.ge.f32.partialorder %v6852_v53, 0.0 }
 0x37e   :  { %v3697_v15 = vmul.f32 0.2, %v7948_v36  ;;  %v7319_v21 = vsel %vm3592_vm1, %v6840_v31, %v7950_v52  ;;  %vm3633_vm0 = vcmp.ge.f32.partialorder %v7948_v36, 0.0  ;;  %vm3635_vm4 = vcmp.ge.f32.partialorder %v7952_v2, 0.0  ;;  %v7954_v10 = vld [vmem:[#allocation4_spill] sm:$0xff]  ;;  %v7955_v52 = vld [vmem:[#allocation5_spill] sm:$0xff] }
 0x37f   :  { %7941 = vst [vmem:[#allocation52_spill] sm:$0xff] %v7287_v42  ;;  %v3695_v42 = vmul.f32 0.2, %v7945_v41  ;;  %7951 = vst [vmem:[#allocation13_spill] sm:$0xff] %v7319_v21  ;;  %v3699_v55 = vmul.f32 0.2, %v7952_v2  ;;  %v7332_v31 = vsel %vm3593_vm2, %v6844_v39, %v7089_v29  ;;  %v7341_v2 = vsel %vm3594_vm3, %v6848_v46, %v7092_v54 }
 0x380   :  { %v3700_v41 = vmul.f32 0.2, %v7953_v13  ;;  %v3701_v27 = vmul.f32 0.2, %v7954_v10  ;;  %vm3637_vm1 = vcmp.ge.f32.partialorder %v7954_v10, 0.0  ;;  %vm3638_vm5 = vcmp.ge.f32.partialorder %v7955_v52, 0.0 }
 0x381   :  { %v3702_v21 = vmul.f32 0.2, %v7955_v52  ;;  %v7956_v13 = vld [vmem:[#allocation25_spill] sm:$0xff]  ;;  %vm7958_vm2 = vcmp.ge.f32.partialorder %v6856_v0, 0.0  ;;  %v7359_v29 = vsel %vm3597_vm6, %v6860_v63, %v7107_v16  ;;  %v7959_v46 = vld [vmem:[#allocation27_spill] sm:$0xff]  ;;  %vm7960_vm3 = vcmp.ge.f32.partialorder %v6864_v6, 0.0 }
 0x382   :  { %v7347_v62 = vsel %vm7957_vm7, %v6852_v53, %v7956_v13  ;;  %v7353_v39 = vsel %vm7958_vm2, %v6856_v0, %v7104_v4  ;;  %v7365_v54 = vsel %vm7960_vm3, %v6864_v6, %v7959_v46  ;;  %vm7961_vm7 = vcmp.ge.f32.partialorder %v6868_v11, 0.0  ;;  %v7963_v63 = vld [vmem:[#allocation29_spill] sm:$0xff] }
 0x383   :  { %v7371_v53 = vsel %vm7961_vm7, %v6868_v11, %v7119_v1  ;;  %vm7962_vm2 = vcmp.ge.f32.partialorder %v6872_v17, 0.0  ;;  %v7383_v4 = vsel %vm3601_vm8, %v6876_v24, %v7963_v63  ;;  %vm7964_vm6 = vcmp.ge.f32.partialorder %v6880_v37, 0.0  ;;  %v7997_v13 = vld [vmem:[#allocation21_spill] sm:$0xff]  ;;  %v7999_v63 = vld [vmem:[#allocation22_spill] sm:$0xff] }
 0x384   :  { %v7377_v0 = vsel %vm7962_vm2, %v6872_v17, %v7122_v28  ;;  %v7389_v6 = vsel %vm7964_vm6, %v6880_v37, %v7134_v14  ;;  %vm7965_vm3 = vcmp.ge.f32.partialorder %v6884_v47, 0.0  ;;  %vm7966_vm7 = vcmp.ge.f32.partialorder %v6888_v61, 0.0 }
 0x385   :  { %v7395_v11 = vsel %vm7965_vm3, %v6884_v47, %v7137_v60  ;;  %v7401_v17 = vsel %vm7966_vm7, %v6888_v61, %v7140_v40  ;;  %v7407_v24 = vsel %vm3605_vm9, %v6892_v8, %v7151_v26  ;;  %vm7967_vm8 = vcmp.ge.f32.partialorder %v6896_v23, 0.0  ;;  %v7968_v47 = vld [vmem:[#allocation32_spill] sm:$0xff]  ;;  %v7985_v60 = vld [vmem:[#allocation18_spill] sm:$0xff] }
 0x386   :  { %v7413_v37 = vsel %vm7967_vm8, %v6896_v23, %v7154_v43  ;;  %vm7969_vm2 = vcmp.ge.f32.partialorder %v6900_v32, 0.0  ;;  %vm7970_vm6 = vcmp.ge.f32.partialorder %v6904_v48, 0.0  ;;  %v7431_v8 = vsel %vm3609_vm10, %v6908_v57, %v7172_v44  ;;  %v7971_v23 = vld [vmem:[#allocation34_spill] sm:$0xff]  ;;  %v7975_v57 = vld [vmem:[#allocation36_spill] sm:$0xff] }
 0x387   :  { %v7419_v16 = vsel %vm7969_vm2, %v6900_v32, %v7968_v47  ;;  %v7425_v61 = vsel %vm7970_vm6, %v6904_v48, %v7169_v33  ;;  %vm7972_vm9 = vcmp.ge.f32.partialorder %v6912_v12, 0.0  ;;  %vm7973_vm3 = vcmp.ge.f32.partialorder %v6916_v22, 0.0  ;;  %v7991_v33 = vld [vmem:[#allocation19_spill] sm:$0xff] }
 0x388   :  { %v7437_v40 = vsel %vm7972_vm9, %v6912_v12, %v7971_v23  ;;  %v7443_v32 = vsel %vm7973_vm3, %v6916_v22, %v7187_v59  ;;  %vm7974_vm7 = vcmp.ge.f32.partialorder %v6920_v38, 0.0  ;;  %v7455_v44 = vsel %vm3613_vm11, %v6924_v51, %v7975_v57  ;;  %v7993_v59 = vld [vmem:[#allocation48_spill] sm:$0xff]  ;;  %v8001_v23 = vld [vmem:[#allocation51_spill] sm:$0xff] }
 0x389   :  { %v7449_v48 = vsel %vm7974_vm7, %v6920_v38, %v7190_v45  ;;  %vm7976_vm10 = vcmp.ge.f32.partialorder %v6928_v5, 0.0  ;;  %vm7977_vm8 = vcmp.ge.f32.partialorder %v6932_v18, 0.0  ;;  %v7978_v38 = vld [vmem:[#allocation38_spill] sm:$0xff]  ;;  %vm7979_vm2 = vcmp.ge.f32.partialorder %v6936_v35, 0.0  ;;  %v8002_v57 = vld [vmem:[#allocation23_spill] sm:$0xff] }
 0x38a   :  { %v7461_v12 = vsel %vm7976_vm10, %v6928_v5, %v7205_v34  ;;  %v7467_v22 = vsel %vm7977_vm8, %v6932_v18, %v7208_v19  ;;  %v7473_v1 = vsel %vm7979_vm2, %v6936_v35, %v7978_v38  ;;  %v7479_v51 = vsel %vm3617_vm12, %v6940_v50, %v7224_v25  ;;  %v7980_v5 = vld [vmem:[#allocation40_spill] sm:$0xff]  ;;  %v7982_v18 = vld [vmem:[#allocation41_spill] sm:$0xff]  ;;  %v7984_v35 = vld [vmem:[#allocation43_spill] sm:$0xff] }
 0x38b   :  { %vm7981_vm11 = vcmp.ge.f32.partialorder %v6944_v7, 0.0  ;;  %vm7983_vm6 = vcmp.ge.f32.partialorder %v6948_v20, 0.0  ;;  %vm7986_vm9 = vcmp.ge.f32.partialorder %v7985_v60, 0.0  ;;  %v7987_v50 = vld [vmem:[#allocation44_spill] sm:$0xff]  ;;  %vm7989_vm12 = vcmp.ge.f32.partialorder %v6960_v30, 0.0 }
 0x38c   :  { %v7485_v28 = vsel %vm7981_vm11, %v6944_v7, %v7980_v5  ;;  %v7491_v14 = vsel %vm7983_vm6, %v6948_v20, %v7982_v18  ;;  %v7497_v26 = vsel %vm7986_vm9, %v7985_v60, %v7984_v35  ;;  %v7503_v43 = vsel %vm3621_vm13, %v6956_v56, %v7987_v50  ;;  %v7988_v7 = vld [vmem:[#allocation45_spill] sm:$0xff]  ;;  %v7990_v20 = vld [vmem:[#allocation47_spill] sm:$0xff]  ;;  %v7994_v34 = vld [vmem:[#allocation20_spill] sm:$0xff] }
 0x38d   :  { %v7509_v45 = vsel %vm7989_vm12, %v6960_v30, %v7988_v7  ;;  %vm7992_vm3 = vcmp.ge.f32.partialorder %v7991_v33, 0.0  ;;  %vm7995_vm7 = vcmp.ge.f32.partialorder %v7994_v34, 0.0  ;;  %v7996_v56 = vld [vmem:[#allocation49_spill] sm:$0xff]  ;;  %v7998_v30 = vld [vmem:[#allocation50_spill] sm:$0xff]  ;;  %vm8000_vm13 = vcmp.ge.f32.partialorder %v7999_v63, 0.0  ;;  %v8004_v5 = vld [vmem:[#allocation52_spill] sm:$0xff] }
 0x38e   :  { %v7515_v19 = vsel %vm7992_vm3, %v7991_v33, %v7990_v20  ;;  %v7521_v25 = vsel %vm7995_vm7, %v7994_v34, %v7993_v59  ;;  %v7527_v46 = vsel %vm3625_vm14, %v7997_v13, %v7996_v56  ;;  %v7533_v47 = vsel %vm8000_vm13, %v7999_v63, %v7998_v30  ;;  %v8005_v18 = vld [vmem:[#allocation9_spill] sm:$0xff]  ;;  %v8007_v60 = vld [vmem:[#allocation10_spill] sm:$0xff]  ;;  %v8008_v7 = vld [vmem:[#allocation24_spill] sm:$0xff] }
 0x38f   :  { %vm8003_vm10 = vcmp.ge.f32.partialorder %v8002_v57, 0.0  ;;  %vm8006_vm8 = vcmp.ge.f32.partialorder %v8005_v18, 0.0  ;;  %v7550_v50 = vsel %vm3629_vm15, %v8007_v60, %v3693_v58  ;;  %vm8009_vm14 = vcmp.ge.f32.partialorder %v8008_v7, 0.0  ;;  %v8010_v33 = vld [vmem:[#allocation11_spill] sm:$0xff]  ;;  %v8012_v34 = vld [vmem:[#allocation12_spill] sm:$0xff]  ;;  %v8014_v13 = vld [vmem:[#allocation14_spill] sm:$0xff] }
 0x390   :  { %v7539_v38 = vsel %vm8003_vm10, %v8002_v57, %v8001_v23  ;;  %v7545_v35 = vsel %vm8006_vm8, %v8005_v18, %v8004_v5  ;;  %v7555_v20 = vsel %vm8009_vm14, %v8008_v7, %v3694_v49  ;;  %vm8011_vm2 = vcmp.ge.f32.partialorder %v8010_v33, 0.0  ;;  %v8016_v30 = vld [vmem:[#allocation2_spill] sm:$0xff]  ;;  %v8017_v63 = vld [vmem:[#allocation3_spill] sm:$0xff]  ;;  %v8024_v5 = vld [vmem:[#allocation17_spill] sm:$0xff] }
 0x391   :  { %v7560_v59 = vsel %vm8011_vm2, %v8010_v33, %v3695_v42  ;;  %vm8013_vm11 = vcmp.ge.f32.partialorder %v8012_v34, 0.0  ;;  %v7570_v58 = vsel %vm3633_vm0, %v7948_v36, %v3697_v15  ;;  %vm8015_vm15 = vcmp.ge.f32.partialorder %v8014_v13, 0.0  ;;  %v8021_v36 = vld [vmem:[#allocation6_spill] sm:$0xff]  ;;  %v8022_v23 = vld [vmem:[#allocation7_spill] sm:$0xff]  ;;  %v8026_v7 = vld [vmem:[#allocation28_spill] sm:$0xff] }
 0x392   :  { %v7565_v56 = vsel %vm8013_vm11, %v8012_v34, %v3696_v3  ;;  %v7575_v49 = vsel %vm8015_vm15, %v8014_v13, %v3698_v9  ;;  %v7580_v42 = vsel %vm3635_vm4, %v8016_v30, %v3699_v55  ;;  %vm8018_vm6 = vcmp.ge.f32.partialorder %v8017_v63, 0.0  ;;  %v8023_v55 = vld [vmem:[#allocation15_spill] sm:$0xff]  ;;  %v8025_v60 = vld [vmem:[#allocation26_spill] sm:$0xff]  ;;  %v8029_v30 = vld [vmem:[#allocation33_spill] sm:$0xff] }
 0x393   :  { %v7585_v3 = vsel %vm8018_vm6, %v8017_v63, %v3700_v41  ;;  %v7590_v15 = vsel %vm3637_vm1, %v7954_v10, %v3701_v27  ;;  %v7595_v9 = vsel %vm3638_vm5, %v7955_v52, %v3702_v21  ;;  %v4542_v57 = vpack.c.bf16 %v8022_v23, %v8021_v36  ;;  %v8027_v33 = vld [vmem:[#allocation30_spill] sm:$0xff]  ;;  %v8028_v34 = vld [vmem:[#allocation31_spill] sm:$0xff]  ;;  %v8031_v63 = vld [vmem:[#allocation37_spill] sm:$0xff] }
 0x394   :  { %8019 = vst [vmem:[#allocation16_spill] sm:$0xff] %v7585_v3  ;;  %8020 = vst [vmem:[#allocation4_spill] sm:$0xff] %v7590_v15  ;;  %v4547_v18 = vpack.c.bf16 %v8024_v5, %v8023_v55  ;;  %v4552_v41 = vpack.c.bf16 %v8026_v7, %v8025_v60  ;;  %v4557_v13 = vpack.c.bf16 %v8028_v34, %v8027_v33  ;;  %v8030_v10 = vld [vmem:[#allocation35_spill] sm:$0xff]  ;;  %v8033_v21 = vld [vmem:[#allocation42_spill] sm:$0xff] }
 0x395   :  { %v4562_v27 = vpack.c.bf16 %v8030_v10, %v8029_v30  ;;  %v8032_v15 = vld [vmem:[#allocation39_spill] sm:$0xff]  ;;  %4543 = vst [vmem:[%s7761_s4] sm:$0xff] %v4542_v57   ;;  %v8034_v52 = vld [vmem:[#allocation46_spill] sm:$0xff]  ;;  %v8035_v23 = vld [vmem:[#allocation8_spill] sm:$0xff]  ;;  %v4592_v57 = vpack.c.bf16 %v7353_v39, %v7347_v62  ;;  %v4612_v62 = vpack.c.bf16 %v7401_v17, %v7395_v11  ;;  %v4617_v39 = vpack.c.bf16 %v7413_v37, %v7407_v24 }
 0x396   :  { %v4567_v3 = vpack.c.bf16 %v8032_v15, %v8031_v63  ;;  %4699 = vst [vmem:[%s7761_s4 + $0x8] sm:$0xff] %v4547_v18   ;;  %v4572_v36 = vpack.c.bf16 %v8034_v52, %v8033_v21  ;;  %v8036_v55 = vld [vmem:[#allocation53_spill] sm:$0xff]  ;;  %v8037_v60 = vld [vmem:[#allocation54_spill] sm:$0xff]  ;;  %v4587_v15 = vpack.c.bf16 %v7341_v2, %v7332_v31  ;;  %4700 = vst [vmem:[%s7761_s4 + $0x10] sm:$0xff] %v4552_v41  }
 0x397   :  { %v4577_v5 = vpack.c.bf16 %v8036_v55, %v8035_v23  ;;  %v8038_v7 = vld [vmem:[#allocation13_spill] sm:$0xff]  ;;  %4701 = vst [vmem:[%s7761_s4 + $0x18] sm:$0xff] %v4557_v13   ;;  %4702 = vst [vmem:[%s7761_s4 + $0x20] sm:$0xff] %v4562_v27   ;;  %v4597_v2 = vpack.c.bf16 %v7365_v54, %v7359_v29  ;;  %v4602_v31 = vpack.c.bf16 %v7377_v0, %v7371_v53 }
 0x398   :  { %v4582_v33 = vpack.c.bf16 %v8038_v7, %v8037_v60  ;;  %4703 = vst [vmem:[%s7761_s4 + $0x28] sm:$0xff] %v4567_v3   ;;  %v4607_v18 = vpack.c.bf16 %v7389_v6, %v7383_v4  ;;  %4704 = vst [vmem:[%s7761_s4 + $0x30] sm:$0xff] %v4572_v36   ;;  %v4622_v29 = vpack.c.bf16 %v7425_v61, %v7419_v16 }
 0x399   :  { %4705 = vst [vmem:[%s7761_s4 + $0x38] sm:$0xff] %v4577_v5   ;;  %4707 = vst [vmem:[%s7761_s4 + $0x48] sm:$0xff] %v4587_v15   ;;  %v4627_v54 = vpack.c.bf16 %v7437_v40, %v7431_v8  ;;  %v4632_v53 = vpack.c.bf16 %v7449_v48, %v7443_v32  ;;  %v4637_v0 = vpack.c.bf16 %v7461_v12, %v7455_v44 }
 0x39a   :  { %4706 = vst [vmem:[%s7761_s4 + $0x40] sm:$0xff] %v4582_v33   ;;  %4708 = vst [vmem:[%s7761_s4 + $0x50] sm:$0xff] %v4592_v57   ;;  %v4642_v4 = vpack.c.bf16 %v7473_v1, %v7467_v22  ;;  %v4647_v6 = vpack.c.bf16 %v7485_v28, %v7479_v51  ;;  %v4652_v11 = vpack.c.bf16 %v7497_v26, %v7491_v14 }
 0x39b   :  { %4709 = vst [vmem:[%s7761_s4 + $0x58] sm:$0xff] %v4597_v2   ;;  %4710 = vst [vmem:[%s7761_s4 + $0x60] sm:$0xff] %v4602_v31   ;;  %v4657_v17 = vpack.c.bf16 %v7509_v45, %v7503_v43  ;;  %v4662_v24 = vpack.c.bf16 %v7521_v25, %v7515_v19  ;;  %v4667_v37 = vpack.c.bf16 %v7533_v47, %v7527_v46  ;;  %v8039_v32 = vld [vmem:[#allocation16_spill] sm:$0xff] }
 0x39c   :  { %4711 = vst [vmem:[%s7761_s4 + $0x68] sm:$0xff] %v4607_v18   ;;  %4712 = vst [vmem:[%s7761_s4 + $0x70] sm:$0xff] %v4612_v62   ;;  %v4672_v16 = vpack.c.bf16 %v7545_v35, %v7539_v38  ;;  %v4677_v61 = vpack.c.bf16 %v7555_v20, %v7550_v50  ;;  %v4682_v8 = vpack.c.bf16 %v7565_v56, %v7560_v59  ;;  %v8040_v44 = vld [vmem:[#allocation4_spill] sm:$0xff] }
 0x39d   :  { %4713 = vst [vmem:[%s7761_s4 + $0x78] sm:$0xff] %v4617_v39   ;;  %4714 = vst [vmem:[%s7761_s4 + $0x80] sm:$0xff] %v4622_v29   ;;  %v4687_v40 = vpack.c.bf16 %v7575_v49, %v7570_v58  ;;  %v4692_v48 = vpack.c.bf16 %v8039_v32, %v7580_v42  ;;  %v4697_v12 = vpack.c.bf16 %v7595_v9, %v8040_v44 }
 0x39e   :  { %4715 = vst [vmem:[%s7761_s4 + $0x88] sm:$0xff] %v4627_v54   ;;  %4716 = vst [vmem:[%s7761_s4 + $0x90] sm:$0xff] %v4632_v53  }
 0x39f   :  { %4717 = vst [vmem:[%s7761_s4 + $0x98] sm:$0xff] %v4637_v0   ;;  %4718 = vst [vmem:[%s7761_s4 + $0xa0] sm:$0xff] %v4642_v4  }
 0x3a0   :  { %4719 = vst [vmem:[%s7761_s4 + $0xa8] sm:$0xff] %v4647_v6   ;;  %4720 = vst [vmem:[%s7761_s4 + $0xb0] sm:$0xff] %v4652_v11  }
 0x3a1   :  { %4721 = vst [vmem:[%s7761_s4 + $0xb8] sm:$0xff] %v4657_v17   ;;  %4722 = vst [vmem:[%s7761_s4 + $0xc0] sm:$0xff] %v4662_v24  }
 0x3a2   :  { %4723 = vst [vmem:[%s7761_s4 + $0xc8] sm:$0xff] %v4667_v37   ;;  %4724 = vst [vmem:[%s7761_s4 + $0xd0] sm:$0xff] %v4672_v16  }
 0x3a3   :  { %4725 = vst [vmem:[%s7761_s4 + $0xd8] sm:$0xff] %v4677_v61   ;;  %4726 = vst [vmem:[%s7761_s4 + $0xe0] sm:$0xff] %v4682_v8  }
 0x3a4   :  { %4727 = vst [vmem:[%s7761_s4 + $0xe8] sm:$0xff] %v4687_v40   ;;  %4728 = vst [vmem:[%s7761_s4 + $0xf0] sm:$0xff] %v4692_v48  }
 0x3a5   :  { %4729 = vst [vmem:[%s7761_s4 + $0xf8] sm:$0xff] %v4697_v12  }

// kernel: d_forward.6
= control target key start
LH: loop header
LB: loop body
LE: loop exit
PB: predicated region body
PF: predicated region fallthrough
CT: control target
= control target key end

     0   :  { %s6376_s1 = inlined_call_operand.vmem [shape: bf16[2048,256], index: 1, kind: input, shape index: {}]   ;;  %s6377_s0 = inlined_call_operand.vmem [shape: bf16[128,2048], index: 0, kind: input, shape index: {}]   ;;  %s6378_s2 = inlined_call_operand.vmem [shape: f32[1,256], index: 2, kind: input, shape index: {}]   ;;  %s6379_s3 = inlined_call_operand.vmem [shape: f32[1,256], index: 3, kind: input, shape index: {}]   ;;  %s6380_s4 = inlined_call_operand.vmem [shape: bf16[128,256], index: 4, kind: output, shape index: {}]  }
   0x1   :  { %v4334_v0 = vld [vmem:[%s6376_s1 + $0x4] ss:$8 sps:$4 sm:$0xff]   ;;  %v4338_v2 = vld [vmem:[%s6376_s1] ss:$8 sps:$4 sm:$0xff]   ;;  %v4340_v4 = vld [vmem:[%s6376_s1 + $0x14] ss:$8 sps:$4 sm:$0xff]  }
   0x2   :  { %v4336_v1 = vld [vmem:[%s6376_s1 + $0x404] ss:$8 sps:$4 sm:$0xff]   ;;  %2321 = vmatprep.subr.bf16.mxu1 %v4334_v0  ;;  %v4339_v3 = vld [vmem:[%s6376_s1 + $0x400] ss:$8 sps:$4 sm:$0xff]   ;;  %v4342_v5 = vld [vmem:[%s6376_s1 + $0x414] ss:$8 sps:$4 sm:$0xff]  }
   0x3   :  { %2773 = vmatprep.subr.bf16.mxu0 %v4336_v1  ;;  %2322 = vmatpush1.bf16.msra.mxu1 %v4338_v2  ;;  %v4344_v6 = vld [vmem:[%s6376_s1 + $0x10] ss:$8 sps:$4 sm:$0xff]   ;;  %v4346_v8 = vld [vmem:[%s6376_s1 + $0x24] ss:$8 sps:$4 sm:$0xff]   ;;  %v4350_v10 = vld [vmem:[%s6376_s1 + $0x20] ss:$8 sps:$4 sm:$0xff]  }
   0x4   :  { %2774 = vmatpush1.bf16.msra.mxu0 %v4339_v3  ;;  %2323 = vmatprep.subr.bf16.mxu1 %v4340_v4  ;;  %v4345_v7 = vld [vmem:[%s6376_s1 + $0x410] ss:$8 sps:$4 sm:$0xff]   ;;  %v4348_v9 = vld [vmem:[%s6376_s1 + $0x424] ss:$8 sps:$4 sm:$0xff]   ;;  %v4351_v11 = vld [vmem:[%s6376_s1 + $0x420] ss:$8 sps:$4 sm:$0xff]  }
   0x5   :  { %2775 = vmatprep.subr.bf16.mxu0 %v4342_v5  ;;  %v4352_v12 = vld [vmem:[%s6376_s1 + $0x34] ss:$8 sps:$4 sm:$0xff]   ;;  %v4356_v14 = vld [vmem:[%s6376_s1 + $0x30] ss:$8 sps:$4 sm:$0xff]   ;;  %v4358_v16 = vld [vmem:[%s6376_s1 + $0x44] ss:$8 sps:$4 sm:$0xff]  }
   0x6   :  { %v4354_v13 = vld [vmem:[%s6376_s1 + $0x434] ss:$8 sps:$4 sm:$0xff]   ;;  %v4357_v15 = vld [vmem:[%s6376_s1 + $0x430] ss:$8 sps:$4 sm:$0xff]   ;;  %v4360_v17 = vld [vmem:[%s6376_s1 + $0x444] ss:$8 sps:$4 sm:$0xff]  }
   0x7   :  { %2324 = vmatpush1.bf16.msra.mxu1 %v4344_v6  ;;  %v4362_v18 = vld [vmem:[%s6376_s1 + $0x40] ss:$8 sps:$4 sm:$0xff]   ;;  %v4364_v20 = vld [vmem:[%s6376_s1 + $0x54] ss:$8 sps:$4 sm:$0xff]   ;;  %v4368_v22 = vld [vmem:[%s6376_s1 + $0x50] ss:$8 sps:$4 sm:$0xff]  }
   0x8   :  { %2776 = vmatpush1.bf16.msra.mxu0 %v4345_v7  ;;  %2325 = vmatprep.subr.bf16.mxu1 %v4346_v8  ;;  %v4363_v19 = vld [vmem:[%s6376_s1 + $0x440] ss:$8 sps:$4 sm:$0xff]   ;;  %v4366_v21 = vld [vmem:[%s6376_s1 + $0x454] ss:$8 sps:$4 sm:$0xff]   ;;  %v4369_v23 = vld [vmem:[%s6376_s1 + $0x450] ss:$8 sps:$4 sm:$0xff]  }
   0x9   :  { %2777 = vmatprep.subr.bf16.mxu0 %v4348_v9  ;;  %v4370_v24 = vld [vmem:[%s6376_s1 + $0x64] ss:$8 sps:$4 sm:$0xff]   ;;  %v4374_v26 = vld [vmem:[%s6376_s1 + $0x60] ss:$8 sps:$4 sm:$0xff]   ;;  %v4376_v28 = vld [vmem:[%s6376_s1 + $0x74] ss:$8 sps:$4 sm:$0xff]  }
   0xa   :  { %v4372_v25 = vld [vmem:[%s6376_s1 + $0x464] ss:$8 sps:$4 sm:$0xff]   ;;  %v4375_v27 = vld [vmem:[%s6376_s1 + $0x460] ss:$8 sps:$4 sm:$0xff]   ;;  %v4378_v29 = vld [vmem:[%s6376_s1 + $0x474] ss:$8 sps:$4 sm:$0xff]  }
   0xb   :  { %2326 = vmatpush1.bf16.msra.mxu1 %v4350_v10  ;;  %v4380_v30 = vld [vmem:[%s6376_s1 + $0x70] ss:$8 sps:$4 sm:$0xff]   ;;  %v4382_v32 = vld [vmem:[%s6376_s1 + $0x84] ss:$8 sps:$4 sm:$0xff]   ;;  %v4386_v34 = vld [vmem:[%s6376_s1 + $0x80] ss:$8 sps:$4 sm:$0xff]  }
   0xc   :  { %2778 = vmatpush1.bf16.msra.mxu0 %v4351_v11  ;;  %2327 = vmatprep.subr.bf16.mxu1 %v4352_v12  ;;  %v4381_v31 = vld [vmem:[%s6376_s1 + $0x470] ss:$8 sps:$4 sm:$0xff]   ;;  %v4384_v33 = vld [vmem:[%s6376_s1 + $0x484] ss:$8 sps:$4 sm:$0xff]   ;;  %v4387_v35 = vld [vmem:[%s6376_s1 + $0x480] ss:$8 sps:$4 sm:$0xff]  }
   0xd   :  { %2779 = vmatprep.subr.bf16.mxu0 %v4354_v13  ;;  %v4388_v36 = vld [vmem:[%s6376_s1 + $0x94] ss:$8 sps:$4 sm:$0xff]   ;;  %v4392_v38 = vld [vmem:[%s6376_s1 + $0x90] ss:$8 sps:$4 sm:$0xff]   ;;  %v4394_v40 = vld [vmem:[%s6376_s1 + $0xa4] ss:$8 sps:$4 sm:$0xff]  }
   0xe   :  { %v4390_v37 = vld [vmem:[%s6376_s1 + $0x494] ss:$8 sps:$4 sm:$0xff]   ;;  %v4393_v39 = vld [vmem:[%s6376_s1 + $0x490] ss:$8 sps:$4 sm:$0xff]   ;;  %v4396_v41 = vld [vmem:[%s6376_s1 + $0x4a4] ss:$8 sps:$4 sm:$0xff]  }
   0xf   :  { %2328 = vmatpush1.bf16.msra.mxu1 %v4356_v14  ;;  %v4398_v42 = vld [vmem:[%s6376_s1 + $0xa0] ss:$8 sps:$4 sm:$0xff]   ;;  %v4400_v44 = vld [vmem:[%s6376_s1 + $0xb4] ss:$8 sps:$4 sm:$0xff]   ;;  %v4404_v46 = vld [vmem:[%s6376_s1 + $0xb0] ss:$8 sps:$4 sm:$0xff]  }
  0x10   :  { %2780 = vmatpush1.bf16.msra.mxu0 %v4357_v15  ;;  %2329 = vmatprep.subr.bf16.mxu1 %v4358_v16  ;;  %v4399_v43 = vld [vmem:[%s6376_s1 + $0x4a0] ss:$8 sps:$4 sm:$0xff]   ;;  %v4402_v45 = vld [vmem:[%s6376_s1 + $0x4b4] ss:$8 sps:$4 sm:$0xff]   ;;  %v4405_v47 = vld [vmem:[%s6376_s1 + $0x4b0] ss:$8 sps:$4 sm:$0xff]  }
  0x11   :  { %2781 = vmatprep.subr.bf16.mxu0 %v4360_v17  ;;  %v17_v48 = vld [vmem:[%s6377_s0] sm:$0xff]  ;;  %v4412_v58 = vld [vmem:[%s6376_s1 + $0xd4] ss:$8 sps:$4 sm:$0xff]   ;;  %v4416_v60 = vld [vmem:[%s6376_s1 + $0xd0] ss:$8 sps:$4 sm:$0xff]  }
  0x12   :  { %v25_v49 = vld [vmem:[%s6377_s0 + $0x40] sm:$0xff]  ;;  %v4414_v59 = vld [vmem:[%s6376_s1 + $0x4d4] ss:$8 sps:$4 sm:$0xff]   ;;  %v4417_v61 = vld [vmem:[%s6376_s1 + $0x4d0] ss:$8 sps:$4 sm:$0xff]  }
  0x13   :  { %2330 = vmatpush1.bf16.msra.mxu1 %v4362_v18  ;;  %v21_v50 = vld [vmem:[%s6377_s0 + $0x20] sm:$0xff]  ;;  %v3694_v53 = vcombine.high %v17_v48, %v25_v49  ;;  %v4424_v2 = vld [vmem:[%s6376_s1 + $0xf4] ss:$8 sps:$4 sm:$0xff]   ;;  %v4428_v4 = vld [vmem:[%s6376_s1 + $0xf0] ss:$8 sps:$4 sm:$0xff]   ;;  %v3693_v11 = vcombine.low %v17_v48, %v25_v49 }
  0x14   :  { %2782 = vmatpush1.bf16.msra.mxu0 %v4363_v19  ;;  %2331 = vmatprep.subr.bf16.mxu1 %v4364_v20  ;;  %v29_v51 = vld [vmem:[%s6377_s0 + $0x60] sm:$0xff]  ;;  %v4426_v3 = vld [vmem:[%s6376_s1 + $0x4f4] ss:$8 sps:$4 sm:$0xff]   ;;  %v4429_v5 = vld [vmem:[%s6376_s1 + $0x4f0] ss:$8 sps:$4 sm:$0xff]  }
  0x15   :  { %2783 = vmatprep.subr.bf16.mxu0 %v4366_v21  ;;  %v4406_v52 = vld [vmem:[%s6376_s1 + $0xc4] ss:$8 sps:$4 sm:$0xff]   ;;  %v3702_v55 = vcombine.high %v21_v50, %v29_v51  ;;  %2353 = vmatprep.mubr.bf16.mxu1 %v3694_v53  ;;  %v4410_v56 = vld [vmem:[%s6376_s1 + $0xc0] ss:$8 sps:$4 sm:$0xff]   ;;  %v3701_v12 = vcombine.low %v21_v50, %v29_v51  ;;  %v4438_v16 = vld [vmem:[%s6376_s1 + $0x114] ss:$8 sps:$4 sm:$0xff]  }
  0x16   :  { %v4408_v54 = vld [vmem:[%s6376_s1 + $0x4c4] ss:$8 sps:$4 sm:$0xff]   ;;  %v4411_v57 = vld [vmem:[%s6376_s1 + $0x4c0] ss:$8 sps:$4 sm:$0xff]   ;;  %v4441_v17 = vld [vmem:[%s6376_s1 + $0x514] ss:$8 sps:$4 sm:$0xff]  }
  0x17   :  { %2332 = vmatpush1.bf16.msra.mxu1 %v4368_v22  ;;  %2805 = vmatprep.mubr.bf16.mxu0 %v3702_v55  ;;  %v4418_v62 = vld [vmem:[%s6376_s1 + $0xe4] ss:$8 sps:$4 sm:$0xff]   ;;  %v4422_v0 = vld [vmem:[%s6376_s1 + $0xe0] ss:$8 sps:$4 sm:$0xff]   ;;  %v4436_v20 = vld [vmem:[%s6376_s1 + $0x110] ss:$8 sps:$4 sm:$0xff]  }
  0x18   :  { %2784 = vmatpush1.bf16.msra.mxu0 %v4369_v23  ;;  %2333 = vmatprep.subr.bf16.mxu1 %v4370_v24  ;;  %v4420_v63 = vld [vmem:[%s6376_s1 + $0x4e4] ss:$8 sps:$4 sm:$0xff]   ;;  %v4423_v1 = vld [vmem:[%s6376_s1 + $0x4e0] ss:$8 sps:$4 sm:$0xff]   ;;  %v4439_v21 = vld [vmem:[%s6376_s1 + $0x510] ss:$8 sps:$4 sm:$0xff]  }
  0x19   :  { %2785 = vmatprep.subr.bf16.mxu0 %v4372_v25  ;;  %v4432_v6 = vld [vmem:[%s6376_s1 + $0x104] ss:$8 sps:$4 sm:$0xff]   ;;  %v4430_v8 = vld [vmem:[%s6376_s1 + $0x100] ss:$8 sps:$4 sm:$0xff]   ;;  %v4462_v48 = vld [vmem:[%s6376_s1 + $0x154] ss:$8 sps:$4 sm:$0xff]  }
  0x1a   :  { %v4435_v7 = vld [vmem:[%s6376_s1 + $0x504] ss:$8 sps:$4 sm:$0xff]   ;;  %v4433_v9 = vld [vmem:[%s6376_s1 + $0x500] ss:$8 sps:$4 sm:$0xff]   ;;  %v4465_v49 = vld [vmem:[%s6376_s1 + $0x554] ss:$8 sps:$4 sm:$0xff]  }
  0x1b   :  { %2334 = vmatpush1.bf16.msra.mxu1 %v4374_v26  ;;  %v33_v10 = vld [vmem:[%s6377_s0 + $0x80] sm:$0xff]  ;;  %v4463_v53 = vld [vmem:[%s6376_s1 + $0x550] ss:$8 sps:$4 sm:$0xff]  }
  0x1c   :  { %2786 = vmatpush1.bf16.msra.mxu0 %v4375_v27  ;;  %2335 = vmatprep.subr.bf16.mxu1 %v4376_v28  ;;  %v41_v13 = vld [vmem:[%s6377_s0 + $0xc0] sm:$0xff] }
  0x1d   :  { %2787 = vmatprep.subr.bf16.mxu0 %v4378_v29  ;;  %v37_v14 = vld [vmem:[%s6377_s0 + $0xa0] sm:$0xff]  ;;  %v3710_v18 = vcombine.high %v33_v10, %v41_v13  ;;  %v3709_v28 = vcombine.low %v33_v10, %v41_v13 }
  0x1e   :  { %v45_v15 = vld [vmem:[%s6377_s0 + $0xe0] sm:$0xff] }
  0x1f   :  { %2336 = vmatpush1.bf16.msra.mxu1 %v4380_v30  ;;  %v3718_v19 = vcombine.high %v37_v14, %v45_v15  ;;  %v4444_v22 = vld [vmem:[%s6376_s1 + $0x124] ss:$8 sps:$4 sm:$0xff]   ;;  %v4442_v24 = vld [vmem:[%s6376_s1 + $0x120] ss:$8 sps:$4 sm:$0xff]   ;;  %v3717_v29 = vcombine.low %v37_v14, %v45_v15 }
  0x20   :  { %2788 = vmatpush1.bf16.msra.mxu0 %v4381_v31  ;;  %2337 = vmatprep.subr.bf16.mxu1 %v4382_v32  ;;  %v4447_v23 = vld [vmem:[%s6376_s1 + $0x524] ss:$8 sps:$4 sm:$0xff]   ;;  %v4445_v25 = vld [vmem:[%s6376_s1 + $0x520] ss:$8 sps:$4 sm:$0xff]   ;;  %v4450_v32 = vld [vmem:[%s6376_s1 + $0x134] ss:$8 sps:$4 sm:$0xff]  }
  0x21   :  { %2789 = vmatprep.subr.bf16.mxu0 %v4384_v33  ;;  %v49_v26 = vld [vmem:[%s6377_s0 + $0x100] sm:$0xff]  ;;  %v4453_v33 = vld [vmem:[%s6376_s1 + $0x534] ss:$8 sps:$4 sm:$0xff]  }
  0x22   :  { %v57_v27 = vld [vmem:[%s6377_s0 + $0x140] sm:$0xff] }
  0x23   :  { %2338 = vmatpush1.bf16.msra.mxu1 %v4386_v34  ;;  %v53_v30 = vld [vmem:[%s6377_s0 + $0x120] sm:$0xff]  ;;  %v3726_v34 = vcombine.high %v49_v26, %v57_v27 }
  0x24   :  { %2790 = vmatpush1.bf16.msra.mxu0 %v4387_v35  ;;  %2339 = vmatprep.subr.bf16.mxu1 %v4388_v36  ;;  %v61_v31 = vld [vmem:[%s6377_s0 + $0x160] sm:$0xff]  ;;  %v4448_v36 = vld [vmem:[%s6376_s1 + $0x130] ss:$8 sps:$4 sm:$0xff]  }
  0x25   :  { %2791 = vmatprep.subr.bf16.mxu0 %v4390_v37  ;;  %v3734_v35 = vcombine.high %v53_v30, %v61_v31  ;;  %v4451_v37 = vld [vmem:[%s6376_s1 + $0x530] ss:$8 sps:$4 sm:$0xff]   ;;  %v4471_v55 = vld [vmem:[%s6376_s1 + $0x564] ss:$8 sps:$4 sm:$0xff]   ;;  %v4478_v14 = vld [vmem:[%s6376_s1 + $0x180] ss:$8 sps:$4 sm:$0xff]  }
  0x26   :  { %v109_v13 = vld [vmem:[%s6377_s0 + $0x2e0] sm:$0xff] }
  0x27   :  { %2340 = vmatpush1.bf16.msra.mxu1 %v4392_v38  ;;  %v4456_v38 = vld [vmem:[%s6376_s1 + $0x144] ss:$8 sps:$4 sm:$0xff]   ;;  %v4481_v15 = vld [vmem:[%s6376_s1 + $0x580] ss:$8 sps:$4 sm:$0xff]  }
  0x28   :  { %2792 = vmatpush1.bf16.msra.mxu0 %v4393_v39  ;;  %2341 = vmatprep.subr.bf16.mxu1 %v4394_v40  ;;  %v4459_v39 = vld [vmem:[%s6376_s1 + $0x544] ss:$8 sps:$4 sm:$0xff]   ;;  %v4454_v40 = vld [vmem:[%s6376_s1 + $0x140] ss:$8 sps:$4 sm:$0xff]  }
  0x29   :  { %2793 = vmatprep.subr.bf16.mxu0 %v4396_v41  ;;  %v4457_v41 = vld [vmem:[%s6376_s1 + $0x540] ss:$8 sps:$4 sm:$0xff]  }
  0x2b   :  { %2342 = vmatpush1.bf16.msra.mxu1 %v4398_v42  ;;  %v65_v42 = vld [vmem:[%s6377_s0 + $0x180] sm:$0xff] }
  0x2c   :  { %2794 = vmatpush1.bf16.msra.mxu0 %v4399_v43  ;;  %2343 = vmatprep.subr.bf16.mxu1 %v4400_v44  ;;  %v73_v43 = vld [vmem:[%s6377_s0 + $0x1c0] sm:$0xff]  ;;  %v3725_v44 = vcombine.low %v49_v26, %v57_v27 }
  0x2d   :  { %2795 = vmatprep.subr.bf16.mxu0 %v4402_v45  ;;  %v3733_v45 = vcombine.low %v53_v30, %v61_v31  ;;  %v3742_v50 = vcombine.high %v65_v42, %v73_v43  ;;  %v113_v26 = vld [vmem:[%s6377_s0 + $0x300] sm:$0xff] }
  0x2e   :  { %v117_v30 = vld [vmem:[%s6377_s0 + $0x320] sm:$0xff] }
  0x2f   :  { %2344 = vmatpush1.bf16.msra.mxu1 %v4404_v46  ;;  %v69_v46 = vld [vmem:[%s6377_s0 + $0x1a0] sm:$0xff] }
  0x30   :  { %2796 = vmatpush1.bf16.msra.mxu0 %v4405_v47  ;;  %2345 = vmatprep.subr.bf16.mxu1 %v4406_v52  ;;  %v77_v47 = vld [vmem:[%s6377_s0 + $0x1e0] sm:$0xff]  ;;  %v4460_v52 = vld [vmem:[%s6376_s1 + $0x150] ss:$8 sps:$4 sm:$0xff]  }
  0x31   :  { %2797 = vmatprep.subr.bf16.mxu0 %v4408_v54  ;;  %v3750_v51 = vcombine.high %v69_v46, %v77_v47  ;;  %v4468_v54 = vld [vmem:[%s6376_s1 + $0x164] ss:$8 sps:$4 sm:$0xff]  }
  0x32   :  { %v125_v31 = vld [vmem:[%s6377_s0 + $0x360] sm:$0xff] }
  0x33   :  { %2346 = vmatpush1.bf16.msra.mxu1 %v4410_v56  ;;  %v4466_v56 = vld [vmem:[%s6376_s1 + $0x160] ss:$8 sps:$4 sm:$0xff]  }
  0x34   :  { %2798 = vmatpush1.bf16.msra.mxu0 %v4411_v57  ;;  %2347 = vmatprep.subr.bf16.mxu1 %v4412_v58  ;;  %v81_v57 = vld [vmem:[%s6377_s0 + $0x200] sm:$0xff] }
  0x35   :  { %2799 = vmatprep.subr.bf16.mxu0 %v4414_v59  ;;  %v89_v58 = vld [vmem:[%s6377_s0 + $0x240] sm:$0xff]  ;;  %v3741_v59 = vcombine.low %v65_v42, %v73_v43 }
  0x36   :  { %v3757_v10 = vcombine.low %v81_v57, %v89_v58  ;;  %v129_v42 = vld [vmem:[%s6377_s0 + $0x380] sm:$0xff] }
  0x37   :  { %2348 = vmatpush1.bf16.msra.mxu1 %v4416_v60  ;;  %v3749_v60 = vcombine.low %v69_v46, %v77_v47  ;;  %v137_v43 = vld [vmem:[%s6377_s0 + $0x3c0] sm:$0xff] }
  0x38   :  { %2800 = vmatpush1.bf16.msra.mxu0 %v4417_v61  ;;  %2349 = vmatprep.subr.bf16.mxu1 %v4418_v62  ;;  %v85_v61 = vld [vmem:[%s6377_s0 + $0x220] sm:$0xff] }
  0x39   :  { %2801 = vmatprep.subr.bf16.mxu0 %v4420_v63  ;;  %v93_v62 = vld [vmem:[%s6377_s0 + $0x260] sm:$0xff] }
  0x3a   :  { %v4469_v63 = vld [vmem:[%s6376_s1 + $0x560] ss:$8 sps:$4 sm:$0xff]  }
  0x3b   :  { %2350 = vmatpush1.bf16.msra.mxu1 %v4422_v0  ;;  %v4474_v0 = vld [vmem:[%s6376_s1 + $0x174] ss:$8 sps:$4 sm:$0xff]   ;;  %v133_v46 = vld [vmem:[%s6377_s0 + $0x3a0] sm:$0xff] }
  0x3c   :  { %2802 = vmatpush1.bf16.msra.mxu0 %v4423_v1  ;;  %2351 = vmatprep.subr.bf16.mxu1 %v4424_v2  ;;  %v4477_v1 = vld [vmem:[%s6376_s1 + $0x574] ss:$8 sps:$4 sm:$0xff]   ;;  %v3758_v2 = vcombine.high %v81_v57, %v89_v58  ;;  %v141_v47 = vld [vmem:[%s6377_s0 + $0x3e0] sm:$0xff]  ;;  %v18_v58 = vld [vmem:[%s6377_s0 + $0x8] sm:$0xff] }
  0x3d   :  { %2803 = vmatprep.subr.bf16.mxu0 %v4426_v3  ;;  %v3766_v3 = vcombine.high %v85_v61, %v93_v62  ;;  %v4517_v57 = vld [vmem:[%s6376_s1 + $0x5e0] ss:$8 sps:$4 sm:$0xff]  }
  0x3f   :  { %2352 = vmatpush1.bf16.msra.mxu1 %v4428_v4  ;;  %v4472_v4 = vld [vmem:[%s6376_s1 + $0x170] ss:$8 sps:$4 sm:$0xff]  }
  0x40   :  { %2804 = vmatpush1.bf16.msra.mxu0 %v4429_v5  ;;  %2434 = vmatprep.subr.bf16.mxu1 %v4432_v6  ;;  %v4475_v5 = vld [vmem:[%s6376_s1 + $0x570] ss:$8 sps:$4 sm:$0xff]   ;;  %v4480_v6 = vld [vmem:[%s6376_s1 + $0x184] ss:$8 sps:$4 sm:$0xff]  }
  0x41   :  { %2886 = vmatprep.subr.bf16.mxu0 %v4435_v7  ;;  %v4483_v7 = vld [vmem:[%s6376_s1 + $0x584] ss:$8 sps:$4 sm:$0xff]  }
  0x42   :  { %2354 = vmatmul.mubr.bf16.vlgmr.msra.gmra.mrb[0].mxu1 %v3693_v11  ;;  %v3765_v11 = vcombine.low %v85_v61, %v93_v62  ;;  %v3813_v61 = vcombine.low %v133_v46, %v141_v47  ;;  %v22_v62 = vld [vmem:[%s6377_s0 + $0x28] sm:$0xff] }
  0x43   :  { %2806 = vmatmul.mubr.bf16.vlgmr.msra.gmra.mrb[0].mxu0 %v3701_v12  ;;  %2435 = vmatpush1.bf16.msra.mxu1 %v4430_v8  ;;  %v97_v8 = vld [vmem:[%s6377_s0 + $0x280] sm:$0xff] }
  0x44   :  { %2887 = vmatpush1.bf16.msra.mxu0 %v4433_v9  ;;  %2436 = vmatprep.subr.bf16.mxu1 %v4438_v16  ;;  %v105_v9 = vld [vmem:[%s6377_s0 + $0x2c0] sm:$0xff]  ;;  %v4486_v16 = vld [vmem:[%s6376_s1 + $0x194] ss:$8 sps:$4 sm:$0xff]  }
  0x45   :  { %2888 = vmatprep.subr.bf16.mxu0 %v4441_v17  ;;  %2363 = vmatprep.mubr.bf16.mxu1 %v3710_v18  ;;  %v101_v12 = vld [vmem:[%s6377_s0 + $0x2a0] sm:$0xff]  ;;  %v4489_v17 = vld [vmem:[%s6376_s1 + $0x594] ss:$8 sps:$4 sm:$0xff]   ;;  %v3774_v18 = vcombine.high %v97_v8, %v105_v9  ;;  %v3773_v27 = vcombine.low %v97_v8, %v105_v9  ;;  %v34_v9 = vld [vmem:[%s6377_s0 + $0x88] sm:$0xff] }
  0x46   :  { %2815 = vmatprep.mubr.bf16.mxu0 %v3718_v19  ;;  %v3782_v19 = vcombine.high %v101_v12, %v109_v13  ;;  %v4526_v8 = vld [vmem:[%s6376_s1 + $0x200] ss:$8 sps:$4 sm:$0xff]  }
  0x47   :  { %2437 = vmatpush1.bf16.msra.mxu1 %v4436_v20  ;;  %v4484_v20 = vld [vmem:[%s6376_s1 + $0x190] ss:$8 sps:$4 sm:$0xff]  }
  0x48   :  { %2889 = vmatpush1.bf16.msra.mxu0 %v4439_v21  ;;  %2438 = vmatprep.subr.bf16.mxu1 %v4444_v22  ;;  %v4487_v21 = vld [vmem:[%s6376_s1 + $0x590] ss:$8 sps:$4 sm:$0xff]   ;;  %v4492_v22 = vld [vmem:[%s6376_s1 + $0x1a4] ss:$8 sps:$4 sm:$0xff]  }
  0x49   :  { %2890 = vmatprep.subr.bf16.mxu0 %v4447_v23  ;;  %v4495_v23 = vld [vmem:[%s6376_s1 + $0x5a4] ss:$8 sps:$4 sm:$0xff]  }
  0x4a   :  { %2364 = vmatmul.mubr.bf16.gmra.mrb[4].mxu1 %v3709_v28  ;;  %v3781_v28 = vcombine.low %v101_v12, %v109_v13  ;;  %v38_v13 = vld [vmem:[%s6377_s0 + $0xa8] sm:$0xff] }
  0x4b   :  { %2816 = vmatmul.mubr.bf16.gmra.mrb[4].mxu0 %v3717_v29  ;;  %2439 = vmatpush1.bf16.msra.mxu1 %v4442_v24  ;;  %v4490_v24 = vld [vmem:[%s6376_s1 + $0x1a0] ss:$8 sps:$4 sm:$0xff]  }
  0x4c   :  { %2891 = vmatpush1.bf16.msra.mxu0 %v4445_v25  ;;  %2440 = vmatprep.subr.bf16.mxu1 %v4450_v32  ;;  %v4493_v25 = vld [vmem:[%s6376_s1 + $0x5a0] ss:$8 sps:$4 sm:$0xff]   ;;  %v4498_v32 = vld [vmem:[%s6376_s1 + $0x1b4] ss:$8 sps:$4 sm:$0xff]  }
  0x4d   :  { %2892 = vmatprep.subr.bf16.mxu0 %v4453_v33  ;;  %2373 = vmatprep.mubr.bf16.mxu1 %v3726_v34  ;;  %v121_v29 = vld [vmem:[%s6377_s0 + $0x340] sm:$0xff]  ;;  %v4501_v33 = vld [vmem:[%s6376_s1 + $0x5b4] ss:$8 sps:$4 sm:$0xff]  }
  0x4e   :  { %2825 = vmatprep.mubr.bf16.mxu0 %v3734_v35  ;;  %v3790_v34 = vcombine.high %v113_v26, %v121_v29  ;;  %v3798_v35 = vcombine.high %v117_v30, %v125_v31 }
  0x4f   :  { %2441 = vmatpush1.bf16.msra.mxu1 %v4448_v36  ;;  %v4496_v36 = vld [vmem:[%s6376_s1 + $0x1b0] ss:$8 sps:$4 sm:$0xff]  }
  0x50   :  { %2893 = vmatpush1.bf16.msra.mxu0 %v4451_v37  ;;  %2442 = vmatprep.subr.bf16.mxu1 %v4456_v38  ;;  %v4499_v37 = vld [vmem:[%s6376_s1 + $0x5b0] ss:$8 sps:$4 sm:$0xff]   ;;  %v4504_v38 = vld [vmem:[%s6376_s1 + $0x1c4] ss:$8 sps:$4 sm:$0xff]  }
  0x51   :  { %2894 = vmatprep.subr.bf16.mxu0 %v4459_v39  ;;  %v4507_v39 = vld [vmem:[%s6376_s1 + $0x5c4] ss:$8 sps:$4 sm:$0xff]  }
  0x52   :  { %2374 = vmatmul.mubr.bf16.gmra.mrb[8].mxu1 %v3725_v44  ;;  %v3789_v44 = vcombine.low %v113_v26, %v121_v29  ;;  %v62_v29 = vld [vmem:[%s6377_s0 + $0x168] sm:$0xff] }
  0x53   :  { %2826 = vmatmul.mubr.bf16.gmra.mrb[8].mxu0 %v3733_v45  ;;  %2443 = vmatpush1.bf16.msra.mxu1 %v4454_v40  ;;  %v4502_v40 = vld [vmem:[%s6376_s1 + $0x1c0] ss:$8 sps:$4 sm:$0xff]   ;;  %v3797_v45 = vcombine.low %v117_v30, %v125_v31 }
  0x54   :  { %2895 = vmatpush1.bf16.msra.mxu0 %v4457_v41  ;;  %2444 = vmatprep.subr.bf16.mxu1 %v4462_v48  ;;  %v4505_v41 = vld [vmem:[%s6376_s1 + $0x5c0] ss:$8 sps:$4 sm:$0xff]   ;;  %v4510_v48 = vld [vmem:[%s6376_s1 + $0x1d4] ss:$8 sps:$4 sm:$0xff]  }
  0x55   :  { %2896 = vmatprep.subr.bf16.mxu0 %v4465_v49  ;;  %2383 = vmatprep.mubr.bf16.mxu1 %v3742_v50  ;;  %v4513_v49 = vld [vmem:[%s6376_s1 + $0x5d4] ss:$8 sps:$4 sm:$0xff]   ;;  %v3806_v50 = vcombine.high %v129_v42, %v137_v43  ;;  %v4538_v30 = vld [vmem:[%s6376_s1 + $0x220] ss:$8 sps:$4 sm:$0xff]  }
  0x56   :  { %2835 = vmatprep.mubr.bf16.mxu0 %v3750_v51  ;;  %v3814_v51 = vcombine.high %v133_v46, %v141_v47  ;;  %v4541_v31 = vld [vmem:[%s6376_s1 + $0x620] ss:$8 sps:$4 sm:$0xff]  }
  0x57   :  { %2445 = vmatpush1.bf16.msra.mxu1 %v4460_v52  ;;  %v4508_v52 = vld [vmem:[%s6376_s1 + $0x1d0] ss:$8 sps:$4 sm:$0xff]   ;;  %v70_v46 = vld [vmem:[%s6377_s0 + $0x1a8] sm:$0xff] }
  0x58   :  { %2897 = vmatpush1.bf16.msra.mxu0 %v4463_v53  ;;  %2446 = vmatprep.subr.bf16.mxu1 %v4468_v54  ;;  %v4511_v53 = vld [vmem:[%s6376_s1 + $0x5d0] ss:$8 sps:$4 sm:$0xff]   ;;  %v4516_v54 = vld [vmem:[%s6376_s1 + $0x1e4] ss:$8 sps:$4 sm:$0xff]  }
  0x59   :  { %2898 = vmatprep.subr.bf16.mxu0 %v4471_v55  ;;  %v4519_v55 = vld [vmem:[%s6376_s1 + $0x5e4] ss:$8 sps:$4 sm:$0xff]  }
  0x5a   :  { %2384 = vmatmul.mubr.bf16.gmra.mrb[12].mxu1 %v3741_v59  ;;  %v26_v59 = vld [vmem:[%s6377_s0 + $0x48] sm:$0xff] }
  0x5b   :  { %2836 = vmatmul.mubr.bf16.gmra.mrb[12].mxu0 %v3749_v60  ;;  %2447 = vmatpush1.bf16.msra.mxu1 %v4466_v56  ;;  %v4514_v56 = vld [vmem:[%s6376_s1 + $0x1e0] ss:$8 sps:$4 sm:$0xff]   ;;  %v3805_v60 = vcombine.low %v129_v42, %v137_v43 }
  0x5c   :  { %2899 = vmatpush1.bf16.msra.mxu0 %v4469_v63  ;;  %2448 = vmatprep.subr.bf16.mxu1 %v4474_v0  ;;  %v30_v63 = vld [vmem:[%s6377_s0 + $0x68] sm:$0xff]  ;;  %v4522_v0 = vld [vmem:[%s6376_s1 + $0x1f4] ss:$8 sps:$4 sm:$0xff]  }
  0x5d   :  { %2900 = vmatprep.subr.bf16.mxu0 %v4477_v1  ;;  %2393 = vmatprep.mubr.bf16.mxu1 %v3758_v2  ;;  %v4525_v1 = vld [vmem:[%s6376_s1 + $0x5f4] ss:$8 sps:$4 sm:$0xff]   ;;  %v3696_v2 = vcombine.high %v18_v58, %v26_v59  ;;  %v3703_v12 = vcombine.low %v22_v62, %v30_v63  ;;  %v66_v42 = vld [vmem:[%s6377_s0 + $0x188] sm:$0xff] }
  0x5e   :  { %2845 = vmatprep.mubr.bf16.mxu0 %v3766_v3  ;;  %v3704_v3 = vcombine.high %v22_v62, %v30_v63  ;;  %v78_v47 = vld [vmem:[%s6377_s0 + $0x1e8] sm:$0xff] }
  0x5f   :  { %2449 = vmatpush1.bf16.msra.mxu1 %v4472_v4  ;;  %v4520_v4 = vld [vmem:[%s6376_s1 + $0x1f0] ss:$8 sps:$4 sm:$0xff]   ;;  %v86_v62 = vld [vmem:[%s6377_s0 + $0x228] sm:$0xff] }
  0x60   :  { %2901 = vmatpush1.bf16.msra.mxu0 %v4475_v5  ;;  %2450 = vmatprep.subr.bf16.mxu1 %v4480_v6  ;;  %v4523_v5 = vld [vmem:[%s6376_s1 + $0x5f0] ss:$8 sps:$4 sm:$0xff]   ;;  %v4528_v6 = vld [vmem:[%s6376_s1 + $0x204] ss:$8 sps:$4 sm:$0xff]  }
  0x61   :  { %2902 = vmatprep.subr.bf16.mxu0 %v4483_v7  ;;  %v4531_v7 = vld [vmem:[%s6376_s1 + $0x604] ss:$8 sps:$4 sm:$0xff]  }
  0x62   :  { %2394 = vmatmul.mubr.bf16.gmra.mrb[16].mxu1 %v3757_v10  ;;  %v42_v10 = vld [vmem:[%s6377_s0 + $0xc8] sm:$0xff] }
  0x63   :  { %2846 = vmatmul.mubr.bf16.gmra.mrb[16].mxu0 %v3765_v11  ;;  %2451 = vmatpush1.bf16.msra.mxu1 %v4478_v14  ;;  %v3695_v11 = vcombine.low %v18_v58, %v26_v59  ;;  %v46_v14 = vld [vmem:[%s6377_s0 + $0xe8] sm:$0xff]  ;;  %v3711_v26 = vcombine.low %v34_v9, %v42_v10 }
  0x64   :  { %2903 = vmatpush1.bf16.msra.mxu0 %v4481_v15  ;;  %2452 = vmatprep.subr.bf16.mxu1 %v4486_v16  ;;  %v4529_v15 = vld [vmem:[%s6376_s1 + $0x600] ss:$8 sps:$4 sm:$0xff]   ;;  %v4534_v16 = vld [vmem:[%s6376_s1 + $0x214] ss:$8 sps:$4 sm:$0xff]  }
  0x65   :  { %2904 = vmatprep.subr.bf16.mxu0 %v4489_v17  ;;  %2403 = vmatprep.mubr.bf16.mxu1 %v3774_v18  ;;  %v4537_v17 = vld [vmem:[%s6376_s1 + $0x614] ss:$8 sps:$4 sm:$0xff]   ;;  %v3712_v18 = vcombine.high %v34_v9, %v42_v10  ;;  %v82_v58 = vld [vmem:[%s6377_s0 + $0x208] sm:$0xff] }
  0x66   :  { %2855 = vmatprep.mubr.bf16.mxu0 %v3782_v19  ;;  %v3720_v19 = vcombine.high %v38_v13, %v46_v14  ;;  %v90_v59 = vld [vmem:[%s6377_s0 + $0x248] sm:$0xff] }
  0x67   :  { %2453 = vmatpush1.bf16.msra.mxu1 %v4484_v20  ;;  %v4532_v20 = vld [vmem:[%s6376_s1 + $0x210] ss:$8 sps:$4 sm:$0xff]   ;;  %v94_v63 = vld [vmem:[%s6377_s0 + $0x268] sm:$0xff] }
  0x68   :  { %2905 = vmatpush1.bf16.msra.mxu0 %v4487_v21  ;;  %2454 = vmatprep.subr.bf16.mxu1 %v4492_v22  ;;  %v4535_v21 = vld [vmem:[%s6376_s1 + $0x610] ss:$8 sps:$4 sm:$0xff]   ;;  %v4540_v22 = vld [vmem:[%s6376_s1 + $0x224] ss:$8 sps:$4 sm:$0xff]   ;;  %v4577_v9 = vld [vmem:[%s6376_s1 + $0x680] ss:$8 sps:$4 sm:$0xff]  }
  0x69   :  { %2906 = vmatprep.subr.bf16.mxu0 %v4495_v23  ;;  %v4543_v23 = vld [vmem:[%s6376_s1 + $0x624] ss:$8 sps:$4 sm:$0xff]  }
  0x6a   :  { %2404 = vmatmul.mubr.bf16.gmra.mrb[20].mxu1 %v3773_v27  ;;  %v3719_v27 = vcombine.low %v38_v13, %v46_v14  ;;  %v98_v10 = vld [vmem:[%s6377_s0 + $0x288] sm:$0xff]  ;;  %v3767_v13 = vcombine.low %v86_v62, %v94_v63 }
  0x6b   :  { %2856 = vmatmul.mubr.bf16.gmra.mrb[20].mxu0 %v3781_v28  ;;  %2455 = vmatpush1.bf16.msra.mxu1 %v4490_v24  ;;  %v50_v24 = vld [vmem:[%s6377_s0 + $0x108] sm:$0xff] }
  0x6c   :  { %2907 = vmatpush1.bf16.msra.mxu0 %v4493_v25  ;;  %2456 = vmatprep.subr.bf16.mxu1 %v4498_v32  ;;  %v58_v25 = vld [vmem:[%s6377_s0 + $0x148] sm:$0xff]  ;;  %v4546_v32 = vld [vmem:[%s6376_s1 + $0x234] ss:$8 sps:$4 sm:$0xff]  }
  0x6d   :  { %2908 = vmatprep.subr.bf16.mxu0 %v4501_v33  ;;  %2413 = vmatprep.mubr.bf16.mxu1 %v3790_v34  ;;  %v54_v28 = vld [vmem:[%s6377_s0 + $0x128] sm:$0xff]  ;;  %v4549_v33 = vld [vmem:[%s6376_s1 + $0x634] ss:$8 sps:$4 sm:$0xff]   ;;  %v3728_v34 = vcombine.high %v50_v24, %v58_v25  ;;  %v3727_v43 = vcombine.low %v50_v24, %v58_v25 }
  0x6e   :  { %2865 = vmatprep.mubr.bf16.mxu0 %v3798_v35  ;;  %v3736_v35 = vcombine.high %v54_v28, %v62_v29  ;;  %v102_v14 = vld [vmem:[%s6377_s0 + $0x2a8] sm:$0xff] }
  0x6f   :  { %2457 = vmatpush1.bf16.msra.mxu1 %v4496_v36  ;;  %v4544_v36 = vld [vmem:[%s6376_s1 + $0x230] ss:$8 sps:$4 sm:$0xff]   ;;  %v4586_v24 = vld [vmem:[%s6376_s1 + $0x2a0] ss:$8 sps:$4 sm:$0xff]  }
  0x70   :  { %2909 = vmatpush1.bf16.msra.mxu0 %v4499_v37  ;;  %2458 = vmatprep.subr.bf16.mxu1 %v4504_v38  ;;  %v4547_v37 = vld [vmem:[%s6376_s1 + $0x630] ss:$8 sps:$4 sm:$0xff]   ;;  %v4552_v38 = vld [vmem:[%s6376_s1 + $0x244] ss:$8 sps:$4 sm:$0xff]  }
  0x71   :  { %2910 = vmatprep.subr.bf16.mxu0 %v4507_v39  ;;  %v4555_v39 = vld [vmem:[%s6376_s1 + $0x644] ss:$8 sps:$4 sm:$0xff]  }
  0x72   :  { %2414 = vmatmul.mubr.bf16.gmra.mrb[24].mxu1 %v3789_v44  ;;  %v3735_v44 = vcombine.low %v54_v28, %v62_v29  ;;  %v114_v25 = vld [vmem:[%s6377_s0 + $0x308] sm:$0xff] }
  0x73   :  { %2866 = vmatmul.mubr.bf16.gmra.mrb[24].mxu0 %v3797_v45  ;;  %2459 = vmatpush1.bf16.msra.mxu1 %v4502_v40  ;;  %v4550_v40 = vld [vmem:[%s6376_s1 + $0x240] ss:$8 sps:$4 sm:$0xff]  }
  0x74   :  { %2911 = vmatpush1.bf16.msra.mxu0 %v4505_v41  ;;  %2460 = vmatprep.subr.bf16.mxu1 %v4510_v48  ;;  %v4553_v41 = vld [vmem:[%s6376_s1 + $0x640] ss:$8 sps:$4 sm:$0xff]   ;;  %v4558_v48 = vld [vmem:[%s6376_s1 + $0x254] ss:$8 sps:$4 sm:$0xff]  }
  0x75   :  { %2912 = vmatprep.subr.bf16.mxu0 %v4513_v49  ;;  %2423 = vmatprep.mubr.bf16.mxu1 %v3806_v50  ;;  %v74_v45 = vld [vmem:[%s6377_s0 + $0x1c8] sm:$0xff]  ;;  %v4561_v49 = vld [vmem:[%s6376_s1 + $0x654] ss:$8 sps:$4 sm:$0xff]  }
  0x76   :  { %2875 = vmatprep.mubr.bf16.mxu0 %v3814_v51  ;;  %v3744_v50 = vcombine.high %v66_v42, %v74_v45  ;;  %v3752_v51 = vcombine.high %v70_v46, %v78_v47  ;;  %v118_v29 = vld [vmem:[%s6377_s0 + $0x328] sm:$0xff] }
  0x77   :  { %2461 = vmatpush1.bf16.msra.mxu1 %v4508_v52  ;;  %v4556_v52 = vld [vmem:[%s6376_s1 + $0x250] ss:$8 sps:$4 sm:$0xff]  }
  0x78   :  { %2913 = vmatpush1.bf16.msra.mxu0 %v4511_v53  ;;  %2462 = vmatprep.subr.bf16.mxu1 %v4516_v54  ;;  %v4559_v53 = vld [vmem:[%s6376_s1 + $0x650] ss:$8 sps:$4 sm:$0xff]   ;;  %v4564_v54 = vld [vmem:[%s6376_s1 + $0x264] ss:$8 sps:$4 sm:$0xff]  }
  0x79   :  { %2914 = vmatprep.subr.bf16.mxu0 %v4519_v55  ;;  %v4567_v55 = vld [vmem:[%s6376_s1 + $0x664] ss:$8 sps:$4 sm:$0xff]  }
  0x7a   :  { %2424 = vmatmul.mubr.bf16.gmra.mrb[28].mxu1 %v3805_v60  ;;  %v3743_v60 = vcombine.low %v66_v42, %v74_v45  ;;  %v142_v45 = vld [vmem:[%s6377_s0 + $0x3e8] sm:$0xff] }
  0x7b   :  { %2876 = vmatmul.mubr.bf16.gmra.mrb[28].mxu0 %v3813_v61  ;;  %2463 = vmatpush1.bf16.msra.mxu1 %v4514_v56  ;;  %v4562_v56 = vld [vmem:[%s6376_s1 + $0x260] ss:$8 sps:$4 sm:$0xff]   ;;  %v3751_v61 = vcombine.low %v70_v46, %v78_v47 }
  0x7c   :  { %2915 = vmatpush1.bf16.msra.mxu0 %v4517_v57  ;;  %2464 = vmatprep.subr.bf16.mxu1 %v4522_v0  ;;  %v4565_v57 = vld [vmem:[%s6376_s1 + $0x660] ss:$8 sps:$4 sm:$0xff]   ;;  %v4570_v0 = vld [vmem:[%s6376_s1 + $0x274] ss:$8 sps:$4 sm:$0xff]  }
  0x7d   :  { %2916 = vmatprep.subr.bf16.mxu0 %v4525_v1  ;;  %2466 = vmatprep.mubr.bf16.mxu1 %v3696_v2  ;;  %v4573_v1 = vld [vmem:[%s6376_s1 + $0x674] ss:$8 sps:$4 sm:$0xff]   ;;  %v3760_v2 = vcombine.high %v82_v58, %v90_v59  ;;  %v4598_v46 = vld [vmem:[%s6376_s1 + $0x2c0] ss:$8 sps:$4 sm:$0xff]  }
  0x7e   :  { %2918 = vmatprep.mubr.bf16.mxu0 %v3704_v3  ;;  %v3768_v3 = vcombine.high %v86_v62, %v94_v63  ;;  %v4601_v47 = vld [vmem:[%s6376_s1 + $0x6c0] ss:$8 sps:$4 sm:$0xff]   ;;  %v23_v62 = vld [vmem:[%s6377_s0 + $0x30] sm:$0xff] }
  0x7f   :  { %2465 = vmatpush1.bf16.msra.mxu1 %v4520_v4  ;;  %v4568_v4 = vld [vmem:[%s6376_s1 + $0x270] ss:$8 sps:$4 sm:$0xff]  }
  0x80   :  { %2917 = vmatpush1.bf16.msra.mxu0 %v4523_v5  ;;  %2547 = vmatprep.subr.bf16.mxu1 %v4528_v6  ;;  %v4571_v5 = vld [vmem:[%s6376_s1 + $0x670] ss:$8 sps:$4 sm:$0xff]   ;;  %v4576_v6 = vld [vmem:[%s6376_s1 + $0x284] ss:$8 sps:$4 sm:$0xff]  }
  0x81   :  { %2999 = vmatprep.subr.bf16.mxu0 %v4531_v7  ;;  %v4579_v7 = vld [vmem:[%s6376_s1 + $0x684] ss:$8 sps:$4 sm:$0xff]   ;;  %v31_v63 = vld [vmem:[%s6377_s0 + $0x70] sm:$0xff] }
  0x82   :  { %2467 = vmatmul.mubr.bf16.vlgmr.msra.gmra.mrb[0].mxu1 %v3695_v11  ;;  %v106_v11 = vld [vmem:[%s6377_s0 + $0x2c8] sm:$0xff] }
  0x83   :  { %2919 = vmatmul.mubr.bf16.vlgmr.msra.gmra.mrb[0].mxu0 %v3703_v12  ;;  %2548 = vmatpush1.bf16.msra.mxu1 %v4526_v8  ;;  %v4574_v8 = vld [vmem:[%s6376_s1 + $0x280] ss:$8 sps:$4 sm:$0xff]   ;;  %v3759_v12 = vcombine.low %v82_v58, %v90_v59  ;;  %v19_v58 = vld [vmem:[%s6377_s0 + $0x10] sm:$0xff] }
  0x84   :  { %3000 = vmatpush1.bf16.msra.mxu0 %v4529_v15  ;;  %2549 = vmatprep.subr.bf16.mxu1 %v4534_v16  ;;  %v110_v15 = vld [vmem:[%s6377_s0 + $0x2e8] sm:$0xff]  ;;  %v4582_v16 = vld [vmem:[%s6376_s1 + $0x294] ss:$8 sps:$4 sm:$0xff]  }
  0x85   :  { %3001 = vmatprep.subr.bf16.mxu0 %v4537_v17  ;;  %2476 = vmatprep.mubr.bf16.mxu1 %v3712_v18  ;;  %v4585_v17 = vld [vmem:[%s6376_s1 + $0x694] ss:$8 sps:$4 sm:$0xff]   ;;  %v3776_v18 = vcombine.high %v98_v10, %v106_v11  ;;  %v3783_v28 = vcombine.low %v102_v14, %v110_v15 }
  0x86   :  { %2928 = vmatprep.mubr.bf16.mxu0 %v3720_v19  ;;  %v3784_v19 = vcombine.high %v102_v14, %v110_v15  ;;  %v39_v14 = vld [vmem:[%s6377_s0 + $0xb0] sm:$0xff] }
  0x87   :  { %2550 = vmatpush1.bf16.msra.mxu1 %v4532_v20  ;;  %v4580_v20 = vld [vmem:[%s6376_s1 + $0x290] ss:$8 sps:$4 sm:$0xff]  }
  0x88   :  { %3002 = vmatpush1.bf16.msra.mxu0 %v4535_v21  ;;  %2551 = vmatprep.subr.bf16.mxu1 %v4540_v22  ;;  %v4583_v21 = vld [vmem:[%s6376_s1 + $0x690] ss:$8 sps:$4 sm:$0xff]   ;;  %v4588_v22 = vld [vmem:[%s6376_s1 + $0x2a4] ss:$8 sps:$4 sm:$0xff]  }
  0x89   :  { %3003 = vmatprep.subr.bf16.mxu0 %v4543_v23  ;;  %v4591_v23 = vld [vmem:[%s6376_s1 + $0x6a4] ss:$8 sps:$4 sm:$0xff]   ;;  %v47_v15 = vld [vmem:[%s6377_s0 + $0xf0] sm:$0xff] }
  0x8a   :  { %2477 = vmatmul.mubr.bf16.gmra.mrb[4].mxu1 %v3711_v26  ;;  %v122_v26 = vld [vmem:[%s6377_s0 + $0x348] sm:$0xff] }
  0x8b   :  { %2929 = vmatmul.mubr.bf16.gmra.mrb[4].mxu0 %v3719_v27  ;;  %2552 = vmatpush1.bf16.msra.mxu1 %v4538_v30  ;;  %v3775_v27 = vcombine.low %v98_v10, %v106_v11  ;;  %v126_v30 = vld [vmem:[%s6377_s0 + $0x368] sm:$0xff]  ;;  %v3791_v42 = vcombine.low %v114_v25, %v122_v26  ;;  %v35_v10 = vld [vmem:[%s6377_s0 + $0x90] sm:$0xff] }
  0x8c   :  { %3004 = vmatpush1.bf16.msra.mxu0 %v4541_v31  ;;  %2553 = vmatprep.subr.bf16.mxu1 %v4546_v32  ;;  %v4589_v31 = vld [vmem:[%s6376_s1 + $0x6a0] ss:$8 sps:$4 sm:$0xff]   ;;  %v4594_v32 = vld [vmem:[%s6376_s1 + $0x2b4] ss:$8 sps:$4 sm:$0xff]  }
  0x8d   :  { %3005 = vmatprep.subr.bf16.mxu0 %v4549_v33  ;;  %2486 = vmatprep.mubr.bf16.mxu1 %v3728_v34  ;;  %v4597_v33 = vld [vmem:[%s6376_s1 + $0x6b4] ss:$8 sps:$4 sm:$0xff]   ;;  %v3792_v34 = vcombine.high %v114_v25, %v122_v26  ;;  %v4637_v25 = vld [vmem:[%s6376_s1 + $0x720] ss:$8 sps:$4 sm:$0xff]  }
  0x8e   :  { %2938 = vmatprep.mubr.bf16.mxu0 %v3736_v35  ;;  %v3800_v35 = vcombine.high %v118_v29, %v126_v30  ;;  %v43_v11 = vld [vmem:[%s6377_s0 + $0xd0] sm:$0xff] }
  0x8f   :  { %2554 = vmatpush1.bf16.msra.mxu1 %v4544_v36  ;;  %v4592_v36 = vld [vmem:[%s6376_s1 + $0x2b0] ss:$8 sps:$4 sm:$0xff]  }
  0x90   :  { %3006 = vmatpush1.bf16.msra.mxu0 %v4547_v37  ;;  %2555 = vmatprep.subr.bf16.mxu1 %v4552_v38  ;;  %v4595_v37 = vld [vmem:[%s6376_s1 + $0x6b0] ss:$8 sps:$4 sm:$0xff]   ;;  %v4600_v38 = vld [vmem:[%s6376_s1 + $0x2c4] ss:$8 sps:$4 sm:$0xff]  }
  0x91   :  { %3007 = vmatprep.subr.bf16.mxu0 %v4555_v39  ;;  %v4603_v39 = vld [vmem:[%s6376_s1 + $0x6c4] ss:$8 sps:$4 sm:$0xff]   ;;  %v51_v26 = vld [vmem:[%s6377_s0 + $0x110] sm:$0xff] }
  0x92   :  { %2487 = vmatmul.mubr.bf16.gmra.mrb[8].mxu1 %v3727_v43  ;;  %v3799_v43 = vcombine.low %v118_v29, %v126_v30  ;;  %v3721_v29 = vcombine.low %v39_v14, %v47_v15  ;;  %v55_v30 = vld [vmem:[%s6377_s0 + $0x130] sm:$0xff] }
  0x93   :  { %2939 = vmatmul.mubr.bf16.gmra.mrb[8].mxu0 %v3735_v44  ;;  %2556 = vmatpush1.bf16.msra.mxu1 %v4550_v40  ;;  %v130_v40 = vld [vmem:[%s6377_s0 + $0x388] sm:$0xff] }
  0x94   :  { %3008 = vmatpush1.bf16.msra.mxu0 %v4553_v41  ;;  %2557 = vmatprep.subr.bf16.mxu1 %v4558_v48  ;;  %v138_v41 = vld [vmem:[%s6377_s0 + $0x3c8] sm:$0xff]  ;;  %v4606_v48 = vld [vmem:[%s6376_s1 + $0x2d4] ss:$8 sps:$4 sm:$0xff]  }
  0x95   :  { %3009 = vmatprep.subr.bf16.mxu0 %v4561_v49  ;;  %2496 = vmatprep.mubr.bf16.mxu1 %v3744_v50  ;;  %v134_v44 = vld [vmem:[%s6377_s0 + $0x3a8] sm:$0xff]  ;;  %v4609_v49 = vld [vmem:[%s6376_s1 + $0x6d4] ss:$8 sps:$4 sm:$0xff]   ;;  %v3808_v50 = vcombine.high %v130_v40, %v138_v41  ;;  %v3807_v59 = vcombine.low %v130_v40, %v138_v41 }
  0x96   :  { %2948 = vmatprep.mubr.bf16.mxu0 %v3752_v51  ;;  %v3816_v51 = vcombine.high %v134_v44, %v142_v45  ;;  %v67_v40 = vld [vmem:[%s6377_s0 + $0x190] sm:$0xff] }
  0x97   :  { %2558 = vmatpush1.bf16.msra.mxu1 %v4556_v52  ;;  %v4604_v52 = vld [vmem:[%s6376_s1 + $0x2d0] ss:$8 sps:$4 sm:$0xff]  }
  0x98   :  { %3010 = vmatpush1.bf16.msra.mxu0 %v4559_v53  ;;  %2559 = vmatprep.subr.bf16.mxu1 %v4564_v54  ;;  %v4607_v53 = vld [vmem:[%s6376_s1 + $0x6d0] ss:$8 sps:$4 sm:$0xff]   ;;  %v4612_v54 = vld [vmem:[%s6376_s1 + $0x2e4] ss:$8 sps:$4 sm:$0xff]  }
  0x99   :  { %3011 = vmatprep.subr.bf16.mxu0 %v4567_v55  ;;  %v4615_v55 = vld [vmem:[%s6376_s1 + $0x6e4] ss:$8 sps:$4 sm:$0xff]  }
  0x9a   :  { %2497 = vmatmul.mubr.bf16.gmra.mrb[12].mxu1 %v3743_v60  ;;  %v3815_v60 = vcombine.low %v134_v44, %v142_v45  ;;  %v71_v44 = vld [vmem:[%s6377_s0 + $0x1b0] sm:$0xff] }
  0x9b   :  { %2949 = vmatmul.mubr.bf16.gmra.mrb[12].mxu0 %v3751_v61  ;;  %2560 = vmatpush1.bf16.msra.mxu1 %v4562_v56  ;;  %v4610_v56 = vld [vmem:[%s6376_s1 + $0x2e0] ss:$8 sps:$4 sm:$0xff]   ;;  %v27_v61 = vld [vmem:[%s6377_s0 + $0x50] sm:$0xff] }
  0x9c   :  { %3012 = vmatpush1.bf16.msra.mxu0 %v4565_v57  ;;  %2561 = vmatprep.subr.bf16.mxu1 %v4570_v0  ;;  %v4613_v57 = vld [vmem:[%s6376_s1 + $0x6e0] ss:$8 sps:$4 sm:$0xff]   ;;  %v4618_v0 = vld [vmem:[%s6376_s1 + $0x2f4] ss:$8 sps:$4 sm:$0xff]  }
  0x9d   :  { %3013 = vmatprep.subr.bf16.mxu0 %v4573_v1  ;;  %2506 = vmatprep.mubr.bf16.mxu1 %v3760_v2  ;;  %v4621_v1 = vld [vmem:[%s6376_s1 + $0x6f4] ss:$8 sps:$4 sm:$0xff]   ;;  %v3698_v2 = vcombine.high %v19_v58, %v27_v61 }
  0x9e   :  { %2958 = vmatprep.mubr.bf16.mxu0 %v3768_v3  ;;  %v3706_v3 = vcombine.high %v23_v62, %v31_v63  ;;  %v79_v45 = vld [vmem:[%s6377_s0 + $0x1f0] sm:$0xff] }
  0x9f   :  { %2562 = vmatpush1.bf16.msra.mxu1 %v4568_v4  ;;  %v4616_v4 = vld [vmem:[%s6376_s1 + $0x2f0] ss:$8 sps:$4 sm:$0xff]  }
  0xa0   :  { %3014 = vmatpush1.bf16.msra.mxu0 %v4571_v5  ;;  %2563 = vmatprep.subr.bf16.mxu1 %v4576_v6  ;;  %v4619_v5 = vld [vmem:[%s6376_s1 + $0x6f0] ss:$8 sps:$4 sm:$0xff]   ;;  %v4624_v6 = vld [vmem:[%s6376_s1 + $0x304] ss:$8 sps:$4 sm:$0xff]  }
  0xa1   :  { %3015 = vmatprep.subr.bf16.mxu0 %v4579_v7  ;;  %v4627_v7 = vld [vmem:[%s6376_s1 + $0x704] ss:$8 sps:$4 sm:$0xff]  }
  0xa2   :  { %2507 = vmatmul.mubr.bf16.gmra.mrb[16].mxu1 %v3759_v12  ;;  %v3697_v12 = vcombine.low %v19_v58, %v27_v61  ;;  %v3753_v58 = vcombine.low %v71_v44, %v79_v45  ;;  %v95_v61 = vld [vmem:[%s6377_s0 + $0x270] sm:$0xff] }
  0xa3   :  { %2959 = vmatmul.mubr.bf16.gmra.mrb[16].mxu0 %v3767_v13  ;;  %2564 = vmatpush1.bf16.msra.mxu1 %v4574_v8  ;;  %v4622_v8 = vld [vmem:[%s6376_s1 + $0x300] ss:$8 sps:$4 sm:$0xff]   ;;  %v3705_v13 = vcombine.low %v23_v62, %v31_v63 }
  0xa4   :  { %3016 = vmatpush1.bf16.msra.mxu0 %v4577_v9  ;;  %2565 = vmatprep.subr.bf16.mxu1 %v4582_v16  ;;  %v4625_v9 = vld [vmem:[%s6376_s1 + $0x700] ss:$8 sps:$4 sm:$0xff]   ;;  %v4630_v16 = vld [vmem:[%s6376_s1 + $0x314] ss:$8 sps:$4 sm:$0xff]  }
  0xa5   :  { %3017 = vmatprep.subr.bf16.mxu0 %v4585_v17  ;;  %2516 = vmatprep.mubr.bf16.mxu1 %v3776_v18  ;;  %v4633_v17 = vld [vmem:[%s6376_s1 + $0x714] ss:$8 sps:$4 sm:$0xff]   ;;  %v3714_v18 = vcombine.high %v35_v10, %v43_v11  ;;  %v4658_v62 = vld [vmem:[%s6376_s1 + $0x360] ss:$8 sps:$4 sm:$0xff]  }
  0xa6   :  { %2968 = vmatprep.mubr.bf16.mxu0 %v3784_v19  ;;  %v3722_v19 = vcombine.high %v39_v14, %v47_v15  ;;  %v4661_v63 = vld [vmem:[%s6376_s1 + $0x760] ss:$8 sps:$4 sm:$0xff]  }
  0xa7   :  { %2566 = vmatpush1.bf16.msra.mxu1 %v4580_v20  ;;  %v4628_v20 = vld [vmem:[%s6376_s1 + $0x310] ss:$8 sps:$4 sm:$0xff]   ;;  %v4670_v14 = vld [vmem:[%s6376_s1 + $0x380] ss:$8 sps:$4 sm:$0xff]  }
  0xa8   :  { %3018 = vmatpush1.bf16.msra.mxu0 %v4583_v21  ;;  %2567 = vmatprep.subr.bf16.mxu1 %v4588_v22  ;;  %v4631_v21 = vld [vmem:[%s6376_s1 + $0x710] ss:$8 sps:$4 sm:$0xff]   ;;  %v4636_v22 = vld [vmem:[%s6376_s1 + $0x324] ss:$8 sps:$4 sm:$0xff]   ;;  %v4673_v15 = vld [vmem:[%s6376_s1 + $0x780] ss:$8 sps:$4 sm:$0xff]  }
  0xa9   :  { %3019 = vmatprep.subr.bf16.mxu0 %v4591_v23  ;;  %v4639_v23 = vld [vmem:[%s6376_s1 + $0x724] ss:$8 sps:$4 sm:$0xff]  }
  0xaa   :  { %2517 = vmatmul.mubr.bf16.gmra.mrb[20].mxu1 %v3775_v27  ;;  %v59_v27 = vld [vmem:[%s6377_s0 + $0x150] sm:$0xff] }
  0xab   :  { %2969 = vmatmul.mubr.bf16.gmra.mrb[20].mxu0 %v3783_v28  ;;  %2568 = vmatpush1.bf16.msra.mxu1 %v4586_v24  ;;  %v4634_v24 = vld [vmem:[%s6376_s1 + $0x320] ss:$8 sps:$4 sm:$0xff]   ;;  %v3713_v28 = vcombine.low %v35_v10, %v43_v11  ;;  %v3729_v41 = vcombine.low %v51_v26, %v59_v27  ;;  %v107_v11 = vld [vmem:[%s6377_s0 + $0x2d0] sm:$0xff] }
  0xac   :  { %3020 = vmatpush1.bf16.msra.mxu0 %v4589_v31  ;;  %2569 = vmatprep.subr.bf16.mxu1 %v4594_v32  ;;  %v63_v31 = vld [vmem:[%s6377_s0 + $0x170] sm:$0xff] }
  0xad   :  { %3021 = vmatprep.subr.bf16.mxu0 %v4597_v33  ;;  %2526 = vmatprep.mubr.bf16.mxu1 %v3792_v34  ;;  %v4642_v32 = vld [vmem:[%s6376_s1 + $0x334] ss:$8 sps:$4 sm:$0xff]   ;;  %v3730_v34 = vcombine.high %v51_v26, %v59_v27 }
  0xae   :  { %2978 = vmatprep.mubr.bf16.mxu0 %v3800_v35  ;;  %v4645_v33 = vld [vmem:[%s6376_s1 + $0x734] ss:$8 sps:$4 sm:$0xff]   ;;  %v3738_v35 = vcombine.high %v55_v30, %v63_v31 }
  0xaf   :  { %2570 = vmatpush1.bf16.msra.mxu1 %v4592_v36  ;;  %v4640_v36 = vld [vmem:[%s6376_s1 + $0x330] ss:$8 sps:$4 sm:$0xff]  }
  0xb0   :  { %3022 = vmatpush1.bf16.msra.mxu0 %v4595_v37  ;;  %2571 = vmatprep.subr.bf16.mxu1 %v4600_v38  ;;  %v4643_v37 = vld [vmem:[%s6376_s1 + $0x730] ss:$8 sps:$4 sm:$0xff]   ;;  %v4648_v38 = vld [vmem:[%s6376_s1 + $0x344] ss:$8 sps:$4 sm:$0xff]  }
  0xb1   :  { %3023 = vmatprep.subr.bf16.mxu0 %v4603_v39  ;;  %v4651_v39 = vld [vmem:[%s6376_s1 + $0x744] ss:$8 sps:$4 sm:$0xff]   ;;  %v123_v27 = vld [vmem:[%s6377_s0 + $0x350] sm:$0xff] }
  0xb2   :  { %2527 = vmatmul.mubr.bf16.gmra.mrb[24].mxu1 %v3791_v42  ;;  %v3737_v42 = vcombine.low %v55_v30, %v63_v31  ;;  %v4682_v30 = vld [vmem:[%s6376_s1 + $0x3a0] ss:$8 sps:$4 sm:$0xff]  }
  0xb3   :  { %2979 = vmatmul.mubr.bf16.gmra.mrb[24].mxu0 %v3799_v43  ;;  %2572 = vmatpush1.bf16.msra.mxu1 %v4598_v46  ;;  %v75_v43 = vld [vmem:[%s6377_s0 + $0x1d0] sm:$0xff]  ;;  %v4646_v46 = vld [vmem:[%s6376_s1 + $0x340] ss:$8 sps:$4 sm:$0xff]  }
  0xb4   :  { %3024 = vmatpush1.bf16.msra.mxu0 %v4601_v47  ;;  %2573 = vmatprep.subr.bf16.mxu1 %v4606_v48  ;;  %v4649_v47 = vld [vmem:[%s6376_s1 + $0x740] ss:$8 sps:$4 sm:$0xff]   ;;  %v4654_v48 = vld [vmem:[%s6376_s1 + $0x354] ss:$8 sps:$4 sm:$0xff]  }
  0xb5   :  { %3025 = vmatprep.subr.bf16.mxu0 %v4609_v49  ;;  %2536 = vmatprep.mubr.bf16.mxu1 %v3808_v50  ;;  %v4657_v49 = vld [vmem:[%s6376_s1 + $0x754] ss:$8 sps:$4 sm:$0xff]   ;;  %v3746_v50 = vcombine.high %v67_v40, %v75_v43  ;;  %v4685_v31 = vld [vmem:[%s6376_s1 + $0x7a0] ss:$8 sps:$4 sm:$0xff]  }
  0xb6   :  { %2988 = vmatprep.mubr.bf16.mxu0 %v3816_v51  ;;  %v3754_v51 = vcombine.high %v71_v44, %v79_v45  ;;  %v135_v44 = vld [vmem:[%s6377_s0 + $0x3b0] sm:$0xff] }
  0xb7   :  { %2574 = vmatpush1.bf16.msra.mxu1 %v4604_v52  ;;  %v4652_v52 = vld [vmem:[%s6376_s1 + $0x350] ss:$8 sps:$4 sm:$0xff]  }
  0xb8   :  { %3026 = vmatpush1.bf16.msra.mxu0 %v4607_v53  ;;  %2575 = vmatprep.subr.bf16.mxu1 %v4612_v54  ;;  %v4655_v53 = vld [vmem:[%s6376_s1 + $0x750] ss:$8 sps:$4 sm:$0xff]   ;;  %v4660_v54 = vld [vmem:[%s6376_s1 + $0x364] ss:$8 sps:$4 sm:$0xff]  }
  0xb9   :  { %3027 = vmatprep.subr.bf16.mxu0 %v4615_v55  ;;  %v4663_v55 = vld [vmem:[%s6376_s1 + $0x764] ss:$8 sps:$4 sm:$0xff]   ;;  %v143_v45 = vld [vmem:[%s6377_s0 + $0x3f0] sm:$0xff] }
  0xba   :  { %2537 = vmatmul.mubr.bf16.gmra.mrb[28].mxu1 %v3807_v59  ;;  %v91_v59 = vld [vmem:[%s6377_s0 + $0x250] sm:$0xff] }
  0xbb   :  { %2989 = vmatmul.mubr.bf16.gmra.mrb[28].mxu0 %v3815_v60  ;;  %2576 = vmatpush1.bf16.msra.mxu1 %v4610_v56  ;;  %v83_v56 = vld [vmem:[%s6377_s0 + $0x210] sm:$0xff] }
  0xbc   :  { %3028 = vmatpush1.bf16.msra.mxu0 %v4613_v57  ;;  %2577 = vmatprep.subr.bf16.mxu1 %v4618_v0  ;;  %v3745_v57 = vcombine.low %v67_v40, %v75_v43  ;;  %v87_v60 = vld [vmem:[%s6377_s0 + $0x230] sm:$0xff] }
  0xbd   :  { %3029 = vmatprep.subr.bf16.mxu0 %v4621_v1  ;;  %2579 = vmatprep.mubr.bf16.mxu1 %v3698_v2  ;;  %v4666_v0 = vld [vmem:[%s6376_s1 + $0x374] ss:$8 sps:$4 sm:$0xff]   ;;  %v3762_v2 = vcombine.high %v83_v56, %v91_v59  ;;  %v3769_v10 = vcombine.low %v87_v60, %v95_v61 }
  0xbe   :  { %3031 = vmatprep.mubr.bf16.mxu0 %v3706_v3  ;;  %v4669_v1 = vld [vmem:[%s6376_s1 + $0x774] ss:$8 sps:$4 sm:$0xff]   ;;  %v3770_v3 = vcombine.high %v87_v60, %v95_v61 }
  0xbf   :  { %2578 = vmatpush1.bf16.msra.mxu1 %v4616_v4  ;;  %v4664_v4 = vld [vmem:[%s6376_s1 + $0x370] ss:$8 sps:$4 sm:$0xff]  }
  0xc0   :  { %3030 = vmatpush1.bf16.msra.mxu0 %v4619_v5  ;;  %2660 = vmatprep.subr.bf16.mxu1 %v4624_v6  ;;  %v4667_v5 = vld [vmem:[%s6376_s1 + $0x770] ss:$8 sps:$4 sm:$0xff]   ;;  %v4672_v6 = vld [vmem:[%s6376_s1 + $0x384] ss:$8 sps:$4 sm:$0xff]  }
  0xc1   :  { %3112 = vmatprep.subr.bf16.mxu0 %v4627_v7  ;;  %v4675_v7 = vld [vmem:[%s6376_s1 + $0x784] ss:$8 sps:$4 sm:$0xff]   ;;  %v131_v40 = vld [vmem:[%s6377_s0 + $0x390] sm:$0xff]  ;;  %v24_v60 = vld [vmem:[%s6377_s0 + $0x38] sm:$0xff] }
  0xc2   :  { %2580 = vmatmul.mubr.bf16.vlgmr.msra.gmra.mrb[0].mxu1 %v3697_v12  ;;  %v103_v12 = vld [vmem:[%s6377_s0 + $0x2b0] sm:$0xff]  ;;  %v32_v61 = vld [vmem:[%s6377_s0 + $0x78] sm:$0xff] }
  0xc3   :  { %3032 = vmatmul.mubr.bf16.vlgmr.msra.gmra.mrb[0].mxu0 %v3705_v13  ;;  %2661 = vmatpush1.bf16.msra.mxu1 %v4622_v8  ;;  %v99_v8 = vld [vmem:[%s6377_s0 + $0x290] sm:$0xff] }
  0xc4   :  { %3113 = vmatpush1.bf16.msra.mxu0 %v4625_v9  ;;  %2662 = vmatprep.subr.bf16.mxu1 %v4630_v16  ;;  %v3761_v9 = vcombine.low %v83_v56, %v91_v59  ;;  %v111_v13 = vld [vmem:[%s6377_s0 + $0x2f0] sm:$0xff]  ;;  %v20_v56 = vld [vmem:[%s6377_s0 + $0x18] sm:$0xff] }
  0xc5   :  { %3114 = vmatprep.subr.bf16.mxu0 %v4633_v17  ;;  %2589 = vmatprep.mubr.bf16.mxu1 %v3714_v18  ;;  %v4678_v16 = vld [vmem:[%s6376_s1 + $0x394] ss:$8 sps:$4 sm:$0xff]   ;;  %v3778_v18 = vcombine.high %v99_v8, %v107_v11  ;;  %v3785_v26 = vcombine.low %v103_v12, %v111_v13 }
  0xc6   :  { %3041 = vmatprep.mubr.bf16.mxu0 %v3722_v19  ;;  %v4681_v17 = vld [vmem:[%s6376_s1 + $0x794] ss:$8 sps:$4 sm:$0xff]   ;;  %v3786_v19 = vcombine.high %v103_v12, %v111_v13 }
  0xc7   :  { %2663 = vmatpush1.bf16.msra.mxu1 %v4628_v20  ;;  %v4676_v20 = vld [vmem:[%s6376_s1 + $0x390] ss:$8 sps:$4 sm:$0xff]  }
  0xc8   :  { %3115 = vmatpush1.bf16.msra.mxu0 %v4631_v21  ;;  %2664 = vmatprep.subr.bf16.mxu1 %v4636_v22  ;;  %v4679_v21 = vld [vmem:[%s6376_s1 + $0x790] ss:$8 sps:$4 sm:$0xff]   ;;  %v4684_v22 = vld [vmem:[%s6376_s1 + $0x3a4] ss:$8 sps:$4 sm:$0xff]  }
  0xc9   :  { %3116 = vmatprep.subr.bf16.mxu0 %v4639_v23  ;;  %v4687_v23 = vld [vmem:[%s6376_s1 + $0x7a4] ss:$8 sps:$4 sm:$0xff]   ;;  %v139_v43 = vld [vmem:[%s6377_s0 + $0x3d0] sm:$0xff]  ;;  %v28_v59 = vld [vmem:[%s6377_s0 + $0x58] sm:$0xff] }
  0xca   :  { %2590 = vmatmul.mubr.bf16.gmra.mrb[4].mxu1 %v3713_v28  ;;  %v119_v28 = vld [vmem:[%s6377_s0 + $0x330] sm:$0xff] }
  0xcb   :  { %3042 = vmatmul.mubr.bf16.gmra.mrb[4].mxu0 %v3721_v29  ;;  %2665 = vmatpush1.bf16.msra.mxu1 %v4634_v24  ;;  %v115_v24 = vld [vmem:[%s6377_s0 + $0x310] sm:$0xff] }
  0xcc   :  { %3117 = vmatpush1.bf16.msra.mxu0 %v4637_v25  ;;  %2666 = vmatprep.subr.bf16.mxu1 %v4642_v32  ;;  %v3777_v25 = vcombine.low %v99_v8, %v107_v11  ;;  %v127_v29 = vld [vmem:[%s6377_s0 + $0x370] sm:$0xff]  ;;  %v40_v8 = vld [vmem:[%s6377_s0 + $0xb8] sm:$0xff]  ;;  %v3707_v11 = vcombine.low %v24_v60, %v32_v61 }
  0xcd   :  { %3118 = vmatprep.subr.bf16.mxu0 %v4645_v33  ;;  %2599 = vmatprep.mubr.bf16.mxu1 %v3730_v34  ;;  %v4690_v32 = vld [vmem:[%s6376_s1 + $0x3b4] ss:$8 sps:$4 sm:$0xff]   ;;  %v3794_v34 = vcombine.high %v115_v24, %v123_v27 }
  0xce   :  { %3051 = vmatprep.mubr.bf16.mxu0 %v3738_v35  ;;  %v4693_v33 = vld [vmem:[%s6376_s1 + $0x7b4] ss:$8 sps:$4 sm:$0xff]   ;;  %v3802_v35 = vcombine.high %v119_v28, %v127_v29 }
  0xcf   :  { %2667 = vmatpush1.bf16.msra.mxu1 %v4640_v36  ;;  %v4688_v36 = vld [vmem:[%s6376_s1 + $0x3b0] ss:$8 sps:$4 sm:$0xff]  }
  0xd0   :  { %3119 = vmatpush1.bf16.msra.mxu0 %v4643_v37  ;;  %2668 = vmatprep.subr.bf16.mxu1 %v4648_v38  ;;  %v4691_v37 = vld [vmem:[%s6376_s1 + $0x7b0] ss:$8 sps:$4 sm:$0xff]   ;;  %v4696_v38 = vld [vmem:[%s6376_s1 + $0x3c4] ss:$8 sps:$4 sm:$0xff]  }
  0xd1   :  { %3120 = vmatprep.subr.bf16.mxu0 %v4651_v39  ;;  %v4699_v39 = vld [vmem:[%s6376_s1 + $0x7c4] ss:$8 sps:$4 sm:$0xff]  }
  0xd2   :  { %2600 = vmatmul.mubr.bf16.gmra.mrb[8].mxu1 %v3729_v41  ;;  %v3793_v41 = vcombine.low %v115_v24, %v123_v27  ;;  %v72_v24 = vld [vmem:[%s6377_s0 + $0x1b8] sm:$0xff] }
  0xd3   :  { %3052 = vmatmul.mubr.bf16.gmra.mrb[8].mxu0 %v3737_v42  ;;  %2669 = vmatpush1.bf16.msra.mxu1 %v4646_v46  ;;  %v3801_v42 = vcombine.low %v119_v28, %v127_v29  ;;  %v4694_v46 = vld [vmem:[%s6376_s1 + $0x3c0] ss:$8 sps:$4 sm:$0xff]  }
  0xd4   :  { %3121 = vmatpush1.bf16.msra.mxu0 %v4649_v47  ;;  %2670 = vmatprep.subr.bf16.mxu1 %v4654_v48  ;;  %v4697_v47 = vld [vmem:[%s6376_s1 + $0x7c0] ss:$8 sps:$4 sm:$0xff]   ;;  %v4702_v48 = vld [vmem:[%s6376_s1 + $0x3d4] ss:$8 sps:$4 sm:$0xff]  }
  0xd5   :  { %3122 = vmatprep.subr.bf16.mxu0 %v4657_v49  ;;  %2609 = vmatprep.mubr.bf16.mxu1 %v3746_v50  ;;  %v4705_v49 = vld [vmem:[%s6376_s1 + $0x7d4] ss:$8 sps:$4 sm:$0xff]   ;;  %v3810_v50 = vcombine.high %v131_v40, %v139_v43 }
  0xd6   :  { %3061 = vmatprep.mubr.bf16.mxu0 %v3754_v51  ;;  %v3818_v51 = vcombine.high %v135_v44, %v143_v45 }
  0xd7   :  { %2671 = vmatpush1.bf16.msra.mxu1 %v4652_v52  ;;  %v4700_v52 = vld [vmem:[%s6376_s1 + $0x3d0] ss:$8 sps:$4 sm:$0xff]  }
  0xd8   :  { %3123 = vmatpush1.bf16.msra.mxu0 %v4655_v53  ;;  %2672 = vmatprep.subr.bf16.mxu1 %v4660_v54  ;;  %v4703_v53 = vld [vmem:[%s6376_s1 + $0x7d0] ss:$8 sps:$4 sm:$0xff]   ;;  %v4708_v54 = vld [vmem:[%s6376_s1 + $0x3e4] ss:$8 sps:$4 sm:$0xff]  }
  0xd9   :  { %3124 = vmatprep.subr.bf16.mxu0 %v4663_v55  ;;  %v4711_v55 = vld [vmem:[%s6376_s1 + $0x7e4] ss:$8 sps:$4 sm:$0xff]  }
  0xda   :  { %2610 = vmatmul.mubr.bf16.gmra.mrb[12].mxu1 %v3745_v57  ;;  %v3809_v57 = vcombine.low %v131_v40, %v139_v43  ;;  %v104_v40 = vld [vmem:[%s6377_s0 + $0x2b8] sm:$0xff] }
  0xdb   :  { %3062 = vmatmul.mubr.bf16.gmra.mrb[12].mxu0 %v3753_v58  ;;  %2673 = vmatpush1.bf16.msra.mxu1 %v4658_v62  ;;  %v3817_v58 = vcombine.low %v135_v44, %v143_v45  ;;  %v4706_v62 = vld [vmem:[%s6376_s1 + $0x3e0] ss:$8 sps:$4 sm:$0xff]  }
  0xdc   :  { %3125 = vmatpush1.bf16.msra.mxu0 %v4661_v63  ;;  %2674 = vmatprep.subr.bf16.mxu1 %v4666_v0  ;;  %v4709_v63 = vld [vmem:[%s6376_s1 + $0x7e0] ss:$8 sps:$4 sm:$0xff]   ;;  %v4714_v0 = vld [vmem:[%s6376_s1 + $0x3f4] ss:$8 sps:$4 sm:$0xff]  }
  0xdd   :  { %3126 = vmatprep.subr.bf16.mxu0 %v4669_v1  ;;  %2619 = vmatprep.mubr.bf16.mxu1 %v3762_v2  ;;  %v4717_v1 = vld [vmem:[%s6376_s1 + $0x7f4] ss:$8 sps:$4 sm:$0xff]   ;;  %v3700_v2 = vcombine.high %v20_v56, %v28_v59 }
  0xde   :  { %3071 = vmatprep.mubr.bf16.mxu0 %v3770_v3  ;;  %v3708_v3 = vcombine.high %v24_v60, %v32_v61 }
  0xdf   :  { %2675 = vmatpush1.bf16.msra.mxu1 %v4664_v4  ;;  %v4712_v4 = vld [vmem:[%s6376_s1 + $0x3f0] ss:$8 sps:$4 sm:$0xff]  }
  0xe0   :  { %3127 = vmatpush1.bf16.msra.mxu0 %v4667_v5  ;;  %2676 = vmatprep.subr.bf16.mxu1 %v4672_v6  ;;  %v4715_v5 = vld [vmem:[%s6376_s1 + $0x7f0] ss:$8 sps:$4 sm:$0xff]  }
  0xe1   :  { %3128 = vmatprep.subr.bf16.mxu0 %v4675_v7  ;;  %v36_v6 = vld [vmem:[%s6377_s0 + $0x98] sm:$0xff] }
  0xe2   :  { %2620 = vmatmul.mubr.bf16.gmra.mrb[16].mxu1 %v3761_v9  ;;  %v44_v7 = vld [vmem:[%s6377_s0 + $0xd8] sm:$0xff] }
  0xe3   :  { %3072 = vmatmul.mubr.bf16.gmra.mrb[16].mxu0 %v3769_v10  ;;  %2677 = vmatpush1.bf16.msra.mxu1 %v4670_v14  ;;  %v48_v9 = vld [vmem:[%s6377_s0 + $0xf8] sm:$0xff]  ;;  %v3699_v10 = vcombine.low %v20_v56, %v28_v59  ;;  %v3716_v12 = vcombine.high %v36_v6, %v44_v7 }
  0xe4   :  { %3129 = vmatpush1.bf16.msra.mxu0 %v4673_v15  ;;  %2678 = vmatprep.subr.bf16.mxu1 %v4678_v16  ;;  %v3724_v13 = vcombine.high %v40_v8, %v48_v9  ;;  %v52_v14 = vld [vmem:[%s6377_s0 + $0x118] sm:$0xff] }
  0xe5   :  { %3130 = vmatprep.subr.bf16.mxu0 %v4681_v17  ;;  %2629 = vmatprep.mubr.bf16.mxu1 %v3778_v18  ;;  %v60_v15 = vld [vmem:[%s6377_s0 + $0x158] sm:$0xff]  ;;  %v3715_v18 = vcombine.low %v36_v6, %v44_v7 }
  0xe6   :  { %3081 = vmatprep.mubr.bf16.mxu0 %v3786_v19  ;;  %v56_v16 = vld [vmem:[%s6377_s0 + $0x138] sm:$0xff]  ;;  %v3723_v19 = vcombine.low %v40_v8, %v48_v9 }
  0xe7   :  { %2679 = vmatpush1.bf16.msra.mxu1 %v4676_v20  ;;  %v64_v17 = vld [vmem:[%s6377_s0 + $0x178] sm:$0xff]  ;;  %v3732_v20 = vcombine.high %v52_v14, %v60_v15 }
  0xe8   :  { %3131 = vmatpush1.bf16.msra.mxu0 %v4679_v21  ;;  %2680 = vmatprep.subr.bf16.mxu1 %v4684_v22  ;;  %v3740_v21 = vcombine.high %v56_v16, %v64_v17  ;;  %v68_v22 = vld [vmem:[%s6377_s0 + $0x198] sm:$0xff]  ;;  %v3739_v27 = vcombine.low %v56_v16, %v64_v17 }
  0xe9   :  { %3132 = vmatprep.subr.bf16.mxu0 %v4687_v23  ;;  %v76_v23 = vld [vmem:[%s6377_s0 + $0x1d8] sm:$0xff] }
  0xea   :  { %2630 = vmatmul.mubr.bf16.gmra.mrb[20].mxu1 %v3777_v25  ;;  %v80_v25 = vld [vmem:[%s6377_s0 + $0x1f8] sm:$0xff]  ;;  %v3748_v28 = vcombine.high %v68_v22, %v76_v23 }
  0xeb   :  { %3082 = vmatmul.mubr.bf16.gmra.mrb[20].mxu0 %v3785_v26  ;;  %2681 = vmatpush1.bf16.msra.mxu1 %v4682_v30  ;;  %v3731_v26 = vcombine.low %v52_v14, %v60_v15  ;;  %v3756_v29 = vcombine.high %v72_v24, %v80_v25  ;;  %v84_v30 = vld [vmem:[%s6377_s0 + $0x218] sm:$0xff] }
  0xec   :  { %3133 = vmatpush1.bf16.msra.mxu0 %v4685_v31  ;;  %2682 = vmatprep.subr.bf16.mxu1 %v4690_v32  ;;  %v92_v31 = vld [vmem:[%s6377_s0 + $0x258] sm:$0xff] }
  0xed   :  { %3134 = vmatprep.subr.bf16.mxu0 %v4693_v33  ;;  %2639 = vmatprep.mubr.bf16.mxu1 %v3794_v34  ;;  %v88_v32 = vld [vmem:[%s6377_s0 + $0x238] sm:$0xff]  ;;  %v3747_v34 = vcombine.low %v68_v22, %v76_v23 }
  0xee   :  { %3091 = vmatprep.mubr.bf16.mxu0 %v3802_v35  ;;  %v96_v33 = vld [vmem:[%s6377_s0 + $0x278] sm:$0xff]  ;;  %v3755_v35 = vcombine.low %v72_v24, %v80_v25 }
  0xef   :  { %2683 = vmatpush1.bf16.msra.mxu1 %v4688_v36  ;;  %v3764_v36 = vcombine.high %v84_v30, %v92_v31  ;;  %v3771_v43 = vcombine.low %v88_v32, %v96_v33  ;;  %v136_v56 = vld [vmem:[%s6377_s0 + $0x3b8] sm:$0xff] }
  0xf0   :  { %3135 = vmatpush1.bf16.msra.mxu0 %v4691_v37  ;;  %2684 = vmatprep.subr.bf16.mxu1 %v4696_v38  ;;  %v3772_v37 = vcombine.high %v88_v32, %v96_v33  ;;  %v100_v38 = vld [vmem:[%s6377_s0 + $0x298] sm:$0xff] }
  0xf1   :  { %3136 = vmatprep.subr.bf16.mxu0 %v4699_v39  ;;  %v108_v39 = vld [vmem:[%s6377_s0 + $0x2d8] sm:$0xff] }
  0xf2   :  { %2640 = vmatmul.mubr.bf16.gmra.mrb[24].mxu1 %v3793_v41  ;;  %v112_v41 = vld [vmem:[%s6377_s0 + $0x2f8] sm:$0xff]  ;;  %v3780_v44 = vcombine.high %v100_v38, %v108_v39 }
  0xf3   :  { %3092 = vmatmul.mubr.bf16.gmra.mrb[24].mxu0 %v3801_v42  ;;  %2685 = vmatpush1.bf16.msra.mxu1 %v4694_v46  ;;  %v3763_v42 = vcombine.low %v84_v30, %v92_v31  ;;  %v3788_v45 = vcombine.high %v104_v40, %v112_v41  ;;  %v116_v46 = vld [vmem:[%s6377_s0 + $0x318] sm:$0xff] }
  0xf4   :  { %3137 = vmatpush1.bf16.msra.mxu0 %v4697_v47  ;;  %2686 = vmatprep.subr.bf16.mxu1 %v4702_v48  ;;  %v124_v47 = vld [vmem:[%s6377_s0 + $0x358] sm:$0xff] }
  0xf5   :  { %3138 = vmatprep.subr.bf16.mxu0 %v4705_v49  ;;  %2649 = vmatprep.mubr.bf16.mxu1 %v3810_v50  ;;  %v120_v48 = vld [vmem:[%s6377_s0 + $0x338] sm:$0xff]  ;;  %v3779_v50 = vcombine.low %v100_v38, %v108_v39 }
  0xf6   :  { %3101 = vmatprep.mubr.bf16.mxu0 %v3818_v51  ;;  %v128_v49 = vld [vmem:[%s6377_s0 + $0x378] sm:$0xff]  ;;  %v3787_v51 = vcombine.low %v104_v40, %v112_v41 }
  0xf7   :  { %2687 = vmatpush1.bf16.msra.mxu1 %v4700_v52  ;;  %v3796_v52 = vcombine.high %v116_v46, %v124_v47  ;;  %v3803_v59 = vcombine.low %v120_v48, %v128_v49 }
  0xf8   :  { %3139 = vmatpush1.bf16.msra.mxu0 %v4703_v53  ;;  %2688 = vmatprep.subr.bf16.mxu1 %v4708_v54  ;;  %v3804_v53 = vcombine.high %v120_v48, %v128_v49  ;;  %v132_v54 = vld [vmem:[%s6377_s0 + $0x398] sm:$0xff] }
  0xf9   :  { %3140 = vmatprep.subr.bf16.mxu0 %v4711_v55  ;;  %v140_v55 = vld [vmem:[%s6377_s0 + $0x3d8] sm:$0xff] }
  0xfa   :  { %2650 = vmatmul.mubr.bf16.gmra.mrb[28].mxu1 %v3809_v57  ;;  %v144_v57 = vld [vmem:[%s6377_s0 + $0x3f8] sm:$0xff]  ;;  %v3812_v60 = vcombine.high %v132_v54, %v140_v55 }
  0xfb   :  { %3102 = vmatmul.mubr.bf16.gmra.mrb[28].mxu0 %v3817_v58  ;;  %2689 = vmatpush1.bf16.msra.mxu1 %v4706_v62  ;;  %v3795_v58 = vcombine.low %v116_v46, %v124_v47  ;;  %v3820_v61 = vcombine.high %v136_v56, %v144_v57  ;;  %v3811_v62 = vcombine.low %v132_v54, %v140_v55 }
  0xfc   :  { %3141 = vmatpush1.bf16.msra.mxu0 %v4709_v63  ;;  %2690 = vmatprep.subr.bf16.mxu1 %v4714_v0  ;;  %v3819_v63 = vcombine.low %v136_v56, %v144_v57 }
  0xfd   :  { %3142 = vmatprep.subr.bf16.mxu0 %v4717_v1  ;;  %2692 = vmatprep.mubr.bf16.mxu1 %v3700_v2 }
  0xfe   :  { %3144 = vmatprep.mubr.bf16.mxu0 %v3708_v3 }
  0xff   :  { %2691 = vmatpush1.bf16.msra.mxu1 %v4712_v4 }
 0x100   :  { %3143 = vmatpush1.bf16.msra.mxu0 %v4715_v5 }
 0x102   :  { %2693 = vmatmul.mubr.bf16.vlgmr.msra.gmra.mrb[0].mxu1 %v3699_v10 }
 0x103   :  { %3145 = vmatmul.mubr.bf16.vlgmr.msra.gmra.mrb[0].mxu0 %v3707_v11  ;;  %2702 = vmatprep.mubr.bf16.mxu1 %v3716_v12 }
 0x104   :  { %3154 = vmatprep.mubr.bf16.mxu0 %v3724_v13 }
 0x10a   :  { %2703 = vmatmul.mubr.bf16.gmra.mrb[4].mxu1 %v3715_v18 }
 0x10b   :  { %3155 = vmatmul.mubr.bf16.gmra.mrb[4].mxu0 %v3723_v19  ;;  %2712 = vmatprep.mubr.bf16.mxu1 %v3732_v20 }
 0x10c   :  { %3164 = vmatprep.mubr.bf16.mxu0 %v3740_v21 }
 0x112   :  { %2713 = vmatmul.mubr.bf16.gmra.mrb[8].mxu1 %v3731_v26 }
 0x113   :  { %3165 = vmatmul.mubr.bf16.gmra.mrb[8].mxu0 %v3739_v27  ;;  %2722 = vmatprep.mubr.bf16.mxu1 %v3748_v28 }
 0x114   :  { %3174 = vmatprep.mubr.bf16.mxu0 %v3756_v29 }
 0x11a   :  { %2723 = vmatmul.mubr.bf16.gmra.mrb[12].mxu1 %v3747_v34 }
 0x11b   :  { %3175 = vmatmul.mubr.bf16.gmra.mrb[12].mxu0 %v3755_v35  ;;  %2732 = vmatprep.mubr.bf16.mxu1 %v3764_v36 }
 0x11c   :  { %3184 = vmatprep.mubr.bf16.mxu0 %v3772_v37 }
 0x122   :  { %2733 = vmatmul.mubr.bf16.gmra.mrb[16].mxu1 %v3763_v42 }
 0x123   :  { %3185 = vmatmul.mubr.bf16.gmra.mrb[16].mxu0 %v3771_v43  ;;  %2742 = vmatprep.mubr.bf16.mxu1 %v3780_v44 }
 0x124   :  { %3194 = vmatprep.mubr.bf16.mxu0 %v3788_v45 }
 0x12a   :  { %2743 = vmatmul.mubr.bf16.gmra.mrb[20].mxu1 %v3779_v50 }
 0x12b   :  { %3195 = vmatmul.mubr.bf16.gmra.mrb[20].mxu0 %v3787_v51  ;;  %2752 = vmatprep.mubr.bf16.mxu1 %v3796_v52 }
 0x12c   :  { %3204 = vmatprep.mubr.bf16.mxu0 %v3804_v53 }
 0x132   :  { %2753 = vmatmul.mubr.bf16.gmra.mrb[24].mxu1 %v3795_v58 }
 0x133   :  { %3205 = vmatmul.mubr.bf16.gmra.mrb[24].mxu0 %v3803_v59  ;;  %2762 = vmatprep.mubr.bf16.mxu1 %v3812_v60 }
 0x134   :  { %3214 = vmatprep.mubr.bf16.mxu0 %v3820_v61 }
 0x13a   :  { %2763 = vmatmul.mubr.bf16.gmra.mrb[28].mxu1 %v3811_v62 }
 0x13b   :  { %3215 = vmatmul.mubr.bf16.gmra.mrb[28].mxu0 %v3819_v63 }
 0x1d5   :  { %v2694_v0 = vpop.f32.mrb[0].mxu1 }
 0x1d6   :  { %v3146_v1 = vpop.f32.mrb[0].mxu0  ;;  %v2696_v3 = vpop.f32.mrb[1].mxu1 }
 0x1d7   :  { %v5900_v2 = vadd.f32 %v3146_v1, %v2694_v0  ;;  %v3148_v4 = vpop.f32.mrb[1].mxu0  ;;  %v2698_v6 = vpop.f32.mrb[2].mxu1 }
 0x1d8   :  { %v5902_v5 = vadd.f32 %v3148_v4, %v2696_v3  ;;  %v3150_v7 = vpop.f32.mrb[2].mxu0  ;;  %v2700_v9 = vpop.f32.mrb[3].mxu1 }
 0x1d9   :  { %v5904_v8 = vadd.f32 %v3150_v7, %v2698_v6  ;;  %v3152_v10 = vpop.f32.mrb[3].mxu0  ;;  %v3269_v34 = vmul.f32 %v5900_v2, %v5900_v2 }
 0x1da   :  { %v5906_v11 = vadd.f32 %v3152_v10, %v2700_v9  ;;  %v3270_v40 = vmul.f32 %v5902_v5, %v5902_v5 }
 0x1db   :  { %v3271_v26 = vmul.f32 %v5904_v8, %v5904_v8  ;;  %v3225_v35 = vadd.f32 %v5904_v8, %v5900_v2 }
 0x1dc   :  { %v3272_v30 = vmul.f32 %v5906_v11, %v5906_v11  ;;  %v3246_v41 = vadd.f32 %v5906_v11, %v5902_v5 }
 0x1dd   :  { %v2704_v12 = vpop.f32.mrb[4].mxu1  ;;  %v3301_v44 = vadd.f32 %v3271_v26, %v3269_v34 }
 0x1de   :  { %v3156_v13 = vpop.f32.mrb[4].mxu0  ;;  %v2706_v15 = vpop.f32.mrb[5].mxu1  ;;  %v3322_v46 = vadd.f32 %v3272_v30, %v3270_v40 }
 0x1df   :  { %v5908_v14 = vadd.f32 %v3156_v13, %v2704_v12  ;;  %v3158_v16 = vpop.f32.mrb[5].mxu0  ;;  %v2708_v18 = vpop.f32.mrb[6].mxu1 }
 0x1e0   :  { %v5910_v17 = vadd.f32 %v3158_v16, %v2706_v15  ;;  %v3160_v19 = vpop.f32.mrb[6].mxu0  ;;  %v2710_v21 = vpop.f32.mrb[7].mxu1 }
 0x1e1   :  { %v5912_v20 = vadd.f32 %v3160_v19, %v2708_v18  ;;  %v3162_v22 = vpop.f32.mrb[7].mxu0  ;;  %v3273_v36 = vmul.f32 %v5908_v14, %v5908_v14  ;;  %v3226_v45 = vadd.f32 %v5908_v14, %v3225_v35 }
 0x1e2   :  { %v5914_v23 = vadd.f32 %v3162_v22, %v2710_v21  ;;  %v3274_v42 = vmul.f32 %v5910_v17, %v5910_v17  ;;  %v3247_v47 = vadd.f32 %v5910_v17, %v3246_v41 }
 0x1e3   :  { %v3302_v48 = vadd.f32 %v3301_v44, %v3273_v36  ;;  %v3275_v49 = vmul.f32 %v5912_v20, %v5912_v20  ;;  %v3227_v54 = vadd.f32 %v5912_v20, %v3226_v45 }
 0x1e4   :  { %v3323_v50 = vadd.f32 %v3322_v46, %v3274_v42  ;;  %v3276_v51 = vmul.f32 %v5914_v23, %v5914_v23  ;;  %v3248_v59 = vadd.f32 %v5914_v23, %v3247_v47 }
 0x1e5   :  { %v2714_v24 = vpop.f32.mrb[8].mxu1  ;;  %v3303_v0 = vadd.f32 %v3302_v48, %v3275_v49 }
 0x1e6   :  { %v3166_v25 = vpop.f32.mrb[8].mxu0  ;;  %v2716_v28 = vpop.f32.mrb[9].mxu1  ;;  %v3324_v7 = vadd.f32 %v3323_v50, %v3276_v51 }
 0x1e7   :  { %v5918_v27 = vadd.f32 %v3166_v25, %v2714_v24  ;;  %v3168_v29 = vpop.f32.mrb[9].mxu0  ;;  %v2718_v32 = vpop.f32.mrb[10].mxu1 }
 0x1e8   :  { %v5922_v31 = vadd.f32 %v3168_v29, %v2716_v28  ;;  %v3170_v33 = vpop.f32.mrb[10].mxu0  ;;  %v2720_v38 = vpop.f32.mrb[11].mxu1 }
 0x1e9   :  { %v5930_v37 = vadd.f32 %v3170_v33, %v2718_v32  ;;  %v3172_v39 = vpop.f32.mrb[11].mxu0  ;;  %v3277_v55 = vmul.f32 %v5918_v27, %v5918_v27  ;;  %v3228_v1 = vadd.f32 %v5918_v27, %v3227_v54 }
 0x1ea   :  { %v5938_v43 = vadd.f32 %v3172_v39, %v2720_v38  ;;  %v3278_v60 = vmul.f32 %v5922_v31, %v5922_v31  ;;  %v3249_v9 = vadd.f32 %v5922_v31, %v3248_v59 }
 0x1eb   :  { %v3304_v12 = vadd.f32 %v3303_v0, %v3277_v55  ;;  %v3279_v13 = vmul.f32 %v5930_v37, %v5930_v37  ;;  %v3229_v18 = vadd.f32 %v5930_v37, %v3228_v1 }
 0x1ec   :  { %v3325_v15 = vadd.f32 %v3324_v7, %v3278_v60  ;;  %v3280_v16 = vmul.f32 %v5938_v43, %v5938_v43  ;;  %v3250_v21 = vadd.f32 %v5938_v43, %v3249_v9 }
 0x1ed   :  { %v2724_v52 = vpop.f32.mrb[12].mxu1  ;;  %v3305_v26 = vadd.f32 %v3304_v12, %v3279_v13 }
 0x1ee   :  { %v3176_v53 = vpop.f32.mrb[12].mxu0  ;;  %v2726_v57 = vpop.f32.mrb[13].mxu1  ;;  %v3326_v33 = vadd.f32 %v3325_v15, %v3280_v16 }
 0x1ef   :  { %v5949_v56 = vadd.f32 %v3176_v53, %v2724_v52  ;;  %v3178_v58 = vpop.f32.mrb[13].mxu0  ;;  %v2728_v62 = vpop.f32.mrb[14].mxu1 }
 0x1f0   :  { %v5954_v61 = vadd.f32 %v3178_v58, %v2726_v57  ;;  %v3180_v63 = vpop.f32.mrb[14].mxu0  ;;  %v2730_v4 = vpop.f32.mrb[15].mxu1 }
 0x1f1   :  { %v5957_v3 = vadd.f32 %v3180_v63, %v2728_v62  ;;  %v3182_v6 = vpop.f32.mrb[15].mxu0  ;;  %v3281_v19 = vmul.f32 %v5949_v56, %v5949_v56  ;;  %v3230_v28 = vadd.f32 %v5949_v56, %v3229_v18 }
 0x1f2   :  { %v5960_v10 = vadd.f32 %v3182_v6, %v2730_v4  ;;  %v3282_v22 = vmul.f32 %v5954_v61, %v5954_v61  ;;  %v3251_v34 = vadd.f32 %v5954_v61, %v3250_v21 }
 0x1f3   :  { %v3306_v39 = vadd.f32 %v3305_v26, %v3281_v19  ;;  %v3283_v40 = vmul.f32 %v5957_v3, %v5957_v3  ;;  %v3231_v48 = vadd.f32 %v5957_v3, %v3230_v28 }
 0x1f4   :  { %v3327_v45 = vadd.f32 %v3326_v33, %v3282_v22  ;;  %v3284_v46 = vmul.f32 %v5960_v10, %v5960_v10  ;;  %v3252_v50 = vadd.f32 %v5960_v10, %v3251_v34 }
 0x1f5   :  { %v2734_v24 = vpop.f32.mrb[16].mxu1  ;;  %v3307_v52 = vadd.f32 %v3306_v39, %v3283_v40 }
 0x1f6   :  { %v3186_v25 = vpop.f32.mrb[16].mxu0  ;;  %v2736_v30 = vpop.f32.mrb[17].mxu1  ;;  %v3328_v54 = vadd.f32 %v3327_v45, %v3284_v46 }
 0x1f7   :  { %v5973_v29 = vadd.f32 %v3186_v25, %v2734_v24  ;;  %v3188_v32 = vpop.f32.mrb[17].mxu0  ;;  %v2738_v36 = vpop.f32.mrb[18].mxu1 }
 0x1f8   :  { %v5976_v35 = vadd.f32 %v3188_v32, %v2736_v30  ;;  %v3190_v38 = vpop.f32.mrb[18].mxu0  ;;  %v2740_v42 = vpop.f32.mrb[19].mxu1 }
 0x1f9   :  { %v5980_v41 = vadd.f32 %v3190_v38, %v2738_v36  ;;  %v3192_v44 = vpop.f32.mrb[19].mxu0  ;;  %v3285_v49 = vmul.f32 %v5973_v29, %v5973_v29  ;;  %v3232_v53 = vadd.f32 %v5973_v29, %v3231_v48 }
 0x1fa   :  { %v5984_v47 = vadd.f32 %v3192_v44, %v2740_v42  ;;  %v3286_v51 = vmul.f32 %v5976_v35, %v5976_v35  ;;  %v3253_v55 = vadd.f32 %v5976_v35, %v3252_v50 }
 0x1fb   :  { %v3308_v59 = vadd.f32 %v3307_v52, %v3285_v49  ;;  %v3287_v60 = vmul.f32 %v5980_v41, %v5980_v41  ;;  %v3233_v12 = vadd.f32 %v5980_v41, %v3232_v53 }
 0x1fc   :  { %v3329_v1 = vadd.f32 %v3328_v54, %v3286_v51  ;;  %v3288_v4 = vmul.f32 %v5984_v47, %v5984_v47  ;;  %v3254_v19 = vadd.f32 %v5984_v47, %v3253_v55 }
 0x1fd   :  { %v2744_v57 = vpop.f32.mrb[20].mxu1  ;;  %v3309_v24 = vadd.f32 %v3308_v59, %v3287_v60 }
 0x1fe   :  { %v3196_v58 = vpop.f32.mrb[20].mxu0  ;;  %v2746_v63 = vpop.f32.mrb[21].mxu1  ;;  %v3330_v26 = vadd.f32 %v3329_v1, %v3288_v4 }
 0x1ff   :  { %v5996_v62 = vadd.f32 %v3196_v58, %v2744_v57  ;;  %v3198_v0 = vpop.f32.mrb[21].mxu0  ;;  %v2748_v7 = vpop.f32.mrb[22].mxu1 }
 0x200   :  { %v6000_v6 = vadd.f32 %v3198_v0, %v2746_v63  ;;  %v3200_v9 = vpop.f32.mrb[22].mxu0  ;;  %v2750_v16 = vpop.f32.mrb[23].mxu1 }
 0x201   :  { %v3289_v13 = vmul.f32 %v5996_v62, %v5996_v62  ;;  %v6005_v15 = vadd.f32 %v3200_v9, %v2748_v7  ;;  %v3202_v18 = vpop.f32.mrb[23].mxu0  ;;  %v3234_v25 = vadd.f32 %v5996_v62, %v3233_v12 }
 0x202   :  { %v3290_v21 = vmul.f32 %v6000_v6, %v6000_v6  ;;  %v6010_v22 = vadd.f32 %v3202_v18, %v2750_v16  ;;  %v3255_v28 = vadd.f32 %v6000_v6, %v3254_v19 }
 0x203   :  { %v3310_v30 = vadd.f32 %v3309_v24, %v3289_v13  ;;  %v3291_v32 = vmul.f32 %v6005_v15, %v6005_v15  ;;  %v3235_v39 = vadd.f32 %v6005_v15, %v3234_v25 }
 0x204   :  { %v3331_v33 = vadd.f32 %v3330_v26, %v3290_v21  ;;  %v3292_v34 = vmul.f32 %v6010_v22, %v6010_v22  ;;  %v3256_v45 = vadd.f32 %v6010_v22, %v3255_v28 }
 0x205   :  { %v2754_v36 = vpop.f32.mrb[24].mxu1  ;;  %v3311_v50 = vadd.f32 %v3310_v30, %v3291_v32 }
 0x206   :  { %v3206_v38 = vpop.f32.mrb[24].mxu0  ;;  %v2756_v42 = vpop.f32.mrb[25].mxu1  ;;  %v3332_v57 = vadd.f32 %v3331_v33, %v3292_v34 }
 0x207   :  { %v6019_v40 = vadd.f32 %v3206_v38, %v2754_v36  ;;  %v3208_v44 = vpop.f32.mrb[25].mxu0  ;;  %v2758_v48 = vpop.f32.mrb[26].mxu1 }
 0x208   :  { %v6022_v46 = vadd.f32 %v3208_v44, %v2756_v42  ;;  %v3210_v49 = vpop.f32.mrb[26].mxu0  ;;  %v2760_v54 = vpop.f32.mrb[27].mxu1 }
 0x209   :  { %v3236_v51 = vadd.f32 %v6019_v40, %v3235_v39  ;;  %v3293_v52 = vmul.f32 %v6019_v40, %v6019_v40  ;;  %v6027_v53 = vadd.f32 %v3210_v49, %v2758_v48  ;;  %v3212_v55 = vpop.f32.mrb[27].mxu0 }
 0x20a   :  { %v3257_v58 = vadd.f32 %v6022_v46, %v3256_v45  ;;  %v3294_v59 = vmul.f32 %v6022_v46, %v6022_v46  ;;  %v6032_v60 = vadd.f32 %v3212_v55, %v2760_v54 }
 0x20b   :  { %v3312_v63 = vadd.f32 %v3311_v50, %v3293_v52  ;;  %v3237_v0 = vadd.f32 %v6027_v53, %v3236_v51  ;;  %v3295_v1 = vmul.f32 %v6027_v53, %v6027_v53 }
 0x20c   :  { %v3333_v4 = vadd.f32 %v3332_v57, %v3294_v59  ;;  %v3258_v7 = vadd.f32 %v6032_v60, %v3257_v58  ;;  %v3296_v9 = vmul.f32 %v6032_v60, %v6032_v60 }
 0x20d   :  { %v3313_v12 = vadd.f32 %v3312_v63, %v3295_v1  ;;  %v2764_v16 = vpop.f32.mrb[28].mxu1 }
 0x20e   :  { %v3334_v13 = vadd.f32 %v3333_v4, %v3296_v9  ;;  %v3216_v18 = vpop.f32.mrb[28].mxu0  ;;  %v2766_v21 = vpop.f32.mrb[29].mxu1 }
 0x20f   :  { %v6040_v19 = vadd.f32 %v3216_v18, %v2764_v16  ;;  %v3218_v24 = vpop.f32.mrb[29].mxu0  ;;  %v2768_v26 = vpop.f32.mrb[30].mxu1 }
 0x210   :  { %v6042_v25 = vadd.f32 %v3218_v24, %v2766_v21  ;;  %v3220_v28 = vpop.f32.mrb[30].mxu0  ;;  %v2770_v34 = vpop.f32.mrb[31].mxu1 }
 0x211   :  { %v3238_v30 = vadd.f32 %v6040_v19, %v3237_v0  ;;  %v3297_v32 = vmul.f32 %v6040_v19, %v6040_v19  ;;  %v6047_v33 = vadd.f32 %v3220_v28, %v2768_v26  ;;  %v3222_v36 = vpop.f32.mrb[31].mxu0 }
 0x212   :  { %v3259_v38 = vadd.f32 %v6042_v25, %v3258_v7  ;;  %v3298_v39 = vmul.f32 %v6042_v25, %v6042_v25  ;;  %v6052_v42 = vadd.f32 %v3222_v36, %v2770_v34 }
 0x213   :  { %v3314_v44 = vadd.f32 %v3313_v12, %v3297_v32  ;;  %v3239_v45 = vadd.f32 %v6047_v33, %v3238_v30  ;;  %v3299_v48 = vmul.f32 %v6047_v33, %v6047_v33 }
 0x214   :  { %v3335_v49 = vadd.f32 %v3334_v13, %v3298_v39  ;;  %v3260_v50 = vadd.f32 %v6052_v42, %v3259_v38  ;;  %v3300_v51 = vmul.f32 %v6052_v42, %v6052_v42 }
 0x215   :  { %v3240_v52 = vrot.slane %v3239_v45, 4  ;;  %v3315_v54 = vadd.f32 %v3314_v44, %v3299_v48 }
 0x216   :  { %v3261_v55 = vrot.slane %v3260_v50, 4  ;;  %v3336_v57 = vadd.f32 %v3335_v49, %v3300_v51 }
 0x217   :  { %v3241_v58 = vadd.f32 %v3240_v52, %v3239_v45  ;;  %v3316_v59 = vrot.slane %v3315_v54, 4 }
 0x218   :  { %v3262_v63 = vadd.f32 %v3261_v55, %v3260_v50  ;;  %v3337_v0 = vrot.slane %v3336_v57, 4 }
 0x219   :  { %v3242_v1 = vrot.slane %v3241_v58, 2  ;;  %v3317_v4 = vadd.f32 %v3316_v59, %v3315_v54 }
 0x21a   :  { %v3263_v7 = vrot.slane %v3262_v63, 2  ;;  %v3338_v9 = vadd.f32 %v3337_v0, %v3336_v57 }
 0x21b   :  { %v3243_v12 = vadd.f32 %v3242_v1, %v3241_v58  ;;  %v3318_v16 = vrot.slane %v3317_v4, 2  ;;  %v4722_v58 = vmov 1966171168  }
 0x21c   :  { %v3264_v13 = vadd.f32 %v3263_v7, %v3262_v63  ;;  %v3339_v18 = vrot.slane %v3338_v9, 2  ;;  %v3358_v59 = vunpack.c.l.s4 %v4722_v58  ;;  %v3360_v63 = vlaneseq }
 0x21d   :  { %v3244_v21 = vrot.slane %v3243_v12, 1  ;;  %v3319_v24 = vadd.f32 %v3318_v16, %v3317_v4 }
 0x21e   :  { %v3265_v26 = vrot.slane %v3264_v13, 1  ;;  %v3340_v28 = vadd.f32 %v3339_v18, %v3338_v9  ;;  %v3359_v0 = vunpack.c.0.s8 %v3358_v59  ;;  %v3361_v1 = vshrl.u32 %v3360_v63, 7 }
 0x21f   :  { %v3245_v30 = vadd.f32 %v3244_v21, %v3243_v12  ;;  %v3320_v32 = vrot.slane %v3319_v24, 1 }
 0x220   :  { %v3266_v34 = vadd.f32 %v3265_v26, %v3264_v13  ;;  %v3341_v36 = vrot.slane %v3340_v28, 1  ;;  %v3362_v7 = vsub.s32 %v3359_v0, %v3361_v1  ;;  %v3349_v13 = vld [vmem:[%s6378_s2] sm:$0x3]  ;;  %v3377_v21 = vsub.s32 0, %v3361_v1 }
 0x221   :  { %v3267_v38 = vmul.f32 0.0078125, %v3245_v30  ;;  %v3321_v39 = vadd.f32 %v3320_v32, %v3319_v24  ;;  %v3381_v24 = vsub.s32 1, %v3361_v1 }
 0x222   :  { %v3268_v44 = vmul.f32 0.0078125, %v3266_v34  ;;  %v3342_v45 = vadd.f32 %v3341_v36, %v3340_v28 }
 0x223   :  { %v3343_v48 = vmul.f32 0.0078125, %v3321_v39  ;;  %v3345_v49 = vmul.f32 %v3267_v38, %v3267_v38 }
 0x224   :  { %v3344_v50 = vmul.f32 0.0078125, %v3342_v45  ;;  %v3346_v51 = vmul.f32 %v3268_v44, %v3268_v44 }
 0x225   :  { %v3347_v52 = vsub.f32 %v3343_v48, %v3345_v49 }
 0x226   :  { %v3348_v54 = vsub.f32 %v3344_v50, %v3346_v51 }
 0x227   :  { %v3350_v55 = vadd.f32 1e-05, %v3347_v52 }
 0x228   :  { %v3351_v57 = vadd.f32 1e-05, %v3348_v54 }
 0x229   :  { %4718 = vrsqrt.f32 %v3350_v55 }
 0x22a   :  { %4720 = vrsqrt.f32 %v3351_v57 }
 0x233   :  { %v4719_v4 = vpop.eup %4718 }
 0x234   :  { %v4721_v9 = vpop.eup %4720 }
 0x235   :  { %v3356_v12 = vcombine.low %v4719_v4, %v4721_v9 }
 0x237   :  { %v3363_v16 = vrot.slane %v3356_v12, %v3362_v7 }
 0x239   :  { %v3370_v18 = vrot.slane %v3363_v16, %v3362_v7 }
 0x23b   :  { %v3372_v26 = vmul.f32 %v3370_v18, %v3349_v13 }
 0x23d   :  { %v3378_v28 = vrot.slane %v3372_v26, %v3377_v21  ;;  %v3382_v30 = vrot.slane %v3372_v26, %v3381_v24 }
 0x23f   :  { %v3385_v32 = vmul.f32 %v3378_v28, %v3267_v38  ;;  %v3386_v34 = vmul.f32 %v3382_v30, %v3268_v44  ;;  %v3406_v39 = vmul.f32 %v5900_v2, %v3378_v28  ;;  %v3407_v45 = vmul.f32 %v5902_v5, %v3382_v30  ;;  %v3373_v38 = vld [vmem:[%s6379_s3] sm:$0x3] }
 0x240   :  { %v3408_v48 = vmul.f32 %v5904_v8, %v3378_v28  ;;  %v3409_v49 = vmul.f32 %v5906_v11, %v3382_v30  ;;  %v3410_v50 = vmul.f32 %v5908_v14, %v3378_v28  ;;  %v3411_v52 = vmul.f32 %v5910_v17, %v3382_v30 }
 0x241   :  { %v3389_v36 = vcombine.low %v3385_v32, %v3386_v34  ;;  %v3412_v54 = vmul.f32 %v5912_v20, %v3378_v28  ;;  %v3413_v55 = vmul.f32 %v5914_v23, %v3382_v30  ;;  %v3414_v2 = vmul.f32 %v5918_v27, %v3378_v28 }
 0x242   :  { %v3415_v5 = vmul.f32 %v5922_v31, %v3382_v30  ;;  %v3416_v8 = vmul.f32 %v5930_v37, %v3378_v28  ;;  %v3417_v11 = vmul.f32 %v5938_v43, %v3382_v30  ;;  %v3418_v44 = vmul.f32 %v5949_v56, %v3378_v28 }
 0x243   :  { %v3396_v51 = vrot.slane %v3389_v36, %v3362_v7  ;;  %v3419_v17 = vmul.f32 %v5954_v61, %v3382_v30  ;;  %v3428_v20 = vmul.f32 %v6005_v15, %v3378_v28  ;;  %v3429_v23 = vmul.f32 %v6010_v22, %v3382_v30 }
 0x244   :  { %v3430_v57 = vmul.f32 %v6019_v40, %v3378_v28  ;;  %v3431_v58 = vmul.f32 %v6022_v46, %v3382_v30  ;;  %v3432_v27 = vmul.f32 %v6027_v53, %v3378_v28  ;;  %v3433_v37 = vmul.f32 %v6032_v60, %v3382_v30 }
 0x245   :  { %v3403_v14 = vrot.slane %v3396_v51, %v3362_v7  ;;  %v3434_v43 = vmul.f32 %v6040_v19, %v3378_v28  ;;  %v3435_v59 = vmul.f32 %v6042_v25, %v3382_v30  ;;  %v3420_v56 = vmul.f32 %v5957_v3, %v3378_v28 }
 0x246   :  { %v3421_v61 = vmul.f32 %v5960_v10, %v3382_v30  ;;  %v3436_v15 = vmul.f32 %v6047_v33, %v3378_v28  ;;  %v3437_v22 = vmul.f32 %v6052_v42, %v3382_v30  ;;  %v3422_v40 = vmul.f32 %v5973_v29, %v3378_v28 }
 0x247   :  { %v3405_v31 = vsub.f32 %v3373_v38, %v3403_v14  ;;  %v3423_v46 = vmul.f32 %v5976_v35, %v3382_v30  ;;  %v3424_v60 = vmul.f32 %v5980_v41, %v3378_v28  ;;  %v3425_v19 = vmul.f32 %v5984_v47, %v3382_v30 }
 0x248   :  { %v3426_v25 = vmul.f32 %v5996_v62, %v3378_v28  ;;  %v3427_v3 = vmul.f32 %v6000_v6, %v3382_v30 }
 0x249   :  { %v3442_v53 = vrot.slane %v3405_v31, %v3377_v21  ;;  %v3446_v63 = vrot.slane %v3405_v31, %v3381_v24 }
 0x24b   :  { %v6098_v0 = vadd.f32 %v3442_v53, %v3406_v39  ;;  %v6100_v10 = vadd.f32 %v3446_v63, %v3407_v45  ;;  %v6102_v33 = vadd.f32 %v3442_v53, %v3408_v48  ;;  %v6104_v42 = vadd.f32 %v3446_v63, %v3409_v49 }
 0x24c   :  { %v6106_v29 = vadd.f32 %v3442_v53, %v3410_v50  ;;  %v6108_v35 = vadd.f32 %v3446_v63, %v3411_v52  ;;  %v6110_v1 = vadd.f32 %v3442_v53, %v3412_v54  ;;  %v6112_v41 = vadd.f32 %v3446_v63, %v3413_v55 }
 0x24d   :  { %v6114_v47 = vadd.f32 %v3442_v53, %v3414_v2  ;;  %v6116_v62 = vadd.f32 %v3446_v63, %v3415_v5  ;;  %v6118_v6 = vadd.f32 %v3442_v53, %v3416_v8  ;;  %v6120_v4 = vadd.f32 %v3446_v63, %v3417_v11 }
 0x24e   :  { %v6122_v7 = vadd.f32 %v3442_v53, %v3418_v44  ;;  %v6124_v9 = vadd.f32 %v3446_v63, %v3419_v17  ;;  %v6126_v12 = vadd.f32 %v3442_v53, %v3420_v56  ;;  %v6128_v16 = vadd.f32 %v3446_v63, %v3421_v61 }
 0x24f   :  { %v6130_v13 = vadd.f32 %v3442_v53, %v3422_v40  ;;  %v6132_v18 = vadd.f32 %v3446_v63, %v3423_v46  ;;  %v6134_v21 = vadd.f32 %v3442_v53, %v3424_v60  ;;  %v6136_v24 = vadd.f32 %v3446_v63, %v3425_v19 }
 0x250   :  { %v6138_v26 = vadd.f32 %v3442_v53, %v3426_v25  ;;  %v6140_v28 = vadd.f32 %v3446_v63, %v3427_v3  ;;  %v6142_v30 = vadd.f32 %v3442_v53, %v3428_v20  ;;  %v6144_v32 = vadd.f32 %v3446_v63, %v3429_v23 }
 0x251   :  { %v6146_v34 = vadd.f32 %v3442_v53, %v3430_v57  ;;  %v6148_v36 = vadd.f32 %v3446_v63, %v3431_v58  ;;  %v6150_v39 = vadd.f32 %v3442_v53, %v3432_v27  ;;  %v6152_v45 = vadd.f32 %v3446_v63, %v3433_v37 }
 0x252   :  { %v6154_v48 = vadd.f32 %v3442_v53, %v3434_v43  ;;  %v6156_v49 = vadd.f32 %v3446_v63, %v3435_v59  ;;  %v6158_v50 = vadd.f32 %v3442_v53, %v3436_v15  ;;  %v6160_v51 = vadd.f32 %v3446_v63, %v3437_v22 }
 0x253   :  { %vm3481_vm0 = vcmp.ge.f32.partialorder %v6098_v0, 0.0  ;;  %vm3482_vm1 = vcmp.ge.f32.partialorder %v6100_v10, 0.0  ;;  %vm3483_vm2 = vcmp.ge.f32.partialorder %v6102_v33, 0.0  ;;  %vm3484_vm3 = vcmp.ge.f32.partialorder %v6104_v42, 0.0 }
 0x254   :  { %vm3485_vm4 = vcmp.ge.f32.partialorder %v6106_v29, 0.0  ;;  %vm3486_vm5 = vcmp.ge.f32.partialorder %v6108_v35, 0.0  ;;  %vm3487_vm6 = vcmp.ge.f32.partialorder %v6110_v1, 0.0  ;;  %vm3488_vm7 = vcmp.ge.f32.partialorder %v6112_v41, 0.0 }
 0x255   :  { %vm3489_vm8 = vcmp.ge.f32.partialorder %v6114_v47, 0.0  ;;  %v3513_v52 = vmul.f32 0.2, %v6098_v0  ;;  %v3514_v54 = vmul.f32 0.2, %v6100_v10  ;;  %vm3496_vm15 = vcmp.ge.f32.partialorder %v6128_v16, 0.0 }
 0x256   :  { %v3515_v55 = vmul.f32 0.2, %v6102_v33  ;;  %vm3497_vm9 = vcmp.ge.f32.partialorder %v6130_v13, 0.0  ;;  %v3516_v38 = vmul.f32 0.2, %v6104_v42  ;;  %vm3502_vm14 = vcmp.ge.f32.partialorder %v6140_v28, 0.0 }
 0x257   :  { %v3517_v2 = vmul.f32 0.2, %v6106_v29  ;;  %v3518_v5 = vmul.f32 0.2, %v6108_v35  ;;  %v3519_v8 = vmul.f32 0.2, %v6110_v1  ;;  %v6196_v44 = vsel %vm3481_vm0, %v6098_v0, %v3513_v52 }
 0x258   :  { %v3520_v11 = vmul.f32 0.2, %v6112_v41  ;;  %v3521_v14 = vmul.f32 0.2, %v6114_v47  ;;  %vm3506_vm11 = vcmp.ge.f32.partialorder %v6148_v36, 0.0  ;;  %v6208_v57 = vsel %vm3482_vm1, %v6100_v10, %v3514_v54 }
 0x259   :  { %v3522_v17 = vmul.f32 0.2, %v6116_v62  ;;  %v3523_v20 = vmul.f32 0.2, %v6118_v6  ;;  %v3524_v23 = vmul.f32 0.2, %v6120_v4  ;;  %v3547_v37 = vsel %vm3483_vm2, %v6102_v33, %v3515_v55 }
 0x25a   :  { %vm3508_vm10 = vcmp.ge.f32.partialorder %v6152_v45, 0.0  ;;  %vm3509_vm13 = vcmp.ge.f32.partialorder %v6154_v48, 0.0  ;;  %vm3510_vm12 = vcmp.ge.f32.partialorder %v6156_v49, 0.0  ;;  %v3525_v58 = vmul.f32 0.2, %v6122_v7 }
 0x25b   :  { %v3526_v27 = vmul.f32 0.2, %v6124_v9  ;;  %v3527_v31 = vmul.f32 0.2, %v6126_v12  ;;  %vm3511_vm1 = vcmp.ge.f32.partialorder %v6158_v50, 0.0  ;;  %vm3512_vm0 = vcmp.ge.f32.partialorder %v6160_v51, 0.0 }
 0x25c   :  { %v3528_v43 = vmul.f32 0.2, %v6128_v16  ;;  %v3529_v59 = vmul.f32 0.2, %v6130_v13  ;;  %v3530_v56 = vmul.f32 0.2, %v6132_v18  ;;  %v3548_v61 = vsel %vm3484_vm3, %v6104_v42, %v3516_v38 }
 0x25d   :  { %v3531_v15 = vmul.f32 0.2, %v6134_v21  ;;  %v3532_v22 = vmul.f32 0.2, %v6136_v24  ;;  %v3533_v40 = vmul.f32 0.2, %v6138_v26  ;;  %v3549_v46 = vsel %vm3485_vm4, %v6106_v29, %v3517_v2 }
 0x25e   :  { %v3534_v53 = vmul.f32 0.2, %v6140_v28  ;;  %v3535_v63 = vmul.f32 0.2, %v6142_v30  ;;  %v3536_v60 = vmul.f32 0.2, %v6144_v32  ;;  %v3550_v19 = vsel %vm3486_vm5, %v6108_v35, %v3518_v5 }
 0x25f   :  { %v3537_v25 = vmul.f32 0.2, %v6146_v34  ;;  %v3538_v3 = vmul.f32 0.2, %v6148_v36  ;;  %v3539_v0 = vmul.f32 0.2, %v6150_v39  ;;  %v3551_v10 = vsel %vm3487_vm6, %v6110_v1, %v3519_v8 }
 0x260   :  { %v3540_v33 = vmul.f32 0.2, %v6152_v45  ;;  %v3541_v42 = vmul.f32 0.2, %v6154_v48  ;;  %v3542_v29 = vmul.f32 0.2, %v6156_v49  ;;  %v3552_v35 = vsel %vm3488_vm7, %v6112_v41, %v3520_v11 }
 0x261   :  { %v3543_v52 = vmul.f32 0.2, %v6158_v50  ;;  %v3544_v54 = vmul.f32 0.2, %v6160_v51  ;;  %v3553_v55 = vsel %vm3489_vm8, %v6114_v47, %v3521_v14  ;;  %vm6381_vm2 = vcmp.ge.f32.partialorder %v6116_v62, 0.0 }
 0x262   :  { %v3554_v1 = vsel %vm6381_vm2, %v6116_v62, %v3522_v17  ;;  %vm6382_vm3 = vcmp.ge.f32.partialorder %v6118_v6, 0.0  ;;  %vm6383_vm4 = vcmp.ge.f32.partialorder %v6120_v4, 0.0  ;;  %vm6384_vm5 = vcmp.ge.f32.partialorder %v6122_v7, 0.0 }
 0x263   :  { %v3555_v38 = vsel %vm6382_vm3, %v6118_v6, %v3523_v20  ;;  %v3556_v41 = vsel %vm6383_vm4, %v6120_v4, %v3524_v23  ;;  %v3557_v2 = vsel %vm6384_vm5, %v6122_v7, %v3525_v58  ;;  %vm6385_vm6 = vcmp.ge.f32.partialorder %v6124_v9, 0.0 }
 0x264   :  { %v3558_v47 = vsel %vm6385_vm6, %v6124_v9, %v3526_v27  ;;  %vm6386_vm7 = vcmp.ge.f32.partialorder %v6126_v12, 0.0  ;;  %v3560_v6 = vsel %vm3496_vm15, %v6128_v16, %v3528_v43  ;;  %v3561_v4 = vsel %vm3497_vm9, %v6130_v13, %v3529_v59 }
 0x265   :  { %v3559_v62 = vsel %vm6386_vm7, %v6126_v12, %v3527_v31  ;;  %vm6387_vm8 = vcmp.ge.f32.partialorder %v6132_v18, 0.0  ;;  %vm6388_vm2 = vcmp.ge.f32.partialorder %v6134_v21, 0.0  ;;  %vm6389_vm3 = vcmp.ge.f32.partialorder %v6136_v24, 0.0 }
 0x266   :  { %v3562_v7 = vsel %vm6387_vm8, %v6132_v18, %v3530_v56  ;;  %v3563_v9 = vsel %vm6388_vm2, %v6134_v21, %v3531_v15  ;;  %v3564_v12 = vsel %vm6389_vm3, %v6136_v24, %v3532_v22  ;;  %vm6390_vm4 = vcmp.ge.f32.partialorder %v6138_v26, 0.0 }
 0x267   :  { %v3565_v16 = vsel %vm6390_vm4, %v6138_v26, %v3533_v40  ;;  %v3566_v13 = vsel %vm3502_vm14, %v6140_v28, %v3534_v53  ;;  %vm6391_vm9 = vcmp.ge.f32.partialorder %v6142_v30, 0.0  ;;  %vm6392_vm15 = vcmp.ge.f32.partialorder %v6144_v32, 0.0 }
 0x268   :  { %v3567_v18 = vsel %vm6391_vm9, %v6142_v30, %v3535_v63  ;;  %v3568_v21 = vsel %vm6392_vm15, %v6144_v32, %v3536_v60  ;;  %vm6393_vm5 = vcmp.ge.f32.partialorder %v6146_v34, 0.0  ;;  %v3570_v26 = vsel %vm3506_vm11, %v6148_v36, %v3538_v3 }
 0x269   :  { %v3569_v24 = vsel %vm6393_vm5, %v6146_v34, %v3537_v25  ;;  %vm6394_vm6 = vcmp.ge.f32.partialorder %v6150_v39, 0.0  ;;  %v3572_v30 = vsel %vm3508_vm10, %v6152_v45, %v3540_v33  ;;  %v3573_v32 = vsel %vm3509_vm13, %v6154_v48, %v3541_v42 }
 0x26a   :  { %v3571_v28 = vsel %vm6394_vm6, %v6150_v39, %v3539_v0  ;;  %v3574_v34 = vsel %vm3510_vm12, %v6156_v49, %v3542_v29  ;;  %v3575_v36 = vsel %vm3511_vm1, %v6158_v50, %v3543_v52  ;;  %v3576_v39 = vsel %vm3512_vm0, %v6160_v51, %v3544_v54 }
 0x26b   :  { %v4093_v5 = vpack.c.bf16 %v6208_v57, %v6196_v44  ;;  %v4094_v45 = vpack.c.bf16 %v3548_v61, %v3547_v37  ;;  %v4095_v8 = vpack.c.bf16 %v3550_v19, %v3549_v46  ;;  %v4096_v11 = vpack.c.bf16 %v3552_v35, %v3551_v10 }
 0x26c   :  { %v4097_v14 = vpack.c.bf16 %v3554_v1, %v3553_v55  ;;  %v4098_v48 = vpack.c.bf16 %v3556_v41, %v3555_v38  ;;  %v4099_v17 = vpack.c.bf16 %v3558_v47, %v3557_v2  ;;  %v4100_v20 = vpack.c.bf16 %v3560_v6, %v3559_v62 }
 0x26d   :  { %v4101_v23 = vpack.c.bf16 %v3562_v7, %v3561_v4  ;;  %v4102_v49 = vpack.c.bf16 %v3564_v12, %v3563_v9  ;;  %3673 = vst [vmem:[%s6380_s4] sm:$0xff] %v4093_v5  ;;  %3674 = vst [vmem:[%s6380_s4 + $0x8] sm:$0xff] %v4094_v45  ;;  %v4103_v50 = vpack.c.bf16 %v3566_v13, %v3565_v16 }
 0x26e   :  { %v4104_v51 = vpack.c.bf16 %v3568_v21, %v3567_v18  ;;  %v4105_v44 = vpack.c.bf16 %v3570_v26, %v3569_v24  ;;  %v4106_v57 = vpack.c.bf16 %v3572_v30, %v3571_v28  ;;  %3675 = vst [vmem:[%s6380_s4 + $0x10] sm:$0xff] %v4095_v8  ;;  %3676 = vst [vmem:[%s6380_s4 + $0x18] sm:$0xff] %v4096_v11 }
 0x26f   :  { %3677 = vst [vmem:[%s6380_s4 + $0x20] sm:$0xff] %v4097_v14  ;;  %3678 = vst [vmem:[%s6380_s4 + $0x28] sm:$0xff] %v4098_v48  ;;  %v4107_v58 = vpack.c.bf16 %v3574_v34, %v3573_v32  ;;  %v4108_v27 = vpack.c.bf16 %v3576_v39, %v3575_v36 }
 0x270   :  { %3679 = vst [vmem:[%s6380_s4 + $0x30] sm:$0xff] %v4099_v17  ;;  %3680 = vst [vmem:[%s6380_s4 + $0x38] sm:$0xff] %v4100_v20 }
 0x271   :  { %3681 = vst [vmem:[%s6380_s4 + $0x40] sm:$0xff] %v4101_v23  ;;  %3682 = vst [vmem:[%s6380_s4 + $0x48] sm:$0xff] %v4102_v49 }
 0x272   :  { %3683 = vst [vmem:[%s6380_s4 + $0x50] sm:$0xff] %v4103_v50  ;;  %3684 = vst [vmem:[%s6380_s4 + $0x58] sm:$0xff] %v4104_v51 }
 0x273   :  { %3685 = vst [vmem:[%s6380_s4 + $0x60] sm:$0xff] %v4105_v44  ;;  %3686 = vst [vmem:[%s6380_s4 + $0x68] sm:$0xff] %v4106_v57 }
 0x274   :  { %3687 = vst [vmem:[%s6380_s4 + $0x70] sm:$0xff] %v4107_v58  ;;  %3688 = vst [vmem:[%s6380_s4 + $0x78] sm:$0xff] %v4108_v27 }

// kernel: d_forward.7
= control target key start
LH: loop header
LB: loop body
LE: loop exit
PB: predicated region body
PF: predicated region fallthrough
CT: control target
= control target key end

     0   :  { %s15119_s1 = inlined_call_operand.vmem [shape: bf16[4096,512], index: 1, kind: input, shape index: {}]   ;;  %s15120_s0 = inlined_call_operand.vmem [shape: bf16[32,4096], index: 0, kind: input, shape index: {}]   ;;  %s15121_s2 = inlined_call_operand.vmem [shape: f32[1,512], index: 2, kind: input, shape index: {}]   ;;  %s15122_s3 = inlined_call_operand.vmem [shape: f32[1,512], index: 3, kind: input, shape index: {}]   ;;  %s15123_s4 = inlined_call_operand.vmem [shape: f32[16,512], index: 4, kind: input, shape index: {}]   ;;  %s15124_s5 = inlined_call_operand.vmem [shape: f32[2,1], index: 5, kind: output, shape index: {}]  }
   0x1   :  { %v9963_v0 = vld [vmem:[%s15119_s1 + $0x4] ss:$16 sps:$4 sm:$0xff]   ;;  %v9965_v1 = vld [vmem:[%s15119_s1 + $0xc] ss:$16 sps:$4 sm:$0xff]   ;;  %v9967_v2 = vld [vmem:[%s15119_s1] ss:$16 sps:$4 sm:$0xff]  }
   0x2   :  { %6548 = vmatprep.subr.bf16.mxu0 %v9963_v0  ;;  %v9968_v3 = vld [vmem:[%s15119_s1 + $0x8] ss:$16 sps:$4 sm:$0xff]   ;;  %7396 = vmatprep.subr.bf16.mxu1 %v9965_v1  ;;  %v9969_v4 = vld [vmem:[%s15119_s1 + $0x24] ss:$16 sps:$4 sm:$0xff]   ;;  %v9971_v5 = vld [vmem:[%s15119_s1 + $0x2c] ss:$16 sps:$4 sm:$0xff]  }
   0x3   :  { %6549 = vmatpush1.bf16.msra.mxu0 %v9967_v2  ;;  %7397 = vmatpush1.bf16.msra.mxu1 %v9968_v3  ;;  %v9973_v6 = vld [vmem:[%s15119_s1 + $0x20] ss:$16 sps:$4 sm:$0xff]   ;;  %v9974_v7 = vld [vmem:[%s15119_s1 + $0x28] ss:$16 sps:$4 sm:$0xff]   ;;  %v9975_v8 = vld [vmem:[%s15119_s1 + $0x44] ss:$16 sps:$4 sm:$0xff]  }
   0x4   :  { %6550 = vmatprep.subr.bf16.mxu0 %v9969_v4  ;;  %7398 = vmatprep.subr.bf16.mxu1 %v9971_v5  ;;  %v9977_v9 = vld [vmem:[%s15119_s1 + $0x4c] ss:$16 sps:$4 sm:$0xff]   ;;  %v9979_v10 = vld [vmem:[%s15119_s1 + $0x40] ss:$16 sps:$4 sm:$0xff]   ;;  %v9980_v11 = vld [vmem:[%s15119_s1 + $0x48] ss:$16 sps:$4 sm:$0xff]  }
   0x5   :  { %v9981_v12 = vld [vmem:[%s15119_s1 + $0x64] ss:$16 sps:$4 sm:$0xff]   ;;  %v9983_v13 = vld [vmem:[%s15119_s1 + $0x6c] ss:$16 sps:$4 sm:$0xff]   ;;  %v9985_v14 = vld [vmem:[%s15119_s1 + $0x60] ss:$16 sps:$4 sm:$0xff]  }
   0x6   :  { %v9986_v15 = vld [vmem:[%s15119_s1 + $0x68] ss:$16 sps:$4 sm:$0xff]   ;;  %v9987_v16 = vld [vmem:[%s15119_s1 + $0x84] ss:$16 sps:$4 sm:$0xff]   ;;  %v9989_v17 = vld [vmem:[%s15119_s1 + $0x8c] ss:$16 sps:$4 sm:$0xff]  }
   0x7   :  { %6551 = vmatpush1.bf16.msra.mxu0 %v9973_v6  ;;  %7399 = vmatpush1.bf16.msra.mxu1 %v9974_v7  ;;  %v9991_v18 = vld [vmem:[%s15119_s1 + $0x80] ss:$16 sps:$4 sm:$0xff]   ;;  %v9992_v19 = vld [vmem:[%s15119_s1 + $0x88] ss:$16 sps:$4 sm:$0xff]   ;;  %v9993_v20 = vld [vmem:[%s15119_s1 + $0xa4] ss:$16 sps:$4 sm:$0xff]  }
   0x8   :  { %6552 = vmatprep.subr.bf16.mxu0 %v9975_v8  ;;  %7400 = vmatprep.subr.bf16.mxu1 %v9977_v9  ;;  %v9995_v21 = vld [vmem:[%s15119_s1 + $0xac] ss:$16 sps:$4 sm:$0xff]   ;;  %v9997_v22 = vld [vmem:[%s15119_s1 + $0xa0] ss:$16 sps:$4 sm:$0xff]   ;;  %v9998_v23 = vld [vmem:[%s15119_s1 + $0xa8] ss:$16 sps:$4 sm:$0xff]  }
   0x9   :  { %v9999_v24 = vld [vmem:[%s15119_s1 + $0xc4] ss:$16 sps:$4 sm:$0xff]   ;;  %v10001_v25 = vld [vmem:[%s15119_s1 + $0xcc] ss:$16 sps:$4 sm:$0xff]   ;;  %v10003_v26 = vld [vmem:[%s15119_s1 + $0xc0] ss:$16 sps:$4 sm:$0xff]  }
   0xa   :  { %v10004_v27 = vld [vmem:[%s15119_s1 + $0xc8] ss:$16 sps:$4 sm:$0xff]   ;;  %v10005_v28 = vld [vmem:[%s15119_s1 + $0xe4] ss:$16 sps:$4 sm:$0xff]   ;;  %v10007_v29 = vld [vmem:[%s15119_s1 + $0xec] ss:$16 sps:$4 sm:$0xff]  }
   0xb   :  { %6553 = vmatpush1.bf16.msra.mxu0 %v9979_v10  ;;  %7401 = vmatpush1.bf16.msra.mxu1 %v9980_v11  ;;  %v10009_v30 = vld [vmem:[%s15119_s1 + $0xe0] ss:$16 sps:$4 sm:$0xff]   ;;  %v10010_v31 = vld [vmem:[%s15119_s1 + $0xe8] ss:$16 sps:$4 sm:$0xff]   ;;  %v10011_v32 = vld [vmem:[%s15119_s1 + $0x104] ss:$16 sps:$4 sm:$0xff]  }
   0xc   :  { %6554 = vmatprep.subr.bf16.mxu0 %v9981_v12  ;;  %7402 = vmatprep.subr.bf16.mxu1 %v9983_v13  ;;  %v10013_v33 = vld [vmem:[%s15119_s1 + $0x10c] ss:$16 sps:$4 sm:$0xff]   ;;  %v10015_v34 = vld [vmem:[%s15119_s1 + $0x100] ss:$16 sps:$4 sm:$0xff]   ;;  %v10016_v35 = vld [vmem:[%s15119_s1 + $0x108] ss:$16 sps:$4 sm:$0xff]  }
   0xd   :  { %v10017_v36 = vld [vmem:[%s15119_s1 + $0x124] ss:$16 sps:$4 sm:$0xff]   ;;  %v10019_v37 = vld [vmem:[%s15119_s1 + $0x12c] ss:$16 sps:$4 sm:$0xff]   ;;  %v10021_v38 = vld [vmem:[%s15119_s1 + $0x120] ss:$16 sps:$4 sm:$0xff]  }
   0xe   :  { %v10022_v39 = vld [vmem:[%s15119_s1 + $0x128] ss:$16 sps:$4 sm:$0xff]   ;;  %v10023_v40 = vld [vmem:[%s15119_s1 + $0x144] ss:$16 sps:$4 sm:$0xff]   ;;  %v10025_v41 = vld [vmem:[%s15119_s1 + $0x14c] ss:$16 sps:$4 sm:$0xff]  }
   0xf   :  { %6555 = vmatpush1.bf16.msra.mxu0 %v9985_v14  ;;  %7403 = vmatpush1.bf16.msra.mxu1 %v9986_v15  ;;  %v10027_v42 = vld [vmem:[%s15119_s1 + $0x140] ss:$16 sps:$4 sm:$0xff]   ;;  %v10028_v43 = vld [vmem:[%s15119_s1 + $0x148] ss:$16 sps:$4 sm:$0xff]   ;;  %v10029_v44 = vld [vmem:[%s15119_s1 + $0x164] ss:$16 sps:$4 sm:$0xff]  }
  0x10   :  { %6556 = vmatprep.subr.bf16.mxu0 %v9987_v16  ;;  %7404 = vmatprep.subr.bf16.mxu1 %v9989_v17  ;;  %v10031_v45 = vld [vmem:[%s15119_s1 + $0x16c] ss:$16 sps:$4 sm:$0xff]   ;;  %v20_v46 = vld [vmem:[%s15120_s0] sm:$0xff]  ;;  %v10034_v49 = vld [vmem:[%s15119_s1 + $0x168] ss:$16 sps:$4 sm:$0xff]  }
  0x11   :  { %v36_v47 = vld [vmem:[%s15120_s0 + $0x80] sm:$0xff]  ;;  %v10037_v52 = vld [vmem:[%s15119_s1 + $0x18c] ss:$16 sps:$4 sm:$0xff]   ;;  %v10040_v54 = vld [vmem:[%s15119_s1 + $0x188] ss:$16 sps:$4 sm:$0xff]  }
  0x12   :  { %v10033_v48 = vld [vmem:[%s15119_s1 + $0x160] ss:$16 sps:$4 sm:$0xff]   ;;  %v8634_v50 = vcombine.high %v20_v46, %v36_v47  ;;  %v10035_v51 = vld [vmem:[%s15119_s1 + $0x184] ss:$16 sps:$4 sm:$0xff]   ;;  %v10043_v56 = vld [vmem:[%s15119_s1 + $0x1ac] ss:$16 sps:$4 sm:$0xff]   ;;  %v8633_v5 = vcombine.low %v20_v46, %v36_v47 }
  0x13   :  { %6557 = vmatpush1.bf16.msra.mxu0 %v9991_v18  ;;  %7405 = vmatpush1.bf16.msra.mxu1 %v9992_v19  ;;  %v10039_v53 = vld [vmem:[%s15119_s1 + $0x180] ss:$16 sps:$4 sm:$0xff]   ;;  %v10041_v55 = vld [vmem:[%s15119_s1 + $0x1a4] ss:$16 sps:$4 sm:$0xff]   ;;  %v10046_v58 = vld [vmem:[%s15119_s1 + $0x1a8] ss:$16 sps:$4 sm:$0xff]  }
  0x14   :  { %6558 = vmatprep.subr.bf16.mxu0 %v9993_v20  ;;  %7406 = vmatprep.subr.bf16.mxu1 %v9995_v21  ;;  %v10045_v57 = vld [vmem:[%s15119_s1 + $0x1a0] ss:$16 sps:$4 sm:$0xff]   ;;  %v10047_v59 = vld [vmem:[%s15119_s1 + $0x1c4] ss:$16 sps:$4 sm:$0xff]   ;;  %v10049_v60 = vld [vmem:[%s15119_s1 + $0x1cc] ss:$16 sps:$4 sm:$0xff]  }
  0x15   :  { %6580 = vmatprep.mubr.bf16.mxu0 %v8634_v50  ;;  %7428 = vmatprep.mubr.bf16.mxu1 %v8634_v50  ;;  %v10051_v61 = vld [vmem:[%s15119_s1 + $0x1c0] ss:$16 sps:$4 sm:$0xff]   ;;  %v10052_v62 = vld [vmem:[%s15119_s1 + $0x1c8] ss:$16 sps:$4 sm:$0xff]   ;;  %v10053_v63 = vld [vmem:[%s15119_s1 + $0x1e4] ss:$16 sps:$4 sm:$0xff]  }
  0x16   :  { %v10055_v0 = vld [vmem:[%s15119_s1 + $0x1ec] ss:$16 sps:$4 sm:$0xff]   ;;  %v10057_v1 = vld [vmem:[%s15119_s1 + $0x1e0] ss:$16 sps:$4 sm:$0xff]   ;;  %v10058_v2 = vld [vmem:[%s15119_s1 + $0x1e8] ss:$16 sps:$4 sm:$0xff]  }
  0x17   :  { %6559 = vmatpush1.bf16.msra.mxu0 %v9997_v22  ;;  %7407 = vmatpush1.bf16.msra.mxu1 %v9998_v23  ;;  %v10061_v3 = vld [vmem:[%s15119_s1 + $0x204] ss:$16 sps:$4 sm:$0xff]   ;;  %v10064_v4 = vld [vmem:[%s15119_s1 + $0x20c] ss:$16 sps:$4 sm:$0xff]   ;;  %v10059_v6 = vld [vmem:[%s15119_s1 + $0x200] ss:$16 sps:$4 sm:$0xff]  }
  0x18   :  { %6560 = vmatprep.subr.bf16.mxu0 %v9999_v24  ;;  %7408 = vmatprep.subr.bf16.mxu1 %v10001_v25  ;;  %v10062_v7 = vld [vmem:[%s15119_s1 + $0x208] ss:$16 sps:$4 sm:$0xff]   ;;  %v10067_v8 = vld [vmem:[%s15119_s1 + $0x224] ss:$16 sps:$4 sm:$0xff]   ;;  %v10070_v9 = vld [vmem:[%s15119_s1 + $0x22c] ss:$16 sps:$4 sm:$0xff]  }
  0x19   :  { %v10065_v10 = vld [vmem:[%s15119_s1 + $0x220] ss:$16 sps:$4 sm:$0xff]   ;;  %v10068_v11 = vld [vmem:[%s15119_s1 + $0x228] ss:$16 sps:$4 sm:$0xff]   ;;  %v10073_v12 = vld [vmem:[%s15119_s1 + $0x244] ss:$16 sps:$4 sm:$0xff]  }
  0x1a   :  { %v10076_v13 = vld [vmem:[%s15119_s1 + $0x24c] ss:$16 sps:$4 sm:$0xff]   ;;  %v10071_v14 = vld [vmem:[%s15119_s1 + $0x240] ss:$16 sps:$4 sm:$0xff]   ;;  %v10074_v15 = vld [vmem:[%s15119_s1 + $0x248] ss:$16 sps:$4 sm:$0xff]  }
  0x1b   :  { %6561 = vmatpush1.bf16.msra.mxu0 %v10003_v26  ;;  %7409 = vmatpush1.bf16.msra.mxu1 %v10004_v27  ;;  %v10079_v16 = vld [vmem:[%s15119_s1 + $0x264] ss:$16 sps:$4 sm:$0xff]   ;;  %v10082_v17 = vld [vmem:[%s15119_s1 + $0x26c] ss:$16 sps:$4 sm:$0xff]   ;;  %v10077_v18 = vld [vmem:[%s15119_s1 + $0x260] ss:$16 sps:$4 sm:$0xff]  }
  0x1c   :  { %6562 = vmatprep.subr.bf16.mxu0 %v10005_v28  ;;  %7410 = vmatprep.subr.bf16.mxu1 %v10007_v29  ;;  %v10080_v19 = vld [vmem:[%s15119_s1 + $0x268] ss:$16 sps:$4 sm:$0xff]   ;;  %v10085_v20 = vld [vmem:[%s15119_s1 + $0x284] ss:$16 sps:$4 sm:$0xff]   ;;  %v10088_v21 = vld [vmem:[%s15119_s1 + $0x28c] ss:$16 sps:$4 sm:$0xff]  }
  0x1d   :  { %v10083_v22 = vld [vmem:[%s15119_s1 + $0x280] ss:$16 sps:$4 sm:$0xff]   ;;  %v10086_v23 = vld [vmem:[%s15119_s1 + $0x288] ss:$16 sps:$4 sm:$0xff]   ;;  %v10091_v24 = vld [vmem:[%s15119_s1 + $0x2a4] ss:$16 sps:$4 sm:$0xff]  }
  0x1e   :  { %v10094_v25 = vld [vmem:[%s15119_s1 + $0x2ac] ss:$16 sps:$4 sm:$0xff]   ;;  %v52_v26 = vld [vmem:[%s15120_s0 + $0x100] sm:$0xff]  ;;  %v10110_v46 = vld [vmem:[%s15119_s1 + $0x308] ss:$16 sps:$4 sm:$0xff]  }
  0x1f   :  { %6563 = vmatpush1.bf16.msra.mxu0 %v10009_v30  ;;  %7411 = vmatpush1.bf16.msra.mxu1 %v10010_v31  ;;  %v68_v27 = vld [vmem:[%s15120_s0 + $0x180] sm:$0xff]  ;;  %v10092_v30 = vld [vmem:[%s15119_s1 + $0x2a8] ss:$16 sps:$4 sm:$0xff]  }
  0x20   :  { %6564 = vmatprep.subr.bf16.mxu0 %v10011_v32  ;;  %7412 = vmatprep.subr.bf16.mxu1 %v10013_v33  ;;  %v8666_v28 = vcombine.high %v52_v26, %v68_v27  ;;  %v10089_v29 = vld [vmem:[%s15119_s1 + $0x2a0] ss:$16 sps:$4 sm:$0xff]   ;;  %v8665_v31 = vcombine.low %v52_v26, %v68_v27  ;;  %v10097_v32 = vld [vmem:[%s15119_s1 + $0x2c4] ss:$16 sps:$4 sm:$0xff]   ;;  %v10100_v33 = vld [vmem:[%s15119_s1 + $0x2cc] ss:$16 sps:$4 sm:$0xff]  }
  0x21   :  { %v10115_v47 = vld [vmem:[%s15119_s1 + $0x324] ss:$16 sps:$4 sm:$0xff]   ;;  %v10116_v50 = vld [vmem:[%s15119_s1 + $0x328] ss:$16 sps:$4 sm:$0xff]  }
  0x22   :  { %v11996_v27 = vld [vmem:[%s15120_s0 + $0x90] sm:$0xff] }
  0x23   :  { %6565 = vmatpush1.bf16.msra.mxu0 %v10015_v34  ;;  %7413 = vmatpush1.bf16.msra.mxu1 %v10016_v35  ;;  %v11827_v34 = vld [vmem:[%s15120_s0 + $0x8] sm:$0xff] }
  0x24   :  { %6566 = vmatprep.subr.bf16.mxu0 %v10017_v36  ;;  %7414 = vmatprep.subr.bf16.mxu1 %v10019_v37  ;;  %v11832_v35 = vld [vmem:[%s15120_s0 + $0x88] sm:$0xff]  ;;  %v10095_v36 = vld [vmem:[%s15119_s1 + $0x2c0] ss:$16 sps:$4 sm:$0xff]  }
  0x25   :  { %v10098_v37 = vld [vmem:[%s15119_s1 + $0x2c8] ss:$16 sps:$4 sm:$0xff]  }
  0x27   :  { %6567 = vmatpush1.bf16.msra.mxu0 %v10021_v38  ;;  %7415 = vmatpush1.bf16.msra.mxu1 %v10022_v39  ;;  %v8636_v38 = vcombine.high %v11827_v34, %v11832_v35  ;;  %v10103_v39 = vld [vmem:[%s15119_s1 + $0x2e4] ss:$16 sps:$4 sm:$0xff]  }
  0x28   :  { %6568 = vmatprep.subr.bf16.mxu0 %v10023_v40  ;;  %7416 = vmatprep.subr.bf16.mxu1 %v10025_v41  ;;  %v10106_v40 = vld [vmem:[%s15119_s1 + $0x2ec] ss:$16 sps:$4 sm:$0xff]   ;;  %v10101_v41 = vld [vmem:[%s15119_s1 + $0x2e0] ss:$16 sps:$4 sm:$0xff]  }
  0x2b   :  { %6569 = vmatpush1.bf16.msra.mxu0 %v10027_v42  ;;  %7417 = vmatpush1.bf16.msra.mxu1 %v10028_v43  ;;  %v10104_v42 = vld [vmem:[%s15119_s1 + $0x2e8] ss:$16 sps:$4 sm:$0xff]   ;;  %v10109_v43 = vld [vmem:[%s15119_s1 + $0x304] ss:$16 sps:$4 sm:$0xff]  }
  0x2c   :  { %6570 = vmatprep.subr.bf16.mxu0 %v10029_v44  ;;  %7418 = vmatprep.subr.bf16.mxu1 %v10031_v45  ;;  %v10112_v44 = vld [vmem:[%s15119_s1 + $0x30c] ss:$16 sps:$4 sm:$0xff]   ;;  %v10107_v45 = vld [vmem:[%s15119_s1 + $0x300] ss:$16 sps:$4 sm:$0xff]  }
  0x2f   :  { %6571 = vmatpush1.bf16.msra.mxu0 %v10033_v48  ;;  %7419 = vmatpush1.bf16.msra.mxu1 %v10034_v49  ;;  %v10118_v48 = vld [vmem:[%s15119_s1 + $0x32c] ss:$16 sps:$4 sm:$0xff]   ;;  %v10113_v49 = vld [vmem:[%s15119_s1 + $0x320] ss:$16 sps:$4 sm:$0xff]  }
  0x30   :  { %6572 = vmatprep.subr.bf16.mxu0 %v10035_v51  ;;  %7420 = vmatprep.subr.bf16.mxu1 %v10037_v52  ;;  %v10121_v51 = vld [vmem:[%s15119_s1 + $0x344] ss:$16 sps:$4 sm:$0xff]   ;;  %v10124_v52 = vld [vmem:[%s15119_s1 + $0x34c] ss:$16 sps:$4 sm:$0xff]  }
  0x33   :  { %6573 = vmatpush1.bf16.msra.mxu0 %v10039_v53  ;;  %7421 = vmatpush1.bf16.msra.mxu1 %v10040_v54  ;;  %v10119_v53 = vld [vmem:[%s15119_s1 + $0x340] ss:$16 sps:$4 sm:$0xff]   ;;  %v10122_v54 = vld [vmem:[%s15119_s1 + $0x348] ss:$16 sps:$4 sm:$0xff]  }
  0x34   :  { %6574 = vmatprep.subr.bf16.mxu0 %v10041_v55  ;;  %7422 = vmatprep.subr.bf16.mxu1 %v10043_v56  ;;  %v10127_v55 = vld [vmem:[%s15119_s1 + $0x364] ss:$16 sps:$4 sm:$0xff]   ;;  %v10130_v56 = vld [vmem:[%s15119_s1 + $0x36c] ss:$16 sps:$4 sm:$0xff]  }
  0x37   :  { %6575 = vmatpush1.bf16.msra.mxu0 %v10045_v57  ;;  %7423 = vmatpush1.bf16.msra.mxu1 %v10046_v58  ;;  %v10125_v57 = vld [vmem:[%s15119_s1 + $0x360] ss:$16 sps:$4 sm:$0xff]   ;;  %v10128_v58 = vld [vmem:[%s15119_s1 + $0x368] ss:$16 sps:$4 sm:$0xff]  }
  0x38   :  { %6576 = vmatprep.subr.bf16.mxu0 %v10047_v59  ;;  %7424 = vmatprep.subr.bf16.mxu1 %v10049_v60  ;;  %v10133_v59 = vld [vmem:[%s15119_s1 + $0x384] ss:$16 sps:$4 sm:$0xff]   ;;  %v10136_v60 = vld [vmem:[%s15119_s1 + $0x38c] ss:$16 sps:$4 sm:$0xff]  }
  0x3b   :  { %6577 = vmatpush1.bf16.msra.mxu0 %v10051_v61  ;;  %7425 = vmatpush1.bf16.msra.mxu1 %v10052_v62  ;;  %v10131_v61 = vld [vmem:[%s15119_s1 + $0x380] ss:$16 sps:$4 sm:$0xff]   ;;  %v10134_v62 = vld [vmem:[%s15119_s1 + $0x388] ss:$16 sps:$4 sm:$0xff]  }
  0x3c   :  { %6578 = vmatprep.subr.bf16.mxu0 %v10053_v63  ;;  %7426 = vmatprep.subr.bf16.mxu1 %v10055_v0  ;;  %v10139_v63 = vld [vmem:[%s15119_s1 + $0x3a4] ss:$16 sps:$4 sm:$0xff]   ;;  %v10142_v0 = vld [vmem:[%s15119_s1 + $0x3ac] ss:$16 sps:$4 sm:$0xff]  }
  0x3f   :  { %6579 = vmatpush1.bf16.msra.mxu0 %v10057_v1  ;;  %7427 = vmatpush1.bf16.msra.mxu1 %v10058_v2  ;;  %v10137_v1 = vld [vmem:[%s15119_s1 + $0x3a0] ss:$16 sps:$4 sm:$0xff]   ;;  %v10140_v2 = vld [vmem:[%s15119_s1 + $0x3a8] ss:$16 sps:$4 sm:$0xff]  }
  0x40   :  { %6601 = vmatprep.subr.bf16.mxu0 %v10061_v3  ;;  %7449 = vmatprep.subr.bf16.mxu1 %v10064_v4  ;;  %v10145_v3 = vld [vmem:[%s15119_s1 + $0x3c4] ss:$16 sps:$4 sm:$0xff]   ;;  %v10148_v4 = vld [vmem:[%s15119_s1 + $0x3cc] ss:$16 sps:$4 sm:$0xff]  }
  0x42   :  { %6581 = vmatmul.mubr.bf16.vlgmr.msra.gmra.mrb[0].mxu0 %v8633_v5  ;;  %7429 = vmatmul.mubr.bf16.vlgmr.msra.gmra.mrb[0].mxu1 %v8633_v5  ;;  %v10143_v5 = vld [vmem:[%s15119_s1 + $0x3c0] ss:$16 sps:$4 sm:$0xff]  }
  0x43   :  { %6602 = vmatpush1.bf16.msra.mxu0 %v10059_v6  ;;  %7450 = vmatpush1.bf16.msra.mxu1 %v10062_v7  ;;  %v10146_v6 = vld [vmem:[%s15119_s1 + $0x3c8] ss:$16 sps:$4 sm:$0xff]   ;;  %v10151_v7 = vld [vmem:[%s15119_s1 + $0x3e4] ss:$16 sps:$4 sm:$0xff]  }
  0x44   :  { %6603 = vmatprep.subr.bf16.mxu0 %v10067_v8  ;;  %7451 = vmatprep.subr.bf16.mxu1 %v10070_v9  ;;  %v10154_v8 = vld [vmem:[%s15119_s1 + $0x3ec] ss:$16 sps:$4 sm:$0xff]   ;;  %v10149_v9 = vld [vmem:[%s15119_s1 + $0x3e0] ss:$16 sps:$4 sm:$0xff]  }
  0x45   :  { %6590 = vmatprep.mubr.bf16.mxu0 %v8666_v28  ;;  %7438 = vmatprep.mubr.bf16.mxu1 %v8666_v28  ;;  %v10167_v28 = vld [vmem:[%s15119_s1 + $0x440] ss:$16 sps:$4 sm:$0xff]  }
  0x47   :  { %6604 = vmatpush1.bf16.msra.mxu0 %v10065_v10  ;;  %7452 = vmatpush1.bf16.msra.mxu1 %v10068_v11  ;;  %v10152_v10 = vld [vmem:[%s15119_s1 + $0x3e8] ss:$16 sps:$4 sm:$0xff]   ;;  %v10157_v11 = vld [vmem:[%s15119_s1 + $0x404] ss:$16 sps:$4 sm:$0xff]  }
  0x48   :  { %6605 = vmatprep.subr.bf16.mxu0 %v10073_v12  ;;  %7453 = vmatprep.subr.bf16.mxu1 %v10076_v13  ;;  %v10160_v12 = vld [vmem:[%s15119_s1 + $0x40c] ss:$16 sps:$4 sm:$0xff]   ;;  %v10155_v13 = vld [vmem:[%s15119_s1 + $0x400] ss:$16 sps:$4 sm:$0xff]  }
  0x4a   :  { %6591 = vmatmul.mubr.bf16.gmra.mrb[4].mxu0 %v8665_v31  ;;  %7439 = vmatmul.mubr.bf16.gmra.mrb[4].mxu1 %v8665_v31  ;;  %v10178_v31 = vld [vmem:[%s15119_s1 + $0x46c] ss:$16 sps:$4 sm:$0xff]  }
  0x4b   :  { %6606 = vmatpush1.bf16.msra.mxu0 %v10071_v14  ;;  %7454 = vmatpush1.bf16.msra.mxu1 %v10074_v15  ;;  %v10158_v14 = vld [vmem:[%s15119_s1 + $0x408] ss:$16 sps:$4 sm:$0xff]   ;;  %v8635_v15 = vcombine.low %v11827_v34, %v11832_v35  ;;  %v10181_v35 = vld [vmem:[%s15119_s1 + $0x484] ss:$16 sps:$4 sm:$0xff]  }
  0x4c   :  { %6607 = vmatprep.subr.bf16.mxu0 %v10079_v16  ;;  %7455 = vmatprep.subr.bf16.mxu1 %v10082_v17  ;;  %v53_v16 = vld [vmem:[%s15120_s0 + $0x108] sm:$0xff] }
  0x4d   :  { %6633 = vmatprep.mubr.bf16.mxu0 %v8636_v38  ;;  %7481 = vmatprep.mubr.bf16.mxu1 %v8636_v38  ;;  %v69_v17 = vld [vmem:[%s15120_s0 + $0x188] sm:$0xff] }
  0x4e   :  { %v8667_v26 = vcombine.low %v53_v16, %v69_v17  ;;  %v10176_v34 = vld [vmem:[%s15119_s1 + $0x468] ss:$16 sps:$4 sm:$0xff]  }
  0x4f   :  { %6608 = vmatpush1.bf16.msra.mxu0 %v10077_v18  ;;  %7456 = vmatpush1.bf16.msra.mxu1 %v10080_v19  ;;  %v10163_v18 = vld [vmem:[%s15119_s1 + $0x424] ss:$16 sps:$4 sm:$0xff]   ;;  %v10166_v19 = vld [vmem:[%s15119_s1 + $0x42c] ss:$16 sps:$4 sm:$0xff]   ;;  %v10182_v38 = vld [vmem:[%s15119_s1 + $0x488] ss:$16 sps:$4 sm:$0xff]  }
  0x50   :  { %6609 = vmatprep.subr.bf16.mxu0 %v10085_v20  ;;  %7457 = vmatprep.subr.bf16.mxu1 %v10088_v21  ;;  %v8668_v20 = vcombine.high %v53_v16, %v69_v17  ;;  %v10161_v21 = vld [vmem:[%s15119_s1 + $0x420] ss:$16 sps:$4 sm:$0xff]   ;;  %v10250_v16 = vld [vmem:[%s15119_s1 + $0x5ec] ss:$16 sps:$4 sm:$0xff]  }
  0x51   :  { %v10245_v17 = vld [vmem:[%s15119_s1 + $0x5e0] ss:$16 sps:$4 sm:$0xff]  }
  0x53   :  { %6610 = vmatpush1.bf16.msra.mxu0 %v10083_v22  ;;  %7458 = vmatpush1.bf16.msra.mxu1 %v10086_v23  ;;  %v10164_v22 = vld [vmem:[%s15119_s1 + $0x428] ss:$16 sps:$4 sm:$0xff]   ;;  %v10169_v23 = vld [vmem:[%s15119_s1 + $0x444] ss:$16 sps:$4 sm:$0xff]  }
  0x54   :  { %6611 = vmatprep.subr.bf16.mxu0 %v10091_v24  ;;  %7459 = vmatprep.subr.bf16.mxu1 %v10094_v25  ;;  %v10172_v24 = vld [vmem:[%s15119_s1 + $0x44c] ss:$16 sps:$4 sm:$0xff]   ;;  %v11991_v25 = vld [vmem:[%s15120_s0 + $0x10] sm:$0xff] }
  0x57   :  { %6612 = vmatpush1.bf16.msra.mxu0 %v10089_v29  ;;  %7460 = vmatpush1.bf16.msra.mxu1 %v10092_v30  ;;  %v10170_v29 = vld [vmem:[%s15119_s1 + $0x448] ss:$16 sps:$4 sm:$0xff]   ;;  %v10175_v30 = vld [vmem:[%s15119_s1 + $0x464] ss:$16 sps:$4 sm:$0xff]  }
  0x58   :  { %6613 = vmatprep.subr.bf16.mxu0 %v10097_v32  ;;  %7461 = vmatprep.subr.bf16.mxu1 %v10100_v33  ;;  %v8638_v32 = vcombine.high %v11991_v25, %v11996_v27  ;;  %v10173_v33 = vld [vmem:[%s15119_s1 + $0x460] ss:$16 sps:$4 sm:$0xff]  }
  0x5b   :  { %6614 = vmatpush1.bf16.msra.mxu0 %v10095_v36  ;;  %7462 = vmatpush1.bf16.msra.mxu1 %v10098_v37  ;;  %v10184_v36 = vld [vmem:[%s15119_s1 + $0x48c] ss:$16 sps:$4 sm:$0xff]   ;;  %v10179_v37 = vld [vmem:[%s15119_s1 + $0x480] ss:$16 sps:$4 sm:$0xff]  }
  0x5c   :  { %6615 = vmatprep.subr.bf16.mxu0 %v10103_v39  ;;  %7463 = vmatprep.subr.bf16.mxu1 %v10106_v40  ;;  %v10187_v39 = vld [vmem:[%s15119_s1 + $0x4a4] ss:$16 sps:$4 sm:$0xff]   ;;  %v10190_v40 = vld [vmem:[%s15119_s1 + $0x4ac] ss:$16 sps:$4 sm:$0xff]  }
  0x5f   :  { %6616 = vmatpush1.bf16.msra.mxu0 %v10101_v41  ;;  %7464 = vmatpush1.bf16.msra.mxu1 %v10104_v42  ;;  %v10185_v41 = vld [vmem:[%s15119_s1 + $0x4a0] ss:$16 sps:$4 sm:$0xff]   ;;  %v10188_v42 = vld [vmem:[%s15119_s1 + $0x4a8] ss:$16 sps:$4 sm:$0xff]  }
  0x60   :  { %6617 = vmatprep.subr.bf16.mxu0 %v10109_v43  ;;  %7465 = vmatprep.subr.bf16.mxu1 %v10112_v44  ;;  %v10193_v43 = vld [vmem:[%s15119_s1 + $0x4c4] ss:$16 sps:$4 sm:$0xff]   ;;  %v10196_v44 = vld [vmem:[%s15119_s1 + $0x4cc] ss:$16 sps:$4 sm:$0xff]  }
  0x63   :  { %6618 = vmatpush1.bf16.msra.mxu0 %v10107_v45  ;;  %7466 = vmatpush1.bf16.msra.mxu1 %v10110_v46  ;;  %v10191_v45 = vld [vmem:[%s15119_s1 + $0x4c0] ss:$16 sps:$4 sm:$0xff]   ;;  %v10194_v46 = vld [vmem:[%s15119_s1 + $0x4c8] ss:$16 sps:$4 sm:$0xff]  }
  0x64   :  { %6619 = vmatprep.subr.bf16.mxu0 %v10115_v47  ;;  %7467 = vmatprep.subr.bf16.mxu1 %v10118_v48  ;;  %v10199_v47 = vld [vmem:[%s15119_s1 + $0x4e4] ss:$16 sps:$4 sm:$0xff]   ;;  %v10202_v48 = vld [vmem:[%s15119_s1 + $0x4ec] ss:$16 sps:$4 sm:$0xff]  }
  0x67   :  { %6620 = vmatpush1.bf16.msra.mxu0 %v10113_v49  ;;  %7468 = vmatpush1.bf16.msra.mxu1 %v10116_v50  ;;  %v10197_v49 = vld [vmem:[%s15119_s1 + $0x4e0] ss:$16 sps:$4 sm:$0xff]   ;;  %v10200_v50 = vld [vmem:[%s15119_s1 + $0x4e8] ss:$16 sps:$4 sm:$0xff]  }
  0x68   :  { %6621 = vmatprep.subr.bf16.mxu0 %v10121_v51  ;;  %7469 = vmatprep.subr.bf16.mxu1 %v10124_v52  ;;  %v10205_v51 = vld [vmem:[%s15119_s1 + $0x504] ss:$16 sps:$4 sm:$0xff]   ;;  %v10208_v52 = vld [vmem:[%s15119_s1 + $0x50c] ss:$16 sps:$4 sm:$0xff]  }
  0x6b   :  { %6622 = vmatpush1.bf16.msra.mxu0 %v10119_v53  ;;  %7470 = vmatpush1.bf16.msra.mxu1 %v10122_v54  ;;  %v10203_v53 = vld [vmem:[%s15119_s1 + $0x500] ss:$16 sps:$4 sm:$0xff]   ;;  %v10206_v54 = vld [vmem:[%s15119_s1 + $0x508] ss:$16 sps:$4 sm:$0xff]  }
  0x6c   :  { %6623 = vmatprep.subr.bf16.mxu0 %v10127_v55  ;;  %7471 = vmatprep.subr.bf16.mxu1 %v10130_v56  ;;  %v10211_v55 = vld [vmem:[%s15119_s1 + $0x524] ss:$16 sps:$4 sm:$0xff]   ;;  %v10214_v56 = vld [vmem:[%s15119_s1 + $0x52c] ss:$16 sps:$4 sm:$0xff]  }
  0x6f   :  { %6624 = vmatpush1.bf16.msra.mxu0 %v10125_v57  ;;  %7472 = vmatpush1.bf16.msra.mxu1 %v10128_v58  ;;  %v10209_v57 = vld [vmem:[%s15119_s1 + $0x520] ss:$16 sps:$4 sm:$0xff]   ;;  %v10212_v58 = vld [vmem:[%s15119_s1 + $0x528] ss:$16 sps:$4 sm:$0xff]  }
  0x70   :  { %6625 = vmatprep.subr.bf16.mxu0 %v10133_v59  ;;  %7473 = vmatprep.subr.bf16.mxu1 %v10136_v60  ;;  %v10217_v59 = vld [vmem:[%s15119_s1 + $0x544] ss:$16 sps:$4 sm:$0xff]   ;;  %v10220_v60 = vld [vmem:[%s15119_s1 + $0x54c] ss:$16 sps:$4 sm:$0xff]  }
  0x73   :  { %6626 = vmatpush1.bf16.msra.mxu0 %v10131_v61  ;;  %7474 = vmatpush1.bf16.msra.mxu1 %v10134_v62  ;;  %v10215_v61 = vld [vmem:[%s15119_s1 + $0x540] ss:$16 sps:$4 sm:$0xff]   ;;  %v10218_v62 = vld [vmem:[%s15119_s1 + $0x548] ss:$16 sps:$4 sm:$0xff]  }
  0x74   :  { %6627 = vmatprep.subr.bf16.mxu0 %v10139_v63  ;;  %7475 = vmatprep.subr.bf16.mxu1 %v10142_v0  ;;  %v10223_v63 = vld [vmem:[%s15119_s1 + $0x564] ss:$16 sps:$4 sm:$0xff]   ;;  %v10226_v0 = vld [vmem:[%s15119_s1 + $0x56c] ss:$16 sps:$4 sm:$0xff]  }
  0x77   :  { %6628 = vmatpush1.bf16.msra.mxu0 %v10137_v1  ;;  %7476 = vmatpush1.bf16.msra.mxu1 %v10140_v2  ;;  %v10221_v1 = vld [vmem:[%s15119_s1 + $0x560] ss:$16 sps:$4 sm:$0xff]   ;;  %v10224_v2 = vld [vmem:[%s15119_s1 + $0x568] ss:$16 sps:$4 sm:$0xff]  }
  0x78   :  { %6629 = vmatprep.subr.bf16.mxu0 %v10145_v3  ;;  %7477 = vmatprep.subr.bf16.mxu1 %v10148_v4  ;;  %v10229_v3 = vld [vmem:[%s15119_s1 + $0x584] ss:$16 sps:$4 sm:$0xff]   ;;  %v10232_v4 = vld [vmem:[%s15119_s1 + $0x58c] ss:$16 sps:$4 sm:$0xff]  }
  0x7b   :  { %6630 = vmatpush1.bf16.msra.mxu0 %v10143_v5  ;;  %7478 = vmatpush1.bf16.msra.mxu1 %v10146_v6  ;;  %v10227_v5 = vld [vmem:[%s15119_s1 + $0x580] ss:$16 sps:$4 sm:$0xff]   ;;  %v10230_v6 = vld [vmem:[%s15119_s1 + $0x588] ss:$16 sps:$4 sm:$0xff]  }
  0x7c   :  { %6631 = vmatprep.subr.bf16.mxu0 %v10151_v7  ;;  %7479 = vmatprep.subr.bf16.mxu1 %v10154_v8  ;;  %v10235_v7 = vld [vmem:[%s15119_s1 + $0x5a4] ss:$16 sps:$4 sm:$0xff]   ;;  %v10238_v8 = vld [vmem:[%s15119_s1 + $0x5ac] ss:$16 sps:$4 sm:$0xff]  }
  0x7f   :  { %6632 = vmatpush1.bf16.msra.mxu0 %v10149_v9  ;;  %7480 = vmatpush1.bf16.msra.mxu1 %v10152_v10  ;;  %v10233_v9 = vld [vmem:[%s15119_s1 + $0x5a0] ss:$16 sps:$4 sm:$0xff]   ;;  %v10236_v10 = vld [vmem:[%s15119_s1 + $0x5a8] ss:$16 sps:$4 sm:$0xff]  }
  0x80   :  { %6654 = vmatprep.subr.bf16.mxu0 %v10157_v11  ;;  %7502 = vmatprep.subr.bf16.mxu1 %v10160_v12  ;;  %v10241_v11 = vld [vmem:[%s15119_s1 + $0x5c4] ss:$16 sps:$4 sm:$0xff]   ;;  %v10244_v12 = vld [vmem:[%s15119_s1 + $0x5cc] ss:$16 sps:$4 sm:$0xff]  }
  0x82   :  { %6634 = vmatmul.mubr.bf16.vlgmr.msra.gmra.mrb[0].mxu0 %v8635_v15  ;;  %7482 = vmatmul.mubr.bf16.vlgmr.msra.gmra.mrb[0].mxu1 %v8635_v15  ;;  %v10247_v15 = vld [vmem:[%s15119_s1 + $0x5e4] ss:$16 sps:$4 sm:$0xff]  }
  0x83   :  { %6655 = vmatpush1.bf16.msra.mxu0 %v10155_v13  ;;  %7503 = vmatpush1.bf16.msra.mxu1 %v10158_v14  ;;  %v10239_v13 = vld [vmem:[%s15119_s1 + $0x5c0] ss:$16 sps:$4 sm:$0xff]   ;;  %v10242_v14 = vld [vmem:[%s15119_s1 + $0x5c8] ss:$16 sps:$4 sm:$0xff]  }
  0x84   :  { %6656 = vmatprep.subr.bf16.mxu0 %v10163_v18  ;;  %7504 = vmatprep.subr.bf16.mxu1 %v10166_v19  ;;  %v10248_v18 = vld [vmem:[%s15119_s1 + $0x5e8] ss:$16 sps:$4 sm:$0xff]   ;;  %v10253_v19 = vld [vmem:[%s15119_s1 + $0x604] ss:$16 sps:$4 sm:$0xff]  }
  0x85   :  { %6643 = vmatprep.mubr.bf16.mxu0 %v8668_v20  ;;  %7491 = vmatprep.mubr.bf16.mxu1 %v8668_v20  ;;  %v10256_v20 = vld [vmem:[%s15119_s1 + $0x60c] ss:$16 sps:$4 sm:$0xff]  }
  0x87   :  { %6657 = vmatpush1.bf16.msra.mxu0 %v10161_v21  ;;  %7505 = vmatpush1.bf16.msra.mxu1 %v10164_v22  ;;  %v54_v21 = vld [vmem:[%s15120_s0 + $0x110] sm:$0xff]  ;;  %v8637_v22 = vcombine.low %v11991_v25, %v11996_v27  ;;  %v10262_v27 = vld [vmem:[%s15119_s1 + $0x62c] ss:$16 sps:$4 sm:$0xff]  }
  0x88   :  { %6658 = vmatprep.subr.bf16.mxu0 %v10169_v23  ;;  %7506 = vmatprep.subr.bf16.mxu1 %v10172_v24  ;;  %v70_v23 = vld [vmem:[%s15120_s0 + $0x190] sm:$0xff] }
  0x89   :  { %v10251_v24 = vld [vmem:[%s15119_s1 + $0x600] ss:$16 sps:$4 sm:$0xff]   ;;  %v10259_v25 = vld [vmem:[%s15119_s1 + $0x624] ss:$16 sps:$4 sm:$0xff]  }
  0x8a   :  { %6644 = vmatmul.mubr.bf16.gmra.mrb[4].mxu0 %v8667_v26  ;;  %7492 = vmatmul.mubr.bf16.gmra.mrb[4].mxu1 %v8667_v26  ;;  %v10254_v26 = vld [vmem:[%s15119_s1 + $0x608] ss:$16 sps:$4 sm:$0xff]  }
  0x8b   :  { %6659 = vmatpush1.bf16.msra.mxu0 %v10167_v28  ;;  %7507 = vmatpush1.bf16.msra.mxu1 %v10170_v29  ;;  %v8670_v28 = vcombine.high %v54_v21, %v70_v23  ;;  %v10257_v29 = vld [vmem:[%s15119_s1 + $0x620] ss:$16 sps:$4 sm:$0xff]  }
  0x8c   :  { %6660 = vmatprep.subr.bf16.mxu0 %v10175_v30  ;;  %7508 = vmatprep.subr.bf16.mxu1 %v10178_v31  ;;  %v10260_v30 = vld [vmem:[%s15119_s1 + $0x628] ss:$16 sps:$4 sm:$0xff]   ;;  %v10265_v31 = vld [vmem:[%s15119_s1 + $0x644] ss:$16 sps:$4 sm:$0xff]  }
  0x8d   :  { %6686 = vmatprep.mubr.bf16.mxu0 %v8638_v32  ;;  %7534 = vmatprep.mubr.bf16.mxu1 %v8638_v32  ;;  %v10268_v32 = vld [vmem:[%s15119_s1 + $0x64c] ss:$16 sps:$4 sm:$0xff]  }
  0x8f   :  { %6661 = vmatpush1.bf16.msra.mxu0 %v10173_v33  ;;  %7509 = vmatpush1.bf16.msra.mxu1 %v10176_v34  ;;  %v12203_v33 = vld [vmem:[%s15120_s0 + $0x18] sm:$0xff]  ;;  %v8669_v34 = vcombine.low %v54_v21, %v70_v23  ;;  %v10335_v21 = vld [vmem:[%s15119_s1 + $0x7c0] ss:$16 sps:$4 sm:$0xff]   ;;  %v10343_v23 = vld [vmem:[%s15119_s1 + $0x7e4] ss:$16 sps:$4 sm:$0xff]  }
  0x90   :  { %6662 = vmatprep.subr.bf16.mxu0 %v10181_v35  ;;  %7510 = vmatprep.subr.bf16.mxu1 %v10184_v36  ;;  %v12208_v35 = vld [vmem:[%s15120_s0 + $0x98] sm:$0xff]  ;;  %v10263_v36 = vld [vmem:[%s15119_s1 + $0x640] ss:$16 sps:$4 sm:$0xff]  }
  0x93   :  { %6663 = vmatpush1.bf16.msra.mxu0 %v10179_v37  ;;  %7511 = vmatpush1.bf16.msra.mxu1 %v10182_v38  ;;  %v10266_v37 = vld [vmem:[%s15119_s1 + $0x648] ss:$16 sps:$4 sm:$0xff]   ;;  %v10271_v38 = vld [vmem:[%s15119_s1 + $0x664] ss:$16 sps:$4 sm:$0xff]  }
  0x94   :  { %6664 = vmatprep.subr.bf16.mxu0 %v10187_v39  ;;  %7512 = vmatprep.subr.bf16.mxu1 %v10190_v40  ;;  %v10274_v39 = vld [vmem:[%s15119_s1 + $0x66c] ss:$16 sps:$4 sm:$0xff]   ;;  %v8640_v40 = vcombine.high %v12203_v33, %v12208_v35 }
  0x97   :  { %6665 = vmatpush1.bf16.msra.mxu0 %v10185_v41  ;;  %7513 = vmatpush1.bf16.msra.mxu1 %v10188_v42  ;;  %v10269_v41 = vld [vmem:[%s15119_s1 + $0x660] ss:$16 sps:$4 sm:$0xff]   ;;  %v10272_v42 = vld [vmem:[%s15119_s1 + $0x668] ss:$16 sps:$4 sm:$0xff]  }
  0x98   :  { %6666 = vmatprep.subr.bf16.mxu0 %v10193_v43  ;;  %7514 = vmatprep.subr.bf16.mxu1 %v10196_v44  ;;  %v10277_v43 = vld [vmem:[%s15119_s1 + $0x684] ss:$16 sps:$4 sm:$0xff]   ;;  %v10280_v44 = vld [vmem:[%s15119_s1 + $0x68c] ss:$16 sps:$4 sm:$0xff]  }
  0x9b   :  { %6667 = vmatpush1.bf16.msra.mxu0 %v10191_v45  ;;  %7515 = vmatpush1.bf16.msra.mxu1 %v10194_v46  ;;  %v10275_v45 = vld [vmem:[%s15119_s1 + $0x680] ss:$16 sps:$4 sm:$0xff]   ;;  %v10278_v46 = vld [vmem:[%s15119_s1 + $0x688] ss:$16 sps:$4 sm:$0xff]  }
  0x9c   :  { %6668 = vmatprep.subr.bf16.mxu0 %v10199_v47  ;;  %7516 = vmatprep.subr.bf16.mxu1 %v10202_v48  ;;  %v10283_v47 = vld [vmem:[%s15119_s1 + $0x6a4] ss:$16 sps:$4 sm:$0xff]   ;;  %v10286_v48 = vld [vmem:[%s15119_s1 + $0x6ac] ss:$16 sps:$4 sm:$0xff]  }
  0x9f   :  { %6669 = vmatpush1.bf16.msra.mxu0 %v10197_v49  ;;  %7517 = vmatpush1.bf16.msra.mxu1 %v10200_v50  ;;  %v10281_v49 = vld [vmem:[%s15119_s1 + $0x6a0] ss:$16 sps:$4 sm:$0xff]   ;;  %v10284_v50 = vld [vmem:[%s15119_s1 + $0x6a8] ss:$16 sps:$4 sm:$0xff]  }
  0xa0   :  { %6670 = vmatprep.subr.bf16.mxu0 %v10205_v51  ;;  %7518 = vmatprep.subr.bf16.mxu1 %v10208_v52  ;;  %v10289_v51 = vld [vmem:[%s15119_s1 + $0x6c4] ss:$16 sps:$4 sm:$0xff]   ;;  %v10292_v52 = vld [vmem:[%s15119_s1 + $0x6cc] ss:$16 sps:$4 sm:$0xff]  }
  0xa3   :  { %6671 = vmatpush1.bf16.msra.mxu0 %v10203_v53  ;;  %7519 = vmatpush1.bf16.msra.mxu1 %v10206_v54  ;;  %v10287_v53 = vld [vmem:[%s15119_s1 + $0x6c0] ss:$16 sps:$4 sm:$0xff]   ;;  %v10290_v54 = vld [vmem:[%s15119_s1 + $0x6c8] ss:$16 sps:$4 sm:$0xff]  }
  0xa4   :  { %6672 = vmatprep.subr.bf16.mxu0 %v10211_v55  ;;  %7520 = vmatprep.subr.bf16.mxu1 %v10214_v56  ;;  %v10295_v55 = vld [vmem:[%s15119_s1 + $0x6e4] ss:$16 sps:$4 sm:$0xff]   ;;  %v10298_v56 = vld [vmem:[%s15119_s1 + $0x6ec] ss:$16 sps:$4 sm:$0xff]  }
  0xa7   :  { %6673 = vmatpush1.bf16.msra.mxu0 %v10209_v57  ;;  %7521 = vmatpush1.bf16.msra.mxu1 %v10212_v58  ;;  %v10293_v57 = vld [vmem:[%s15119_s1 + $0x6e0] ss:$16 sps:$4 sm:$0xff]   ;;  %v10296_v58 = vld [vmem:[%s15119_s1 + $0x6e8] ss:$16 sps:$4 sm:$0xff]  }
  0xa8   :  { %6674 = vmatprep.subr.bf16.mxu0 %v10217_v59  ;;  %7522 = vmatprep.subr.bf16.mxu1 %v10220_v60  ;;  %v10301_v59 = vld [vmem:[%s15119_s1 + $0x704] ss:$16 sps:$4 sm:$0xff]   ;;  %v10304_v60 = vld [vmem:[%s15119_s1 + $0x70c] ss:$16 sps:$4 sm:$0xff]  }
  0xab   :  { %6675 = vmatpush1.bf16.msra.mxu0 %v10215_v61  ;;  %7523 = vmatpush1.bf16.msra.mxu1 %v10218_v62  ;;  %v10299_v61 = vld [vmem:[%s15119_s1 + $0x700] ss:$16 sps:$4 sm:$0xff]   ;;  %v10302_v62 = vld [vmem:[%s15119_s1 + $0x708] ss:$16 sps:$4 sm:$0xff]  }
  0xac   :  { %6676 = vmatprep.subr.bf16.mxu0 %v10223_v63  ;;  %7524 = vmatprep.subr.bf16.mxu1 %v10226_v0  ;;  %v10307_v63 = vld [vmem:[%s15119_s1 + $0x724] ss:$16 sps:$4 sm:$0xff]   ;;  %v10310_v0 = vld [vmem:[%s15119_s1 + $0x72c] ss:$16 sps:$4 sm:$0xff]  }
  0xaf   :  { %6677 = vmatpush1.bf16.msra.mxu0 %v10221_v1  ;;  %7525 = vmatpush1.bf16.msra.mxu1 %v10224_v2  ;;  %v10305_v1 = vld [vmem:[%s15119_s1 + $0x720] ss:$16 sps:$4 sm:$0xff]   ;;  %v10308_v2 = vld [vmem:[%s15119_s1 + $0x728] ss:$16 sps:$4 sm:$0xff]  }
  0xb0   :  { %6678 = vmatprep.subr.bf16.mxu0 %v10229_v3  ;;  %7526 = vmatprep.subr.bf16.mxu1 %v10232_v4  ;;  %v10313_v3 = vld [vmem:[%s15119_s1 + $0x744] ss:$16 sps:$4 sm:$0xff]   ;;  %v10316_v4 = vld [vmem:[%s15119_s1 + $0x74c] ss:$16 sps:$4 sm:$0xff]  }
  0xb3   :  { %6679 = vmatpush1.bf16.msra.mxu0 %v10227_v5  ;;  %7527 = vmatpush1.bf16.msra.mxu1 %v10230_v6  ;;  %v10311_v5 = vld [vmem:[%s15119_s1 + $0x740] ss:$16 sps:$4 sm:$0xff]   ;;  %v10314_v6 = vld [vmem:[%s15119_s1 + $0x748] ss:$16 sps:$4 sm:$0xff]  }
  0xb4   :  { %6680 = vmatprep.subr.bf16.mxu0 %v10235_v7  ;;  %7528 = vmatprep.subr.bf16.mxu1 %v10238_v8  ;;  %v10319_v7 = vld [vmem:[%s15119_s1 + $0x764] ss:$16 sps:$4 sm:$0xff]   ;;  %v10322_v8 = vld [vmem:[%s15119_s1 + $0x76c] ss:$16 sps:$4 sm:$0xff]  }
  0xb7   :  { %6681 = vmatpush1.bf16.msra.mxu0 %v10233_v9  ;;  %7529 = vmatpush1.bf16.msra.mxu1 %v10236_v10  ;;  %v10317_v9 = vld [vmem:[%s15119_s1 + $0x760] ss:$16 sps:$4 sm:$0xff]   ;;  %v10320_v10 = vld [vmem:[%s15119_s1 + $0x768] ss:$16 sps:$4 sm:$0xff]  }
  0xb8   :  { %6682 = vmatprep.subr.bf16.mxu0 %v10241_v11  ;;  %7530 = vmatprep.subr.bf16.mxu1 %v10244_v12  ;;  %v10325_v11 = vld [vmem:[%s15119_s1 + $0x784] ss:$16 sps:$4 sm:$0xff]   ;;  %v10328_v12 = vld [vmem:[%s15119_s1 + $0x78c] ss:$16 sps:$4 sm:$0xff]  }
  0xbb   :  { %6683 = vmatpush1.bf16.msra.mxu0 %v10239_v13  ;;  %7531 = vmatpush1.bf16.msra.mxu1 %v10242_v14  ;;  %v10323_v13 = vld [vmem:[%s15119_s1 + $0x780] ss:$16 sps:$4 sm:$0xff]   ;;  %v10326_v14 = vld [vmem:[%s15119_s1 + $0x788] ss:$16 sps:$4 sm:$0xff]  }
  0xbc   :  { %6684 = vmatprep.subr.bf16.mxu0 %v10247_v15  ;;  %7532 = vmatprep.subr.bf16.mxu1 %v10250_v16  ;;  %v10331_v15 = vld [vmem:[%s15119_s1 + $0x7a4] ss:$16 sps:$4 sm:$0xff]   ;;  %v10334_v16 = vld [vmem:[%s15119_s1 + $0x7ac] ss:$16 sps:$4 sm:$0xff]  }
  0xbf   :  { %6685 = vmatpush1.bf16.msra.mxu0 %v10245_v17  ;;  %7533 = vmatpush1.bf16.msra.mxu1 %v10248_v18  ;;  %v10329_v17 = vld [vmem:[%s15119_s1 + $0x7a0] ss:$16 sps:$4 sm:$0xff]   ;;  %v10332_v18 = vld [vmem:[%s15119_s1 + $0x7a8] ss:$16 sps:$4 sm:$0xff]  }
  0xc0   :  { %6707 = vmatprep.subr.bf16.mxu0 %v10253_v19  ;;  %7555 = vmatprep.subr.bf16.mxu1 %v10256_v20  ;;  %v10337_v19 = vld [vmem:[%s15119_s1 + $0x7c4] ss:$16 sps:$4 sm:$0xff]   ;;  %v10340_v20 = vld [vmem:[%s15119_s1 + $0x7cc] ss:$16 sps:$4 sm:$0xff]  }
  0xc2   :  { %6687 = vmatmul.mubr.bf16.vlgmr.msra.gmra.mrb[0].mxu0 %v8637_v22  ;;  %7535 = vmatmul.mubr.bf16.vlgmr.msra.gmra.mrb[0].mxu1 %v8637_v22  ;;  %v10338_v22 = vld [vmem:[%s15119_s1 + $0x7c8] ss:$16 sps:$4 sm:$0xff]  }
  0xc3   :  { %6708 = vmatpush1.bf16.msra.mxu0 %v10251_v24  ;;  %7556 = vmatpush1.bf16.msra.mxu1 %v10254_v26  ;;  %v10346_v24 = vld [vmem:[%s15119_s1 + $0x7ec] ss:$16 sps:$4 sm:$0xff]   ;;  %v10341_v26 = vld [vmem:[%s15119_s1 + $0x7e0] ss:$16 sps:$4 sm:$0xff]  }
  0xc4   :  { %6709 = vmatprep.subr.bf16.mxu0 %v10259_v25  ;;  %7557 = vmatprep.subr.bf16.mxu1 %v10262_v27  ;;  %v10344_v25 = vld [vmem:[%s15119_s1 + $0x7e8] ss:$16 sps:$4 sm:$0xff]   ;;  %v10349_v27 = vld [vmem:[%s15119_s1 + $0x804] ss:$16 sps:$4 sm:$0xff]  }
  0xc5   :  { %6696 = vmatprep.mubr.bf16.mxu0 %v8670_v28  ;;  %7544 = vmatprep.mubr.bf16.mxu1 %v8670_v28  ;;  %v10352_v28 = vld [vmem:[%s15119_s1 + $0x80c] ss:$16 sps:$4 sm:$0xff]  }
  0xc7   :  { %6710 = vmatpush1.bf16.msra.mxu0 %v10257_v29  ;;  %7558 = vmatpush1.bf16.msra.mxu1 %v10260_v30  ;;  %v55_v29 = vld [vmem:[%s15120_s0 + $0x118] sm:$0xff]  ;;  %v8639_v30 = vcombine.low %v12203_v33, %v12208_v35 }
  0xc8   :  { %6711 = vmatprep.subr.bf16.mxu0 %v10265_v31  ;;  %7559 = vmatprep.subr.bf16.mxu1 %v10268_v32  ;;  %v71_v31 = vld [vmem:[%s15120_s0 + $0x198] sm:$0xff]  ;;  %v10347_v32 = vld [vmem:[%s15119_s1 + $0x800] ss:$16 sps:$4 sm:$0xff]  }
  0xc9   :  { %v10358_v33 = vld [vmem:[%s15119_s1 + $0x82c] ss:$16 sps:$4 sm:$0xff]   ;;  %v8672_v35 = vcombine.high %v55_v29, %v71_v31 }
  0xca   :  { %6697 = vmatmul.mubr.bf16.gmra.mrb[4].mxu0 %v8669_v34  ;;  %7545 = vmatmul.mubr.bf16.gmra.mrb[4].mxu1 %v8669_v34  ;;  %v10350_v34 = vld [vmem:[%s15119_s1 + $0x808] ss:$16 sps:$4 sm:$0xff]  }
  0xcb   :  { %6712 = vmatpush1.bf16.msra.mxu0 %v10263_v36  ;;  %7560 = vmatpush1.bf16.msra.mxu1 %v10266_v37  ;;  %v10355_v36 = vld [vmem:[%s15119_s1 + $0x824] ss:$16 sps:$4 sm:$0xff]   ;;  %v10353_v37 = vld [vmem:[%s15119_s1 + $0x820] ss:$16 sps:$4 sm:$0xff]  }
  0xcc   :  { %6713 = vmatprep.subr.bf16.mxu0 %v10271_v38  ;;  %7561 = vmatprep.subr.bf16.mxu1 %v10274_v39  ;;  %v10356_v38 = vld [vmem:[%s15119_s1 + $0x828] ss:$16 sps:$4 sm:$0xff]   ;;  %v10361_v39 = vld [vmem:[%s15119_s1 + $0x844] ss:$16 sps:$4 sm:$0xff]  }
  0xcd   :  { %6739 = vmatprep.mubr.bf16.mxu0 %v8640_v40  ;;  %7587 = vmatprep.mubr.bf16.mxu1 %v8640_v40  ;;  %v10364_v40 = vld [vmem:[%s15119_s1 + $0x84c] ss:$16 sps:$4 sm:$0xff]  }
  0xcf   :  { %6714 = vmatpush1.bf16.msra.mxu0 %v10269_v41  ;;  %7562 = vmatpush1.bf16.msra.mxu1 %v10272_v42  ;;  %v12415_v41 = vld [vmem:[%s15120_s0 + $0x20] sm:$0xff]  ;;  %v8671_v42 = vcombine.low %v55_v29, %v71_v31 }
  0xd0   :  { %6715 = vmatprep.subr.bf16.mxu0 %v10277_v43  ;;  %7563 = vmatprep.subr.bf16.mxu1 %v10280_v44  ;;  %v12420_v43 = vld [vmem:[%s15120_s0 + $0xa0] sm:$0xff] }
  0xd1   :  { %v10359_v44 = vld [vmem:[%s15119_s1 + $0x840] ss:$16 sps:$4 sm:$0xff]   ;;  %v10439_v31 = vld [vmem:[%s15119_s1 + $0x9e4] ss:$16 sps:$4 sm:$0xff]  }
  0xd2   :  { %v10431_v29 = vld [vmem:[%s15119_s1 + $0x9c0] ss:$16 sps:$4 sm:$0xff]  }
  0xd3   :  { %6716 = vmatpush1.bf16.msra.mxu0 %v10275_v45  ;;  %7564 = vmatpush1.bf16.msra.mxu1 %v10278_v46  ;;  %v10362_v45 = vld [vmem:[%s15119_s1 + $0x848] ss:$16 sps:$4 sm:$0xff]   ;;  %v10367_v46 = vld [vmem:[%s15119_s1 + $0x864] ss:$16 sps:$4 sm:$0xff]  }
  0xd4   :  { %6717 = vmatprep.subr.bf16.mxu0 %v10283_v47  ;;  %7565 = vmatprep.subr.bf16.mxu1 %v10286_v48  ;;  %v10370_v47 = vld [vmem:[%s15119_s1 + $0x86c] ss:$16 sps:$4 sm:$0xff]   ;;  %v8642_v48 = vcombine.high %v12415_v41, %v12420_v43 }
  0xd7   :  { %6718 = vmatpush1.bf16.msra.mxu0 %v10281_v49  ;;  %7566 = vmatpush1.bf16.msra.mxu1 %v10284_v50  ;;  %v10365_v49 = vld [vmem:[%s15119_s1 + $0x860] ss:$16 sps:$4 sm:$0xff]   ;;  %v10368_v50 = vld [vmem:[%s15119_s1 + $0x868] ss:$16 sps:$4 sm:$0xff]  }
  0xd8   :  { %6719 = vmatprep.subr.bf16.mxu0 %v10289_v51  ;;  %7567 = vmatprep.subr.bf16.mxu1 %v10292_v52  ;;  %v10373_v51 = vld [vmem:[%s15119_s1 + $0x884] ss:$16 sps:$4 sm:$0xff]   ;;  %v10376_v52 = vld [vmem:[%s15119_s1 + $0x88c] ss:$16 sps:$4 sm:$0xff]  }
  0xdb   :  { %6720 = vmatpush1.bf16.msra.mxu0 %v10287_v53  ;;  %7568 = vmatpush1.bf16.msra.mxu1 %v10290_v54  ;;  %v10371_v53 = vld [vmem:[%s15119_s1 + $0x880] ss:$16 sps:$4 sm:$0xff]   ;;  %v10374_v54 = vld [vmem:[%s15119_s1 + $0x888] ss:$16 sps:$4 sm:$0xff]  }
  0xdc   :  { %6721 = vmatprep.subr.bf16.mxu0 %v10295_v55  ;;  %7569 = vmatprep.subr.bf16.mxu1 %v10298_v56  ;;  %v10379_v55 = vld [vmem:[%s15119_s1 + $0x8a4] ss:$16 sps:$4 sm:$0xff]   ;;  %v10382_v56 = vld [vmem:[%s15119_s1 + $0x8ac] ss:$16 sps:$4 sm:$0xff]  }
  0xdf   :  { %6722 = vmatpush1.bf16.msra.mxu0 %v10293_v57  ;;  %7570 = vmatpush1.bf16.msra.mxu1 %v10296_v58  ;;  %v10377_v57 = vld [vmem:[%s15119_s1 + $0x8a0] ss:$16 sps:$4 sm:$0xff]   ;;  %v10380_v58 = vld [vmem:[%s15119_s1 + $0x8a8] ss:$16 sps:$4 sm:$0xff]  }
  0xe0   :  { %6723 = vmatprep.subr.bf16.mxu0 %v10301_v59  ;;  %7571 = vmatprep.subr.bf16.mxu1 %v10304_v60  ;;  %v10385_v59 = vld [vmem:[%s15119_s1 + $0x8c4] ss:$16 sps:$4 sm:$0xff]   ;;  %v10388_v60 = vld [vmem:[%s15119_s1 + $0x8cc] ss:$16 sps:$4 sm:$0xff]  }
  0xe3   :  { %6724 = vmatpush1.bf16.msra.mxu0 %v10299_v61  ;;  %7572 = vmatpush1.bf16.msra.mxu1 %v10302_v62  ;;  %v10383_v61 = vld [vmem:[%s15119_s1 + $0x8c0] ss:$16 sps:$4 sm:$0xff]   ;;  %v10386_v62 = vld [vmem:[%s15119_s1 + $0x8c8] ss:$16 sps:$4 sm:$0xff]  }
  0xe4   :  { %6725 = vmatprep.subr.bf16.mxu0 %v10307_v63  ;;  %7573 = vmatprep.subr.bf16.mxu1 %v10310_v0  ;;  %v10391_v63 = vld [vmem:[%s15119_s1 + $0x8e4] ss:$16 sps:$4 sm:$0xff]   ;;  %v10394_v0 = vld [vmem:[%s15119_s1 + $0x8ec] ss:$16 sps:$4 sm:$0xff]  }
  0xe7   :  { %6726 = vmatpush1.bf16.msra.mxu0 %v10305_v1  ;;  %7574 = vmatpush1.bf16.msra.mxu1 %v10308_v2  ;;  %v10389_v1 = vld [vmem:[%s15119_s1 + $0x8e0] ss:$16 sps:$4 sm:$0xff]   ;;  %v10392_v2 = vld [vmem:[%s15119_s1 + $0x8e8] ss:$16 sps:$4 sm:$0xff]  }
  0xe8   :  { %6727 = vmatprep.subr.bf16.mxu0 %v10313_v3  ;;  %7575 = vmatprep.subr.bf16.mxu1 %v10316_v4  ;;  %v10397_v3 = vld [vmem:[%s15119_s1 + $0x904] ss:$16 sps:$4 sm:$0xff]   ;;  %v10400_v4 = vld [vmem:[%s15119_s1 + $0x90c] ss:$16 sps:$4 sm:$0xff]  }
  0xeb   :  { %6728 = vmatpush1.bf16.msra.mxu0 %v10311_v5  ;;  %7576 = vmatpush1.bf16.msra.mxu1 %v10314_v6  ;;  %v10395_v5 = vld [vmem:[%s15119_s1 + $0x900] ss:$16 sps:$4 sm:$0xff]   ;;  %v10398_v6 = vld [vmem:[%s15119_s1 + $0x908] ss:$16 sps:$4 sm:$0xff]  }
  0xec   :  { %6729 = vmatprep.subr.bf16.mxu0 %v10319_v7  ;;  %7577 = vmatprep.subr.bf16.mxu1 %v10322_v8  ;;  %v10403_v7 = vld [vmem:[%s15119_s1 + $0x924] ss:$16 sps:$4 sm:$0xff]   ;;  %v10406_v8 = vld [vmem:[%s15119_s1 + $0x92c] ss:$16 sps:$4 sm:$0xff]  }
  0xef   :  { %6730 = vmatpush1.bf16.msra.mxu0 %v10317_v9  ;;  %7578 = vmatpush1.bf16.msra.mxu1 %v10320_v10  ;;  %v10401_v9 = vld [vmem:[%s15119_s1 + $0x920] ss:$16 sps:$4 sm:$0xff]   ;;  %v10404_v10 = vld [vmem:[%s15119_s1 + $0x928] ss:$16 sps:$4 sm:$0xff]  }
  0xf0   :  { %6731 = vmatprep.subr.bf16.mxu0 %v10325_v11  ;;  %7579 = vmatprep.subr.bf16.mxu1 %v10328_v12  ;;  %v10409_v11 = vld [vmem:[%s15119_s1 + $0x944] ss:$16 sps:$4 sm:$0xff]   ;;  %v10412_v12 = vld [vmem:[%s15119_s1 + $0x94c] ss:$16 sps:$4 sm:$0xff]  }
  0xf3   :  { %6732 = vmatpush1.bf16.msra.mxu0 %v10323_v13  ;;  %7580 = vmatpush1.bf16.msra.mxu1 %v10326_v14  ;;  %v10407_v13 = vld [vmem:[%s15119_s1 + $0x940] ss:$16 sps:$4 sm:$0xff]   ;;  %v10410_v14 = vld [vmem:[%s15119_s1 + $0x948] ss:$16 sps:$4 sm:$0xff]  }
  0xf4   :  { %6733 = vmatprep.subr.bf16.mxu0 %v10331_v15  ;;  %7581 = vmatprep.subr.bf16.mxu1 %v10334_v16  ;;  %v10415_v15 = vld [vmem:[%s15119_s1 + $0x964] ss:$16 sps:$4 sm:$0xff]   ;;  %v10418_v16 = vld [vmem:[%s15119_s1 + $0x96c] ss:$16 sps:$4 sm:$0xff]  }
  0xf7   :  { %6734 = vmatpush1.bf16.msra.mxu0 %v10329_v17  ;;  %7582 = vmatpush1.bf16.msra.mxu1 %v10332_v18  ;;  %v10413_v17 = vld [vmem:[%s15119_s1 + $0x960] ss:$16 sps:$4 sm:$0xff]   ;;  %v10416_v18 = vld [vmem:[%s15119_s1 + $0x968] ss:$16 sps:$4 sm:$0xff]  }
  0xf8   :  { %6735 = vmatprep.subr.bf16.mxu0 %v10337_v19  ;;  %7583 = vmatprep.subr.bf16.mxu1 %v10340_v20  ;;  %v10421_v19 = vld [vmem:[%s15119_s1 + $0x984] ss:$16 sps:$4 sm:$0xff]   ;;  %v10424_v20 = vld [vmem:[%s15119_s1 + $0x98c] ss:$16 sps:$4 sm:$0xff]  }
  0xfb   :  { %6736 = vmatpush1.bf16.msra.mxu0 %v10335_v21  ;;  %7584 = vmatpush1.bf16.msra.mxu1 %v10338_v22  ;;  %v10419_v21 = vld [vmem:[%s15119_s1 + $0x980] ss:$16 sps:$4 sm:$0xff]   ;;  %v10422_v22 = vld [vmem:[%s15119_s1 + $0x988] ss:$16 sps:$4 sm:$0xff]  }
  0xfc   :  { %6737 = vmatprep.subr.bf16.mxu0 %v10343_v23  ;;  %7585 = vmatprep.subr.bf16.mxu1 %v10346_v24  ;;  %v10427_v23 = vld [vmem:[%s15119_s1 + $0x9a4] ss:$16 sps:$4 sm:$0xff]   ;;  %v10430_v24 = vld [vmem:[%s15119_s1 + $0x9ac] ss:$16 sps:$4 sm:$0xff]  }
  0xff   :  { %6738 = vmatpush1.bf16.msra.mxu0 %v10341_v26  ;;  %7586 = vmatpush1.bf16.msra.mxu1 %v10344_v25  ;;  %v10425_v26 = vld [vmem:[%s15119_s1 + $0x9a0] ss:$16 sps:$4 sm:$0xff]   ;;  %v10428_v25 = vld [vmem:[%s15119_s1 + $0x9a8] ss:$16 sps:$4 sm:$0xff]  }
 0x100   :  { %6760 = vmatprep.subr.bf16.mxu0 %v10349_v27  ;;  %7608 = vmatprep.subr.bf16.mxu1 %v10352_v28  ;;  %v10433_v27 = vld [vmem:[%s15119_s1 + $0x9c4] ss:$16 sps:$4 sm:$0xff]   ;;  %v10436_v28 = vld [vmem:[%s15119_s1 + $0x9cc] ss:$16 sps:$4 sm:$0xff]  }
 0x102   :  { %6740 = vmatmul.mubr.bf16.vlgmr.msra.gmra.mrb[0].mxu0 %v8639_v30  ;;  %7588 = vmatmul.mubr.bf16.vlgmr.msra.gmra.mrb[0].mxu1 %v8639_v30  ;;  %v10434_v30 = vld [vmem:[%s15119_s1 + $0x9c8] ss:$16 sps:$4 sm:$0xff]  }
 0x103   :  { %6761 = vmatpush1.bf16.msra.mxu0 %v10347_v32  ;;  %7609 = vmatpush1.bf16.msra.mxu1 %v10350_v34  ;;  %v10442_v32 = vld [vmem:[%s15119_s1 + $0x9ec] ss:$16 sps:$4 sm:$0xff]   ;;  %v10437_v34 = vld [vmem:[%s15119_s1 + $0x9e0] ss:$16 sps:$4 sm:$0xff]  }
 0x104   :  { %6762 = vmatprep.subr.bf16.mxu0 %v10355_v36  ;;  %7610 = vmatprep.subr.bf16.mxu1 %v10358_v33  ;;  %v10440_v36 = vld [vmem:[%s15119_s1 + $0x9e8] ss:$16 sps:$4 sm:$0xff]   ;;  %v10445_v33 = vld [vmem:[%s15119_s1 + $0xa04] ss:$16 sps:$4 sm:$0xff]  }
 0x105   :  { %6749 = vmatprep.mubr.bf16.mxu0 %v8672_v35  ;;  %7597 = vmatprep.mubr.bf16.mxu1 %v8672_v35  ;;  %v10448_v35 = vld [vmem:[%s15119_s1 + $0xa0c] ss:$16 sps:$4 sm:$0xff]  }
 0x107   :  { %6763 = vmatpush1.bf16.msra.mxu0 %v10353_v37  ;;  %7611 = vmatpush1.bf16.msra.mxu1 %v10356_v38  ;;  %v56_v37 = vld [vmem:[%s15120_s0 + $0x120] sm:$0xff] }
 0x108   :  { %6764 = vmatprep.subr.bf16.mxu0 %v10361_v39  ;;  %7612 = vmatprep.subr.bf16.mxu1 %v10364_v40  ;;  %v72_v38 = vld [vmem:[%s15120_s0 + $0x1a0] sm:$0xff]  ;;  %v8641_v39 = vcombine.low %v12415_v41, %v12420_v43  ;;  %v10454_v41 = vld [vmem:[%s15119_s1 + $0xa2c] ss:$16 sps:$4 sm:$0xff]  }
 0x109   :  { %v10443_v40 = vld [vmem:[%s15119_s1 + $0xa00] ss:$16 sps:$4 sm:$0xff]  }
 0x10a   :  { %6750 = vmatmul.mubr.bf16.gmra.mrb[4].mxu0 %v8671_v42  ;;  %7598 = vmatmul.mubr.bf16.gmra.mrb[4].mxu1 %v8671_v42  ;;  %v10446_v42 = vld [vmem:[%s15119_s1 + $0xa08] ss:$16 sps:$4 sm:$0xff]   ;;  %v10449_v43 = vld [vmem:[%s15119_s1 + $0xa20] ss:$16 sps:$4 sm:$0xff]  }
 0x10b   :  { %6765 = vmatpush1.bf16.msra.mxu0 %v10359_v44  ;;  %7613 = vmatpush1.bf16.msra.mxu1 %v10362_v45  ;;  %v10451_v44 = vld [vmem:[%s15119_s1 + $0xa24] ss:$16 sps:$4 sm:$0xff]   ;;  %v10452_v45 = vld [vmem:[%s15119_s1 + $0xa28] ss:$16 sps:$4 sm:$0xff]  }
 0x10c   :  { %6766 = vmatprep.subr.bf16.mxu0 %v10367_v46  ;;  %7614 = vmatprep.subr.bf16.mxu1 %v10370_v47  ;;  %v8674_v46 = vcombine.high %v56_v37, %v72_v38  ;;  %v10457_v47 = vld [vmem:[%s15119_s1 + $0xa44] ss:$16 sps:$4 sm:$0xff]  }
 0x10d   :  { %6792 = vmatprep.mubr.bf16.mxu0 %v8642_v48  ;;  %7640 = vmatprep.mubr.bf16.mxu1 %v8642_v48  ;;  %v10460_v48 = vld [vmem:[%s15119_s1 + $0xa4c] ss:$16 sps:$4 sm:$0xff]  }
 0x10f   :  { %6767 = vmatpush1.bf16.msra.mxu0 %v10365_v49  ;;  %7615 = vmatpush1.bf16.msra.mxu1 %v10368_v50  ;;  %v12627_v49 = vld [vmem:[%s15120_s0 + $0x28] sm:$0xff] }
 0x110   :  { %6768 = vmatprep.subr.bf16.mxu0 %v10373_v51  ;;  %7616 = vmatprep.subr.bf16.mxu1 %v10376_v52  ;;  %v12632_v50 = vld [vmem:[%s15120_s0 + $0xa8] sm:$0xff]  ;;  %v8673_v51 = vcombine.low %v56_v37, %v72_v38  ;;  %v10455_v52 = vld [vmem:[%s15119_s1 + $0xa40] ss:$16 sps:$4 sm:$0xff]  }
 0x111   :  { %v10527_v37 = vld [vmem:[%s15119_s1 + $0xbc0] ss:$16 sps:$4 sm:$0xff]   ;;  %v10530_v38 = vld [vmem:[%s15119_s1 + $0xbc8] ss:$16 sps:$4 sm:$0xff]  }
 0x113   :  { %6769 = vmatpush1.bf16.msra.mxu0 %v10371_v53  ;;  %7617 = vmatpush1.bf16.msra.mxu1 %v10374_v54  ;;  %v10458_v53 = vld [vmem:[%s15119_s1 + $0xa48] ss:$16 sps:$4 sm:$0xff]   ;;  %v10463_v54 = vld [vmem:[%s15119_s1 + $0xa64] ss:$16 sps:$4 sm:$0xff]  }
 0x114   :  { %6770 = vmatprep.subr.bf16.mxu0 %v10379_v55  ;;  %7618 = vmatprep.subr.bf16.mxu1 %v10382_v56  ;;  %v10466_v55 = vld [vmem:[%s15119_s1 + $0xa6c] ss:$16 sps:$4 sm:$0xff]   ;;  %v8644_v56 = vcombine.high %v12627_v49, %v12632_v50 }
 0x117   :  { %6771 = vmatpush1.bf16.msra.mxu0 %v10377_v57  ;;  %7619 = vmatpush1.bf16.msra.mxu1 %v10380_v58  ;;  %v10461_v57 = vld [vmem:[%s15119_s1 + $0xa60] ss:$16 sps:$4 sm:$0xff]   ;;  %v10464_v58 = vld [vmem:[%s15119_s1 + $0xa68] ss:$16 sps:$4 sm:$0xff]  }
 0x118   :  { %6772 = vmatprep.subr.bf16.mxu0 %v10385_v59  ;;  %7620 = vmatprep.subr.bf16.mxu1 %v10388_v60  ;;  %v10469_v59 = vld [vmem:[%s15119_s1 + $0xa84] ss:$16 sps:$4 sm:$0xff]   ;;  %v10472_v60 = vld [vmem:[%s15119_s1 + $0xa8c] ss:$16 sps:$4 sm:$0xff]  }
 0x11b   :  { %6773 = vmatpush1.bf16.msra.mxu0 %v10383_v61  ;;  %7621 = vmatpush1.bf16.msra.mxu1 %v10386_v62  ;;  %v10467_v61 = vld [vmem:[%s15119_s1 + $0xa80] ss:$16 sps:$4 sm:$0xff]   ;;  %v10470_v62 = vld [vmem:[%s15119_s1 + $0xa88] ss:$16 sps:$4 sm:$0xff]  }
 0x11c   :  { %6774 = vmatprep.subr.bf16.mxu0 %v10391_v63  ;;  %7622 = vmatprep.subr.bf16.mxu1 %v10394_v0  ;;  %v10475_v63 = vld [vmem:[%s15119_s1 + $0xaa4] ss:$16 sps:$4 sm:$0xff]   ;;  %v10478_v0 = vld [vmem:[%s15119_s1 + $0xaac] ss:$16 sps:$4 sm:$0xff]  }
 0x11f   :  { %6775 = vmatpush1.bf16.msra.mxu0 %v10389_v1  ;;  %7623 = vmatpush1.bf16.msra.mxu1 %v10392_v2  ;;  %v10473_v1 = vld [vmem:[%s15119_s1 + $0xaa0] ss:$16 sps:$4 sm:$0xff]   ;;  %v10476_v2 = vld [vmem:[%s15119_s1 + $0xaa8] ss:$16 sps:$4 sm:$0xff]  }
 0x120   :  { %6776 = vmatprep.subr.bf16.mxu0 %v10397_v3  ;;  %7624 = vmatprep.subr.bf16.mxu1 %v10400_v4  ;;  %v10481_v3 = vld [vmem:[%s15119_s1 + $0xac4] ss:$16 sps:$4 sm:$0xff]   ;;  %v10484_v4 = vld [vmem:[%s15119_s1 + $0xacc] ss:$16 sps:$4 sm:$0xff]  }
 0x123   :  { %6777 = vmatpush1.bf16.msra.mxu0 %v10395_v5  ;;  %7625 = vmatpush1.bf16.msra.mxu1 %v10398_v6  ;;  %v10479_v5 = vld [vmem:[%s15119_s1 + $0xac0] ss:$16 sps:$4 sm:$0xff]   ;;  %v10482_v6 = vld [vmem:[%s15119_s1 + $0xac8] ss:$16 sps:$4 sm:$0xff]  }
 0x124   :  { %6778 = vmatprep.subr.bf16.mxu0 %v10403_v7  ;;  %7626 = vmatprep.subr.bf16.mxu1 %v10406_v8  ;;  %v10487_v7 = vld [vmem:[%s15119_s1 + $0xae4] ss:$16 sps:$4 sm:$0xff]   ;;  %v10490_v8 = vld [vmem:[%s15119_s1 + $0xaec] ss:$16 sps:$4 sm:$0xff]  }
 0x127   :  { %6779 = vmatpush1.bf16.msra.mxu0 %v10401_v9  ;;  %7627 = vmatpush1.bf16.msra.mxu1 %v10404_v10  ;;  %v10485_v9 = vld [vmem:[%s15119_s1 + $0xae0] ss:$16 sps:$4 sm:$0xff]   ;;  %v10488_v10 = vld [vmem:[%s15119_s1 + $0xae8] ss:$16 sps:$4 sm:$0xff]  }
 0x128   :  { %6780 = vmatprep.subr.bf16.mxu0 %v10409_v11  ;;  %7628 = vmatprep.subr.bf16.mxu1 %v10412_v12  ;;  %v10493_v11 = vld [vmem:[%s15119_s1 + $0xb04] ss:$16 sps:$4 sm:$0xff]   ;;  %v10496_v12 = vld [vmem:[%s15119_s1 + $0xb0c] ss:$16 sps:$4 sm:$0xff]  }
 0x12b   :  { %6781 = vmatpush1.bf16.msra.mxu0 %v10407_v13  ;;  %7629 = vmatpush1.bf16.msra.mxu1 %v10410_v14  ;;  %v10491_v13 = vld [vmem:[%s15119_s1 + $0xb00] ss:$16 sps:$4 sm:$0xff]   ;;  %v10494_v14 = vld [vmem:[%s15119_s1 + $0xb08] ss:$16 sps:$4 sm:$0xff]  }
 0x12c   :  { %6782 = vmatprep.subr.bf16.mxu0 %v10415_v15  ;;  %7630 = vmatprep.subr.bf16.mxu1 %v10418_v16  ;;  %v10499_v15 = vld [vmem:[%s15119_s1 + $0xb24] ss:$16 sps:$4 sm:$0xff]   ;;  %v10502_v16 = vld [vmem:[%s15119_s1 + $0xb2c] ss:$16 sps:$4 sm:$0xff]  }
 0x12f   :  { %6783 = vmatpush1.bf16.msra.mxu0 %v10413_v17  ;;  %7631 = vmatpush1.bf16.msra.mxu1 %v10416_v18  ;;  %v10497_v17 = vld [vmem:[%s15119_s1 + $0xb20] ss:$16 sps:$4 sm:$0xff]   ;;  %v10500_v18 = vld [vmem:[%s15119_s1 + $0xb28] ss:$16 sps:$4 sm:$0xff]  }
 0x130   :  { %6784 = vmatprep.subr.bf16.mxu0 %v10421_v19  ;;  %7632 = vmatprep.subr.bf16.mxu1 %v10424_v20  ;;  %v10505_v19 = vld [vmem:[%s15119_s1 + $0xb44] ss:$16 sps:$4 sm:$0xff]   ;;  %v10508_v20 = vld [vmem:[%s15119_s1 + $0xb4c] ss:$16 sps:$4 sm:$0xff]  }
 0x133   :  { %6785 = vmatpush1.bf16.msra.mxu0 %v10419_v21  ;;  %7633 = vmatpush1.bf16.msra.mxu1 %v10422_v22  ;;  %v10503_v21 = vld [vmem:[%s15119_s1 + $0xb40] ss:$16 sps:$4 sm:$0xff]   ;;  %v10506_v22 = vld [vmem:[%s15119_s1 + $0xb48] ss:$16 sps:$4 sm:$0xff]  }
 0x134   :  { %6786 = vmatprep.subr.bf16.mxu0 %v10427_v23  ;;  %7634 = vmatprep.subr.bf16.mxu1 %v10430_v24  ;;  %v10511_v23 = vld [vmem:[%s15119_s1 + $0xb64] ss:$16 sps:$4 sm:$0xff]   ;;  %v10514_v24 = vld [vmem:[%s15119_s1 + $0xb6c] ss:$16 sps:$4 sm:$0xff]  }
 0x137   :  { %6787 = vmatpush1.bf16.msra.mxu0 %v10425_v26  ;;  %7635 = vmatpush1.bf16.msra.mxu1 %v10428_v25  ;;  %v10509_v26 = vld [vmem:[%s15119_s1 + $0xb60] ss:$16 sps:$4 sm:$0xff]   ;;  %v10512_v25 = vld [vmem:[%s15119_s1 + $0xb68] ss:$16 sps:$4 sm:$0xff]  }
 0x138   :  { %6788 = vmatprep.subr.bf16.mxu0 %v10433_v27  ;;  %7636 = vmatprep.subr.bf16.mxu1 %v10436_v28  ;;  %v10517_v27 = vld [vmem:[%s15119_s1 + $0xb84] ss:$16 sps:$4 sm:$0xff]   ;;  %v10520_v28 = vld [vmem:[%s15119_s1 + $0xb8c] ss:$16 sps:$4 sm:$0xff]  }
 0x13b   :  { %6789 = vmatpush1.bf16.msra.mxu0 %v10431_v29  ;;  %7637 = vmatpush1.bf16.msra.mxu1 %v10434_v30  ;;  %v10515_v29 = vld [vmem:[%s15119_s1 + $0xb80] ss:$16 sps:$4 sm:$0xff]   ;;  %v10518_v30 = vld [vmem:[%s15119_s1 + $0xb88] ss:$16 sps:$4 sm:$0xff]  }
 0x13c   :  { %6790 = vmatprep.subr.bf16.mxu0 %v10439_v31  ;;  %7638 = vmatprep.subr.bf16.mxu1 %v10442_v32  ;;  %v10523_v31 = vld [vmem:[%s15119_s1 + $0xba4] ss:$16 sps:$4 sm:$0xff]   ;;  %v10526_v32 = vld [vmem:[%s15119_s1 + $0xbac] ss:$16 sps:$4 sm:$0xff]  }
 0x13f   :  { %6791 = vmatpush1.bf16.msra.mxu0 %v10437_v34  ;;  %7639 = vmatpush1.bf16.msra.mxu1 %v10440_v36  ;;  %v10521_v34 = vld [vmem:[%s15119_s1 + $0xba0] ss:$16 sps:$4 sm:$0xff]   ;;  %v10524_v36 = vld [vmem:[%s15119_s1 + $0xba8] ss:$16 sps:$4 sm:$0xff]  }
 0x140   :  { %6813 = vmatprep.subr.bf16.mxu0 %v10445_v33  ;;  %7661 = vmatprep.subr.bf16.mxu1 %v10448_v35  ;;  %v10529_v33 = vld [vmem:[%s15119_s1 + $0xbc4] ss:$16 sps:$4 sm:$0xff]   ;;  %v10532_v35 = vld [vmem:[%s15119_s1 + $0xbcc] ss:$16 sps:$4 sm:$0xff]  }
 0x142   :  { %6793 = vmatmul.mubr.bf16.vlgmr.msra.gmra.mrb[0].mxu0 %v8641_v39  ;;  %7641 = vmatmul.mubr.bf16.vlgmr.msra.gmra.mrb[0].mxu1 %v8641_v39  ;;  %v10535_v39 = vld [vmem:[%s15119_s1 + $0xbe4] ss:$16 sps:$4 sm:$0xff]  }
 0x143   :  { %6814 = vmatpush1.bf16.msra.mxu0 %v10443_v40  ;;  %7662 = vmatpush1.bf16.msra.mxu1 %v10446_v42  ;;  %v10538_v40 = vld [vmem:[%s15119_s1 + $0xbec] ss:$16 sps:$4 sm:$0xff]   ;;  %v10533_v42 = vld [vmem:[%s15119_s1 + $0xbe0] ss:$16 sps:$4 sm:$0xff]  }
 0x144   :  { %6815 = vmatprep.subr.bf16.mxu0 %v10451_v44  ;;  %7663 = vmatprep.subr.bf16.mxu1 %v10454_v41  ;;  %v10536_v44 = vld [vmem:[%s15119_s1 + $0xbe8] ss:$16 sps:$4 sm:$0xff]   ;;  %v10541_v41 = vld [vmem:[%s15119_s1 + $0xc04] ss:$16 sps:$4 sm:$0xff]  }
 0x145   :  { %6802 = vmatprep.mubr.bf16.mxu0 %v8674_v46  ;;  %7650 = vmatprep.mubr.bf16.mxu1 %v8674_v46  ;;  %v73_v46 = vld [vmem:[%s15120_s0 + $0x1a8] sm:$0xff] }
 0x147   :  { %6816 = vmatpush1.bf16.msra.mxu0 %v10449_v43  ;;  %7664 = vmatpush1.bf16.msra.mxu1 %v10452_v45  ;;  %v10544_v43 = vld [vmem:[%s15119_s1 + $0xc0c] ss:$16 sps:$4 sm:$0xff]  }
 0x148   :  { %6817 = vmatprep.subr.bf16.mxu0 %v10457_v47  ;;  %7665 = vmatprep.subr.bf16.mxu1 %v10460_v48  ;;  %v57_v45 = vld [vmem:[%s15120_s0 + $0x128] sm:$0xff]  ;;  %v8643_v47 = vcombine.low %v12627_v49, %v12632_v50  ;;  %v10539_v48 = vld [vmem:[%s15119_s1 + $0xc00] ss:$16 sps:$4 sm:$0xff]  }
 0x149   :  { %v10550_v49 = vld [vmem:[%s15119_s1 + $0xc2c] ss:$16 sps:$4 sm:$0xff]   ;;  %v10545_v50 = vld [vmem:[%s15119_s1 + $0xc20] ss:$16 sps:$4 sm:$0xff]  }
 0x14a   :  { %6803 = vmatmul.mubr.bf16.gmra.mrb[4].mxu0 %v8673_v51  ;;  %7651 = vmatmul.mubr.bf16.gmra.mrb[4].mxu1 %v8673_v51  ;;  %v10542_v51 = vld [vmem:[%s15119_s1 + $0xc08] ss:$16 sps:$4 sm:$0xff]  }
 0x14b   :  { %6818 = vmatpush1.bf16.msra.mxu0 %v10455_v52  ;;  %7666 = vmatpush1.bf16.msra.mxu1 %v10458_v53  ;;  %v10547_v52 = vld [vmem:[%s15119_s1 + $0xc24] ss:$16 sps:$4 sm:$0xff]   ;;  %v10548_v53 = vld [vmem:[%s15119_s1 + $0xc28] ss:$16 sps:$4 sm:$0xff]  }
 0x14c   :  { %6819 = vmatprep.subr.bf16.mxu0 %v10463_v54  ;;  %7667 = vmatprep.subr.bf16.mxu1 %v10466_v55  ;;  %v8676_v54 = vcombine.high %v57_v45, %v73_v46  ;;  %v10553_v55 = vld [vmem:[%s15119_s1 + $0xc44] ss:$16 sps:$4 sm:$0xff]  }
 0x14d   :  { %6845 = vmatprep.mubr.bf16.mxu0 %v8644_v56  ;;  %7693 = vmatprep.mubr.bf16.mxu1 %v8644_v56  ;;  %v10556_v56 = vld [vmem:[%s15119_s1 + $0xc4c] ss:$16 sps:$4 sm:$0xff]  }
 0x14f   :  { %6820 = vmatpush1.bf16.msra.mxu0 %v10461_v57  ;;  %7668 = vmatpush1.bf16.msra.mxu1 %v10464_v58  ;;  %v12839_v57 = vld [vmem:[%s15120_s0 + $0x30] sm:$0xff] }
 0x150   :  { %6821 = vmatprep.subr.bf16.mxu0 %v10469_v59  ;;  %7669 = vmatprep.subr.bf16.mxu1 %v10472_v60  ;;  %v12844_v58 = vld [vmem:[%s15120_s0 + $0xb0] sm:$0xff]  ;;  %v8675_v59 = vcombine.low %v57_v45, %v73_v46  ;;  %v10626_v46 = vld [vmem:[%s15119_s1 + $0xdc8] ss:$16 sps:$4 sm:$0xff]  }
 0x151   :  { %v10551_v60 = vld [vmem:[%s15119_s1 + $0xc40] ss:$16 sps:$4 sm:$0xff]  }
 0x152   :  { %v10623_v45 = vld [vmem:[%s15119_s1 + $0xdc0] ss:$16 sps:$4 sm:$0xff]  }
 0x153   :  { %6822 = vmatpush1.bf16.msra.mxu0 %v10467_v61  ;;  %7670 = vmatpush1.bf16.msra.mxu1 %v10470_v62  ;;  %v10554_v61 = vld [vmem:[%s15119_s1 + $0xc48] ss:$16 sps:$4 sm:$0xff]   ;;  %v10559_v62 = vld [vmem:[%s15119_s1 + $0xc64] ss:$16 sps:$4 sm:$0xff]  }
 0x154   :  { %6823 = vmatprep.subr.bf16.mxu0 %v10475_v63  ;;  %7671 = vmatprep.subr.bf16.mxu1 %v10478_v0  ;;  %v10562_v63 = vld [vmem:[%s15119_s1 + $0xc6c] ss:$16 sps:$4 sm:$0xff]   ;;  %v8646_v0 = vcombine.high %v12839_v57, %v12844_v58 }
 0x157   :  { %6824 = vmatpush1.bf16.msra.mxu0 %v10473_v1  ;;  %7672 = vmatpush1.bf16.msra.mxu1 %v10476_v2  ;;  %v10557_v1 = vld [vmem:[%s15119_s1 + $0xc60] ss:$16 sps:$4 sm:$0xff]   ;;  %v10560_v2 = vld [vmem:[%s15119_s1 + $0xc68] ss:$16 sps:$4 sm:$0xff]  }
 0x158   :  { %6825 = vmatprep.subr.bf16.mxu0 %v10481_v3  ;;  %7673 = vmatprep.subr.bf16.mxu1 %v10484_v4  ;;  %v10565_v3 = vld [vmem:[%s15119_s1 + $0xc84] ss:$16 sps:$4 sm:$0xff]   ;;  %v10568_v4 = vld [vmem:[%s15119_s1 + $0xc8c] ss:$16 sps:$4 sm:$0xff]  }
 0x15b   :  { %6826 = vmatpush1.bf16.msra.mxu0 %v10479_v5  ;;  %7674 = vmatpush1.bf16.msra.mxu1 %v10482_v6  ;;  %v10563_v5 = vld [vmem:[%s15119_s1 + $0xc80] ss:$16 sps:$4 sm:$0xff]   ;;  %v10566_v6 = vld [vmem:[%s15119_s1 + $0xc88] ss:$16 sps:$4 sm:$0xff]  }
 0x15c   :  { %6827 = vmatprep.subr.bf16.mxu0 %v10487_v7  ;;  %7675 = vmatprep.subr.bf16.mxu1 %v10490_v8  ;;  %v10571_v7 = vld [vmem:[%s15119_s1 + $0xca4] ss:$16 sps:$4 sm:$0xff]   ;;  %v10574_v8 = vld [vmem:[%s15119_s1 + $0xcac] ss:$16 sps:$4 sm:$0xff]  }
 0x15f   :  { %6828 = vmatpush1.bf16.msra.mxu0 %v10485_v9  ;;  %7676 = vmatpush1.bf16.msra.mxu1 %v10488_v10  ;;  %v10569_v9 = vld [vmem:[%s15119_s1 + $0xca0] ss:$16 sps:$4 sm:$0xff]   ;;  %v10572_v10 = vld [vmem:[%s15119_s1 + $0xca8] ss:$16 sps:$4 sm:$0xff]  }
 0x160   :  { %6829 = vmatprep.subr.bf16.mxu0 %v10493_v11  ;;  %7677 = vmatprep.subr.bf16.mxu1 %v10496_v12  ;;  %v10577_v11 = vld [vmem:[%s15119_s1 + $0xcc4] ss:$16 sps:$4 sm:$0xff]   ;;  %v10580_v12 = vld [vmem:[%s15119_s1 + $0xccc] ss:$16 sps:$4 sm:$0xff]  }
 0x163   :  { %6830 = vmatpush1.bf16.msra.mxu0 %v10491_v13  ;;  %7678 = vmatpush1.bf16.msra.mxu1 %v10494_v14  ;;  %v10575_v13 = vld [vmem:[%s15119_s1 + $0xcc0] ss:$16 sps:$4 sm:$0xff]   ;;  %v10578_v14 = vld [vmem:[%s15119_s1 + $0xcc8] ss:$16 sps:$4 sm:$0xff]  }
 0x164   :  { %6831 = vmatprep.subr.bf16.mxu0 %v10499_v15  ;;  %7679 = vmatprep.subr.bf16.mxu1 %v10502_v16  ;;  %v10583_v15 = vld [vmem:[%s15119_s1 + $0xce4] ss:$16 sps:$4 sm:$0xff]   ;;  %v10586_v16 = vld [vmem:[%s15119_s1 + $0xcec] ss:$16 sps:$4 sm:$0xff]  }
 0x167   :  { %6832 = vmatpush1.bf16.msra.mxu0 %v10497_v17  ;;  %7680 = vmatpush1.bf16.msra.mxu1 %v10500_v18  ;;  %v10581_v17 = vld [vmem:[%s15119_s1 + $0xce0] ss:$16 sps:$4 sm:$0xff]   ;;  %v10584_v18 = vld [vmem:[%s15119_s1 + $0xce8] ss:$16 sps:$4 sm:$0xff]  }
 0x168   :  { %6833 = vmatprep.subr.bf16.mxu0 %v10505_v19  ;;  %7681 = vmatprep.subr.bf16.mxu1 %v10508_v20  ;;  %v10589_v19 = vld [vmem:[%s15119_s1 + $0xd04] ss:$16 sps:$4 sm:$0xff]   ;;  %v10592_v20 = vld [vmem:[%s15119_s1 + $0xd0c] ss:$16 sps:$4 sm:$0xff]  }
 0x16b   :  { %6834 = vmatpush1.bf16.msra.mxu0 %v10503_v21  ;;  %7682 = vmatpush1.bf16.msra.mxu1 %v10506_v22  ;;  %v10587_v21 = vld [vmem:[%s15119_s1 + $0xd00] ss:$16 sps:$4 sm:$0xff]   ;;  %v10590_v22 = vld [vmem:[%s15119_s1 + $0xd08] ss:$16 sps:$4 sm:$0xff]  }
 0x16c   :  { %6835 = vmatprep.subr.bf16.mxu0 %v10511_v23  ;;  %7683 = vmatprep.subr.bf16.mxu1 %v10514_v24  ;;  %v10595_v23 = vld [vmem:[%s15119_s1 + $0xd24] ss:$16 sps:$4 sm:$0xff]   ;;  %v10598_v24 = vld [vmem:[%s15119_s1 + $0xd2c] ss:$16 sps:$4 sm:$0xff]  }
 0x16f   :  { %6836 = vmatpush1.bf16.msra.mxu0 %v10509_v26  ;;  %7684 = vmatpush1.bf16.msra.mxu1 %v10512_v25  ;;  %v10593_v26 = vld [vmem:[%s15119_s1 + $0xd20] ss:$16 sps:$4 sm:$0xff]   ;;  %v10596_v25 = vld [vmem:[%s15119_s1 + $0xd28] ss:$16 sps:$4 sm:$0xff]  }
 0x170   :  { %6837 = vmatprep.subr.bf16.mxu0 %v10517_v27  ;;  %7685 = vmatprep.subr.bf16.mxu1 %v10520_v28  ;;  %v10601_v27 = vld [vmem:[%s15119_s1 + $0xd44] ss:$16 sps:$4 sm:$0xff]   ;;  %v10604_v28 = vld [vmem:[%s15119_s1 + $0xd4c] ss:$16 sps:$4 sm:$0xff]  }
 0x173   :  { %6838 = vmatpush1.bf16.msra.mxu0 %v10515_v29  ;;  %7686 = vmatpush1.bf16.msra.mxu1 %v10518_v30  ;;  %v10599_v29 = vld [vmem:[%s15119_s1 + $0xd40] ss:$16 sps:$4 sm:$0xff]   ;;  %v10602_v30 = vld [vmem:[%s15119_s1 + $0xd48] ss:$16 sps:$4 sm:$0xff]  }
 0x174   :  { %6839 = vmatprep.subr.bf16.mxu0 %v10523_v31  ;;  %7687 = vmatprep.subr.bf16.mxu1 %v10526_v32  ;;  %v10607_v31 = vld [vmem:[%s15119_s1 + $0xd64] ss:$16 sps:$4 sm:$0xff]   ;;  %v10610_v32 = vld [vmem:[%s15119_s1 + $0xd6c] ss:$16 sps:$4 sm:$0xff]  }
 0x177   :  { %6840 = vmatpush1.bf16.msra.mxu0 %v10521_v34  ;;  %7688 = vmatpush1.bf16.msra.mxu1 %v10524_v36  ;;  %v10605_v34 = vld [vmem:[%s15119_s1 + $0xd60] ss:$16 sps:$4 sm:$0xff]   ;;  %v10608_v36 = vld [vmem:[%s15119_s1 + $0xd68] ss:$16 sps:$4 sm:$0xff]  }
 0x178   :  { %6841 = vmatprep.subr.bf16.mxu0 %v10529_v33  ;;  %7689 = vmatprep.subr.bf16.mxu1 %v10532_v35  ;;  %v10613_v33 = vld [vmem:[%s15119_s1 + $0xd84] ss:$16 sps:$4 sm:$0xff]   ;;  %v10616_v35 = vld [vmem:[%s15119_s1 + $0xd8c] ss:$16 sps:$4 sm:$0xff]  }
 0x17b   :  { %6842 = vmatpush1.bf16.msra.mxu0 %v10527_v37  ;;  %7690 = vmatpush1.bf16.msra.mxu1 %v10530_v38  ;;  %v10611_v37 = vld [vmem:[%s15119_s1 + $0xd80] ss:$16 sps:$4 sm:$0xff]   ;;  %v10614_v38 = vld [vmem:[%s15119_s1 + $0xd88] ss:$16 sps:$4 sm:$0xff]  }
 0x17c   :  { %6843 = vmatprep.subr.bf16.mxu0 %v10535_v39  ;;  %7691 = vmatprep.subr.bf16.mxu1 %v10538_v40  ;;  %v10619_v39 = vld [vmem:[%s15119_s1 + $0xda4] ss:$16 sps:$4 sm:$0xff]   ;;  %v10622_v40 = vld [vmem:[%s15119_s1 + $0xdac] ss:$16 sps:$4 sm:$0xff]  }
 0x17f   :  { %6844 = vmatpush1.bf16.msra.mxu0 %v10533_v42  ;;  %7692 = vmatpush1.bf16.msra.mxu1 %v10536_v44  ;;  %v10617_v42 = vld [vmem:[%s15119_s1 + $0xda0] ss:$16 sps:$4 sm:$0xff]   ;;  %v10620_v44 = vld [vmem:[%s15119_s1 + $0xda8] ss:$16 sps:$4 sm:$0xff]  }
 0x180   :  { %6866 = vmatprep.subr.bf16.mxu0 %v10541_v41  ;;  %7714 = vmatprep.subr.bf16.mxu1 %v10544_v43  ;;  %v10625_v41 = vld [vmem:[%s15119_s1 + $0xdc4] ss:$16 sps:$4 sm:$0xff]   ;;  %v10628_v43 = vld [vmem:[%s15119_s1 + $0xdcc] ss:$16 sps:$4 sm:$0xff]  }
 0x182   :  { %6846 = vmatmul.mubr.bf16.vlgmr.msra.gmra.mrb[0].mxu0 %v8643_v47  ;;  %7694 = vmatmul.mubr.bf16.vlgmr.msra.gmra.mrb[0].mxu1 %v8643_v47  ;;  %v10631_v47 = vld [vmem:[%s15119_s1 + $0xde4] ss:$16 sps:$4 sm:$0xff]  }
 0x183   :  { %6867 = vmatpush1.bf16.msra.mxu0 %v10539_v48  ;;  %7715 = vmatpush1.bf16.msra.mxu1 %v10542_v51  ;;  %v10634_v48 = vld [vmem:[%s15119_s1 + $0xdec] ss:$16 sps:$4 sm:$0xff]   ;;  %v10629_v51 = vld [vmem:[%s15119_s1 + $0xde0] ss:$16 sps:$4 sm:$0xff]  }
 0x184   :  { %6868 = vmatprep.subr.bf16.mxu0 %v10547_v52  ;;  %7716 = vmatprep.subr.bf16.mxu1 %v10550_v49  ;;  %v10632_v52 = vld [vmem:[%s15119_s1 + $0xde8] ss:$16 sps:$4 sm:$0xff]   ;;  %v10637_v49 = vld [vmem:[%s15119_s1 + $0xe04] ss:$16 sps:$4 sm:$0xff]  }
 0x185   :  { %6855 = vmatprep.mubr.bf16.mxu0 %v8676_v54  ;;  %7703 = vmatprep.mubr.bf16.mxu1 %v8676_v54  ;;  %v74_v54 = vld [vmem:[%s15120_s0 + $0x1b0] sm:$0xff] }
 0x187   :  { %6869 = vmatpush1.bf16.msra.mxu0 %v10545_v50  ;;  %7717 = vmatpush1.bf16.msra.mxu1 %v10548_v53  ;;  %v10640_v50 = vld [vmem:[%s15119_s1 + $0xe0c] ss:$16 sps:$4 sm:$0xff]   ;;  %v58_v53 = vld [vmem:[%s15120_s0 + $0x130] sm:$0xff] }
 0x188   :  { %6870 = vmatprep.subr.bf16.mxu0 %v10553_v55  ;;  %7718 = vmatprep.subr.bf16.mxu1 %v10556_v56  ;;  %v8645_v55 = vcombine.low %v12839_v57, %v12844_v58  ;;  %v10635_v56 = vld [vmem:[%s15119_s1 + $0xe00] ss:$16 sps:$4 sm:$0xff]   ;;  %v10646_v57 = vld [vmem:[%s15119_s1 + $0xe2c] ss:$16 sps:$4 sm:$0xff]  }
 0x189   :  { %v10641_v58 = vld [vmem:[%s15119_s1 + $0xe20] ss:$16 sps:$4 sm:$0xff]  }
 0x18a   :  { %6856 = vmatmul.mubr.bf16.gmra.mrb[4].mxu0 %v8675_v59  ;;  %7704 = vmatmul.mubr.bf16.gmra.mrb[4].mxu1 %v8675_v59  ;;  %v10638_v59 = vld [vmem:[%s15119_s1 + $0xe08] ss:$16 sps:$4 sm:$0xff]  }
 0x18b   :  { %6871 = vmatpush1.bf16.msra.mxu0 %v10551_v60  ;;  %7719 = vmatpush1.bf16.msra.mxu1 %v10554_v61  ;;  %v10643_v60 = vld [vmem:[%s15119_s1 + $0xe24] ss:$16 sps:$4 sm:$0xff]   ;;  %v10644_v61 = vld [vmem:[%s15119_s1 + $0xe28] ss:$16 sps:$4 sm:$0xff]  }
 0x18c   :  { %6872 = vmatprep.subr.bf16.mxu0 %v10559_v62  ;;  %7720 = vmatprep.subr.bf16.mxu1 %v10562_v63  ;;  %v8678_v62 = vcombine.high %v58_v53, %v74_v54  ;;  %v10649_v63 = vld [vmem:[%s15119_s1 + $0xe44] ss:$16 sps:$4 sm:$0xff]  }
 0x18d   :  { %6898 = vmatprep.mubr.bf16.mxu0 %v8646_v0  ;;  %7746 = vmatprep.mubr.bf16.mxu1 %v8646_v0  ;;  %v10652_v0 = vld [vmem:[%s15119_s1 + $0xe4c] ss:$16 sps:$4 sm:$0xff]  }
 0x18f   :  { %6873 = vmatpush1.bf16.msra.mxu0 %v10557_v1  ;;  %7721 = vmatpush1.bf16.msra.mxu1 %v10560_v2  ;;  %v13051_v1 = vld [vmem:[%s15120_s0 + $0x38] sm:$0xff] }
 0x190   :  { %6874 = vmatprep.subr.bf16.mxu0 %v10565_v3  ;;  %7722 = vmatprep.subr.bf16.mxu1 %v10568_v4  ;;  %v13056_v2 = vld [vmem:[%s15120_s0 + $0xb8] sm:$0xff]  ;;  %v8677_v3 = vcombine.low %v58_v53, %v74_v54  ;;  %v10647_v4 = vld [vmem:[%s15119_s1 + $0xe40] ss:$16 sps:$4 sm:$0xff]  }
 0x191   :  { %v10719_v53 = vld [vmem:[%s15119_s1 + $0xfc0] ss:$16 sps:$4 sm:$0xff]   ;;  %v10722_v54 = vld [vmem:[%s15119_s1 + $0xfc8] ss:$16 sps:$4 sm:$0xff]  }
 0x193   :  { %6875 = vmatpush1.bf16.msra.mxu0 %v10563_v5  ;;  %7723 = vmatpush1.bf16.msra.mxu1 %v10566_v6  ;;  %v10650_v5 = vld [vmem:[%s15119_s1 + $0xe48] ss:$16 sps:$4 sm:$0xff]   ;;  %v10655_v6 = vld [vmem:[%s15119_s1 + $0xe64] ss:$16 sps:$4 sm:$0xff]  }
 0x194   :  { %6876 = vmatprep.subr.bf16.mxu0 %v10571_v7  ;;  %7724 = vmatprep.subr.bf16.mxu1 %v10574_v8  ;;  %v10658_v7 = vld [vmem:[%s15119_s1 + $0xe6c] ss:$16 sps:$4 sm:$0xff]   ;;  %v8648_v8 = vcombine.high %v13051_v1, %v13056_v2 }
 0x197   :  { %6877 = vmatpush1.bf16.msra.mxu0 %v10569_v9  ;;  %7725 = vmatpush1.bf16.msra.mxu1 %v10572_v10  ;;  %v10653_v9 = vld [vmem:[%s15119_s1 + $0xe60] ss:$16 sps:$4 sm:$0xff]   ;;  %v10656_v10 = vld [vmem:[%s15119_s1 + $0xe68] ss:$16 sps:$4 sm:$0xff]  }
 0x198   :  { %6878 = vmatprep.subr.bf16.mxu0 %v10577_v11  ;;  %7726 = vmatprep.subr.bf16.mxu1 %v10580_v12  ;;  %v10661_v11 = vld [vmem:[%s15119_s1 + $0xe84] ss:$16 sps:$4 sm:$0xff]   ;;  %v10664_v12 = vld [vmem:[%s15119_s1 + $0xe8c] ss:$16 sps:$4 sm:$0xff]  }
 0x19b   :  { %6879 = vmatpush1.bf16.msra.mxu0 %v10575_v13  ;;  %7727 = vmatpush1.bf16.msra.mxu1 %v10578_v14  ;;  %v10659_v13 = vld [vmem:[%s15119_s1 + $0xe80] ss:$16 sps:$4 sm:$0xff]   ;;  %v10662_v14 = vld [vmem:[%s15119_s1 + $0xe88] ss:$16 sps:$4 sm:$0xff]  }
 0x19c   :  { %6880 = vmatprep.subr.bf16.mxu0 %v10583_v15  ;;  %7728 = vmatprep.subr.bf16.mxu1 %v10586_v16  ;;  %v10667_v15 = vld [vmem:[%s15119_s1 + $0xea4] ss:$16 sps:$4 sm:$0xff]   ;;  %v10670_v16 = vld [vmem:[%s15119_s1 + $0xeac] ss:$16 sps:$4 sm:$0xff]  }
 0x19f   :  { %6881 = vmatpush1.bf16.msra.mxu0 %v10581_v17  ;;  %7729 = vmatpush1.bf16.msra.mxu1 %v10584_v18  ;;  %v10665_v17 = vld [vmem:[%s15119_s1 + $0xea0] ss:$16 sps:$4 sm:$0xff]   ;;  %v10668_v18 = vld [vmem:[%s15119_s1 + $0xea8] ss:$16 sps:$4 sm:$0xff]  }
 0x1a0   :  { %6882 = vmatprep.subr.bf16.mxu0 %v10589_v19  ;;  %7730 = vmatprep.subr.bf16.mxu1 %v10592_v20  ;;  %v10673_v19 = vld [vmem:[%s15119_s1 + $0xec4] ss:$16 sps:$4 sm:$0xff]   ;;  %v10676_v20 = vld [vmem:[%s15119_s1 + $0xecc] ss:$16 sps:$4 sm:$0xff]  }
 0x1a3   :  { %6883 = vmatpush1.bf16.msra.mxu0 %v10587_v21  ;;  %7731 = vmatpush1.bf16.msra.mxu1 %v10590_v22  ;;  %v10671_v21 = vld [vmem:[%s15119_s1 + $0xec0] ss:$16 sps:$4 sm:$0xff]   ;;  %v10674_v22 = vld [vmem:[%s15119_s1 + $0xec8] ss:$16 sps:$4 sm:$0xff]  }
 0x1a4   :  { %6884 = vmatprep.subr.bf16.mxu0 %v10595_v23  ;;  %7732 = vmatprep.subr.bf16.mxu1 %v10598_v24  ;;  %v10679_v23 = vld [vmem:[%s15119_s1 + $0xee4] ss:$16 sps:$4 sm:$0xff]   ;;  %v10682_v24 = vld [vmem:[%s15119_s1 + $0xeec] ss:$16 sps:$4 sm:$0xff]  }
 0x1a7   :  { %6885 = vmatpush1.bf16.msra.mxu0 %v10593_v26  ;;  %7733 = vmatpush1.bf16.msra.mxu1 %v10596_v25  ;;  %v10677_v26 = vld [vmem:[%s15119_s1 + $0xee0] ss:$16 sps:$4 sm:$0xff]   ;;  %v10680_v25 = vld [vmem:[%s15119_s1 + $0xee8] ss:$16 sps:$4 sm:$0xff]  }
 0x1a8   :  { %6886 = vmatprep.subr.bf16.mxu0 %v10601_v27  ;;  %7734 = vmatprep.subr.bf16.mxu1 %v10604_v28  ;;  %v10685_v27 = vld [vmem:[%s15119_s1 + $0xf04] ss:$16 sps:$4 sm:$0xff]   ;;  %v10688_v28 = vld [vmem:[%s15119_s1 + $0xf0c] ss:$16 sps:$4 sm:$0xff]  }
 0x1ab   :  { %6887 = vmatpush1.bf16.msra.mxu0 %v10599_v29  ;;  %7735 = vmatpush1.bf16.msra.mxu1 %v10602_v30  ;;  %v10683_v29 = vld [vmem:[%s15119_s1 + $0xf00] ss:$16 sps:$4 sm:$0xff]   ;;  %v10686_v30 = vld [vmem:[%s15119_s1 + $0xf08] ss:$16 sps:$4 sm:$0xff]  }
 0x1ac   :  { %6888 = vmatprep.subr.bf16.mxu0 %v10607_v31  ;;  %7736 = vmatprep.subr.bf16.mxu1 %v10610_v32  ;;  %v10691_v31 = vld [vmem:[%s15119_s1 + $0xf24] ss:$16 sps:$4 sm:$0xff]   ;;  %v10694_v32 = vld [vmem:[%s15119_s1 + $0xf2c] ss:$16 sps:$4 sm:$0xff]  }
 0x1af   :  { %6889 = vmatpush1.bf16.msra.mxu0 %v10605_v34  ;;  %7737 = vmatpush1.bf16.msra.mxu1 %v10608_v36  ;;  %v10689_v34 = vld [vmem:[%s15119_s1 + $0xf20] ss:$16 sps:$4 sm:$0xff]   ;;  %v10692_v36 = vld [vmem:[%s15119_s1 + $0xf28] ss:$16 sps:$4 sm:$0xff]  }
 0x1b0   :  { %6890 = vmatprep.subr.bf16.mxu0 %v10613_v33  ;;  %7738 = vmatprep.subr.bf16.mxu1 %v10616_v35  ;;  %v10697_v33 = vld [vmem:[%s15119_s1 + $0xf44] ss:$16 sps:$4 sm:$0xff]   ;;  %v10700_v35 = vld [vmem:[%s15119_s1 + $0xf4c] ss:$16 sps:$4 sm:$0xff]  }
 0x1b3   :  { %6891 = vmatpush1.bf16.msra.mxu0 %v10611_v37  ;;  %7739 = vmatpush1.bf16.msra.mxu1 %v10614_v38  ;;  %v10695_v37 = vld [vmem:[%s15119_s1 + $0xf40] ss:$16 sps:$4 sm:$0xff]   ;;  %v10698_v38 = vld [vmem:[%s15119_s1 + $0xf48] ss:$16 sps:$4 sm:$0xff]  }
 0x1b4   :  { %6892 = vmatprep.subr.bf16.mxu0 %v10619_v39  ;;  %7740 = vmatprep.subr.bf16.mxu1 %v10622_v40  ;;  %v10703_v39 = vld [vmem:[%s15119_s1 + $0xf64] ss:$16 sps:$4 sm:$0xff]   ;;  %v10706_v40 = vld [vmem:[%s15119_s1 + $0xf6c] ss:$16 sps:$4 sm:$0xff]  }
 0x1b7   :  { %6893 = vmatpush1.bf16.msra.mxu0 %v10617_v42  ;;  %7741 = vmatpush1.bf16.msra.mxu1 %v10620_v44  ;;  %v10701_v42 = vld [vmem:[%s15119_s1 + $0xf60] ss:$16 sps:$4 sm:$0xff]   ;;  %v10704_v44 = vld [vmem:[%s15119_s1 + $0xf68] ss:$16 sps:$4 sm:$0xff]  }
 0x1b8   :  { %6894 = vmatprep.subr.bf16.mxu0 %v10625_v41  ;;  %7742 = vmatprep.subr.bf16.mxu1 %v10628_v43  ;;  %v10709_v41 = vld [vmem:[%s15119_s1 + $0xf84] ss:$16 sps:$4 sm:$0xff]   ;;  %v10712_v43 = vld [vmem:[%s15119_s1 + $0xf8c] ss:$16 sps:$4 sm:$0xff]  }
 0x1bb   :  { %6895 = vmatpush1.bf16.msra.mxu0 %v10623_v45  ;;  %7743 = vmatpush1.bf16.msra.mxu1 %v10626_v46  ;;  %v10707_v45 = vld [vmem:[%s15119_s1 + $0xf80] ss:$16 sps:$4 sm:$0xff]   ;;  %v10710_v46 = vld [vmem:[%s15119_s1 + $0xf88] ss:$16 sps:$4 sm:$0xff]  }
 0x1bc   :  { %6896 = vmatprep.subr.bf16.mxu0 %v10631_v47  ;;  %7744 = vmatprep.subr.bf16.mxu1 %v10634_v48  ;;  %v10715_v47 = vld [vmem:[%s15119_s1 + $0xfa4] ss:$16 sps:$4 sm:$0xff]   ;;  %v10718_v48 = vld [vmem:[%s15119_s1 + $0xfac] ss:$16 sps:$4 sm:$0xff]  }
 0x1bf   :  { %6897 = vmatpush1.bf16.msra.mxu0 %v10629_v51  ;;  %7745 = vmatpush1.bf16.msra.mxu1 %v10632_v52  ;;  %v10713_v51 = vld [vmem:[%s15119_s1 + $0xfa0] ss:$16 sps:$4 sm:$0xff]   ;;  %v10716_v52 = vld [vmem:[%s15119_s1 + $0xfa8] ss:$16 sps:$4 sm:$0xff]  }
 0x1c0   :  { %6919 = vmatprep.subr.bf16.mxu0 %v10637_v49  ;;  %7767 = vmatprep.subr.bf16.mxu1 %v10640_v50  ;;  %v10721_v49 = vld [vmem:[%s15119_s1 + $0xfc4] ss:$16 sps:$4 sm:$0xff]   ;;  %v10724_v50 = vld [vmem:[%s15119_s1 + $0xfcc] ss:$16 sps:$4 sm:$0xff]  }
 0x1c2   :  { %6899 = vmatmul.mubr.bf16.vlgmr.msra.gmra.mrb[0].mxu0 %v8645_v55  ;;  %7747 = vmatmul.mubr.bf16.vlgmr.msra.gmra.mrb[0].mxu1 %v8645_v55  ;;  %v10727_v55 = vld [vmem:[%s15119_s1 + $0xfe4] ss:$16 sps:$4 sm:$0xff]  }
 0x1c3   :  { %6920 = vmatpush1.bf16.msra.mxu0 %v10635_v56  ;;  %7768 = vmatpush1.bf16.msra.mxu1 %v10638_v59  ;;  %v10730_v56 = vld [vmem:[%s15119_s1 + $0xfec] ss:$16 sps:$4 sm:$0xff]   ;;  %v10725_v59 = vld [vmem:[%s15119_s1 + $0xfe0] ss:$16 sps:$4 sm:$0xff]  }
 0x1c4   :  { %6921 = vmatprep.subr.bf16.mxu0 %v10643_v60  ;;  %7769 = vmatprep.subr.bf16.mxu1 %v10646_v57  ;;  %v10728_v60 = vld [vmem:[%s15119_s1 + $0xfe8] ss:$16 sps:$4 sm:$0xff]   ;;  %v10733_v57 = vld [vmem:[%s15119_s1 + $0x1004] ss:$16 sps:$4 sm:$0xff]  }
 0x1c5   :  { %6908 = vmatprep.mubr.bf16.mxu0 %v8678_v62  ;;  %7756 = vmatprep.mubr.bf16.mxu1 %v8678_v62  ;;  %v75_v62 = vld [vmem:[%s15120_s0 + $0x1b8] sm:$0xff] }
 0x1c7   :  { %6922 = vmatpush1.bf16.msra.mxu0 %v10641_v58  ;;  %7770 = vmatpush1.bf16.msra.mxu1 %v10644_v61  ;;  %v10736_v58 = vld [vmem:[%s15119_s1 + $0x100c] ss:$16 sps:$4 sm:$0xff]  }
 0x1c8   :  { %6923 = vmatprep.subr.bf16.mxu0 %v10649_v63  ;;  %7771 = vmatprep.subr.bf16.mxu1 %v10652_v0  ;;  %v59_v61 = vld [vmem:[%s15120_s0 + $0x138] sm:$0xff]  ;;  %v8647_v63 = vcombine.low %v13051_v1, %v13056_v2  ;;  %v10731_v0 = vld [vmem:[%s15119_s1 + $0x1000] ss:$16 sps:$4 sm:$0xff]  }
 0x1c9   :  { %v10742_v1 = vld [vmem:[%s15119_s1 + $0x102c] ss:$16 sps:$4 sm:$0xff]   ;;  %v10737_v2 = vld [vmem:[%s15119_s1 + $0x1020] ss:$16 sps:$4 sm:$0xff]  }
 0x1ca   :  { %6909 = vmatmul.mubr.bf16.gmra.mrb[4].mxu0 %v8677_v3  ;;  %7757 = vmatmul.mubr.bf16.gmra.mrb[4].mxu1 %v8677_v3  ;;  %v10734_v3 = vld [vmem:[%s15119_s1 + $0x1008] ss:$16 sps:$4 sm:$0xff]  }
 0x1cb   :  { %6924 = vmatpush1.bf16.msra.mxu0 %v10647_v4  ;;  %7772 = vmatpush1.bf16.msra.mxu1 %v10650_v5  ;;  %v10739_v4 = vld [vmem:[%s15119_s1 + $0x1024] ss:$16 sps:$4 sm:$0xff]   ;;  %v10740_v5 = vld [vmem:[%s15119_s1 + $0x1028] ss:$16 sps:$4 sm:$0xff]  }
 0x1cc   :  { %6925 = vmatprep.subr.bf16.mxu0 %v10655_v6  ;;  %7773 = vmatprep.subr.bf16.mxu1 %v10658_v7  ;;  %v8680_v6 = vcombine.high %v59_v61, %v75_v62  ;;  %v10745_v7 = vld [vmem:[%s15119_s1 + $0x1044] ss:$16 sps:$4 sm:$0xff]  }
 0x1cd   :  { %6951 = vmatprep.mubr.bf16.mxu0 %v8648_v8  ;;  %7799 = vmatprep.mubr.bf16.mxu1 %v8648_v8  ;;  %v10748_v8 = vld [vmem:[%s15119_s1 + $0x104c] ss:$16 sps:$4 sm:$0xff]  }
 0x1cf   :  { %6926 = vmatpush1.bf16.msra.mxu0 %v10653_v9  ;;  %7774 = vmatpush1.bf16.msra.mxu1 %v10656_v10  ;;  %v13263_v9 = vld [vmem:[%s15120_s0 + $0x40] sm:$0xff] }
 0x1d0   :  { %6927 = vmatprep.subr.bf16.mxu0 %v10661_v11  ;;  %7775 = vmatprep.subr.bf16.mxu1 %v10664_v12  ;;  %v13268_v10 = vld [vmem:[%s15120_s0 + $0xc0] sm:$0xff]  ;;  %v8679_v11 = vcombine.low %v59_v61, %v75_v62  ;;  %v10818_v62 = vld [vmem:[%s15119_s1 + $0x11c8] ss:$16 sps:$4 sm:$0xff]  }
 0x1d1   :  { %v10743_v12 = vld [vmem:[%s15119_s1 + $0x1040] ss:$16 sps:$4 sm:$0xff]  }
 0x1d2   :  { %v10815_v61 = vld [vmem:[%s15119_s1 + $0x11c0] ss:$16 sps:$4 sm:$0xff]  }
 0x1d3   :  { %6928 = vmatpush1.bf16.msra.mxu0 %v10659_v13  ;;  %7776 = vmatpush1.bf16.msra.mxu1 %v10662_v14  ;;  %v10746_v13 = vld [vmem:[%s15119_s1 + $0x1048] ss:$16 sps:$4 sm:$0xff]   ;;  %v10751_v14 = vld [vmem:[%s15119_s1 + $0x1064] ss:$16 sps:$4 sm:$0xff]  }
 0x1d4   :  { %6929 = vmatprep.subr.bf16.mxu0 %v10667_v15  ;;  %7777 = vmatprep.subr.bf16.mxu1 %v10670_v16  ;;  %v10754_v15 = vld [vmem:[%s15119_s1 + $0x106c] ss:$16 sps:$4 sm:$0xff]   ;;  %v8650_v16 = vcombine.high %v13263_v9, %v13268_v10 }
 0x1d7   :  { %6930 = vmatpush1.bf16.msra.mxu0 %v10665_v17  ;;  %7778 = vmatpush1.bf16.msra.mxu1 %v10668_v18  ;;  %v10749_v17 = vld [vmem:[%s15119_s1 + $0x1060] ss:$16 sps:$4 sm:$0xff]   ;;  %v10752_v18 = vld [vmem:[%s15119_s1 + $0x1068] ss:$16 sps:$4 sm:$0xff]  }
 0x1d8   :  { %6931 = vmatprep.subr.bf16.mxu0 %v10673_v19  ;;  %7779 = vmatprep.subr.bf16.mxu1 %v10676_v20  ;;  %v10757_v19 = vld [vmem:[%s15119_s1 + $0x1084] ss:$16 sps:$4 sm:$0xff]   ;;  %v10760_v20 = vld [vmem:[%s15119_s1 + $0x108c] ss:$16 sps:$4 sm:$0xff]  }
 0x1db   :  { %6932 = vmatpush1.bf16.msra.mxu0 %v10671_v21  ;;  %7780 = vmatpush1.bf16.msra.mxu1 %v10674_v22  ;;  %v10755_v21 = vld [vmem:[%s15119_s1 + $0x1080] ss:$16 sps:$4 sm:$0xff]   ;;  %v10758_v22 = vld [vmem:[%s15119_s1 + $0x1088] ss:$16 sps:$4 sm:$0xff]  }
 0x1dc   :  { %6933 = vmatprep.subr.bf16.mxu0 %v10679_v23  ;;  %7781 = vmatprep.subr.bf16.mxu1 %v10682_v24  ;;  %v10763_v23 = vld [vmem:[%s15119_s1 + $0x10a4] ss:$16 sps:$4 sm:$0xff]   ;;  %v10766_v24 = vld [vmem:[%s15119_s1 + $0x10ac] ss:$16 sps:$4 sm:$0xff]  }
 0x1df   :  { %6934 = vmatpush1.bf16.msra.mxu0 %v10677_v26  ;;  %7782 = vmatpush1.bf16.msra.mxu1 %v10680_v25  ;;  %v10761_v26 = vld [vmem:[%s15119_s1 + $0x10a0] ss:$16 sps:$4 sm:$0xff]   ;;  %v10764_v25 = vld [vmem:[%s15119_s1 + $0x10a8] ss:$16 sps:$4 sm:$0xff]  }
 0x1e0   :  { %6935 = vmatprep.subr.bf16.mxu0 %v10685_v27  ;;  %7783 = vmatprep.subr.bf16.mxu1 %v10688_v28  ;;  %v10769_v27 = vld [vmem:[%s15119_s1 + $0x10c4] ss:$16 sps:$4 sm:$0xff]   ;;  %v10772_v28 = vld [vmem:[%s15119_s1 + $0x10cc] ss:$16 sps:$4 sm:$0xff]  }
 0x1e3   :  { %6936 = vmatpush1.bf16.msra.mxu0 %v10683_v29  ;;  %7784 = vmatpush1.bf16.msra.mxu1 %v10686_v30  ;;  %v10767_v29 = vld [vmem:[%s15119_s1 + $0x10c0] ss:$16 sps:$4 sm:$0xff]   ;;  %v10770_v30 = vld [vmem:[%s15119_s1 + $0x10c8] ss:$16 sps:$4 sm:$0xff]  }
 0x1e4   :  { %6937 = vmatprep.subr.bf16.mxu0 %v10691_v31  ;;  %7785 = vmatprep.subr.bf16.mxu1 %v10694_v32  ;;  %v10775_v31 = vld [vmem:[%s15119_s1 + $0x10e4] ss:$16 sps:$4 sm:$0xff]   ;;  %v10778_v32 = vld [vmem:[%s15119_s1 + $0x10ec] ss:$16 sps:$4 sm:$0xff]  }
 0x1e7   :  { %6938 = vmatpush1.bf16.msra.mxu0 %v10689_v34  ;;  %7786 = vmatpush1.bf16.msra.mxu1 %v10692_v36  ;;  %v10773_v34 = vld [vmem:[%s15119_s1 + $0x10e0] ss:$16 sps:$4 sm:$0xff]   ;;  %v10776_v36 = vld [vmem:[%s15119_s1 + $0x10e8] ss:$16 sps:$4 sm:$0xff]  }
 0x1e8   :  { %6939 = vmatprep.subr.bf16.mxu0 %v10697_v33  ;;  %7787 = vmatprep.subr.bf16.mxu1 %v10700_v35  ;;  %v10781_v33 = vld [vmem:[%s15119_s1 + $0x1104] ss:$16 sps:$4 sm:$0xff]   ;;  %v10784_v35 = vld [vmem:[%s15119_s1 + $0x110c] ss:$16 sps:$4 sm:$0xff]  }
 0x1eb   :  { %6940 = vmatpush1.bf16.msra.mxu0 %v10695_v37  ;;  %7788 = vmatpush1.bf16.msra.mxu1 %v10698_v38  ;;  %v10779_v37 = vld [vmem:[%s15119_s1 + $0x1100] ss:$16 sps:$4 sm:$0xff]   ;;  %v10782_v38 = vld [vmem:[%s15119_s1 + $0x1108] ss:$16 sps:$4 sm:$0xff]  }
 0x1ec   :  { %6941 = vmatprep.subr.bf16.mxu0 %v10703_v39  ;;  %7789 = vmatprep.subr.bf16.mxu1 %v10706_v40  ;;  %v10787_v39 = vld [vmem:[%s15119_s1 + $0x1124] ss:$16 sps:$4 sm:$0xff]   ;;  %v10790_v40 = vld [vmem:[%s15119_s1 + $0x112c] ss:$16 sps:$4 sm:$0xff]  }
 0x1ef   :  { %6942 = vmatpush1.bf16.msra.mxu0 %v10701_v42  ;;  %7790 = vmatpush1.bf16.msra.mxu1 %v10704_v44  ;;  %v10785_v42 = vld [vmem:[%s15119_s1 + $0x1120] ss:$16 sps:$4 sm:$0xff]   ;;  %v10788_v44 = vld [vmem:[%s15119_s1 + $0x1128] ss:$16 sps:$4 sm:$0xff]  }
 0x1f0   :  { %6943 = vmatprep.subr.bf16.mxu0 %v10709_v41  ;;  %7791 = vmatprep.subr.bf16.mxu1 %v10712_v43  ;;  %v10793_v41 = vld [vmem:[%s15119_s1 + $0x1144] ss:$16 sps:$4 sm:$0xff]   ;;  %v10796_v43 = vld [vmem:[%s15119_s1 + $0x114c] ss:$16 sps:$4 sm:$0xff]  }
 0x1f3   :  { %6944 = vmatpush1.bf16.msra.mxu0 %v10707_v45  ;;  %7792 = vmatpush1.bf16.msra.mxu1 %v10710_v46  ;;  %v10791_v45 = vld [vmem:[%s15119_s1 + $0x1140] ss:$16 sps:$4 sm:$0xff]   ;;  %v10794_v46 = vld [vmem:[%s15119_s1 + $0x1148] ss:$16 sps:$4 sm:$0xff]  }
 0x1f4   :  { %6945 = vmatprep.subr.bf16.mxu0 %v10715_v47  ;;  %7793 = vmatprep.subr.bf16.mxu1 %v10718_v48  ;;  %v10799_v47 = vld [vmem:[%s15119_s1 + $0x1164] ss:$16 sps:$4 sm:$0xff]   ;;  %v10802_v48 = vld [vmem:[%s15119_s1 + $0x116c] ss:$16 sps:$4 sm:$0xff]  }
 0x1f7   :  { %6946 = vmatpush1.bf16.msra.mxu0 %v10713_v51  ;;  %7794 = vmatpush1.bf16.msra.mxu1 %v10716_v52  ;;  %v10797_v51 = vld [vmem:[%s15119_s1 + $0x1160] ss:$16 sps:$4 sm:$0xff]   ;;  %v10800_v52 = vld [vmem:[%s15119_s1 + $0x1168] ss:$16 sps:$4 sm:$0xff]  }
 0x1f8   :  { %6947 = vmatprep.subr.bf16.mxu0 %v10721_v49  ;;  %7795 = vmatprep.subr.bf16.mxu1 %v10724_v50  ;;  %v10805_v49 = vld [vmem:[%s15119_s1 + $0x1184] ss:$16 sps:$4 sm:$0xff]   ;;  %v10808_v50 = vld [vmem:[%s15119_s1 + $0x118c] ss:$16 sps:$4 sm:$0xff]  }
 0x1fb   :  { %6948 = vmatpush1.bf16.msra.mxu0 %v10719_v53  ;;  %7796 = vmatpush1.bf16.msra.mxu1 %v10722_v54  ;;  %v10803_v53 = vld [vmem:[%s15119_s1 + $0x1180] ss:$16 sps:$4 sm:$0xff]   ;;  %v10806_v54 = vld [vmem:[%s15119_s1 + $0x1188] ss:$16 sps:$4 sm:$0xff]  }
 0x1fc   :  { %6949 = vmatprep.subr.bf16.mxu0 %v10727_v55  ;;  %7797 = vmatprep.subr.bf16.mxu1 %v10730_v56  ;;  %v10811_v55 = vld [vmem:[%s15119_s1 + $0x11a4] ss:$16 sps:$4 sm:$0xff]   ;;  %v10814_v56 = vld [vmem:[%s15119_s1 + $0x11ac] ss:$16 sps:$4 sm:$0xff]  }
 0x1ff   :  { %6950 = vmatpush1.bf16.msra.mxu0 %v10725_v59  ;;  %7798 = vmatpush1.bf16.msra.mxu1 %v10728_v60  ;;  %v10809_v59 = vld [vmem:[%s15119_s1 + $0x11a0] ss:$16 sps:$4 sm:$0xff]   ;;  %v10812_v60 = vld [vmem:[%s15119_s1 + $0x11a8] ss:$16 sps:$4 sm:$0xff]  }
 0x200   :  { %6972 = vmatprep.subr.bf16.mxu0 %v10733_v57  ;;  %7820 = vmatprep.subr.bf16.mxu1 %v10736_v58  ;;  %v10817_v57 = vld [vmem:[%s15119_s1 + $0x11c4] ss:$16 sps:$4 sm:$0xff]   ;;  %v10820_v58 = vld [vmem:[%s15119_s1 + $0x11cc] ss:$16 sps:$4 sm:$0xff]  }
 0x202   :  { %6952 = vmatmul.mubr.bf16.vlgmr.msra.gmra.mrb[0].mxu0 %v8647_v63  ;;  %7800 = vmatmul.mubr.bf16.vlgmr.msra.gmra.mrb[0].mxu1 %v8647_v63  ;;  %v10823_v63 = vld [vmem:[%s15119_s1 + $0x11e4] ss:$16 sps:$4 sm:$0xff]  }
 0x203   :  { %6973 = vmatpush1.bf16.msra.mxu0 %v10731_v0  ;;  %7821 = vmatpush1.bf16.msra.mxu1 %v10734_v3  ;;  %v10826_v0 = vld [vmem:[%s15119_s1 + $0x11ec] ss:$16 sps:$4 sm:$0xff]   ;;  %v10821_v3 = vld [vmem:[%s15119_s1 + $0x11e0] ss:$16 sps:$4 sm:$0xff]  }
 0x204   :  { %6974 = vmatprep.subr.bf16.mxu0 %v10739_v4  ;;  %7822 = vmatprep.subr.bf16.mxu1 %v10742_v1  ;;  %v10824_v4 = vld [vmem:[%s15119_s1 + $0x11e8] ss:$16 sps:$4 sm:$0xff]   ;;  %v10829_v1 = vld [vmem:[%s15119_s1 + $0x1204] ss:$16 sps:$4 sm:$0xff]  }
 0x205   :  { %6961 = vmatprep.mubr.bf16.mxu0 %v8680_v6  ;;  %7809 = vmatprep.mubr.bf16.mxu1 %v8680_v6  ;;  %v76_v6 = vld [vmem:[%s15120_s0 + $0x1c0] sm:$0xff] }
 0x207   :  { %6975 = vmatpush1.bf16.msra.mxu0 %v10737_v2  ;;  %7823 = vmatpush1.bf16.msra.mxu1 %v10740_v5  ;;  %v10832_v2 = vld [vmem:[%s15119_s1 + $0x120c] ss:$16 sps:$4 sm:$0xff]   ;;  %v60_v5 = vld [vmem:[%s15120_s0 + $0x140] sm:$0xff] }
 0x208   :  { %6976 = vmatprep.subr.bf16.mxu0 %v10745_v7  ;;  %7824 = vmatprep.subr.bf16.mxu1 %v10748_v8  ;;  %v8649_v7 = vcombine.low %v13263_v9, %v13268_v10  ;;  %v10827_v8 = vld [vmem:[%s15119_s1 + $0x1200] ss:$16 sps:$4 sm:$0xff]   ;;  %v10838_v9 = vld [vmem:[%s15119_s1 + $0x122c] ss:$16 sps:$4 sm:$0xff]  }
 0x209   :  { %v10833_v10 = vld [vmem:[%s15119_s1 + $0x1220] ss:$16 sps:$4 sm:$0xff]  }
 0x20a   :  { %6962 = vmatmul.mubr.bf16.gmra.mrb[4].mxu0 %v8679_v11  ;;  %7810 = vmatmul.mubr.bf16.gmra.mrb[4].mxu1 %v8679_v11  ;;  %v10830_v11 = vld [vmem:[%s15119_s1 + $0x1208] ss:$16 sps:$4 sm:$0xff]  }
 0x20b   :  { %6977 = vmatpush1.bf16.msra.mxu0 %v10743_v12  ;;  %7825 = vmatpush1.bf16.msra.mxu1 %v10746_v13  ;;  %v10835_v12 = vld [vmem:[%s15119_s1 + $0x1224] ss:$16 sps:$4 sm:$0xff]   ;;  %v10836_v13 = vld [vmem:[%s15119_s1 + $0x1228] ss:$16 sps:$4 sm:$0xff]  }
 0x20c   :  { %6978 = vmatprep.subr.bf16.mxu0 %v10751_v14  ;;  %7826 = vmatprep.subr.bf16.mxu1 %v10754_v15  ;;  %v8682_v14 = vcombine.high %v60_v5, %v76_v6  ;;  %v10841_v15 = vld [vmem:[%s15119_s1 + $0x1244] ss:$16 sps:$4 sm:$0xff]  }
 0x20d   :  { %7004 = vmatprep.mubr.bf16.mxu0 %v8650_v16  ;;  %7852 = vmatprep.mubr.bf16.mxu1 %v8650_v16  ;;  %v10844_v16 = vld [vmem:[%s15119_s1 + $0x124c] ss:$16 sps:$4 sm:$0xff]  }
 0x20f   :  { %6979 = vmatpush1.bf16.msra.mxu0 %v10749_v17  ;;  %7827 = vmatpush1.bf16.msra.mxu1 %v10752_v18  ;;  %v13475_v17 = vld [vmem:[%s15120_s0 + $0x48] sm:$0xff] }
 0x210   :  { %6980 = vmatprep.subr.bf16.mxu0 %v10757_v19  ;;  %7828 = vmatprep.subr.bf16.mxu1 %v10760_v20  ;;  %v13480_v18 = vld [vmem:[%s15120_s0 + $0xc8] sm:$0xff]  ;;  %v8681_v19 = vcombine.low %v60_v5, %v76_v6  ;;  %v10839_v20 = vld [vmem:[%s15119_s1 + $0x1240] ss:$16 sps:$4 sm:$0xff]  }
 0x211   :  { %v10911_v5 = vld [vmem:[%s15119_s1 + $0x13c0] ss:$16 sps:$4 sm:$0xff]   ;;  %v10914_v6 = vld [vmem:[%s15119_s1 + $0x13c8] ss:$16 sps:$4 sm:$0xff]  }
 0x213   :  { %6981 = vmatpush1.bf16.msra.mxu0 %v10755_v21  ;;  %7829 = vmatpush1.bf16.msra.mxu1 %v10758_v22  ;;  %v10842_v21 = vld [vmem:[%s15119_s1 + $0x1248] ss:$16 sps:$4 sm:$0xff]   ;;  %v10847_v22 = vld [vmem:[%s15119_s1 + $0x1264] ss:$16 sps:$4 sm:$0xff]  }
 0x214   :  { %6982 = vmatprep.subr.bf16.mxu0 %v10763_v23  ;;  %7830 = vmatprep.subr.bf16.mxu1 %v10766_v24  ;;  %v10850_v23 = vld [vmem:[%s15119_s1 + $0x126c] ss:$16 sps:$4 sm:$0xff]   ;;  %v8652_v24 = vcombine.high %v13475_v17, %v13480_v18 }
 0x217   :  { %6983 = vmatpush1.bf16.msra.mxu0 %v10761_v26  ;;  %7831 = vmatpush1.bf16.msra.mxu1 %v10764_v25  ;;  %v10845_v26 = vld [vmem:[%s15119_s1 + $0x1260] ss:$16 sps:$4 sm:$0xff]   ;;  %v10848_v25 = vld [vmem:[%s15119_s1 + $0x1268] ss:$16 sps:$4 sm:$0xff]  }
 0x218   :  { %6984 = vmatprep.subr.bf16.mxu0 %v10769_v27  ;;  %7832 = vmatprep.subr.bf16.mxu1 %v10772_v28  ;;  %v10853_v27 = vld [vmem:[%s15119_s1 + $0x1284] ss:$16 sps:$4 sm:$0xff]   ;;  %v10856_v28 = vld [vmem:[%s15119_s1 + $0x128c] ss:$16 sps:$4 sm:$0xff]  }
 0x21b   :  { %6985 = vmatpush1.bf16.msra.mxu0 %v10767_v29  ;;  %7833 = vmatpush1.bf16.msra.mxu1 %v10770_v30  ;;  %v10851_v29 = vld [vmem:[%s15119_s1 + $0x1280] ss:$16 sps:$4 sm:$0xff]   ;;  %v10854_v30 = vld [vmem:[%s15119_s1 + $0x1288] ss:$16 sps:$4 sm:$0xff]  }
 0x21c   :  { %6986 = vmatprep.subr.bf16.mxu0 %v10775_v31  ;;  %7834 = vmatprep.subr.bf16.mxu1 %v10778_v32  ;;  %v10859_v31 = vld [vmem:[%s15119_s1 + $0x12a4] ss:$16 sps:$4 sm:$0xff]   ;;  %v10862_v32 = vld [vmem:[%s15119_s1 + $0x12ac] ss:$16 sps:$4 sm:$0xff]  }
 0x21f   :  { %6987 = vmatpush1.bf16.msra.mxu0 %v10773_v34  ;;  %7835 = vmatpush1.bf16.msra.mxu1 %v10776_v36  ;;  %v10857_v34 = vld [vmem:[%s15119_s1 + $0x12a0] ss:$16 sps:$4 sm:$0xff]   ;;  %v10860_v36 = vld [vmem:[%s15119_s1 + $0x12a8] ss:$16 sps:$4 sm:$0xff]  }
 0x220   :  { %6988 = vmatprep.subr.bf16.mxu0 %v10781_v33  ;;  %7836 = vmatprep.subr.bf16.mxu1 %v10784_v35  ;;  %v10865_v33 = vld [vmem:[%s15119_s1 + $0x12c4] ss:$16 sps:$4 sm:$0xff]   ;;  %v10868_v35 = vld [vmem:[%s15119_s1 + $0x12cc] ss:$16 sps:$4 sm:$0xff]  }
 0x223   :  { %6989 = vmatpush1.bf16.msra.mxu0 %v10779_v37  ;;  %7837 = vmatpush1.bf16.msra.mxu1 %v10782_v38  ;;  %v10863_v37 = vld [vmem:[%s15119_s1 + $0x12c0] ss:$16 sps:$4 sm:$0xff]   ;;  %v10866_v38 = vld [vmem:[%s15119_s1 + $0x12c8] ss:$16 sps:$4 sm:$0xff]  }
 0x224   :  { %6990 = vmatprep.subr.bf16.mxu0 %v10787_v39  ;;  %7838 = vmatprep.subr.bf16.mxu1 %v10790_v40  ;;  %v10871_v39 = vld [vmem:[%s15119_s1 + $0x12e4] ss:$16 sps:$4 sm:$0xff]   ;;  %v10874_v40 = vld [vmem:[%s15119_s1 + $0x12ec] ss:$16 sps:$4 sm:$0xff]  }
 0x227   :  { %6991 = vmatpush1.bf16.msra.mxu0 %v10785_v42  ;;  %7839 = vmatpush1.bf16.msra.mxu1 %v10788_v44  ;;  %v10869_v42 = vld [vmem:[%s15119_s1 + $0x12e0] ss:$16 sps:$4 sm:$0xff]   ;;  %v10872_v44 = vld [vmem:[%s15119_s1 + $0x12e8] ss:$16 sps:$4 sm:$0xff]  }
 0x228   :  { %6992 = vmatprep.subr.bf16.mxu0 %v10793_v41  ;;  %7840 = vmatprep.subr.bf16.mxu1 %v10796_v43  ;;  %v10877_v41 = vld [vmem:[%s15119_s1 + $0x1304] ss:$16 sps:$4 sm:$0xff]   ;;  %v10880_v43 = vld [vmem:[%s15119_s1 + $0x130c] ss:$16 sps:$4 sm:$0xff]  }
 0x22b   :  { %6993 = vmatpush1.bf16.msra.mxu0 %v10791_v45  ;;  %7841 = vmatpush1.bf16.msra.mxu1 %v10794_v46  ;;  %v10875_v45 = vld [vmem:[%s15119_s1 + $0x1300] ss:$16 sps:$4 sm:$0xff]   ;;  %v10878_v46 = vld [vmem:[%s15119_s1 + $0x1308] ss:$16 sps:$4 sm:$0xff]  }
 0x22c   :  { %6994 = vmatprep.subr.bf16.mxu0 %v10799_v47  ;;  %7842 = vmatprep.subr.bf16.mxu1 %v10802_v48  ;;  %v10883_v47 = vld [vmem:[%s15119_s1 + $0x1324] ss:$16 sps:$4 sm:$0xff]   ;;  %v10886_v48 = vld [vmem:[%s15119_s1 + $0x132c] ss:$16 sps:$4 sm:$0xff]  }
 0x22f   :  { %6995 = vmatpush1.bf16.msra.mxu0 %v10797_v51  ;;  %7843 = vmatpush1.bf16.msra.mxu1 %v10800_v52  ;;  %v10881_v51 = vld [vmem:[%s15119_s1 + $0x1320] ss:$16 sps:$4 sm:$0xff]   ;;  %v10884_v52 = vld [vmem:[%s15119_s1 + $0x1328] ss:$16 sps:$4 sm:$0xff]  }
 0x230   :  { %6996 = vmatprep.subr.bf16.mxu0 %v10805_v49  ;;  %7844 = vmatprep.subr.bf16.mxu1 %v10808_v50  ;;  %v10889_v49 = vld [vmem:[%s15119_s1 + $0x1344] ss:$16 sps:$4 sm:$0xff]   ;;  %v10892_v50 = vld [vmem:[%s15119_s1 + $0x134c] ss:$16 sps:$4 sm:$0xff]  }
 0x233   :  { %6997 = vmatpush1.bf16.msra.mxu0 %v10803_v53  ;;  %7845 = vmatpush1.bf16.msra.mxu1 %v10806_v54  ;;  %v10887_v53 = vld [vmem:[%s15119_s1 + $0x1340] ss:$16 sps:$4 sm:$0xff]   ;;  %v10890_v54 = vld [vmem:[%s15119_s1 + $0x1348] ss:$16 sps:$4 sm:$0xff]  }
 0x234   :  { %6998 = vmatprep.subr.bf16.mxu0 %v10811_v55  ;;  %7846 = vmatprep.subr.bf16.mxu1 %v10814_v56  ;;  %v10895_v55 = vld [vmem:[%s15119_s1 + $0x1364] ss:$16 sps:$4 sm:$0xff]   ;;  %v10898_v56 = vld [vmem:[%s15119_s1 + $0x136c] ss:$16 sps:$4 sm:$0xff]  }
 0x237   :  { %6999 = vmatpush1.bf16.msra.mxu0 %v10809_v59  ;;  %7847 = vmatpush1.bf16.msra.mxu1 %v10812_v60  ;;  %v10893_v59 = vld [vmem:[%s15119_s1 + $0x1360] ss:$16 sps:$4 sm:$0xff]   ;;  %v10896_v60 = vld [vmem:[%s15119_s1 + $0x1368] ss:$16 sps:$4 sm:$0xff]  }
 0x238   :  { %7000 = vmatprep.subr.bf16.mxu0 %v10817_v57  ;;  %7848 = vmatprep.subr.bf16.mxu1 %v10820_v58  ;;  %v10901_v57 = vld [vmem:[%s15119_s1 + $0x1384] ss:$16 sps:$4 sm:$0xff]   ;;  %v10904_v58 = vld [vmem:[%s15119_s1 + $0x138c] ss:$16 sps:$4 sm:$0xff]  }
 0x23b   :  { %7001 = vmatpush1.bf16.msra.mxu0 %v10815_v61  ;;  %7849 = vmatpush1.bf16.msra.mxu1 %v10818_v62  ;;  %v10899_v61 = vld [vmem:[%s15119_s1 + $0x1380] ss:$16 sps:$4 sm:$0xff]   ;;  %v10902_v62 = vld [vmem:[%s15119_s1 + $0x1388] ss:$16 sps:$4 sm:$0xff]  }
 0x23c   :  { %7002 = vmatprep.subr.bf16.mxu0 %v10823_v63  ;;  %7850 = vmatprep.subr.bf16.mxu1 %v10826_v0  ;;  %v10907_v63 = vld [vmem:[%s15119_s1 + $0x13a4] ss:$16 sps:$4 sm:$0xff]   ;;  %v10910_v0 = vld [vmem:[%s15119_s1 + $0x13ac] ss:$16 sps:$4 sm:$0xff]  }
 0x23f   :  { %7003 = vmatpush1.bf16.msra.mxu0 %v10821_v3  ;;  %7851 = vmatpush1.bf16.msra.mxu1 %v10824_v4  ;;  %v10905_v3 = vld [vmem:[%s15119_s1 + $0x13a0] ss:$16 sps:$4 sm:$0xff]   ;;  %v10908_v4 = vld [vmem:[%s15119_s1 + $0x13a8] ss:$16 sps:$4 sm:$0xff]  }
 0x240   :  { %7025 = vmatprep.subr.bf16.mxu0 %v10829_v1  ;;  %7873 = vmatprep.subr.bf16.mxu1 %v10832_v2  ;;  %v10913_v1 = vld [vmem:[%s15119_s1 + $0x13c4] ss:$16 sps:$4 sm:$0xff]   ;;  %v10916_v2 = vld [vmem:[%s15119_s1 + $0x13cc] ss:$16 sps:$4 sm:$0xff]  }
 0x242   :  { %7005 = vmatmul.mubr.bf16.vlgmr.msra.gmra.mrb[0].mxu0 %v8649_v7  ;;  %7853 = vmatmul.mubr.bf16.vlgmr.msra.gmra.mrb[0].mxu1 %v8649_v7  ;;  %v10919_v7 = vld [vmem:[%s15119_s1 + $0x13e4] ss:$16 sps:$4 sm:$0xff]  }
 0x243   :  { %7026 = vmatpush1.bf16.msra.mxu0 %v10827_v8  ;;  %7874 = vmatpush1.bf16.msra.mxu1 %v10830_v11  ;;  %v10922_v8 = vld [vmem:[%s15119_s1 + $0x13ec] ss:$16 sps:$4 sm:$0xff]   ;;  %v10917_v11 = vld [vmem:[%s15119_s1 + $0x13e0] ss:$16 sps:$4 sm:$0xff]  }
 0x244   :  { %7027 = vmatprep.subr.bf16.mxu0 %v10835_v12  ;;  %7875 = vmatprep.subr.bf16.mxu1 %v10838_v9  ;;  %v10920_v12 = vld [vmem:[%s15119_s1 + $0x13e8] ss:$16 sps:$4 sm:$0xff]   ;;  %v10925_v9 = vld [vmem:[%s15119_s1 + $0x1404] ss:$16 sps:$4 sm:$0xff]  }
 0x245   :  { %7014 = vmatprep.mubr.bf16.mxu0 %v8682_v14  ;;  %7862 = vmatprep.mubr.bf16.mxu1 %v8682_v14  ;;  %v61_v14 = vld [vmem:[%s15120_s0 + $0x148] sm:$0xff] }
 0x247   :  { %7028 = vmatpush1.bf16.msra.mxu0 %v10833_v10  ;;  %7876 = vmatpush1.bf16.msra.mxu1 %v10836_v13  ;;  %v10928_v10 = vld [vmem:[%s15119_s1 + $0x140c] ss:$16 sps:$4 sm:$0xff]   ;;  %v8651_v13 = vcombine.low %v13475_v17, %v13480_v18  ;;  %v10931_v17 = vld [vmem:[%s15119_s1 + $0x1424] ss:$16 sps:$4 sm:$0xff]  }
 0x248   :  { %7029 = vmatprep.subr.bf16.mxu0 %v10841_v15  ;;  %7877 = vmatprep.subr.bf16.mxu1 %v10844_v16  ;;  %v77_v15 = vld [vmem:[%s15120_s0 + $0x1c8] sm:$0xff]  ;;  %v10923_v16 = vld [vmem:[%s15119_s1 + $0x1400] ss:$16 sps:$4 sm:$0xff]  }
 0x249   :  { %v10934_v18 = vld [vmem:[%s15119_s1 + $0x142c] ss:$16 sps:$4 sm:$0xff]  }
 0x24a   :  { %7015 = vmatmul.mubr.bf16.gmra.mrb[4].mxu0 %v8681_v19  ;;  %7863 = vmatmul.mubr.bf16.gmra.mrb[4].mxu1 %v8681_v19  ;;  %v10926_v19 = vld [vmem:[%s15119_s1 + $0x1408] ss:$16 sps:$4 sm:$0xff]  }
 0x24b   :  { %7030 = vmatpush1.bf16.msra.mxu0 %v10839_v20  ;;  %7878 = vmatpush1.bf16.msra.mxu1 %v10842_v21  ;;  %v8684_v20 = vcombine.high %v61_v14, %v77_v15  ;;  %v10929_v21 = vld [vmem:[%s15119_s1 + $0x1420] ss:$16 sps:$4 sm:$0xff]  }
 0x24c   :  { %7031 = vmatprep.subr.bf16.mxu0 %v10847_v22  ;;  %7879 = vmatprep.subr.bf16.mxu1 %v10850_v23  ;;  %v10932_v22 = vld [vmem:[%s15119_s1 + $0x1428] ss:$16 sps:$4 sm:$0xff]   ;;  %v10937_v23 = vld [vmem:[%s15119_s1 + $0x1444] ss:$16 sps:$4 sm:$0xff]  }
 0x24d   :  { %7057 = vmatprep.mubr.bf16.mxu0 %v8652_v24  ;;  %7905 = vmatprep.mubr.bf16.mxu1 %v8652_v24  ;;  %v10940_v24 = vld [vmem:[%s15119_s1 + $0x144c] ss:$16 sps:$4 sm:$0xff]  }
 0x24f   :  { %7032 = vmatpush1.bf16.msra.mxu0 %v10845_v26  ;;  %7880 = vmatpush1.bf16.msra.mxu1 %v10848_v25  ;;  %v8683_v26 = vcombine.low %v61_v14, %v77_v15  ;;  %v13687_v25 = vld [vmem:[%s15120_s0 + $0x50] sm:$0xff]  ;;  %v11010_v14 = vld [vmem:[%s15119_s1 + $0x15c8] ss:$16 sps:$4 sm:$0xff]  }
 0x250   :  { %7033 = vmatprep.subr.bf16.mxu0 %v10853_v27  ;;  %7881 = vmatprep.subr.bf16.mxu1 %v10856_v28  ;;  %v13692_v27 = vld [vmem:[%s15120_s0 + $0xd0] sm:$0xff] }
 0x251   :  { %v10935_v28 = vld [vmem:[%s15119_s1 + $0x1440] ss:$16 sps:$4 sm:$0xff]   ;;  %v11015_v15 = vld [vmem:[%s15119_s1 + $0x15e4] ss:$16 sps:$4 sm:$0xff]  }
 0x253   :  { %7034 = vmatpush1.bf16.msra.mxu0 %v10851_v29  ;;  %7882 = vmatpush1.bf16.msra.mxu1 %v10854_v30  ;;  %v10938_v29 = vld [vmem:[%s15119_s1 + $0x1448] ss:$16 sps:$4 sm:$0xff]   ;;  %v10943_v30 = vld [vmem:[%s15119_s1 + $0x1464] ss:$16 sps:$4 sm:$0xff]  }
 0x254   :  { %7035 = vmatprep.subr.bf16.mxu0 %v10859_v31  ;;  %7883 = vmatprep.subr.bf16.mxu1 %v10862_v32  ;;  %v10946_v31 = vld [vmem:[%s15119_s1 + $0x146c] ss:$16 sps:$4 sm:$0xff]   ;;  %v8654_v32 = vcombine.high %v13687_v25, %v13692_v27 }
 0x257   :  { %7036 = vmatpush1.bf16.msra.mxu0 %v10857_v34  ;;  %7884 = vmatpush1.bf16.msra.mxu1 %v10860_v36  ;;  %v10941_v34 = vld [vmem:[%s15119_s1 + $0x1460] ss:$16 sps:$4 sm:$0xff]   ;;  %v10944_v36 = vld [vmem:[%s15119_s1 + $0x1468] ss:$16 sps:$4 sm:$0xff]  }
 0x258   :  { %7037 = vmatprep.subr.bf16.mxu0 %v10865_v33  ;;  %7885 = vmatprep.subr.bf16.mxu1 %v10868_v35  ;;  %v10949_v33 = vld [vmem:[%s15119_s1 + $0x1484] ss:$16 sps:$4 sm:$0xff]   ;;  %v10952_v35 = vld [vmem:[%s15119_s1 + $0x148c] ss:$16 sps:$4 sm:$0xff]  }
 0x25b   :  { %7038 = vmatpush1.bf16.msra.mxu0 %v10863_v37  ;;  %7886 = vmatpush1.bf16.msra.mxu1 %v10866_v38  ;;  %v10947_v37 = vld [vmem:[%s15119_s1 + $0x1480] ss:$16 sps:$4 sm:$0xff]   ;;  %v10950_v38 = vld [vmem:[%s15119_s1 + $0x1488] ss:$16 sps:$4 sm:$0xff]  }
 0x25c   :  { %7039 = vmatprep.subr.bf16.mxu0 %v10871_v39  ;;  %7887 = vmatprep.subr.bf16.mxu1 %v10874_v40  ;;  %v10955_v39 = vld [vmem:[%s15119_s1 + $0x14a4] ss:$16 sps:$4 sm:$0xff]   ;;  %v10958_v40 = vld [vmem:[%s15119_s1 + $0x14ac] ss:$16 sps:$4 sm:$0xff]  }
 0x25f   :  { %7040 = vmatpush1.bf16.msra.mxu0 %v10869_v42  ;;  %7888 = vmatpush1.bf16.msra.mxu1 %v10872_v44  ;;  %v10953_v42 = vld [vmem:[%s15119_s1 + $0x14a0] ss:$16 sps:$4 sm:$0xff]   ;;  %v10956_v44 = vld [vmem:[%s15119_s1 + $0x14a8] ss:$16 sps:$4 sm:$0xff]  }
 0x260   :  { %7041 = vmatprep.subr.bf16.mxu0 %v10877_v41  ;;  %7889 = vmatprep.subr.bf16.mxu1 %v10880_v43  ;;  %v10961_v41 = vld [vmem:[%s15119_s1 + $0x14c4] ss:$16 sps:$4 sm:$0xff]   ;;  %v10964_v43 = vld [vmem:[%s15119_s1 + $0x14cc] ss:$16 sps:$4 sm:$0xff]  }
 0x263   :  { %7042 = vmatpush1.bf16.msra.mxu0 %v10875_v45  ;;  %7890 = vmatpush1.bf16.msra.mxu1 %v10878_v46  ;;  %v10959_v45 = vld [vmem:[%s15119_s1 + $0x14c0] ss:$16 sps:$4 sm:$0xff]   ;;  %v10962_v46 = vld [vmem:[%s15119_s1 + $0x14c8] ss:$16 sps:$4 sm:$0xff]  }
 0x264   :  { %7043 = vmatprep.subr.bf16.mxu0 %v10883_v47  ;;  %7891 = vmatprep.subr.bf16.mxu1 %v10886_v48  ;;  %v10967_v47 = vld [vmem:[%s15119_s1 + $0x14e4] ss:$16 sps:$4 sm:$0xff]   ;;  %v10970_v48 = vld [vmem:[%s15119_s1 + $0x14ec] ss:$16 sps:$4 sm:$0xff]  }
 0x267   :  { %7044 = vmatpush1.bf16.msra.mxu0 %v10881_v51  ;;  %7892 = vmatpush1.bf16.msra.mxu1 %v10884_v52  ;;  %v10965_v51 = vld [vmem:[%s15119_s1 + $0x14e0] ss:$16 sps:$4 sm:$0xff]   ;;  %v10968_v52 = vld [vmem:[%s15119_s1 + $0x14e8] ss:$16 sps:$4 sm:$0xff]  }
 0x268   :  { %7045 = vmatprep.subr.bf16.mxu0 %v10889_v49  ;;  %7893 = vmatprep.subr.bf16.mxu1 %v10892_v50  ;;  %v10973_v49 = vld [vmem:[%s15119_s1 + $0x1504] ss:$16 sps:$4 sm:$0xff]   ;;  %v10976_v50 = vld [vmem:[%s15119_s1 + $0x150c] ss:$16 sps:$4 sm:$0xff]  }
 0x26b   :  { %7046 = vmatpush1.bf16.msra.mxu0 %v10887_v53  ;;  %7894 = vmatpush1.bf16.msra.mxu1 %v10890_v54  ;;  %v10971_v53 = vld [vmem:[%s15119_s1 + $0x1500] ss:$16 sps:$4 sm:$0xff]   ;;  %v10974_v54 = vld [vmem:[%s15119_s1 + $0x1508] ss:$16 sps:$4 sm:$0xff]  }
 0x26c   :  { %7047 = vmatprep.subr.bf16.mxu0 %v10895_v55  ;;  %7895 = vmatprep.subr.bf16.mxu1 %v10898_v56  ;;  %v10979_v55 = vld [vmem:[%s15119_s1 + $0x1524] ss:$16 sps:$4 sm:$0xff]   ;;  %v10982_v56 = vld [vmem:[%s15119_s1 + $0x152c] ss:$16 sps:$4 sm:$0xff]  }
 0x26f   :  { %7048 = vmatpush1.bf16.msra.mxu0 %v10893_v59  ;;  %7896 = vmatpush1.bf16.msra.mxu1 %v10896_v60  ;;  %v10977_v59 = vld [vmem:[%s15119_s1 + $0x1520] ss:$16 sps:$4 sm:$0xff]   ;;  %v10980_v60 = vld [vmem:[%s15119_s1 + $0x1528] ss:$16 sps:$4 sm:$0xff]  }
 0x270   :  { %7049 = vmatprep.subr.bf16.mxu0 %v10901_v57  ;;  %7897 = vmatprep.subr.bf16.mxu1 %v10904_v58  ;;  %v10985_v57 = vld [vmem:[%s15119_s1 + $0x1544] ss:$16 sps:$4 sm:$0xff]   ;;  %v10988_v58 = vld [vmem:[%s15119_s1 + $0x154c] ss:$16 sps:$4 sm:$0xff]  }
 0x273   :  { %7050 = vmatpush1.bf16.msra.mxu0 %v10899_v61  ;;  %7898 = vmatpush1.bf16.msra.mxu1 %v10902_v62  ;;  %v10983_v61 = vld [vmem:[%s15119_s1 + $0x1540] ss:$16 sps:$4 sm:$0xff]   ;;  %v10986_v62 = vld [vmem:[%s15119_s1 + $0x1548] ss:$16 sps:$4 sm:$0xff]  }
 0x274   :  { %7051 = vmatprep.subr.bf16.mxu0 %v10907_v63  ;;  %7899 = vmatprep.subr.bf16.mxu1 %v10910_v0  ;;  %v10991_v63 = vld [vmem:[%s15119_s1 + $0x1564] ss:$16 sps:$4 sm:$0xff]   ;;  %v10994_v0 = vld [vmem:[%s15119_s1 + $0x156c] ss:$16 sps:$4 sm:$0xff]  }
 0x277   :  { %7052 = vmatpush1.bf16.msra.mxu0 %v10905_v3  ;;  %7900 = vmatpush1.bf16.msra.mxu1 %v10908_v4  ;;  %v10989_v3 = vld [vmem:[%s15119_s1 + $0x1560] ss:$16 sps:$4 sm:$0xff]   ;;  %v10992_v4 = vld [vmem:[%s15119_s1 + $0x1568] ss:$16 sps:$4 sm:$0xff]  }
 0x278   :  { %7053 = vmatprep.subr.bf16.mxu0 %v10913_v1  ;;  %7901 = vmatprep.subr.bf16.mxu1 %v10916_v2  ;;  %v10997_v1 = vld [vmem:[%s15119_s1 + $0x1584] ss:$16 sps:$4 sm:$0xff]   ;;  %v11000_v2 = vld [vmem:[%s15119_s1 + $0x158c] ss:$16 sps:$4 sm:$0xff]  }
 0x27b   :  { %7054 = vmatpush1.bf16.msra.mxu0 %v10911_v5  ;;  %7902 = vmatpush1.bf16.msra.mxu1 %v10914_v6  ;;  %v10995_v5 = vld [vmem:[%s15119_s1 + $0x1580] ss:$16 sps:$4 sm:$0xff]   ;;  %v10998_v6 = vld [vmem:[%s15119_s1 + $0x1588] ss:$16 sps:$4 sm:$0xff]  }
 0x27c   :  { %7055 = vmatprep.subr.bf16.mxu0 %v10919_v7  ;;  %7903 = vmatprep.subr.bf16.mxu1 %v10922_v8  ;;  %v11003_v7 = vld [vmem:[%s15119_s1 + $0x15a4] ss:$16 sps:$4 sm:$0xff]   ;;  %v11006_v8 = vld [vmem:[%s15119_s1 + $0x15ac] ss:$16 sps:$4 sm:$0xff]  }
 0x27f   :  { %7056 = vmatpush1.bf16.msra.mxu0 %v10917_v11  ;;  %7904 = vmatpush1.bf16.msra.mxu1 %v10920_v12  ;;  %v11001_v11 = vld [vmem:[%s15119_s1 + $0x15a0] ss:$16 sps:$4 sm:$0xff]   ;;  %v11004_v12 = vld [vmem:[%s15119_s1 + $0x15a8] ss:$16 sps:$4 sm:$0xff]  }
 0x280   :  { %7078 = vmatprep.subr.bf16.mxu0 %v10925_v9  ;;  %7926 = vmatprep.subr.bf16.mxu1 %v10928_v10  ;;  %v11009_v9 = vld [vmem:[%s15119_s1 + $0x15c4] ss:$16 sps:$4 sm:$0xff]   ;;  %v11012_v10 = vld [vmem:[%s15119_s1 + $0x15cc] ss:$16 sps:$4 sm:$0xff]  }
 0x282   :  { %7058 = vmatmul.mubr.bf16.vlgmr.msra.gmra.mrb[0].mxu0 %v8651_v13  ;;  %7906 = vmatmul.mubr.bf16.vlgmr.msra.gmra.mrb[0].mxu1 %v8651_v13  ;;  %v11007_v13 = vld [vmem:[%s15119_s1 + $0x15c0] ss:$16 sps:$4 sm:$0xff]  }
 0x283   :  { %7079 = vmatpush1.bf16.msra.mxu0 %v10923_v16  ;;  %7927 = vmatpush1.bf16.msra.mxu1 %v10926_v19  ;;  %v11018_v16 = vld [vmem:[%s15119_s1 + $0x15ec] ss:$16 sps:$4 sm:$0xff]   ;;  %v11013_v19 = vld [vmem:[%s15119_s1 + $0x15e0] ss:$16 sps:$4 sm:$0xff]  }
 0x284   :  { %7080 = vmatprep.subr.bf16.mxu0 %v10931_v17  ;;  %7928 = vmatprep.subr.bf16.mxu1 %v10934_v18  ;;  %v11016_v17 = vld [vmem:[%s15119_s1 + $0x15e8] ss:$16 sps:$4 sm:$0xff]   ;;  %v11021_v18 = vld [vmem:[%s15119_s1 + $0x1604] ss:$16 sps:$4 sm:$0xff]  }
 0x285   :  { %7067 = vmatprep.mubr.bf16.mxu0 %v8684_v20  ;;  %7915 = vmatprep.mubr.bf16.mxu1 %v8684_v20  ;;  %v11024_v20 = vld [vmem:[%s15119_s1 + $0x160c] ss:$16 sps:$4 sm:$0xff]  }
 0x287   :  { %7081 = vmatpush1.bf16.msra.mxu0 %v10929_v21  ;;  %7929 = vmatpush1.bf16.msra.mxu1 %v10932_v22  ;;  %v8653_v21 = vcombine.low %v13687_v25, %v13692_v27  ;;  %v62_v22 = vld [vmem:[%s15120_s0 + $0x150] sm:$0xff]  ;;  %v11030_v27 = vld [vmem:[%s15119_s1 + $0x162c] ss:$16 sps:$4 sm:$0xff]  }
 0x288   :  { %7082 = vmatprep.subr.bf16.mxu0 %v10937_v23  ;;  %7930 = vmatprep.subr.bf16.mxu1 %v10940_v24  ;;  %v78_v23 = vld [vmem:[%s15120_s0 + $0x1d0] sm:$0xff] }
 0x289   :  { %v11019_v24 = vld [vmem:[%s15119_s1 + $0x1600] ss:$16 sps:$4 sm:$0xff]   ;;  %v11027_v25 = vld [vmem:[%s15119_s1 + $0x1624] ss:$16 sps:$4 sm:$0xff]  }
 0x28a   :  { %7068 = vmatmul.mubr.bf16.gmra.mrb[4].mxu0 %v8683_v26  ;;  %7916 = vmatmul.mubr.bf16.gmra.mrb[4].mxu1 %v8683_v26  ;;  %v11022_v26 = vld [vmem:[%s15119_s1 + $0x1608] ss:$16 sps:$4 sm:$0xff]  }
 0x28b   :  { %7083 = vmatpush1.bf16.msra.mxu0 %v10935_v28  ;;  %7931 = vmatpush1.bf16.msra.mxu1 %v10938_v29  ;;  %v8686_v28 = vcombine.high %v62_v22, %v78_v23  ;;  %v11025_v29 = vld [vmem:[%s15119_s1 + $0x1620] ss:$16 sps:$4 sm:$0xff]  }
 0x28c   :  { %7084 = vmatprep.subr.bf16.mxu0 %v10943_v30  ;;  %7932 = vmatprep.subr.bf16.mxu1 %v10946_v31  ;;  %v11028_v30 = vld [vmem:[%s15119_s1 + $0x1628] ss:$16 sps:$4 sm:$0xff]   ;;  %v11033_v31 = vld [vmem:[%s15119_s1 + $0x1644] ss:$16 sps:$4 sm:$0xff]  }
 0x28d   :  { %7110 = vmatprep.mubr.bf16.mxu0 %v8654_v32  ;;  %7958 = vmatprep.mubr.bf16.mxu1 %v8654_v32  ;;  %v11036_v32 = vld [vmem:[%s15119_s1 + $0x164c] ss:$16 sps:$4 sm:$0xff]  }
 0x28f   :  { %7085 = vmatpush1.bf16.msra.mxu0 %v10941_v34  ;;  %7933 = vmatpush1.bf16.msra.mxu1 %v10944_v36  ;;  %v8685_v34 = vcombine.low %v62_v22, %v78_v23  ;;  %v13899_v36 = vld [vmem:[%s15120_s0 + $0x58] sm:$0xff]  ;;  %v11111_v23 = vld [vmem:[%s15119_s1 + $0x17e4] ss:$16 sps:$4 sm:$0xff]  }
 0x290   :  { %7086 = vmatprep.subr.bf16.mxu0 %v10949_v33  ;;  %7934 = vmatprep.subr.bf16.mxu1 %v10952_v35  ;;  %v13904_v33 = vld [vmem:[%s15120_s0 + $0xd8] sm:$0xff]  ;;  %v11031_v35 = vld [vmem:[%s15119_s1 + $0x1640] ss:$16 sps:$4 sm:$0xff]  }
 0x291   :  { %v11106_v22 = vld [vmem:[%s15119_s1 + $0x17c8] ss:$16 sps:$4 sm:$0xff]  }
 0x293   :  { %7087 = vmatpush1.bf16.msra.mxu0 %v10947_v37  ;;  %7935 = vmatpush1.bf16.msra.mxu1 %v10950_v38  ;;  %v11034_v37 = vld [vmem:[%s15119_s1 + $0x1648] ss:$16 sps:$4 sm:$0xff]   ;;  %v11039_v38 = vld [vmem:[%s15119_s1 + $0x1664] ss:$16 sps:$4 sm:$0xff]  }
 0x294   :  { %7088 = vmatprep.subr.bf16.mxu0 %v10955_v39  ;;  %7936 = vmatprep.subr.bf16.mxu1 %v10958_v40  ;;  %v11042_v39 = vld [vmem:[%s15119_s1 + $0x166c] ss:$16 sps:$4 sm:$0xff]   ;;  %v8656_v40 = vcombine.high %v13899_v36, %v13904_v33 }
 0x297   :  { %7089 = vmatpush1.bf16.msra.mxu0 %v10953_v42  ;;  %7937 = vmatpush1.bf16.msra.mxu1 %v10956_v44  ;;  %v11037_v42 = vld [vmem:[%s15119_s1 + $0x1660] ss:$16 sps:$4 sm:$0xff]   ;;  %v11040_v44 = vld [vmem:[%s15119_s1 + $0x1668] ss:$16 sps:$4 sm:$0xff]  }
 0x298   :  { %7090 = vmatprep.subr.bf16.mxu0 %v10961_v41  ;;  %7938 = vmatprep.subr.bf16.mxu1 %v10964_v43  ;;  %v11045_v41 = vld [vmem:[%s15119_s1 + $0x1684] ss:$16 sps:$4 sm:$0xff]   ;;  %v11048_v43 = vld [vmem:[%s15119_s1 + $0x168c] ss:$16 sps:$4 sm:$0xff]  }
 0x29b   :  { %7091 = vmatpush1.bf16.msra.mxu0 %v10959_v45  ;;  %7939 = vmatpush1.bf16.msra.mxu1 %v10962_v46  ;;  %v11043_v45 = vld [vmem:[%s15119_s1 + $0x1680] ss:$16 sps:$4 sm:$0xff]   ;;  %v11046_v46 = vld [vmem:[%s15119_s1 + $0x1688] ss:$16 sps:$4 sm:$0xff]  }
 0x29c   :  { %7092 = vmatprep.subr.bf16.mxu0 %v10967_v47  ;;  %7940 = vmatprep.subr.bf16.mxu1 %v10970_v48  ;;  %v11051_v47 = vld [vmem:[%s15119_s1 + $0x16a4] ss:$16 sps:$4 sm:$0xff]   ;;  %v11054_v48 = vld [vmem:[%s15119_s1 + $0x16ac] ss:$16 sps:$4 sm:$0xff]  }
 0x29f   :  { %7093 = vmatpush1.bf16.msra.mxu0 %v10965_v51  ;;  %7941 = vmatpush1.bf16.msra.mxu1 %v10968_v52  ;;  %v11049_v51 = vld [vmem:[%s15119_s1 + $0x16a0] ss:$16 sps:$4 sm:$0xff]   ;;  %v11052_v52 = vld [vmem:[%s15119_s1 + $0x16a8] ss:$16 sps:$4 sm:$0xff]  }
 0x2a0   :  { %7094 = vmatprep.subr.bf16.mxu0 %v10973_v49  ;;  %7942 = vmatprep.subr.bf16.mxu1 %v10976_v50  ;;  %v11057_v49 = vld [vmem:[%s15119_s1 + $0x16c4] ss:$16 sps:$4 sm:$0xff]   ;;  %v11060_v50 = vld [vmem:[%s15119_s1 + $0x16cc] ss:$16 sps:$4 sm:$0xff]  }
 0x2a3   :  { %7095 = vmatpush1.bf16.msra.mxu0 %v10971_v53  ;;  %7943 = vmatpush1.bf16.msra.mxu1 %v10974_v54  ;;  %v11055_v53 = vld [vmem:[%s15119_s1 + $0x16c0] ss:$16 sps:$4 sm:$0xff]   ;;  %v11058_v54 = vld [vmem:[%s15119_s1 + $0x16c8] ss:$16 sps:$4 sm:$0xff]  }
 0x2a4   :  { %7096 = vmatprep.subr.bf16.mxu0 %v10979_v55  ;;  %7944 = vmatprep.subr.bf16.mxu1 %v10982_v56  ;;  %v11063_v55 = vld [vmem:[%s15119_s1 + $0x16e4] ss:$16 sps:$4 sm:$0xff]   ;;  %v11066_v56 = vld [vmem:[%s15119_s1 + $0x16ec] ss:$16 sps:$4 sm:$0xff]  }
 0x2a7   :  { %7097 = vmatpush1.bf16.msra.mxu0 %v10977_v59  ;;  %7945 = vmatpush1.bf16.msra.mxu1 %v10980_v60  ;;  %v11061_v59 = vld [vmem:[%s15119_s1 + $0x16e0] ss:$16 sps:$4 sm:$0xff]   ;;  %v11064_v60 = vld [vmem:[%s15119_s1 + $0x16e8] ss:$16 sps:$4 sm:$0xff]  }
 0x2a8   :  { %7098 = vmatprep.subr.bf16.mxu0 %v10985_v57  ;;  %7946 = vmatprep.subr.bf16.mxu1 %v10988_v58  ;;  %v11069_v57 = vld [vmem:[%s15119_s1 + $0x1704] ss:$16 sps:$4 sm:$0xff]   ;;  %v11072_v58 = vld [vmem:[%s15119_s1 + $0x170c] ss:$16 sps:$4 sm:$0xff]  }
 0x2ab   :  { %7099 = vmatpush1.bf16.msra.mxu0 %v10983_v61  ;;  %7947 = vmatpush1.bf16.msra.mxu1 %v10986_v62  ;;  %v11067_v61 = vld [vmem:[%s15119_s1 + $0x1700] ss:$16 sps:$4 sm:$0xff]   ;;  %v11070_v62 = vld [vmem:[%s15119_s1 + $0x1708] ss:$16 sps:$4 sm:$0xff]  }
 0x2ac   :  { %7100 = vmatprep.subr.bf16.mxu0 %v10991_v63  ;;  %7948 = vmatprep.subr.bf16.mxu1 %v10994_v0  ;;  %v11075_v63 = vld [vmem:[%s15119_s1 + $0x1724] ss:$16 sps:$4 sm:$0xff]   ;;  %v11078_v0 = vld [vmem:[%s15119_s1 + $0x172c] ss:$16 sps:$4 sm:$0xff]  }
 0x2af   :  { %7101 = vmatpush1.bf16.msra.mxu0 %v10989_v3  ;;  %7949 = vmatpush1.bf16.msra.mxu1 %v10992_v4  ;;  %v11073_v3 = vld [vmem:[%s15119_s1 + $0x1720] ss:$16 sps:$4 sm:$0xff]   ;;  %v11076_v4 = vld [vmem:[%s15119_s1 + $0x1728] ss:$16 sps:$4 sm:$0xff]  }
 0x2b0   :  { %7102 = vmatprep.subr.bf16.mxu0 %v10997_v1  ;;  %7950 = vmatprep.subr.bf16.mxu1 %v11000_v2  ;;  %v11081_v1 = vld [vmem:[%s15119_s1 + $0x1744] ss:$16 sps:$4 sm:$0xff]   ;;  %v11084_v2 = vld [vmem:[%s15119_s1 + $0x174c] ss:$16 sps:$4 sm:$0xff]  }
 0x2b3   :  { %7103 = vmatpush1.bf16.msra.mxu0 %v10995_v5  ;;  %7951 = vmatpush1.bf16.msra.mxu1 %v10998_v6  ;;  %v11079_v5 = vld [vmem:[%s15119_s1 + $0x1740] ss:$16 sps:$4 sm:$0xff]   ;;  %v11082_v6 = vld [vmem:[%s15119_s1 + $0x1748] ss:$16 sps:$4 sm:$0xff]  }
 0x2b4   :  { %7104 = vmatprep.subr.bf16.mxu0 %v11003_v7  ;;  %7952 = vmatprep.subr.bf16.mxu1 %v11006_v8  ;;  %v11087_v7 = vld [vmem:[%s15119_s1 + $0x1764] ss:$16 sps:$4 sm:$0xff]   ;;  %v11090_v8 = vld [vmem:[%s15119_s1 + $0x176c] ss:$16 sps:$4 sm:$0xff]  }
 0x2b7   :  { %7105 = vmatpush1.bf16.msra.mxu0 %v11001_v11  ;;  %7953 = vmatpush1.bf16.msra.mxu1 %v11004_v12  ;;  %v11085_v11 = vld [vmem:[%s15119_s1 + $0x1760] ss:$16 sps:$4 sm:$0xff]   ;;  %v11088_v12 = vld [vmem:[%s15119_s1 + $0x1768] ss:$16 sps:$4 sm:$0xff]  }
 0x2b8   :  { %7106 = vmatprep.subr.bf16.mxu0 %v11009_v9  ;;  %7954 = vmatprep.subr.bf16.mxu1 %v11012_v10  ;;  %v11093_v9 = vld [vmem:[%s15119_s1 + $0x1784] ss:$16 sps:$4 sm:$0xff]   ;;  %v11096_v10 = vld [vmem:[%s15119_s1 + $0x178c] ss:$16 sps:$4 sm:$0xff]  }
 0x2bb   :  { %7107 = vmatpush1.bf16.msra.mxu0 %v11007_v13  ;;  %7955 = vmatpush1.bf16.msra.mxu1 %v11010_v14  ;;  %v11091_v13 = vld [vmem:[%s15119_s1 + $0x1780] ss:$16 sps:$4 sm:$0xff]   ;;  %v11094_v14 = vld [vmem:[%s15119_s1 + $0x1788] ss:$16 sps:$4 sm:$0xff]  }
 0x2bc   :  { %7108 = vmatprep.subr.bf16.mxu0 %v11015_v15  ;;  %7956 = vmatprep.subr.bf16.mxu1 %v11018_v16  ;;  %v11099_v15 = vld [vmem:[%s15119_s1 + $0x17a4] ss:$16 sps:$4 sm:$0xff]   ;;  %v11102_v16 = vld [vmem:[%s15119_s1 + $0x17ac] ss:$16 sps:$4 sm:$0xff]  }
 0x2bf   :  { %7109 = vmatpush1.bf16.msra.mxu0 %v11013_v19  ;;  %7957 = vmatpush1.bf16.msra.mxu1 %v11016_v17  ;;  %v11097_v19 = vld [vmem:[%s15119_s1 + $0x17a0] ss:$16 sps:$4 sm:$0xff]   ;;  %v11100_v17 = vld [vmem:[%s15119_s1 + $0x17a8] ss:$16 sps:$4 sm:$0xff]  }
 0x2c0   :  { %7131 = vmatprep.subr.bf16.mxu0 %v11021_v18  ;;  %7979 = vmatprep.subr.bf16.mxu1 %v11024_v20  ;;  %v11105_v18 = vld [vmem:[%s15119_s1 + $0x17c4] ss:$16 sps:$4 sm:$0xff]   ;;  %v11108_v20 = vld [vmem:[%s15119_s1 + $0x17cc] ss:$16 sps:$4 sm:$0xff]  }
 0x2c2   :  { %7111 = vmatmul.mubr.bf16.vlgmr.msra.gmra.mrb[0].mxu0 %v8653_v21  ;;  %7959 = vmatmul.mubr.bf16.vlgmr.msra.gmra.mrb[0].mxu1 %v8653_v21  ;;  %v11103_v21 = vld [vmem:[%s15119_s1 + $0x17c0] ss:$16 sps:$4 sm:$0xff]  }
 0x2c3   :  { %7132 = vmatpush1.bf16.msra.mxu0 %v11019_v24  ;;  %7980 = vmatpush1.bf16.msra.mxu1 %v11022_v26  ;;  %v11114_v24 = vld [vmem:[%s15119_s1 + $0x17ec] ss:$16 sps:$4 sm:$0xff]   ;;  %v11109_v26 = vld [vmem:[%s15119_s1 + $0x17e0] ss:$16 sps:$4 sm:$0xff]  }
 0x2c4   :  { %7133 = vmatprep.subr.bf16.mxu0 %v11027_v25  ;;  %7981 = vmatprep.subr.bf16.mxu1 %v11030_v27  ;;  %v11112_v25 = vld [vmem:[%s15119_s1 + $0x17e8] ss:$16 sps:$4 sm:$0xff]   ;;  %v11117_v27 = vld [vmem:[%s15119_s1 + $0x1804] ss:$16 sps:$4 sm:$0xff]  }
 0x2c5   :  { %7120 = vmatprep.mubr.bf16.mxu0 %v8686_v28  ;;  %7968 = vmatprep.mubr.bf16.mxu1 %v8686_v28  ;;  %v11120_v28 = vld [vmem:[%s15119_s1 + $0x180c] ss:$16 sps:$4 sm:$0xff]  }
 0x2c7   :  { %7134 = vmatpush1.bf16.msra.mxu0 %v11025_v29  ;;  %7982 = vmatpush1.bf16.msra.mxu1 %v11028_v30  ;;  %v8655_v29 = vcombine.low %v13899_v36, %v13904_v33  ;;  %v63_v30 = vld [vmem:[%s15120_s0 + $0x158] sm:$0xff]  ;;  %v11123_v36 = vld [vmem:[%s15119_s1 + $0x1824] ss:$16 sps:$4 sm:$0xff]  }
 0x2c8   :  { %7135 = vmatprep.subr.bf16.mxu0 %v11033_v31  ;;  %7983 = vmatprep.subr.bf16.mxu1 %v11036_v32  ;;  %v79_v31 = vld [vmem:[%s15120_s0 + $0x1d8] sm:$0xff]  ;;  %v11115_v32 = vld [vmem:[%s15119_s1 + $0x1800] ss:$16 sps:$4 sm:$0xff]  }
 0x2c9   :  { %v11126_v33 = vld [vmem:[%s15119_s1 + $0x182c] ss:$16 sps:$4 sm:$0xff]  }
 0x2ca   :  { %7121 = vmatmul.mubr.bf16.gmra.mrb[4].mxu0 %v8685_v34  ;;  %7969 = vmatmul.mubr.bf16.gmra.mrb[4].mxu1 %v8685_v34  ;;  %v11118_v34 = vld [vmem:[%s15119_s1 + $0x1808] ss:$16 sps:$4 sm:$0xff]  }
 0x2cb   :  { %7136 = vmatpush1.bf16.msra.mxu0 %v11031_v35  ;;  %7984 = vmatpush1.bf16.msra.mxu1 %v11034_v37  ;;  %v8688_v35 = vcombine.high %v63_v30, %v79_v31  ;;  %v11121_v37 = vld [vmem:[%s15119_s1 + $0x1820] ss:$16 sps:$4 sm:$0xff]  }
 0x2cc   :  { %7137 = vmatprep.subr.bf16.mxu0 %v11039_v38  ;;  %7985 = vmatprep.subr.bf16.mxu1 %v11042_v39  ;;  %v11124_v38 = vld [vmem:[%s15119_s1 + $0x1828] ss:$16 sps:$4 sm:$0xff]   ;;  %v11129_v39 = vld [vmem:[%s15119_s1 + $0x1844] ss:$16 sps:$4 sm:$0xff]  }
 0x2cd   :  { %7163 = vmatprep.mubr.bf16.mxu0 %v8656_v40  ;;  %8011 = vmatprep.mubr.bf16.mxu1 %v8656_v40  ;;  %v11132_v40 = vld [vmem:[%s15119_s1 + $0x184c] ss:$16 sps:$4 sm:$0xff]  }
 0x2cf   :  { %7138 = vmatpush1.bf16.msra.mxu0 %v11037_v42  ;;  %7986 = vmatpush1.bf16.msra.mxu1 %v11040_v44  ;;  %v8687_v42 = vcombine.low %v63_v30, %v79_v31  ;;  %v14111_v44 = vld [vmem:[%s15120_s0 + $0x60] sm:$0xff]  ;;  %v11202_v30 = vld [vmem:[%s15119_s1 + $0x19c8] ss:$16 sps:$4 sm:$0xff]  }
 0x2d0   :  { %7139 = vmatprep.subr.bf16.mxu0 %v11045_v41  ;;  %7987 = vmatprep.subr.bf16.mxu1 %v11048_v43  ;;  %v14116_v41 = vld [vmem:[%s15120_s0 + $0xe0] sm:$0xff] }
 0x2d1   :  { %v11127_v43 = vld [vmem:[%s15119_s1 + $0x1840] ss:$16 sps:$4 sm:$0xff]   ;;  %v11207_v31 = vld [vmem:[%s15119_s1 + $0x19e4] ss:$16 sps:$4 sm:$0xff]  }
 0x2d3   :  { %7140 = vmatpush1.bf16.msra.mxu0 %v11043_v45  ;;  %7988 = vmatpush1.bf16.msra.mxu1 %v11046_v46  ;;  %v11130_v45 = vld [vmem:[%s15119_s1 + $0x1848] ss:$16 sps:$4 sm:$0xff]   ;;  %v11135_v46 = vld [vmem:[%s15119_s1 + $0x1864] ss:$16 sps:$4 sm:$0xff]  }
 0x2d4   :  { %7141 = vmatprep.subr.bf16.mxu0 %v11051_v47  ;;  %7989 = vmatprep.subr.bf16.mxu1 %v11054_v48  ;;  %v11138_v47 = vld [vmem:[%s15119_s1 + $0x186c] ss:$16 sps:$4 sm:$0xff]   ;;  %v8658_v48 = vcombine.high %v14111_v44, %v14116_v41 }
 0x2d7   :  { %7142 = vmatpush1.bf16.msra.mxu0 %v11049_v51  ;;  %7990 = vmatpush1.bf16.msra.mxu1 %v11052_v52  ;;  %v11133_v51 = vld [vmem:[%s15119_s1 + $0x1860] ss:$16 sps:$4 sm:$0xff]   ;;  %v11136_v52 = vld [vmem:[%s15119_s1 + $0x1868] ss:$16 sps:$4 sm:$0xff]  }
 0x2d8   :  { %7143 = vmatprep.subr.bf16.mxu0 %v11057_v49  ;;  %7991 = vmatprep.subr.bf16.mxu1 %v11060_v50  ;;  %v11141_v49 = vld [vmem:[%s15119_s1 + $0x1884] ss:$16 sps:$4 sm:$0xff]   ;;  %v11144_v50 = vld [vmem:[%s15119_s1 + $0x188c] ss:$16 sps:$4 sm:$0xff]  }
 0x2db   :  { %7144 = vmatpush1.bf16.msra.mxu0 %v11055_v53  ;;  %7992 = vmatpush1.bf16.msra.mxu1 %v11058_v54  ;;  %v11139_v53 = vld [vmem:[%s15119_s1 + $0x1880] ss:$16 sps:$4 sm:$0xff]   ;;  %v11142_v54 = vld [vmem:[%s15119_s1 + $0x1888] ss:$16 sps:$4 sm:$0xff]  }
 0x2dc   :  { %7145 = vmatprep.subr.bf16.mxu0 %v11063_v55  ;;  %7993 = vmatprep.subr.bf16.mxu1 %v11066_v56  ;;  %v11147_v55 = vld [vmem:[%s15119_s1 + $0x18a4] ss:$16 sps:$4 sm:$0xff]   ;;  %v11150_v56 = vld [vmem:[%s15119_s1 + $0x18ac] ss:$16 sps:$4 sm:$0xff]  }
 0x2df   :  { %7146 = vmatpush1.bf16.msra.mxu0 %v11061_v59  ;;  %7994 = vmatpush1.bf16.msra.mxu1 %v11064_v60  ;;  %v11145_v59 = vld [vmem:[%s15119_s1 + $0x18a0] ss:$16 sps:$4 sm:$0xff]   ;;  %v11148_v60 = vld [vmem:[%s15119_s1 + $0x18a8] ss:$16 sps:$4 sm:$0xff]  }
 0x2e0   :  { %7147 = vmatprep.subr.bf16.mxu0 %v11069_v57  ;;  %7995 = vmatprep.subr.bf16.mxu1 %v11072_v58  ;;  %v11153_v57 = vld [vmem:[%s15119_s1 + $0x18c4] ss:$16 sps:$4 sm:$0xff]   ;;  %v11156_v58 = vld [vmem:[%s15119_s1 + $0x18cc] ss:$16 sps:$4 sm:$0xff]  }
 0x2e3   :  { %7148 = vmatpush1.bf16.msra.mxu0 %v11067_v61  ;;  %7996 = vmatpush1.bf16.msra.mxu1 %v11070_v62  ;;  %v11151_v61 = vld [vmem:[%s15119_s1 + $0x18c0] ss:$16 sps:$4 sm:$0xff]   ;;  %v11154_v62 = vld [vmem:[%s15119_s1 + $0x18c8] ss:$16 sps:$4 sm:$0xff]  }
 0x2e4   :  { %7149 = vmatprep.subr.bf16.mxu0 %v11075_v63  ;;  %7997 = vmatprep.subr.bf16.mxu1 %v11078_v0  ;;  %v11159_v63 = vld [vmem:[%s15119_s1 + $0x18e4] ss:$16 sps:$4 sm:$0xff]   ;;  %v11162_v0 = vld [vmem:[%s15119_s1 + $0x18ec] ss:$16 sps:$4 sm:$0xff]  }
 0x2e7   :  { %7150 = vmatpush1.bf16.msra.mxu0 %v11073_v3  ;;  %7998 = vmatpush1.bf16.msra.mxu1 %v11076_v4  ;;  %v11157_v3 = vld [vmem:[%s15119_s1 + $0x18e0] ss:$16 sps:$4 sm:$0xff]   ;;  %v11160_v4 = vld [vmem:[%s15119_s1 + $0x18e8] ss:$16 sps:$4 sm:$0xff]  }
 0x2e8   :  { %7151 = vmatprep.subr.bf16.mxu0 %v11081_v1  ;;  %7999 = vmatprep.subr.bf16.mxu1 %v11084_v2  ;;  %v11165_v1 = vld [vmem:[%s15119_s1 + $0x1904] ss:$16 sps:$4 sm:$0xff]   ;;  %v11168_v2 = vld [vmem:[%s15119_s1 + $0x190c] ss:$16 sps:$4 sm:$0xff]  }
 0x2eb   :  { %7152 = vmatpush1.bf16.msra.mxu0 %v11079_v5  ;;  %8000 = vmatpush1.bf16.msra.mxu1 %v11082_v6  ;;  %v11163_v5 = vld [vmem:[%s15119_s1 + $0x1900] ss:$16 sps:$4 sm:$0xff]   ;;  %v11166_v6 = vld [vmem:[%s15119_s1 + $0x1908] ss:$16 sps:$4 sm:$0xff]  }
 0x2ec   :  { %7153 = vmatprep.subr.bf16.mxu0 %v11087_v7  ;;  %8001 = vmatprep.subr.bf16.mxu1 %v11090_v8  ;;  %v11171_v7 = vld [vmem:[%s15119_s1 + $0x1924] ss:$16 sps:$4 sm:$0xff]   ;;  %v11174_v8 = vld [vmem:[%s15119_s1 + $0x192c] ss:$16 sps:$4 sm:$0xff]  }
 0x2ef   :  { %7154 = vmatpush1.bf16.msra.mxu0 %v11085_v11  ;;  %8002 = vmatpush1.bf16.msra.mxu1 %v11088_v12  ;;  %v11169_v11 = vld [vmem:[%s15119_s1 + $0x1920] ss:$16 sps:$4 sm:$0xff]   ;;  %v11172_v12 = vld [vmem:[%s15119_s1 + $0x1928] ss:$16 sps:$4 sm:$0xff]  }
 0x2f0   :  { %7155 = vmatprep.subr.bf16.mxu0 %v11093_v9  ;;  %8003 = vmatprep.subr.bf16.mxu1 %v11096_v10  ;;  %v11177_v9 = vld [vmem:[%s15119_s1 + $0x1944] ss:$16 sps:$4 sm:$0xff]   ;;  %v11180_v10 = vld [vmem:[%s15119_s1 + $0x194c] ss:$16 sps:$4 sm:$0xff]  }
 0x2f3   :  { %7156 = vmatpush1.bf16.msra.mxu0 %v11091_v13  ;;  %8004 = vmatpush1.bf16.msra.mxu1 %v11094_v14  ;;  %v11175_v13 = vld [vmem:[%s15119_s1 + $0x1940] ss:$16 sps:$4 sm:$0xff]   ;;  %v11178_v14 = vld [vmem:[%s15119_s1 + $0x1948] ss:$16 sps:$4 sm:$0xff]  }
 0x2f4   :  { %7157 = vmatprep.subr.bf16.mxu0 %v11099_v15  ;;  %8005 = vmatprep.subr.bf16.mxu1 %v11102_v16  ;;  %v11183_v15 = vld [vmem:[%s15119_s1 + $0x1964] ss:$16 sps:$4 sm:$0xff]   ;;  %v11186_v16 = vld [vmem:[%s15119_s1 + $0x196c] ss:$16 sps:$4 sm:$0xff]  }
 0x2f7   :  { %7158 = vmatpush1.bf16.msra.mxu0 %v11097_v19  ;;  %8006 = vmatpush1.bf16.msra.mxu1 %v11100_v17  ;;  %v11181_v19 = vld [vmem:[%s15119_s1 + $0x1960] ss:$16 sps:$4 sm:$0xff]   ;;  %v11184_v17 = vld [vmem:[%s15119_s1 + $0x1968] ss:$16 sps:$4 sm:$0xff]  }
 0x2f8   :  { %7159 = vmatprep.subr.bf16.mxu0 %v11105_v18  ;;  %8007 = vmatprep.subr.bf16.mxu1 %v11108_v20  ;;  %v11189_v18 = vld [vmem:[%s15119_s1 + $0x1984] ss:$16 sps:$4 sm:$0xff]   ;;  %v11192_v20 = vld [vmem:[%s15119_s1 + $0x198c] ss:$16 sps:$4 sm:$0xff]  }
 0x2fb   :  { %7160 = vmatpush1.bf16.msra.mxu0 %v11103_v21  ;;  %8008 = vmatpush1.bf16.msra.mxu1 %v11106_v22  ;;  %v11187_v21 = vld [vmem:[%s15119_s1 + $0x1980] ss:$16 sps:$4 sm:$0xff]   ;;  %v11190_v22 = vld [vmem:[%s15119_s1 + $0x1988] ss:$16 sps:$4 sm:$0xff]  }
 0x2fc   :  { %7161 = vmatprep.subr.bf16.mxu0 %v11111_v23  ;;  %8009 = vmatprep.subr.bf16.mxu1 %v11114_v24  ;;  %v11195_v23 = vld [vmem:[%s15119_s1 + $0x19a4] ss:$16 sps:$4 sm:$0xff]   ;;  %v11198_v24 = vld [vmem:[%s15119_s1 + $0x19ac] ss:$16 sps:$4 sm:$0xff]  }
 0x2ff   :  { %7162 = vmatpush1.bf16.msra.mxu0 %v11109_v26  ;;  %8010 = vmatpush1.bf16.msra.mxu1 %v11112_v25  ;;  %v11193_v26 = vld [vmem:[%s15119_s1 + $0x19a0] ss:$16 sps:$4 sm:$0xff]   ;;  %v11196_v25 = vld [vmem:[%s15119_s1 + $0x19a8] ss:$16 sps:$4 sm:$0xff]  }
 0x300   :  { %7184 = vmatprep.subr.bf16.mxu0 %v11117_v27  ;;  %8032 = vmatprep.subr.bf16.mxu1 %v11120_v28  ;;  %v11201_v27 = vld [vmem:[%s15119_s1 + $0x19c4] ss:$16 sps:$4 sm:$0xff]   ;;  %v11204_v28 = vld [vmem:[%s15119_s1 + $0x19cc] ss:$16 sps:$4 sm:$0xff]  }
 0x302   :  { %7164 = vmatmul.mubr.bf16.vlgmr.msra.gmra.mrb[0].mxu0 %v8655_v29  ;;  %8012 = vmatmul.mubr.bf16.vlgmr.msra.gmra.mrb[0].mxu1 %v8655_v29  ;;  %v11199_v29 = vld [vmem:[%s15119_s1 + $0x19c0] ss:$16 sps:$4 sm:$0xff]  }
 0x303   :  { %7185 = vmatpush1.bf16.msra.mxu0 %v11115_v32  ;;  %8033 = vmatpush1.bf16.msra.mxu1 %v11118_v34  ;;  %v11210_v32 = vld [vmem:[%s15119_s1 + $0x19ec] ss:$16 sps:$4 sm:$0xff]   ;;  %v11205_v34 = vld [vmem:[%s15119_s1 + $0x19e0] ss:$16 sps:$4 sm:$0xff]  }
 0x304   :  { %7186 = vmatprep.subr.bf16.mxu0 %v11123_v36  ;;  %8034 = vmatprep.subr.bf16.mxu1 %v11126_v33  ;;  %v11208_v36 = vld [vmem:[%s15119_s1 + $0x19e8] ss:$16 sps:$4 sm:$0xff]   ;;  %v11213_v33 = vld [vmem:[%s15119_s1 + $0x1a04] ss:$16 sps:$4 sm:$0xff]  }
 0x305   :  { %7173 = vmatprep.mubr.bf16.mxu0 %v8688_v35  ;;  %8021 = vmatprep.mubr.bf16.mxu1 %v8688_v35  ;;  %v11216_v35 = vld [vmem:[%s15119_s1 + $0x1a0c] ss:$16 sps:$4 sm:$0xff]  }
 0x307   :  { %7187 = vmatpush1.bf16.msra.mxu0 %v11121_v37  ;;  %8035 = vmatpush1.bf16.msra.mxu1 %v11124_v38  ;;  %v8657_v37 = vcombine.low %v14111_v44, %v14116_v41  ;;  %v64_v38 = vld [vmem:[%s15120_s0 + $0x160] sm:$0xff]  ;;  %v11222_v41 = vld [vmem:[%s15119_s1 + $0x1a2c] ss:$16 sps:$4 sm:$0xff]  }
 0x308   :  { %7188 = vmatprep.subr.bf16.mxu0 %v11129_v39  ;;  %8036 = vmatprep.subr.bf16.mxu1 %v11132_v40  ;;  %v80_v39 = vld [vmem:[%s15120_s0 + $0x1e0] sm:$0xff] }
 0x309   :  { %v11211_v40 = vld [vmem:[%s15119_s1 + $0x1a00] ss:$16 sps:$4 sm:$0xff]   ;;  %v11219_v44 = vld [vmem:[%s15119_s1 + $0x1a24] ss:$16 sps:$4 sm:$0xff]  }
 0x30a   :  { %7174 = vmatmul.mubr.bf16.gmra.mrb[4].mxu0 %v8687_v42  ;;  %8022 = vmatmul.mubr.bf16.gmra.mrb[4].mxu1 %v8687_v42  ;;  %v11214_v42 = vld [vmem:[%s15119_s1 + $0x1a08] ss:$16 sps:$4 sm:$0xff]  }
 0x30b   :  { %7189 = vmatpush1.bf16.msra.mxu0 %v11127_v43  ;;  %8037 = vmatpush1.bf16.msra.mxu1 %v11130_v45  ;;  %v8690_v43 = vcombine.high %v64_v38, %v80_v39  ;;  %v11217_v45 = vld [vmem:[%s15119_s1 + $0x1a20] ss:$16 sps:$4 sm:$0xff]  }
 0x30c   :  { %7190 = vmatprep.subr.bf16.mxu0 %v11135_v46  ;;  %8038 = vmatprep.subr.bf16.mxu1 %v11138_v47  ;;  %v11220_v46 = vld [vmem:[%s15119_s1 + $0x1a28] ss:$16 sps:$4 sm:$0xff]   ;;  %v11225_v47 = vld [vmem:[%s15119_s1 + $0x1a44] ss:$16 sps:$4 sm:$0xff]  }
 0x30d   :  { %7216 = vmatprep.mubr.bf16.mxu0 %v8658_v48  ;;  %8064 = vmatprep.mubr.bf16.mxu1 %v8658_v48  ;;  %v11228_v48 = vld [vmem:[%s15119_s1 + $0x1a4c] ss:$16 sps:$4 sm:$0xff]  }
 0x30f   :  { %7191 = vmatpush1.bf16.msra.mxu0 %v11133_v51  ;;  %8039 = vmatpush1.bf16.msra.mxu1 %v11136_v52  ;;  %v8689_v51 = vcombine.low %v64_v38, %v80_v39  ;;  %v14323_v52 = vld [vmem:[%s15120_s0 + $0x68] sm:$0xff]  ;;  %v11303_v39 = vld [vmem:[%s15119_s1 + $0x1be4] ss:$16 sps:$4 sm:$0xff]  }
 0x310   :  { %7192 = vmatprep.subr.bf16.mxu0 %v11141_v49  ;;  %8040 = vmatprep.subr.bf16.mxu1 %v11144_v50  ;;  %v14328_v49 = vld [vmem:[%s15120_s0 + $0xe8] sm:$0xff]  ;;  %v11223_v50 = vld [vmem:[%s15119_s1 + $0x1a40] ss:$16 sps:$4 sm:$0xff]  }
 0x311   :  { %v11298_v38 = vld [vmem:[%s15119_s1 + $0x1bc8] ss:$16 sps:$4 sm:$0xff]  }
 0x313   :  { %7193 = vmatpush1.bf16.msra.mxu0 %v11139_v53  ;;  %8041 = vmatpush1.bf16.msra.mxu1 %v11142_v54  ;;  %v11226_v53 = vld [vmem:[%s15119_s1 + $0x1a48] ss:$16 sps:$4 sm:$0xff]   ;;  %v11231_v54 = vld [vmem:[%s15119_s1 + $0x1a64] ss:$16 sps:$4 sm:$0xff]  }
 0x314   :  { %7194 = vmatprep.subr.bf16.mxu0 %v11147_v55  ;;  %8042 = vmatprep.subr.bf16.mxu1 %v11150_v56  ;;  %v11234_v55 = vld [vmem:[%s15119_s1 + $0x1a6c] ss:$16 sps:$4 sm:$0xff]   ;;  %v8660_v56 = vcombine.high %v14323_v52, %v14328_v49 }
 0x317   :  { %7195 = vmatpush1.bf16.msra.mxu0 %v11145_v59  ;;  %8043 = vmatpush1.bf16.msra.mxu1 %v11148_v60  ;;  %v11229_v59 = vld [vmem:[%s15119_s1 + $0x1a60] ss:$16 sps:$4 sm:$0xff]   ;;  %v11232_v60 = vld [vmem:[%s15119_s1 + $0x1a68] ss:$16 sps:$4 sm:$0xff]  }
 0x318   :  { %7196 = vmatprep.subr.bf16.mxu0 %v11153_v57  ;;  %8044 = vmatprep.subr.bf16.mxu1 %v11156_v58  ;;  %v11237_v57 = vld [vmem:[%s15119_s1 + $0x1a84] ss:$16 sps:$4 sm:$0xff]   ;;  %v11240_v58 = vld [vmem:[%s15119_s1 + $0x1a8c] ss:$16 sps:$4 sm:$0xff]  }
 0x31b   :  { %7197 = vmatpush1.bf16.msra.mxu0 %v11151_v61  ;;  %8045 = vmatpush1.bf16.msra.mxu1 %v11154_v62  ;;  %v11235_v61 = vld [vmem:[%s15119_s1 + $0x1a80] ss:$16 sps:$4 sm:$0xff]   ;;  %v11238_v62 = vld [vmem:[%s15119_s1 + $0x1a88] ss:$16 sps:$4 sm:$0xff]  }
 0x31c   :  { %7198 = vmatprep.subr.bf16.mxu0 %v11159_v63  ;;  %8046 = vmatprep.subr.bf16.mxu1 %v11162_v0  ;;  %v11243_v63 = vld [vmem:[%s15119_s1 + $0x1aa4] ss:$16 sps:$4 sm:$0xff]   ;;  %v11246_v0 = vld [vmem:[%s15119_s1 + $0x1aac] ss:$16 sps:$4 sm:$0xff]  }
 0x31f   :  { %7199 = vmatpush1.bf16.msra.mxu0 %v11157_v3  ;;  %8047 = vmatpush1.bf16.msra.mxu1 %v11160_v4  ;;  %v11241_v3 = vld [vmem:[%s15119_s1 + $0x1aa0] ss:$16 sps:$4 sm:$0xff]   ;;  %v11244_v4 = vld [vmem:[%s15119_s1 + $0x1aa8] ss:$16 sps:$4 sm:$0xff]  }
 0x320   :  { %7200 = vmatprep.subr.bf16.mxu0 %v11165_v1  ;;  %8048 = vmatprep.subr.bf16.mxu1 %v11168_v2  ;;  %v11249_v1 = vld [vmem:[%s15119_s1 + $0x1ac4] ss:$16 sps:$4 sm:$0xff]   ;;  %v11252_v2 = vld [vmem:[%s15119_s1 + $0x1acc] ss:$16 sps:$4 sm:$0xff]  }
 0x323   :  { %7201 = vmatpush1.bf16.msra.mxu0 %v11163_v5  ;;  %8049 = vmatpush1.bf16.msra.mxu1 %v11166_v6  ;;  %v11247_v5 = vld [vmem:[%s15119_s1 + $0x1ac0] ss:$16 sps:$4 sm:$0xff]   ;;  %v11250_v6 = vld [vmem:[%s15119_s1 + $0x1ac8] ss:$16 sps:$4 sm:$0xff]  }
 0x324   :  { %7202 = vmatprep.subr.bf16.mxu0 %v11171_v7  ;;  %8050 = vmatprep.subr.bf16.mxu1 %v11174_v8  ;;  %v11255_v7 = vld [vmem:[%s15119_s1 + $0x1ae4] ss:$16 sps:$4 sm:$0xff]   ;;  %v11258_v8 = vld [vmem:[%s15119_s1 + $0x1aec] ss:$16 sps:$4 sm:$0xff]  }
 0x327   :  { %7203 = vmatpush1.bf16.msra.mxu0 %v11169_v11  ;;  %8051 = vmatpush1.bf16.msra.mxu1 %v11172_v12  ;;  %v11253_v11 = vld [vmem:[%s15119_s1 + $0x1ae0] ss:$16 sps:$4 sm:$0xff]   ;;  %v11256_v12 = vld [vmem:[%s15119_s1 + $0x1ae8] ss:$16 sps:$4 sm:$0xff]  }
 0x328   :  { %7204 = vmatprep.subr.bf16.mxu0 %v11177_v9  ;;  %8052 = vmatprep.subr.bf16.mxu1 %v11180_v10  ;;  %v11261_v9 = vld [vmem:[%s15119_s1 + $0x1b04] ss:$16 sps:$4 sm:$0xff]   ;;  %v11264_v10 = vld [vmem:[%s15119_s1 + $0x1b0c] ss:$16 sps:$4 sm:$0xff]  }
 0x32b   :  { %7205 = vmatpush1.bf16.msra.mxu0 %v11175_v13  ;;  %8053 = vmatpush1.bf16.msra.mxu1 %v11178_v14  ;;  %v11259_v13 = vld [vmem:[%s15119_s1 + $0x1b00] ss:$16 sps:$4 sm:$0xff]   ;;  %v11262_v14 = vld [vmem:[%s15119_s1 + $0x1b08] ss:$16 sps:$4 sm:$0xff]  }
 0x32c   :  { %7206 = vmatprep.subr.bf16.mxu0 %v11183_v15  ;;  %8054 = vmatprep.subr.bf16.mxu1 %v11186_v16  ;;  %v11267_v15 = vld [vmem:[%s15119_s1 + $0x1b24] ss:$16 sps:$4 sm:$0xff]   ;;  %v11270_v16 = vld [vmem:[%s15119_s1 + $0x1b2c] ss:$16 sps:$4 sm:$0xff]  }
 0x32f   :  { %7207 = vmatpush1.bf16.msra.mxu0 %v11181_v19  ;;  %8055 = vmatpush1.bf16.msra.mxu1 %v11184_v17  ;;  %v11265_v19 = vld [vmem:[%s15119_s1 + $0x1b20] ss:$16 sps:$4 sm:$0xff]   ;;  %v11268_v17 = vld [vmem:[%s15119_s1 + $0x1b28] ss:$16 sps:$4 sm:$0xff]  }
 0x330   :  { %7208 = vmatprep.subr.bf16.mxu0 %v11189_v18  ;;  %8056 = vmatprep.subr.bf16.mxu1 %v11192_v20  ;;  %v11273_v18 = vld [vmem:[%s15119_s1 + $0x1b44] ss:$16 sps:$4 sm:$0xff]   ;;  %v11276_v20 = vld [vmem:[%s15119_s1 + $0x1b4c] ss:$16 sps:$4 sm:$0xff]  }
 0x333   :  { %7209 = vmatpush1.bf16.msra.mxu0 %v11187_v21  ;;  %8057 = vmatpush1.bf16.msra.mxu1 %v11190_v22  ;;  %v11271_v21 = vld [vmem:[%s15119_s1 + $0x1b40] ss:$16 sps:$4 sm:$0xff]   ;;  %v11274_v22 = vld [vmem:[%s15119_s1 + $0x1b48] ss:$16 sps:$4 sm:$0xff]  }
 0x334   :  { %7210 = vmatprep.subr.bf16.mxu0 %v11195_v23  ;;  %8058 = vmatprep.subr.bf16.mxu1 %v11198_v24  ;;  %v11279_v23 = vld [vmem:[%s15119_s1 + $0x1b64] ss:$16 sps:$4 sm:$0xff]   ;;  %v11282_v24 = vld [vmem:[%s15119_s1 + $0x1b6c] ss:$16 sps:$4 sm:$0xff]  }
 0x337   :  { %7211 = vmatpush1.bf16.msra.mxu0 %v11193_v26  ;;  %8059 = vmatpush1.bf16.msra.mxu1 %v11196_v25  ;;  %v11277_v26 = vld [vmem:[%s15119_s1 + $0x1b60] ss:$16 sps:$4 sm:$0xff]   ;;  %v11280_v25 = vld [vmem:[%s15119_s1 + $0x1b68] ss:$16 sps:$4 sm:$0xff]  }
 0x338   :  { %7212 = vmatprep.subr.bf16.mxu0 %v11201_v27  ;;  %8060 = vmatprep.subr.bf16.mxu1 %v11204_v28  ;;  %v11285_v27 = vld [vmem:[%s15119_s1 + $0x1b84] ss:$16 sps:$4 sm:$0xff]   ;;  %v11288_v28 = vld [vmem:[%s15119_s1 + $0x1b8c] ss:$16 sps:$4 sm:$0xff]  }
 0x33b   :  { %7213 = vmatpush1.bf16.msra.mxu0 %v11199_v29  ;;  %8061 = vmatpush1.bf16.msra.mxu1 %v11202_v30  ;;  %v11283_v29 = vld [vmem:[%s15119_s1 + $0x1b80] ss:$16 sps:$4 sm:$0xff]   ;;  %v11286_v30 = vld [vmem:[%s15119_s1 + $0x1b88] ss:$16 sps:$4 sm:$0xff]  }
 0x33c   :  { %7214 = vmatprep.subr.bf16.mxu0 %v11207_v31  ;;  %8062 = vmatprep.subr.bf16.mxu1 %v11210_v32  ;;  %v11291_v31 = vld [vmem:[%s15119_s1 + $0x1ba4] ss:$16 sps:$4 sm:$0xff]   ;;  %v11294_v32 = vld [vmem:[%s15119_s1 + $0x1bac] ss:$16 sps:$4 sm:$0xff]  }
 0x33f   :  { %7215 = vmatpush1.bf16.msra.mxu0 %v11205_v34  ;;  %8063 = vmatpush1.bf16.msra.mxu1 %v11208_v36  ;;  %v11289_v34 = vld [vmem:[%s15119_s1 + $0x1ba0] ss:$16 sps:$4 sm:$0xff]   ;;  %v11292_v36 = vld [vmem:[%s15119_s1 + $0x1ba8] ss:$16 sps:$4 sm:$0xff]  }
 0x340   :  { %7237 = vmatprep.subr.bf16.mxu0 %v11213_v33  ;;  %8085 = vmatprep.subr.bf16.mxu1 %v11216_v35  ;;  %v11297_v33 = vld [vmem:[%s15119_s1 + $0x1bc4] ss:$16 sps:$4 sm:$0xff]   ;;  %v11300_v35 = vld [vmem:[%s15119_s1 + $0x1bcc] ss:$16 sps:$4 sm:$0xff]  }
 0x342   :  { %7217 = vmatmul.mubr.bf16.vlgmr.msra.gmra.mrb[0].mxu0 %v8657_v37  ;;  %8065 = vmatmul.mubr.bf16.vlgmr.msra.gmra.mrb[0].mxu1 %v8657_v37  ;;  %v11295_v37 = vld [vmem:[%s15119_s1 + $0x1bc0] ss:$16 sps:$4 sm:$0xff]  }
 0x343   :  { %7238 = vmatpush1.bf16.msra.mxu0 %v11211_v40  ;;  %8086 = vmatpush1.bf16.msra.mxu1 %v11214_v42  ;;  %v11306_v40 = vld [vmem:[%s15119_s1 + $0x1bec] ss:$16 sps:$4 sm:$0xff]   ;;  %v11301_v42 = vld [vmem:[%s15119_s1 + $0x1be0] ss:$16 sps:$4 sm:$0xff]  }
 0x344   :  { %7239 = vmatprep.subr.bf16.mxu0 %v11219_v44  ;;  %8087 = vmatprep.subr.bf16.mxu1 %v11222_v41  ;;  %v11304_v44 = vld [vmem:[%s15119_s1 + $0x1be8] ss:$16 sps:$4 sm:$0xff]   ;;  %v11309_v41 = vld [vmem:[%s15119_s1 + $0x1c04] ss:$16 sps:$4 sm:$0xff]  }
 0x345   :  { %7226 = vmatprep.mubr.bf16.mxu0 %v8690_v43  ;;  %8074 = vmatprep.mubr.bf16.mxu1 %v8690_v43  ;;  %v11312_v43 = vld [vmem:[%s15119_s1 + $0x1c0c] ss:$16 sps:$4 sm:$0xff]  }
 0x347   :  { %7240 = vmatpush1.bf16.msra.mxu0 %v11217_v45  ;;  %8088 = vmatpush1.bf16.msra.mxu1 %v11220_v46  ;;  %v8659_v45 = vcombine.low %v14323_v52, %v14328_v49  ;;  %v65_v46 = vld [vmem:[%s15120_s0 + $0x168] sm:$0xff]  ;;  %v11315_v52 = vld [vmem:[%s15119_s1 + $0x1c24] ss:$16 sps:$4 sm:$0xff]  }
 0x348   :  { %7241 = vmatprep.subr.bf16.mxu0 %v11225_v47  ;;  %8089 = vmatprep.subr.bf16.mxu1 %v11228_v48  ;;  %v81_v47 = vld [vmem:[%s15120_s0 + $0x1e8] sm:$0xff]  ;;  %v11307_v48 = vld [vmem:[%s15119_s1 + $0x1c00] ss:$16 sps:$4 sm:$0xff]  }
 0x349   :  { %v11318_v49 = vld [vmem:[%s15119_s1 + $0x1c2c] ss:$16 sps:$4 sm:$0xff]  }
 0x34a   :  { %7227 = vmatmul.mubr.bf16.gmra.mrb[4].mxu0 %v8689_v51  ;;  %8075 = vmatmul.mubr.bf16.gmra.mrb[4].mxu1 %v8689_v51  ;;  %v11310_v51 = vld [vmem:[%s15119_s1 + $0x1c08] ss:$16 sps:$4 sm:$0xff]  }
 0x34b   :  { %7242 = vmatpush1.bf16.msra.mxu0 %v11223_v50  ;;  %8090 = vmatpush1.bf16.msra.mxu1 %v11226_v53  ;;  %v8692_v50 = vcombine.high %v65_v46, %v81_v47  ;;  %v11313_v53 = vld [vmem:[%s15119_s1 + $0x1c20] ss:$16 sps:$4 sm:$0xff]  }
 0x34c   :  { %7243 = vmatprep.subr.bf16.mxu0 %v11231_v54  ;;  %8091 = vmatprep.subr.bf16.mxu1 %v11234_v55  ;;  %v11316_v54 = vld [vmem:[%s15119_s1 + $0x1c28] ss:$16 sps:$4 sm:$0xff]   ;;  %v11321_v55 = vld [vmem:[%s15119_s1 + $0x1c44] ss:$16 sps:$4 sm:$0xff]  }
 0x34d   :  { %7269 = vmatprep.mubr.bf16.mxu0 %v8660_v56  ;;  %8117 = vmatprep.mubr.bf16.mxu1 %v8660_v56  ;;  %v11324_v56 = vld [vmem:[%s15119_s1 + $0x1c4c] ss:$16 sps:$4 sm:$0xff]  }
 0x34f   :  { %7244 = vmatpush1.bf16.msra.mxu0 %v11229_v59  ;;  %8092 = vmatpush1.bf16.msra.mxu1 %v11232_v60  ;;  %v8691_v59 = vcombine.low %v65_v46, %v81_v47  ;;  %v14535_v60 = vld [vmem:[%s15120_s0 + $0x70] sm:$0xff]  ;;  %v11394_v46 = vld [vmem:[%s15119_s1 + $0x1dc8] ss:$16 sps:$4 sm:$0xff]  }
 0x350   :  { %7245 = vmatprep.subr.bf16.mxu0 %v11237_v57  ;;  %8093 = vmatprep.subr.bf16.mxu1 %v11240_v58  ;;  %v14540_v57 = vld [vmem:[%s15120_s0 + $0xf0] sm:$0xff] }
 0x351   :  { %v11319_v58 = vld [vmem:[%s15119_s1 + $0x1c40] ss:$16 sps:$4 sm:$0xff]   ;;  %v11399_v47 = vld [vmem:[%s15119_s1 + $0x1de4] ss:$16 sps:$4 sm:$0xff]  }
 0x353   :  { %7246 = vmatpush1.bf16.msra.mxu0 %v11235_v61  ;;  %8094 = vmatpush1.bf16.msra.mxu1 %v11238_v62  ;;  %v11322_v61 = vld [vmem:[%s15119_s1 + $0x1c48] ss:$16 sps:$4 sm:$0xff]   ;;  %v11327_v62 = vld [vmem:[%s15119_s1 + $0x1c64] ss:$16 sps:$4 sm:$0xff]  }
 0x354   :  { %7247 = vmatprep.subr.bf16.mxu0 %v11243_v63  ;;  %8095 = vmatprep.subr.bf16.mxu1 %v11246_v0  ;;  %v11330_v63 = vld [vmem:[%s15119_s1 + $0x1c6c] ss:$16 sps:$4 sm:$0xff]   ;;  %v8662_v0 = vcombine.high %v14535_v60, %v14540_v57 }
 0x357   :  { %7248 = vmatpush1.bf16.msra.mxu0 %v11241_v3  ;;  %8096 = vmatpush1.bf16.msra.mxu1 %v11244_v4  ;;  %v11325_v3 = vld [vmem:[%s15119_s1 + $0x1c60] ss:$16 sps:$4 sm:$0xff]   ;;  %v11328_v4 = vld [vmem:[%s15119_s1 + $0x1c68] ss:$16 sps:$4 sm:$0xff]  }
 0x358   :  { %7249 = vmatprep.subr.bf16.mxu0 %v11249_v1  ;;  %8097 = vmatprep.subr.bf16.mxu1 %v11252_v2  ;;  %v11333_v1 = vld [vmem:[%s15119_s1 + $0x1c84] ss:$16 sps:$4 sm:$0xff]   ;;  %v11336_v2 = vld [vmem:[%s15119_s1 + $0x1c8c] ss:$16 sps:$4 sm:$0xff]  }
 0x35b   :  { %7250 = vmatpush1.bf16.msra.mxu0 %v11247_v5  ;;  %8098 = vmatpush1.bf16.msra.mxu1 %v11250_v6  ;;  %v11331_v5 = vld [vmem:[%s15119_s1 + $0x1c80] ss:$16 sps:$4 sm:$0xff]   ;;  %v11334_v6 = vld [vmem:[%s15119_s1 + $0x1c88] ss:$16 sps:$4 sm:$0xff]  }
 0x35c   :  { %7251 = vmatprep.subr.bf16.mxu0 %v11255_v7  ;;  %8099 = vmatprep.subr.bf16.mxu1 %v11258_v8  ;;  %v11339_v7 = vld [vmem:[%s15119_s1 + $0x1ca4] ss:$16 sps:$4 sm:$0xff]   ;;  %v11342_v8 = vld [vmem:[%s15119_s1 + $0x1cac] ss:$16 sps:$4 sm:$0xff]  }
 0x35f   :  { %7252 = vmatpush1.bf16.msra.mxu0 %v11253_v11  ;;  %8100 = vmatpush1.bf16.msra.mxu1 %v11256_v12  ;;  %v11337_v11 = vld [vmem:[%s15119_s1 + $0x1ca0] ss:$16 sps:$4 sm:$0xff]   ;;  %v11340_v12 = vld [vmem:[%s15119_s1 + $0x1ca8] ss:$16 sps:$4 sm:$0xff]  }
 0x360   :  { %7253 = vmatprep.subr.bf16.mxu0 %v11261_v9  ;;  %8101 = vmatprep.subr.bf16.mxu1 %v11264_v10  ;;  %v11345_v9 = vld [vmem:[%s15119_s1 + $0x1cc4] ss:$16 sps:$4 sm:$0xff]   ;;  %v11348_v10 = vld [vmem:[%s15119_s1 + $0x1ccc] ss:$16 sps:$4 sm:$0xff]  }
 0x363   :  { %7254 = vmatpush1.bf16.msra.mxu0 %v11259_v13  ;;  %8102 = vmatpush1.bf16.msra.mxu1 %v11262_v14  ;;  %v11343_v13 = vld [vmem:[%s15119_s1 + $0x1cc0] ss:$16 sps:$4 sm:$0xff]   ;;  %v11346_v14 = vld [vmem:[%s15119_s1 + $0x1cc8] ss:$16 sps:$4 sm:$0xff]  }
 0x364   :  { %7255 = vmatprep.subr.bf16.mxu0 %v11267_v15  ;;  %8103 = vmatprep.subr.bf16.mxu1 %v11270_v16  ;;  %v11351_v15 = vld [vmem:[%s15119_s1 + $0x1ce4] ss:$16 sps:$4 sm:$0xff]   ;;  %v11354_v16 = vld [vmem:[%s15119_s1 + $0x1cec] ss:$16 sps:$4 sm:$0xff]  }
 0x367   :  { %7256 = vmatpush1.bf16.msra.mxu0 %v11265_v19  ;;  %8104 = vmatpush1.bf16.msra.mxu1 %v11268_v17  ;;  %v11349_v19 = vld [vmem:[%s15119_s1 + $0x1ce0] ss:$16 sps:$4 sm:$0xff]   ;;  %v11352_v17 = vld [vmem:[%s15119_s1 + $0x1ce8] ss:$16 sps:$4 sm:$0xff]  }
 0x368   :  { %7257 = vmatprep.subr.bf16.mxu0 %v11273_v18  ;;  %8105 = vmatprep.subr.bf16.mxu1 %v11276_v20  ;;  %v11357_v18 = vld [vmem:[%s15119_s1 + $0x1d04] ss:$16 sps:$4 sm:$0xff]   ;;  %v11360_v20 = vld [vmem:[%s15119_s1 + $0x1d0c] ss:$16 sps:$4 sm:$0xff]  }
 0x36b   :  { %7258 = vmatpush1.bf16.msra.mxu0 %v11271_v21  ;;  %8106 = vmatpush1.bf16.msra.mxu1 %v11274_v22  ;;  %v11355_v21 = vld [vmem:[%s15119_s1 + $0x1d00] ss:$16 sps:$4 sm:$0xff]   ;;  %v11358_v22 = vld [vmem:[%s15119_s1 + $0x1d08] ss:$16 sps:$4 sm:$0xff]  }
 0x36c   :  { %7259 = vmatprep.subr.bf16.mxu0 %v11279_v23  ;;  %8107 = vmatprep.subr.bf16.mxu1 %v11282_v24  ;;  %v11363_v23 = vld [vmem:[%s15119_s1 + $0x1d24] ss:$16 sps:$4 sm:$0xff]   ;;  %v11366_v24 = vld [vmem:[%s15119_s1 + $0x1d2c] ss:$16 sps:$4 sm:$0xff]  }
 0x36f   :  { %7260 = vmatpush1.bf16.msra.mxu0 %v11277_v26  ;;  %8108 = vmatpush1.bf16.msra.mxu1 %v11280_v25  ;;  %v11361_v26 = vld [vmem:[%s15119_s1 + $0x1d20] ss:$16 sps:$4 sm:$0xff]   ;;  %v11364_v25 = vld [vmem:[%s15119_s1 + $0x1d28] ss:$16 sps:$4 sm:$0xff]  }
 0x370   :  { %7261 = vmatprep.subr.bf16.mxu0 %v11285_v27  ;;  %8109 = vmatprep.subr.bf16.mxu1 %v11288_v28  ;;  %v11369_v27 = vld [vmem:[%s15119_s1 + $0x1d44] ss:$16 sps:$4 sm:$0xff]   ;;  %v11372_v28 = vld [vmem:[%s15119_s1 + $0x1d4c] ss:$16 sps:$4 sm:$0xff]  }
 0x373   :  { %7262 = vmatpush1.bf16.msra.mxu0 %v11283_v29  ;;  %8110 = vmatpush1.bf16.msra.mxu1 %v11286_v30  ;;  %v11367_v29 = vld [vmem:[%s15119_s1 + $0x1d40] ss:$16 sps:$4 sm:$0xff]   ;;  %v11370_v30 = vld [vmem:[%s15119_s1 + $0x1d48] ss:$16 sps:$4 sm:$0xff]  }
 0x374   :  { %7263 = vmatprep.subr.bf16.mxu0 %v11291_v31  ;;  %8111 = vmatprep.subr.bf16.mxu1 %v11294_v32  ;;  %v11375_v31 = vld [vmem:[%s15119_s1 + $0x1d64] ss:$16 sps:$4 sm:$0xff]   ;;  %v11378_v32 = vld [vmem:[%s15119_s1 + $0x1d6c] ss:$16 sps:$4 sm:$0xff]  }
 0x377   :  { %7264 = vmatpush1.bf16.msra.mxu0 %v11289_v34  ;;  %8112 = vmatpush1.bf16.msra.mxu1 %v11292_v36  ;;  %v11373_v34 = vld [vmem:[%s15119_s1 + $0x1d60] ss:$16 sps:$4 sm:$0xff]   ;;  %v11376_v36 = vld [vmem:[%s15119_s1 + $0x1d68] ss:$16 sps:$4 sm:$0xff]  }
 0x378   :  { %7265 = vmatprep.subr.bf16.mxu0 %v11297_v33  ;;  %8113 = vmatprep.subr.bf16.mxu1 %v11300_v35  ;;  %v11381_v33 = vld [vmem:[%s15119_s1 + $0x1d84] ss:$16 sps:$4 sm:$0xff]   ;;  %v11384_v35 = vld [vmem:[%s15119_s1 + $0x1d8c] ss:$16 sps:$4 sm:$0xff]  }
 0x37b   :  { %7266 = vmatpush1.bf16.msra.mxu0 %v11295_v37  ;;  %8114 = vmatpush1.bf16.msra.mxu1 %v11298_v38  ;;  %v11379_v37 = vld [vmem:[%s15119_s1 + $0x1d80] ss:$16 sps:$4 sm:$0xff]   ;;  %v11382_v38 = vld [vmem:[%s15119_s1 + $0x1d88] ss:$16 sps:$4 sm:$0xff]  }
 0x37c   :  { %7267 = vmatprep.subr.bf16.mxu0 %v11303_v39  ;;  %8115 = vmatprep.subr.bf16.mxu1 %v11306_v40  ;;  %v11387_v39 = vld [vmem:[%s15119_s1 + $0x1da4] ss:$16 sps:$4 sm:$0xff]   ;;  %v11390_v40 = vld [vmem:[%s15119_s1 + $0x1dac] ss:$16 sps:$4 sm:$0xff]  }
 0x37f   :  { %7268 = vmatpush1.bf16.msra.mxu0 %v11301_v42  ;;  %8116 = vmatpush1.bf16.msra.mxu1 %v11304_v44  ;;  %v11385_v42 = vld [vmem:[%s15119_s1 + $0x1da0] ss:$16 sps:$4 sm:$0xff]   ;;  %v11388_v44 = vld [vmem:[%s15119_s1 + $0x1da8] ss:$16 sps:$4 sm:$0xff]  }
 0x380   :  { %7290 = vmatprep.subr.bf16.mxu0 %v11309_v41  ;;  %8138 = vmatprep.subr.bf16.mxu1 %v11312_v43  ;;  %v11393_v41 = vld [vmem:[%s15119_s1 + $0x1dc4] ss:$16 sps:$4 sm:$0xff]   ;;  %v11396_v43 = vld [vmem:[%s15119_s1 + $0x1dcc] ss:$16 sps:$4 sm:$0xff]  }
 0x382   :  { %7270 = vmatmul.mubr.bf16.vlgmr.msra.gmra.mrb[0].mxu0 %v8659_v45  ;;  %8118 = vmatmul.mubr.bf16.vlgmr.msra.gmra.mrb[0].mxu1 %v8659_v45  ;;  %v11391_v45 = vld [vmem:[%s15119_s1 + $0x1dc0] ss:$16 sps:$4 sm:$0xff]  }
 0x383   :  { %7291 = vmatpush1.bf16.msra.mxu0 %v11307_v48  ;;  %8139 = vmatpush1.bf16.msra.mxu1 %v11310_v51  ;;  %v11402_v48 = vld [vmem:[%s15119_s1 + $0x1dec] ss:$16 sps:$4 sm:$0xff]   ;;  %v11397_v51 = vld [vmem:[%s15119_s1 + $0x1de0] ss:$16 sps:$4 sm:$0xff]  }
 0x384   :  { %7292 = vmatprep.subr.bf16.mxu0 %v11315_v52  ;;  %8140 = vmatprep.subr.bf16.mxu1 %v11318_v49  ;;  %v11400_v52 = vld [vmem:[%s15119_s1 + $0x1de8] ss:$16 sps:$4 sm:$0xff]   ;;  %v11405_v49 = vld [vmem:[%s15119_s1 + $0x1e04] ss:$16 sps:$4 sm:$0xff]  }
 0x385   :  { %7279 = vmatprep.mubr.bf16.mxu0 %v8692_v50  ;;  %8127 = vmatprep.mubr.bf16.mxu1 %v8692_v50  ;;  %v11408_v50 = vld [vmem:[%s15119_s1 + $0x1e0c] ss:$16 sps:$4 sm:$0xff]  }
 0x387   :  { %7293 = vmatpush1.bf16.msra.mxu0 %v11313_v53  ;;  %8141 = vmatpush1.bf16.msra.mxu1 %v11316_v54  ;;  %v8661_v53 = vcombine.low %v14535_v60, %v14540_v57  ;;  %v66_v54 = vld [vmem:[%s15120_s0 + $0x170] sm:$0xff]  ;;  %v11414_v57 = vld [vmem:[%s15119_s1 + $0x1e2c] ss:$16 sps:$4 sm:$0xff]  }
 0x388   :  { %7294 = vmatprep.subr.bf16.mxu0 %v11321_v55  ;;  %8142 = vmatprep.subr.bf16.mxu1 %v11324_v56  ;;  %v82_v55 = vld [vmem:[%s15120_s0 + $0x1f0] sm:$0xff] }
 0x389   :  { %v11403_v56 = vld [vmem:[%s15119_s1 + $0x1e00] ss:$16 sps:$4 sm:$0xff]   ;;  %v11411_v60 = vld [vmem:[%s15119_s1 + $0x1e24] ss:$16 sps:$4 sm:$0xff]  }
 0x38a   :  { %7280 = vmatmul.mubr.bf16.gmra.mrb[4].mxu0 %v8691_v59  ;;  %8128 = vmatmul.mubr.bf16.gmra.mrb[4].mxu1 %v8691_v59  ;;  %v11406_v59 = vld [vmem:[%s15119_s1 + $0x1e08] ss:$16 sps:$4 sm:$0xff]  }
 0x38b   :  { %7295 = vmatpush1.bf16.msra.mxu0 %v11319_v58  ;;  %8143 = vmatpush1.bf16.msra.mxu1 %v11322_v61  ;;  %v8694_v58 = vcombine.high %v66_v54, %v82_v55  ;;  %v11409_v61 = vld [vmem:[%s15119_s1 + $0x1e20] ss:$16 sps:$4 sm:$0xff]  }
 0x38c   :  { %7296 = vmatprep.subr.bf16.mxu0 %v11327_v62  ;;  %8144 = vmatprep.subr.bf16.mxu1 %v11330_v63  ;;  %v11412_v62 = vld [vmem:[%s15119_s1 + $0x1e28] ss:$16 sps:$4 sm:$0xff]   ;;  %v11417_v63 = vld [vmem:[%s15119_s1 + $0x1e44] ss:$16 sps:$4 sm:$0xff]  }
 0x38d   :  { %7322 = vmatprep.mubr.bf16.mxu0 %v8662_v0  ;;  %8170 = vmatprep.mubr.bf16.mxu1 %v8662_v0  ;;  %v11420_v0 = vld [vmem:[%s15119_s1 + $0x1e4c] ss:$16 sps:$4 sm:$0xff]  }
 0x38f   :  { %7297 = vmatpush1.bf16.msra.mxu0 %v11325_v3  ;;  %8145 = vmatpush1.bf16.msra.mxu1 %v11328_v4  ;;  %v8693_v3 = vcombine.low %v66_v54, %v82_v55  ;;  %v14747_v4 = vld [vmem:[%s15120_s0 + $0x78] sm:$0xff]  ;;  %v11495_v55 = vld [vmem:[%s15119_s1 + $0x1fe4] ss:$16 sps:$4 sm:$0xff]  }
 0x390   :  { %7298 = vmatprep.subr.bf16.mxu0 %v11333_v1  ;;  %8146 = vmatprep.subr.bf16.mxu1 %v11336_v2  ;;  %v14752_v1 = vld [vmem:[%s15120_s0 + $0xf8] sm:$0xff]  ;;  %v11415_v2 = vld [vmem:[%s15119_s1 + $0x1e40] ss:$16 sps:$4 sm:$0xff]  }
 0x391   :  { %v11490_v54 = vld [vmem:[%s15119_s1 + $0x1fc8] ss:$16 sps:$4 sm:$0xff]  }
 0x393   :  { %7299 = vmatpush1.bf16.msra.mxu0 %v11331_v5  ;;  %8147 = vmatpush1.bf16.msra.mxu1 %v11334_v6  ;;  %v11418_v5 = vld [vmem:[%s15119_s1 + $0x1e48] ss:$16 sps:$4 sm:$0xff]   ;;  %v11423_v6 = vld [vmem:[%s15119_s1 + $0x1e64] ss:$16 sps:$4 sm:$0xff]  }
 0x394   :  { %7300 = vmatprep.subr.bf16.mxu0 %v11339_v7  ;;  %8148 = vmatprep.subr.bf16.mxu1 %v11342_v8  ;;  %v11426_v7 = vld [vmem:[%s15119_s1 + $0x1e6c] ss:$16 sps:$4 sm:$0xff]   ;;  %v8664_v8 = vcombine.high %v14747_v4, %v14752_v1 }
 0x397   :  { %7301 = vmatpush1.bf16.msra.mxu0 %v11337_v11  ;;  %8149 = vmatpush1.bf16.msra.mxu1 %v11340_v12  ;;  %v11421_v11 = vld [vmem:[%s15119_s1 + $0x1e60] ss:$16 sps:$4 sm:$0xff]   ;;  %v11424_v12 = vld [vmem:[%s15119_s1 + $0x1e68] ss:$16 sps:$4 sm:$0xff]  }
 0x398   :  { %7302 = vmatprep.subr.bf16.mxu0 %v11345_v9  ;;  %8150 = vmatprep.subr.bf16.mxu1 %v11348_v10  ;;  %v11429_v9 = vld [vmem:[%s15119_s1 + $0x1e84] ss:$16 sps:$4 sm:$0xff]   ;;  %v11432_v10 = vld [vmem:[%s15119_s1 + $0x1e8c] ss:$16 sps:$4 sm:$0xff]  }
 0x39b   :  { %7303 = vmatpush1.bf16.msra.mxu0 %v11343_v13  ;;  %8151 = vmatpush1.bf16.msra.mxu1 %v11346_v14  ;;  %v11427_v13 = vld [vmem:[%s15119_s1 + $0x1e80] ss:$16 sps:$4 sm:$0xff]   ;;  %v11430_v14 = vld [vmem:[%s15119_s1 + $0x1e88] ss:$16 sps:$4 sm:$0xff]  }
 0x39c   :  { %7304 = vmatprep.subr.bf16.mxu0 %v11351_v15  ;;  %8152 = vmatprep.subr.bf16.mxu1 %v11354_v16  ;;  %v11435_v15 = vld [vmem:[%s15119_s1 + $0x1ea4] ss:$16 sps:$4 sm:$0xff]   ;;  %v11438_v16 = vld [vmem:[%s15119_s1 + $0x1eac] ss:$16 sps:$4 sm:$0xff]  }
 0x39f   :  { %7305 = vmatpush1.bf16.msra.mxu0 %v11349_v19  ;;  %8153 = vmatpush1.bf16.msra.mxu1 %v11352_v17  ;;  %v11433_v19 = vld [vmem:[%s15119_s1 + $0x1ea0] ss:$16 sps:$4 sm:$0xff]   ;;  %v11436_v17 = vld [vmem:[%s15119_s1 + $0x1ea8] ss:$16 sps:$4 sm:$0xff]  }
 0x3a0   :  { %7306 = vmatprep.subr.bf16.mxu0 %v11357_v18  ;;  %8154 = vmatprep.subr.bf16.mxu1 %v11360_v20  ;;  %v11441_v18 = vld [vmem:[%s15119_s1 + $0x1ec4] ss:$16 sps:$4 sm:$0xff]   ;;  %v11444_v20 = vld [vmem:[%s15119_s1 + $0x1ecc] ss:$16 sps:$4 sm:$0xff]  }
 0x3a3   :  { %7307 = vmatpush1.bf16.msra.mxu0 %v11355_v21  ;;  %8155 = vmatpush1.bf16.msra.mxu1 %v11358_v22  ;;  %v11439_v21 = vld [vmem:[%s15119_s1 + $0x1ec0] ss:$16 sps:$4 sm:$0xff]   ;;  %v11442_v22 = vld [vmem:[%s15119_s1 + $0x1ec8] ss:$16 sps:$4 sm:$0xff]  }
 0x3a4   :  { %7308 = vmatprep.subr.bf16.mxu0 %v11363_v23  ;;  %8156 = vmatprep.subr.bf16.mxu1 %v11366_v24  ;;  %v11447_v23 = vld [vmem:[%s15119_s1 + $0x1ee4] ss:$16 sps:$4 sm:$0xff]   ;;  %v11450_v24 = vld [vmem:[%s15119_s1 + $0x1eec] ss:$16 sps:$4 sm:$0xff]  }
 0x3a7   :  { %7309 = vmatpush1.bf16.msra.mxu0 %v11361_v26  ;;  %8157 = vmatpush1.bf16.msra.mxu1 %v11364_v25  ;;  %v11445_v26 = vld [vmem:[%s15119_s1 + $0x1ee0] ss:$16 sps:$4 sm:$0xff]   ;;  %v11448_v25 = vld [vmem:[%s15119_s1 + $0x1ee8] ss:$16 sps:$4 sm:$0xff]  }
 0x3a8   :  { %7310 = vmatprep.subr.bf16.mxu0 %v11369_v27  ;;  %8158 = vmatprep.subr.bf16.mxu1 %v11372_v28  ;;  %v11453_v27 = vld [vmem:[%s15119_s1 + $0x1f04] ss:$16 sps:$4 sm:$0xff]   ;;  %v11456_v28 = vld [vmem:[%s15119_s1 + $0x1f0c] ss:$16 sps:$4 sm:$0xff]  }
 0x3ab   :  { %7311 = vmatpush1.bf16.msra.mxu0 %v11367_v29  ;;  %8159 = vmatpush1.bf16.msra.mxu1 %v11370_v30  ;;  %v11451_v29 = vld [vmem:[%s15119_s1 + $0x1f00] ss:$16 sps:$4 sm:$0xff]   ;;  %v11454_v30 = vld [vmem:[%s15119_s1 + $0x1f08] ss:$16 sps:$4 sm:$0xff]  }
 0x3ac   :  { %7312 = vmatprep.subr.bf16.mxu0 %v11375_v31  ;;  %8160 = vmatprep.subr.bf16.mxu1 %v11378_v32  ;;  %v11459_v31 = vld [vmem:[%s15119_s1 + $0x1f24] ss:$16 sps:$4 sm:$0xff]   ;;  %v11462_v32 = vld [vmem:[%s15119_s1 + $0x1f2c] ss:$16 sps:$4 sm:$0xff]  }
 0x3af   :  { %7313 = vmatpush1.bf16.msra.mxu0 %v11373_v34  ;;  %8161 = vmatpush1.bf16.msra.mxu1 %v11376_v36  ;;  %v11457_v34 = vld [vmem:[%s15119_s1 + $0x1f20] ss:$16 sps:$4 sm:$0xff]   ;;  %v11460_v36 = vld [vmem:[%s15119_s1 + $0x1f28] ss:$16 sps:$4 sm:$0xff]  }
 0x3b0   :  { %7314 = vmatprep.subr.bf16.mxu0 %v11381_v33  ;;  %8162 = vmatprep.subr.bf16.mxu1 %v11384_v35  ;;  %v11465_v33 = vld [vmem:[%s15119_s1 + $0x1f44] ss:$16 sps:$4 sm:$0xff]   ;;  %v11468_v35 = vld [vmem:[%s15119_s1 + $0x1f4c] ss:$16 sps:$4 sm:$0xff]  }
 0x3b3   :  { %7315 = vmatpush1.bf16.msra.mxu0 %v11379_v37  ;;  %8163 = vmatpush1.bf16.msra.mxu1 %v11382_v38  ;;  %v11463_v37 = vld [vmem:[%s15119_s1 + $0x1f40] ss:$16 sps:$4 sm:$0xff]   ;;  %v11466_v38 = vld [vmem:[%s15119_s1 + $0x1f48] ss:$16 sps:$4 sm:$0xff]  }
 0x3b4   :  { %7316 = vmatprep.subr.bf16.mxu0 %v11387_v39  ;;  %8164 = vmatprep.subr.bf16.mxu1 %v11390_v40  ;;  %v11471_v39 = vld [vmem:[%s15119_s1 + $0x1f64] ss:$16 sps:$4 sm:$0xff]   ;;  %v11474_v40 = vld [vmem:[%s15119_s1 + $0x1f6c] ss:$16 sps:$4 sm:$0xff]  }
 0x3b7   :  { %7317 = vmatpush1.bf16.msra.mxu0 %v11385_v42  ;;  %8165 = vmatpush1.bf16.msra.mxu1 %v11388_v44  ;;  %v11469_v42 = vld [vmem:[%s15119_s1 + $0x1f60] ss:$16 sps:$4 sm:$0xff]   ;;  %v11472_v44 = vld [vmem:[%s15119_s1 + $0x1f68] ss:$16 sps:$4 sm:$0xff]  }
 0x3b8   :  { %7318 = vmatprep.subr.bf16.mxu0 %v11393_v41  ;;  %8166 = vmatprep.subr.bf16.mxu1 %v11396_v43  ;;  %v11477_v41 = vld [vmem:[%s15119_s1 + $0x1f84] ss:$16 sps:$4 sm:$0xff]   ;;  %v11480_v43 = vld [vmem:[%s15119_s1 + $0x1f8c] ss:$16 sps:$4 sm:$0xff]  }
 0x3bb   :  { %7319 = vmatpush1.bf16.msra.mxu0 %v11391_v45  ;;  %8167 = vmatpush1.bf16.msra.mxu1 %v11394_v46  ;;  %v11475_v45 = vld [vmem:[%s15119_s1 + $0x1f80] ss:$16 sps:$4 sm:$0xff]   ;;  %v11478_v46 = vld [vmem:[%s15119_s1 + $0x1f88] ss:$16 sps:$4 sm:$0xff]  }
 0x3bc   :  { %7320 = vmatprep.subr.bf16.mxu0 %v11399_v47  ;;  %8168 = vmatprep.subr.bf16.mxu1 %v11402_v48  ;;  %v11483_v47 = vld [vmem:[%s15119_s1 + $0x1fa4] ss:$16 sps:$4 sm:$0xff]   ;;  %v11486_v48 = vld [vmem:[%s15119_s1 + $0x1fac] ss:$16 sps:$4 sm:$0xff]  }
 0x3bf   :  { %7321 = vmatpush1.bf16.msra.mxu0 %v11397_v51  ;;  %8169 = vmatpush1.bf16.msra.mxu1 %v11400_v52  ;;  %v11481_v51 = vld [vmem:[%s15119_s1 + $0x1fa0] ss:$16 sps:$4 sm:$0xff]   ;;  %v11484_v52 = vld [vmem:[%s15119_s1 + $0x1fa8] ss:$16 sps:$4 sm:$0xff]  }
 0x3c0   :  { %7343 = vmatprep.subr.bf16.mxu0 %v11405_v49  ;;  %8191 = vmatprep.subr.bf16.mxu1 %v11408_v50  ;;  %v11489_v49 = vld [vmem:[%s15119_s1 + $0x1fc4] ss:$16 sps:$4 sm:$0xff]   ;;  %v11492_v50 = vld [vmem:[%s15119_s1 + $0x1fcc] ss:$16 sps:$4 sm:$0xff]  }
 0x3c2   :  { %7323 = vmatmul.mubr.bf16.vlgmr.msra.gmra.mrb[0].mxu0 %v8661_v53  ;;  %8171 = vmatmul.mubr.bf16.vlgmr.msra.gmra.mrb[0].mxu1 %v8661_v53  ;;  %v11487_v53 = vld [vmem:[%s15119_s1 + $0x1fc0] ss:$16 sps:$4 sm:$0xff]  }
 0x3c3   :  { %7344 = vmatpush1.bf16.msra.mxu0 %v11403_v56  ;;  %8192 = vmatpush1.bf16.msra.mxu1 %v11406_v59  ;;  %v11498_v56 = vld [vmem:[%s15119_s1 + $0x1fec] ss:$16 sps:$4 sm:$0xff]   ;;  %v11493_v59 = vld [vmem:[%s15119_s1 + $0x1fe0] ss:$16 sps:$4 sm:$0xff]  }
 0x3c4   :  { %7345 = vmatprep.subr.bf16.mxu0 %v11411_v60  ;;  %8193 = vmatprep.subr.bf16.mxu1 %v11414_v57  ;;  %v11496_v60 = vld [vmem:[%s15119_s1 + $0x1fe8] ss:$16 sps:$4 sm:$0xff]  }
 0x3c5   :  { %7332 = vmatprep.mubr.bf16.mxu0 %v8694_v58  ;;  %8180 = vmatprep.mubr.bf16.mxu1 %v8694_v58  ;;  %v67_v57 = vld [vmem:[%s15120_s0 + $0x178] sm:$0xff] }
 0x3c6   :  { %v83_v58 = vld [vmem:[%s15120_s0 + $0x1f8] sm:$0xff] }
 0x3c7   :  { %7346 = vmatpush1.bf16.msra.mxu0 %v11409_v61  ;;  %8194 = vmatpush1.bf16.msra.mxu1 %v11412_v62  ;;  %v8663_v61 = vcombine.low %v14747_v4, %v14752_v1  ;;  %v8696_v62 = vcombine.high %v67_v57, %v83_v58 }
 0x3c8   :  { %7347 = vmatprep.subr.bf16.mxu0 %v11417_v63  ;;  %8195 = vmatprep.subr.bf16.mxu1 %v11420_v0  ;;  %v8695_v63 = vcombine.low %v67_v57, %v83_v58 }
 0x3ca   :  { %7333 = vmatmul.mubr.bf16.gmra.mrb[4].mxu0 %v8693_v3  ;;  %8181 = vmatmul.mubr.bf16.gmra.mrb[4].mxu1 %v8693_v3 }
 0x3cb   :  { %7348 = vmatpush1.bf16.msra.mxu0 %v11415_v2  ;;  %8196 = vmatpush1.bf16.msra.mxu1 %v11418_v5 }
 0x3cc   :  { %7349 = vmatprep.subr.bf16.mxu0 %v11423_v6  ;;  %8197 = vmatprep.subr.bf16.mxu1 %v11426_v7 }
 0x3cd   :  { %7375 = vmatprep.mubr.bf16.mxu0 %v8664_v8  ;;  %8223 = vmatprep.mubr.bf16.mxu1 %v8664_v8 }
 0x3cf   :  { %7350 = vmatpush1.bf16.msra.mxu0 %v11421_v11  ;;  %8198 = vmatpush1.bf16.msra.mxu1 %v11424_v12 }
 0x3d0   :  { %7351 = vmatprep.subr.bf16.mxu0 %v11429_v9  ;;  %8199 = vmatprep.subr.bf16.mxu1 %v11432_v10 }
 0x3d3   :  { %7352 = vmatpush1.bf16.msra.mxu0 %v11427_v13  ;;  %8200 = vmatpush1.bf16.msra.mxu1 %v11430_v14 }
 0x3d4   :  { %7353 = vmatprep.subr.bf16.mxu0 %v11435_v15  ;;  %8201 = vmatprep.subr.bf16.mxu1 %v11438_v16 }
 0x3d7   :  { %7354 = vmatpush1.bf16.msra.mxu0 %v11433_v19  ;;  %8202 = vmatpush1.bf16.msra.mxu1 %v11436_v17 }
 0x3d8   :  { %7355 = vmatprep.subr.bf16.mxu0 %v11441_v18  ;;  %8203 = vmatprep.subr.bf16.mxu1 %v11444_v20 }
 0x3db   :  { %7356 = vmatpush1.bf16.msra.mxu0 %v11439_v21  ;;  %8204 = vmatpush1.bf16.msra.mxu1 %v11442_v22 }
 0x3dc   :  { %7357 = vmatprep.subr.bf16.mxu0 %v11447_v23  ;;  %8205 = vmatprep.subr.bf16.mxu1 %v11450_v24 }
 0x3df   :  { %7358 = vmatpush1.bf16.msra.mxu0 %v11445_v26  ;;  %8206 = vmatpush1.bf16.msra.mxu1 %v11448_v25 }
 0x3e0   :  { %7359 = vmatprep.subr.bf16.mxu0 %v11453_v27  ;;  %8207 = vmatprep.subr.bf16.mxu1 %v11456_v28 }
 0x3e3   :  { %7360 = vmatpush1.bf16.msra.mxu0 %v11451_v29  ;;  %8208 = vmatpush1.bf16.msra.mxu1 %v11454_v30 }
 0x3e4   :  { %7361 = vmatprep.subr.bf16.mxu0 %v11459_v31  ;;  %8209 = vmatprep.subr.bf16.mxu1 %v11462_v32 }
 0x3e7   :  { %7362 = vmatpush1.bf16.msra.mxu0 %v11457_v34  ;;  %8210 = vmatpush1.bf16.msra.mxu1 %v11460_v36 }
 0x3e8   :  { %7363 = vmatprep.subr.bf16.mxu0 %v11465_v33  ;;  %8211 = vmatprep.subr.bf16.mxu1 %v11468_v35 }
 0x3eb   :  { %7364 = vmatpush1.bf16.msra.mxu0 %v11463_v37  ;;  %8212 = vmatpush1.bf16.msra.mxu1 %v11466_v38 }
 0x3ec   :  { %7365 = vmatprep.subr.bf16.mxu0 %v11471_v39  ;;  %8213 = vmatprep.subr.bf16.mxu1 %v11474_v40 }
 0x3ef   :  { %7366 = vmatpush1.bf16.msra.mxu0 %v11469_v42  ;;  %8214 = vmatpush1.bf16.msra.mxu1 %v11472_v44 }
 0x3f0   :  { %7367 = vmatprep.subr.bf16.mxu0 %v11477_v41  ;;  %8215 = vmatprep.subr.bf16.mxu1 %v11480_v43 }
 0x3f3   :  { %7368 = vmatpush1.bf16.msra.mxu0 %v11475_v45  ;;  %8216 = vmatpush1.bf16.msra.mxu1 %v11478_v46 }
 0x3f4   :  { %7369 = vmatprep.subr.bf16.mxu0 %v11483_v47  ;;  %8217 = vmatprep.subr.bf16.mxu1 %v11486_v48 }
 0x3f7   :  { %7370 = vmatpush1.bf16.msra.mxu0 %v11481_v51  ;;  %8218 = vmatpush1.bf16.msra.mxu1 %v11484_v52 }
 0x3f8   :  { %7371 = vmatprep.subr.bf16.mxu0 %v11489_v49  ;;  %8219 = vmatprep.subr.bf16.mxu1 %v11492_v50 }
 0x3fb   :  { %7372 = vmatpush1.bf16.msra.mxu0 %v11487_v53  ;;  %8220 = vmatpush1.bf16.msra.mxu1 %v11490_v54 }
 0x3fc   :  { %7373 = vmatprep.subr.bf16.mxu0 %v11495_v55  ;;  %8221 = vmatprep.subr.bf16.mxu1 %v11498_v56 }
 0x3ff   :  { %7374 = vmatpush1.bf16.msra.mxu0 %v11493_v59  ;;  %8222 = vmatpush1.bf16.msra.mxu1 %v11496_v60 }
 0x402   :  { %7376 = vmatmul.mubr.bf16.vlgmr.msra.gmra.mrb[0].mxu0 %v8663_v61  ;;  %8224 = vmatmul.mubr.bf16.vlgmr.msra.gmra.mrb[0].mxu1 %v8663_v61 }
 0x403   :  { %7385 = vmatprep.mubr.bf16.mxu0 %v8696_v62  ;;  %8233 = vmatprep.mubr.bf16.mxu1 %v8696_v62 }
 0x40a   :  { %7386 = vmatmul.mubr.bf16.gmra.mrb[4].mxu0 %v8695_v63  ;;  %8234 = vmatmul.mubr.bf16.gmra.mrb[4].mxu1 %v8695_v63 }
 0x4d5   :  { %v14926_v0 = vpop.f32.mrb[0].mxu0  ;;  %v14928_v3 = vpop.f32.mrb[0].mxu1 }
 0x4d6   :  { %v14930_v2 = vpop.f32.mrb[1].mxu0  ;;  %v14932_v5 = vpop.f32.mrb[1].mxu1  ;;  %v8284_v4 = vmul.f32 %v14926_v0, %v14926_v0  ;;  %v8286_v1 = vmul.f32 %v14928_v3, %v14928_v3 }
 0x4d7   :  { %v8285_v6 = vmul.f32 %v14930_v2, %v14930_v2  ;;  %v8287_v7 = vmul.f32 %v14932_v5, %v14932_v5  ;;  %v14942_v8 = vpop.f32.mrb[2].mxu0  ;;  %v14944_v11 = vpop.f32.mrb[2].mxu1 }
 0x4d8   :  { %v8244_v12 = vadd.f32 %v14942_v8, %v14926_v0  ;;  %v8288_v9 = vmul.f32 %v14942_v8, %v14942_v8  ;;  %v8262_v10 = vadd.f32 %v14944_v11, %v14928_v3  ;;  %v8290_v13 = vmul.f32 %v14944_v11, %v14944_v11  ;;  %v14954_v14 = vpop.f32.mrb[3].mxu0  ;;  %v14956_v15 = vpop.f32.mrb[3].mxu1 }
 0x4d9   :  { %v8253_v16 = vadd.f32 %v14954_v14, %v14930_v2  ;;  %v8289_v19 = vmul.f32 %v14954_v14, %v14954_v14  ;;  %v8271_v17 = vadd.f32 %v14956_v15, %v14932_v5  ;;  %v8291_v18 = vmul.f32 %v14956_v15, %v14956_v15 }
 0x4da   :  { %v8300_v20 = vadd.f32 %v8288_v9, %v8284_v4  ;;  %v8318_v21 = vadd.f32 %v8290_v13, %v8286_v1 }
 0x4db   :  { %v8309_v22 = vadd.f32 %v8289_v19, %v8285_v6  ;;  %v8327_v23 = vadd.f32 %v8291_v18, %v8287_v7 }
 0x4dd   :  { %v14966_v24 = vpop.f32.mrb[4].mxu0  ;;  %v14968_v26 = vpop.f32.mrb[4].mxu1 }
 0x4de   :  { %v8245_v25 = vadd.f32 %v8244_v12, %v14966_v24  ;;  %v8292_v27 = vmul.f32 %v14966_v24, %v14966_v24  ;;  %v8263_v28 = vadd.f32 %v8262_v10, %v14968_v26  ;;  %v8294_v29 = vmul.f32 %v14968_v26, %v14968_v26  ;;  %v14976_v30 = vpop.f32.mrb[5].mxu0  ;;  %v14978_v31 = vpop.f32.mrb[5].mxu1 }
 0x4df   :  { %v8254_v32 = vadd.f32 %v8253_v16, %v14976_v30  ;;  %v8293_v34 = vmul.f32 %v14976_v30, %v14976_v30  ;;  %v8272_v36 = vadd.f32 %v8271_v17, %v14978_v31  ;;  %v8295_v33 = vmul.f32 %v14978_v31, %v14978_v31  ;;  %v14986_v35 = vpop.f32.mrb[6].mxu0  ;;  %v14988_v37 = vpop.f32.mrb[6].mxu1 }
 0x4e0   :  { %v8301_v38 = vadd.f32 %v8300_v20, %v8292_v27  ;;  %v8319_v39 = vadd.f32 %v8318_v21, %v8294_v29  ;;  %v8246_v40 = vadd.f32 %v8245_v25, %v14986_v35  ;;  %v8296_v42 = vmul.f32 %v14986_v35, %v14986_v35  ;;  %v14993_v44 = vpop.f32.mrb[7].mxu0  ;;  %v14995_v41 = vpop.f32.mrb[7].mxu1 }
 0x4e1   :  { %v8310_v43 = vadd.f32 %v8309_v22, %v8293_v34  ;;  %v8328_v45 = vadd.f32 %v8327_v23, %v8295_v33  ;;  %v8264_v46 = vadd.f32 %v8263_v28, %v14988_v37  ;;  %v8298_v47 = vmul.f32 %v14988_v37, %v14988_v37 }
 0x4e2   :  { %v8247_v48 = vrot.slane %v8246_v40, 4  ;;  %v8302_v51 = vadd.f32 %v8301_v38, %v8296_v42  ;;  %v8255_v52 = vadd.f32 %v8254_v32, %v14993_v44  ;;  %v8297_v49 = vmul.f32 %v14993_v44, %v14993_v44 }
 0x4e3   :  { %v8265_v50 = vrot.slane %v8264_v46, 4  ;;  %v8320_v53 = vadd.f32 %v8319_v39, %v8298_v47  ;;  %v8273_v54 = vadd.f32 %v8272_v36, %v14995_v41  ;;  %v8299_v55 = vmul.f32 %v14995_v41, %v14995_v41 }
 0x4e4   :  { %v8248_v56 = vadd.f32 %v8247_v48, %v8246_v40  ;;  %v8303_v59 = vrot.slane %v8302_v51, 4  ;;  %v8256_v60 = vrot.slane %v8255_v52, 4  ;;  %v8311_v57 = vadd.f32 %v8310_v43, %v8297_v49 }
 0x4e5   :  { %v8266_v58 = vadd.f32 %v8265_v50, %v8264_v46  ;;  %v8321_v61 = vrot.slane %v8320_v53, 4  ;;  %v8274_v62 = vrot.slane %v8273_v54, 4  ;;  %v8329_v63 = vadd.f32 %v8328_v45, %v8299_v55 }
 0x4e6   :  { %v8249_v4 = vrot.slane %v8248_v56, 2  ;;  %v8304_v1 = vadd.f32 %v8303_v59, %v8302_v51  ;;  %v8257_v6 = vadd.f32 %v8256_v60, %v8255_v52  ;;  %v8312_v7 = vrot.slane %v8311_v57, 4 }
 0x4e7   :  { %v8267_v12 = vrot.slane %v8266_v58, 2  ;;  %v8322_v9 = vadd.f32 %v8321_v61, %v8320_v53  ;;  %v8275_v10 = vadd.f32 %v8274_v62, %v8273_v54  ;;  %v8330_v13 = vrot.slane %v8329_v63, 4 }
 0x4e8   :  { %v8250_v16 = vadd.f32 %v8249_v4, %v8248_v56  ;;  %v8305_v19 = vrot.slane %v8304_v1, 2  ;;  %v8258_v17 = vrot.slane %v8257_v6, 2  ;;  %v8313_v18 = vadd.f32 %v8312_v7, %v8311_v57 }
 0x4e9   :  { %v8268_v20 = vadd.f32 %v8267_v12, %v8266_v58  ;;  %v8323_v21 = vrot.slane %v8322_v9, 2  ;;  %v8276_v22 = vrot.slane %v8275_v10, 2  ;;  %v8331_v23 = vadd.f32 %v8330_v13, %v8329_v63 }
 0x4ea   :  { %v8251_v25 = vrot.slane %v8250_v16, 1  ;;  %v8306_v27 = vadd.f32 %v8305_v19, %v8304_v1  ;;  %v8259_v28 = vadd.f32 %v8258_v17, %v8257_v6  ;;  %v8314_v29 = vrot.slane %v8313_v18, 2 }
 0x4eb   :  { %v8269_v32 = vrot.slane %v8268_v20, 1  ;;  %v8324_v34 = vadd.f32 %v8323_v21, %v8322_v9  ;;  %v8277_v36 = vadd.f32 %v8276_v22, %v8275_v10  ;;  %v8332_v33 = vrot.slane %v8331_v23, 2 }
 0x4ec   :  { %v8252_v38 = vadd.f32 %v8251_v25, %v8250_v16  ;;  %v8307_v39 = vrot.slane %v8306_v27, 1  ;;  %v8260_v40 = vrot.slane %v8259_v28, 1  ;;  %v8315_v42 = vadd.f32 %v8314_v29, %v8313_v18 }
 0x4ed   :  { %v8270_v43 = vadd.f32 %v8269_v32, %v8268_v20  ;;  %v8325_v45 = vrot.slane %v8324_v34, 1  ;;  %v8278_v46 = vrot.slane %v8277_v36, 1  ;;  %v8333_v47 = vadd.f32 %v8332_v33, %v8331_v23 }
 0x4ee   :  { %v8280_v48 = vmul.f32 0.03125, %v8252_v38  ;;  %v8308_v51 = vadd.f32 %v8307_v39, %v8306_v27  ;;  %v8261_v52 = vadd.f32 %v8260_v40, %v8259_v28  ;;  %v8316_v49 = vrot.slane %v8315_v42, 1 }
 0x4ef   :  { %v8282_v50 = vmul.f32 0.03125, %v8270_v43  ;;  %v8326_v53 = vadd.f32 %v8325_v45, %v8324_v34  ;;  %v8279_v54 = vadd.f32 %v8278_v46, %v8277_v36  ;;  %v8334_v55 = vrot.slane %v8333_v47, 1 }
 0x4f0   :  { %v8336_v56 = vmul.f32 0.03125, %v8308_v51  ;;  %v8340_v59 = vmul.f32 %v8280_v48, %v8280_v48  ;;  %v8281_v60 = vmul.f32 0.03125, %v8261_v52  ;;  %v8317_v57 = vadd.f32 %v8316_v49, %v8315_v42  ;;  %v8348_v42 = vld [vmem:[%s15121_s2] sm:$0xf] }
 0x4f1   :  { %v8338_v58 = vmul.f32 0.03125, %v8326_v53  ;;  %v8342_v61 = vmul.f32 %v8282_v50, %v8282_v50  ;;  %v8283_v62 = vmul.f32 0.03125, %v8279_v54  ;;  %v8335_v63 = vadd.f32 %v8334_v55, %v8333_v47 }
 0x4f2   :  { %v8344_v4 = vsub.f32 %v8336_v56, %v8340_v59  ;;  %v8337_v1 = vmul.f32 0.03125, %v8317_v57  ;;  %v8341_v6 = vmul.f32 %v8281_v60, %v8281_v60  ;;  %v11511_v20 = vmov 1966171168  }
 0x4f3   :  { %v8346_v7 = vsub.f32 %v8338_v58, %v8342_v61  ;;  %v8339_v12 = vmul.f32 0.03125, %v8335_v63  ;;  %v8343_v9 = vmul.f32 %v8283_v62, %v8283_v62  ;;  %v8364_v21 = vunpack.c.l.s4 %v11511_v20 }
 0x4f4   :  { %v8349_v10 = vadd.f32 1e-05, %v8344_v4  ;;  %v8345_v13 = vsub.f32 %v8337_v1, %v8341_v6  ;;  %v8366_v22 = vlaneseq }
 0x4f5   :  { %v8351_v16 = vadd.f32 1e-05, %v8346_v7  ;;  %v8347_v19 = vsub.f32 %v8339_v12, %v8343_v9  ;;  %v8365_v23 = vunpack.c.0.s8 %v8364_v21 }
 0x4f6   :  { %11499 = vrsqrt.f32 %v8349_v10  ;;  %v8350_v17 = vadd.f32 1e-05, %v8345_v13  ;;  %v15007_v25 = vshrl.u32 %v8366_v22, 7 }
 0x4f7   :  { %11501 = vrsqrt.f32 %v8351_v16  ;;  %v8352_v18 = vadd.f32 1e-05, %v8347_v19 }
 0x4f8   :  { %11503 = vrsqrt.f32 %v8350_v17  ;;  %v8368_v29 = vsub.s32 %v8365_v23, %v15007_v25  ;;  %v8391_v43 = vsub.s32 0, %v15007_v25  ;;  %v8395_v46 = vsub.s32 1, %v15007_v25 }
 0x4f9   :  { %11505 = vrsqrt.f32 %v8352_v18  ;;  %v8399_v47 = vsub.s32 2, %v15007_v25  ;;  %v8403_v51 = vsub.s32 3, %v15007_v25 }
 0x500   :  { %v11500_v27 = vpop.eup %11499 }
 0x501   :  { %v11502_v28 = vpop.eup %11501 }
 0x502   :  { %v11504_v32 = vpop.eup %11503 }
 0x503   :  { %v11506_v34 = vpop.eup %11505  ;;  %v8361_v36 = vcombine.low %v11500_v27, %v11504_v32  ;;  %v8544_v27 = vld [vmem:[%s15123_s4] sm:$0xff] }
 0x504   :  { %v8362_v33 = vcombine.low %v11502_v28, %v11506_v34  ;;  %v8545_v28 = vld [vmem:[%s15123_s4 + $0x8] sm:$0xff]  ;;  %v8546_v34 = vld [vmem:[%s15123_s4 + $0x10] sm:$0xff] }
 0x505   :  { %v8369_v38 = vrot.slane %v8361_v36, %v8368_v29 }
 0x506   :  { %v8376_v39 = vrot.slane %v8362_v33, %v8368_v29 }
 0x508   :  { %v8377_v40 = vcombine.low %v8369_v38, %v8376_v39 }
 0x50a   :  { %v8384_v45 = vrot.slane %v8377_v40, %v8368_v29 }
 0x50c   :  { %v8386_v52 = vmul.f32 %v8384_v45, %v8348_v42 }
 0x50e   :  { %v8392_v49 = vrot.slane %v8386_v52, %v8391_v43  ;;  %v8396_v53 = vrot.slane %v8386_v52, %v8395_v46  ;;  %v8400_v54 = vrot.slane %v8386_v52, %v8399_v47  ;;  %v8404_v55 = vrot.slane %v8386_v52, %v8403_v51 }
 0x510   :  { %v8409_v56 = vmul.f32 %v8392_v49, %v8280_v48  ;;  %v8410_v59 = vmul.f32 %v8396_v53, %v8281_v60  ;;  %v8411_v57 = vmul.f32 %v8400_v54, %v8282_v50  ;;  %v8412_v58 = vmul.f32 %v8404_v55, %v8283_v62 }
 0x511   :  { %v8458_v61 = vmul.f32 %v8404_v55, %v14995_v41  ;;  %v8451_v63 = vmul.f32 %v8392_v49, %v14966_v24  ;;  %v8452_v4 = vmul.f32 %v8396_v53, %v14976_v30  ;;  %v8453_v1 = vmul.f32 %v8400_v54, %v14968_v26 }
 0x512   :  { %v8417_v6 = vcombine.low %v8409_v56, %v8410_v59  ;;  %v8418_v7 = vcombine.low %v8411_v57, %v8412_v58  ;;  %v8454_v12 = vmul.f32 %v8404_v55, %v14978_v31  ;;  %v8443_v9 = vmul.f32 %v8392_v49, %v14926_v0 }
 0x513   :  { %v8444_v10 = vmul.f32 %v8396_v53, %v14930_v2  ;;  %v8445_v48 = vmul.f32 %v8400_v54, %v14928_v3  ;;  %v8446_v50 = vmul.f32 %v8404_v55, %v14932_v5  ;;  %v8455_v41 = vmul.f32 %v8392_v49, %v14986_v35  ;;  %v8387_v5 = vld [vmem:[%s15122_s3] sm:$0xf] }
 0x514   :  { %v8425_v60 = vrot.slane %v8417_v6, %v8368_v29  ;;  %v8432_v24 = vrot.slane %v8418_v7, %v8368_v29  ;;  %v8456_v30 = vmul.f32 %v8396_v53, %v14993_v44  ;;  %v8457_v26 = vmul.f32 %v8400_v54, %v14988_v37 }
 0x515   :  { %v15030_v62 = vmul.f32 %v8392_v49, %v14942_v8  ;;  %v15033_v31 = vmul.f32 %v8396_v53, %v14954_v14  ;;  %v15036_v0 = vmul.f32 %v8400_v54, %v14944_v11  ;;  %v15039_v3 = vmul.f32 %v8404_v55, %v14956_v15 }
 0x516   :  { %v8433_v2 = vcombine.low %v8425_v60, %v8432_v24 }
 0x518   :  { %v8440_v35 = vrot.slane %v8433_v2, %v8368_v29 }
 0x51a   :  { %v8442_v44 = vsub.f32 %v8387_v5, %v8440_v35 }
 0x51c   :  { %v15044_v37 = vrot.slane %v8442_v44, %v8403_v51  ;;  %v15046_v8 = vrot.slane %v8442_v44, %v8391_v43  ;;  %v15048_v13 = vrot.slane %v8442_v44, %v8395_v46  ;;  %v15050_v14 = vrot.slane %v8442_v44, %v8399_v47  ;;  %v8547_v47 = vld [vmem:[%s15123_s4 + $0x18] sm:$0xff] }
 0x51e   :  { %v15053_v11 = vadd.f32 %v15044_v37, %v8458_v61  ;;  %v8488_v15 = vadd.f32 %v15046_v8, %v8451_v63  ;;  %v8489_v16 = vadd.f32 %v15048_v13, %v8452_v4  ;;  %v8490_v19 = vadd.f32 %v15050_v14, %v8453_v1 }
 0x51f   :  { %v8491_v17 = vadd.f32 %v15044_v37, %v8454_v12  ;;  %v8480_v18 = vadd.f32 %v15046_v8, %v8443_v9  ;;  %v8481_v20 = vadd.f32 %v15048_v13, %v8444_v10  ;;  %v8482_v21 = vadd.f32 %v15050_v14, %v8445_v48  ;;  %v8548_v48 = vld [vmem:[%s15123_s4 + $0x20] sm:$0xff] }
 0x520   :  { %v15063_v23 = vmul.f32 0.2, %v15053_v11  ;;  %vm8504_vm0 = vcmp.ge.f32.partialorder %v8488_v15, 0.0  ;;  %vm8505_vm1 = vcmp.ge.f32.partialorder %v8489_v16, 0.0  ;;  %vm8506_vm2 = vcmp.ge.f32.partialorder %v8490_v19, 0.0 }
 0x521   :  { %v8520_v29 = vmul.f32 0.2, %v8488_v15  ;;  %v8521_v32 = vmul.f32 0.2, %v8489_v16  ;;  %v8483_v36 = vadd.f32 %v15044_v37, %v8446_v50  ;;  %vm8507_vm3 = vcmp.ge.f32.partialorder %v8491_v17, 0.0  ;;  %v8549_v50 = vld [vmem:[%s15123_s4 + $0x28] sm:$0xff] }
 0x522   :  { %v8522_v33 = vmul.f32 0.2, %v8490_v19  ;;  %v8523_v38 = vmul.f32 0.2, %v8491_v17  ;;  %vm8496_vm4 = vcmp.ge.f32.partialorder %v8480_v18, 0.0  ;;  %vm8497_vm5 = vcmp.ge.f32.partialorder %v8481_v20, 0.0 }
 0x523   :  { %v8536_v39 = vsel %vm8504_vm0, %v8488_v15, %v8520_v29  ;;  %v8537_v40 = vsel %vm8505_vm1, %v8489_v16, %v8521_v32  ;;  %vm8498_vm6 = vcmp.ge.f32.partialorder %v8482_v21, 0.0  ;;  %vm8499_vm7 = vcmp.ge.f32.partialorder %v8483_v36, 0.0 }
 0x524   :  { %v8538_v42 = vsel %vm8506_vm2, %v8490_v19, %v8522_v33  ;;  %v8560_v43 = vmul.f32 %v8544_v27, %v8536_v39  ;;  %v8561_v45 = vmul.f32 %v8545_v28, %v8537_v40  ;;  %v8539_v46 = vsel %vm8507_vm3, %v8491_v17, %v8523_v38 }
 0x525   :  { %v8562_v51 = vmul.f32 %v8546_v34, %v8538_v42  ;;  %v8512_v52 = vmul.f32 0.2, %v8480_v18  ;;  %v8513_v49 = vmul.f32 0.2, %v8481_v20  ;;  %v8514_v54 = vmul.f32 0.2, %v8482_v21 }
 0x526   :  { %v8578_v53 = vadd.f32 %v8561_v45, %v8560_v43  ;;  %v8515_v55 = vmul.f32 0.2, %v8483_v36  ;;  %v8492_v56 = vadd.f32 %v15046_v8, %v8455_v41  ;;  %v8493_v58 = vadd.f32 %v15048_v13, %v8456_v30  ;;  %v8550_v41 = vld [vmem:[%s15123_s4 + $0x30] sm:$0xff] }
 0x527   :  { %v8528_v59 = vsel %vm8496_vm4, %v8480_v18, %v8512_v52  ;;  %v8529_v57 = vsel %vm8497_vm5, %v8481_v20, %v8513_v49  ;;  %v8494_v61 = vadd.f32 %v15050_v14, %v8457_v26  ;;  %v8563_v63 = vmul.f32 %v8547_v47, %v8539_v46 }
 0x528   :  { %v8579_v4 = vadd.f32 %v8578_v53, %v8562_v51  ;;  %v8530_v1 = vsel %vm8498_vm6, %v8482_v21, %v8514_v54  ;;  %v8552_v6 = vmul.f32 %v8544_v27, %v8528_v59  ;;  %v8531_v7 = vsel %vm8499_vm7, %v8483_v36, %v8515_v55 }
 0x529   :  { %v8553_v12 = vmul.f32 %v8545_v28, %v8529_v57  ;;  %v8554_v9 = vmul.f32 %v8546_v34, %v8530_v1  ;;  %vm8508_vm8 = vcmp.ge.f32.partialorder %v8492_v56, 0.0  ;;  %vm8509_vm9 = vcmp.ge.f32.partialorder %v8493_v58, 0.0 }
 0x52a   :  { %v8580_v10 = vadd.f32 %v8579_v4, %v8563_v63  ;;  %vm8510_vm10 = vcmp.ge.f32.partialorder %v8494_v61, 0.0  ;;  %vm8511_vm11 = vcmp.ge.f32.partialorder %v15053_v11, 0.0  ;;  %v8524_v24 = vmul.f32 0.2, %v8492_v56 }
 0x52b   :  { %v8568_v60 = vadd.f32 %v8553_v12, %v8552_v6  ;;  %v8525_v30 = vmul.f32 0.2, %v8493_v58  ;;  %v8526_v26 = vmul.f32 0.2, %v8494_v61  ;;  %v8555_v2 = vmul.f32 %v8547_v47, %v8531_v7 }
 0x52c   :  { %8581 = vadd.xlane.f32.xlu1 %v8580_v10  ;;  %v8484_v5 = vadd.f32 %v15046_v8, %v15030_v62  ;;  %v8485_v35 = vadd.f32 %v15048_v13, %v15033_v31  ;;  %v8486_v44 = vadd.f32 %v15050_v14, %v15036_v0  ;;  %v8540_v16 = vsel %vm8508_vm8, %v8492_v56, %v8524_v24  ;;  %v8551_v31 = vld [vmem:[%s15123_s4 + $0x38] sm:$0xff] }
 0x52d   :  { %v8569_v15 = vadd.f32 %v8568_v60, %v8554_v9  ;;  %v8541_v19 = vsel %vm8509_vm9, %v8493_v58, %v8525_v30  ;;  %v8542_v17 = vsel %vm8510_vm10, %v8494_v61, %v8526_v26  ;;  %v8543_v18 = vsel %vm8511_vm11, %v15053_v11, %v15063_v23 }
 0x52e   :  { %v8564_v20 = vmul.f32 %v8548_v48, %v8540_v16  ;;  %v8565_v62 = vmul.f32 %v8549_v50, %v8541_v19  ;;  %v8566_v8 = vmul.f32 %v8550_v41, %v8542_v17  ;;  %v8487_v0 = vadd.f32 %v15044_v37, %v15039_v3 }
 0x52f   :  { %v8570_v21 = vadd.f32 %v8569_v15, %v8555_v2  ;;  %vm8500_vm12 = vcmp.ge.f32.partialorder %v8484_v5, 0.0  ;;  %vm8501_vm13 = vcmp.ge.f32.partialorder %v8485_v35, 0.0  ;;  %vm8502_vm14 = vcmp.ge.f32.partialorder %v8486_v44, 0.0 }
 0x530   :  { %v8583_v13 = vadd.f32 %v8565_v62, %v8564_v20  ;;  %v8516_v14 = vmul.f32 0.2, %v8484_v5  ;;  %v8517_v27 = vmul.f32 0.2, %v8485_v35  ;;  %vm8503_vm15 = vcmp.ge.f32.partialorder %v8487_v0, 0.0 }
 0x531   :  { %8571 = vadd.xlane.f32.xlu0 %v8570_v21  ;;  %v8518_v11 = vmul.f32 0.2, %v8486_v44  ;;  %v8519_v23 = vmul.f32 0.2, %v8487_v0  ;;  %v8567_v28 = vmul.f32 %v8551_v31, %v8543_v18  ;;  %v8593_v46 = vand.u32 127, %v8366_v22 }
 0x532   :  { %v8584_v29 = vadd.f32 %v8583_v13, %v8566_v8  ;;  %v8532_v32 = vsel %vm8500_vm12, %v8484_v5, %v8516_v14  ;;  %v8533_v34 = vsel %vm8501_vm13, %v8485_v35, %v8517_v27  ;;  %vm8603_vm0 = vcmask 130112  }
 0x533   :  { %v8534_v36 = vsel %vm8502_vm14, %v8486_v44, %v8518_v11  ;;  %v8556_v33 = vmul.f32 %v8548_v48, %v8532_v32  ;;  %v8557_v38 = vmul.f32 %v8549_v50, %v8533_v34  ;;  %v8535_v40 = vsel %vm8503_vm15, %v8487_v0, %v8519_v23 }
 0x534   :  { %v8585_v39 = vadd.f32 %v8584_v29, %v8567_v28  ;;  %v8558_v3 = vmul.f32 %v8550_v41, %v8534_v36  ;;  %v8559_v42 = vmul.f32 %v8551_v31, %v8535_v40  ;;  %v8598_v51 = vadd.s32 4294967288, %v8593_v46 }
 0x535   :  { %v8573_v37 = vadd.f32 %v8557_v38, %v8556_v33  ;;  %v8596_v53 = vsub.s32 %v8593_v46, %v15007_v25  ;;  %vm8614_vm1 = vcmask 1041409   ;;  %vm8617_vm2 = vcmask 123904  }
 0x536   :  { %8586 = vadd.xlane.f32.xlu1 %v8585_v39  ;;  %v8601_v52 = vsub.s32 %v8598_v51, %v15007_v25  ;;  %vm8627_vm3 = vcmask 1024  }
 0x537   :  { %v8574_v43 = vadd.f32 %v8573_v37, %v8558_v3 }
 0x539   :  { %v8575_v45 = vadd.f32 %v8574_v43, %v8559_v42 }
 0x53b   :  { %8576 = vadd.xlane.f32.xlu0 %v8575_v45 }
 0x5b9   :  { %v8582_v47 = vpop.xlane.xlu1 %8581 }
 0x5ba   :  { %v8608_v56 = vrot.slane %v8582_v47, %v8596_v53 }
 0x5be   :  { %v8572_v49 = vpop.xlane.xlu0 %8571 }
 0x5bf   :  { %v8597_v57 = vrot.slane %v8572_v49, %v8596_v53 }
 0x5c3   :  { %v8587_v54 = vpop.xlane.xlu1 %8586 }
 0x5c4   :  { %v8612_v55 = vrot.slane %v8587_v54, %v8601_v52 }
 0x5c6   :  { %v8613_v61 = vsel %vm8603_vm0, %v8612_v55, %v8608_v56 }
 0x5c8   :  { %v8577_v59 = vpop.xlane.xlu0 %8576 }
 0x5c9   :  { %v8602_v58 = vrot.slane %v8577_v59, %v8601_v52 }
 0x5cb   :  { %v8604_v63 = vsel %vm8603_vm0, %v8602_v58, %v8597_v57 }
 0x5cc   :  { %v8615_v4 = vsel %vm8614_vm1, %v8613_v61, %v8604_v63 }
 0x5cd   :  { %v8618_v22 = vsel %vm8617_vm2, %v8615_v4, 0.0 }
 0x5ce   :  { %8619 = vadd.xlane.f32.xlu0 %v8618_v22 }
 0x65b   :  { %v8620_v1 = vpop.xlane.xlu0 %8619 }
 0x65c   :  { %v9721_v6 = vmul.f32 -1.442695, %v8620_v1 }
 0x65e   :  { %11507 = vpow2.f32 %v9721_v6 }
 0x668   :  { %v11508_v7 = vpop.eup %11507 }
 0x669   :  { %v8624_v12 = vadd.f32 1.0, %v11508_v7 }
 0x66b   :  { %11509 = vrcp.f32 %v8624_v12 }
 0x675   :  { %v11510_v25 = vpop.eup %11509 }
 0x676   :  { %8628 = vst.msk [vmem:[%s15124_s5] sm:$0x3] %vm8627_vm3, %v11510_v25 }

</bundles_post_ra>
